<compile_context>
chip_gen: v6e
topology: v6e:2x2x1
jax: 0.10.0
libtpu: 0.0.40
codegen_flags: <defaults>
</compile_context>

<pallas_src>
import math
from functools import partial

import numpy as np
import jax
import jax.numpy as jnp
from jax import lax
from jax.experimental import pallas as pl
from jax.experimental.pallas import tpu as pltpu


# --------------------------- tap-selection matrices -------------------------

def _build_tap_select(H, W, kh, kw, stride, pad):
    """Per-image 0/1 gather matrices S: (kh*kw, Ho*Wo, H*W).
    S[t, yo*Wo+xo, yi*W+xi] = 1 where (yi, xi) is the in-bounds input pixel of
    tap t=(ky,kx) for output pixel (yo, xo); zero rows encode zero padding."""
    Ho = (H + 2 * pad - kh) // stride + 1
    Wo = (W + 2 * pad - kw) // stride + 1
    S = np.zeros((kh * kw, Ho * Wo, H * W), np.float32)
    for ky in range(kh):
        for kx in range(kw):
            t = ky * kw + kx
            for yo in range(Ho):
                yi = yo * stride - pad + ky
                if yi < 0 or yi >= H:
                    continue
                for xo in range(Wo):
                    xi = xo * stride - pad + kx
                    if xi < 0 or xi >= W:
                        continue
                    S[t, yo * Wo + xo, yi * W + xi] = 1.0
    return jnp.asarray(S), (Ho, Wo)


# ------------------------------ the fused kernel ----------------------------

def _network_kernel(cfg, *refs):
    f32 = jnp.float32
    out_ref = refs[-1]
    it = iter(refs[:-1])
    nxt = lambda: next(it)

    def conv_taps(x, s_ref, w_ref, sh_ref, relu, residual=None):
        """out = sum_t (S_t @ x) @ W_t + shift (+res) (ReLU).  All 2-D matmuls."""
        taps = s_ref.shape[0]
        mo = s_ref.shape[1]
        cout = w_ref.shape[2]

        def tap(t, acc):
            g = jnp.dot(s_ref[t], x, preferred_element_type=f32)
            return acc + jnp.dot(g, w_ref[t], preferred_element_type=f32)

        acc = jnp.zeros((mo, cout), f32)
        if taps == 1:
            acc = tap(0, acc)
        else:
            acc = lax.fori_loop(0, taps, tap, acc)
        acc = acc + sh_ref[...]
        if residual is not None:
            acc = acc + residual
        if relu:
            acc = jnp.maximum(acc, 0.0)
        return acc

    # ----- stem: conv1 (pre-im2col'd patches) + folded BN + ReLU -----
    patches = nxt()[0]                       # (Ho*Wo, 7*7*Cin) for this image
    c1_w = nxt()                             # (7*7*Cin, C1), BN scale folded in
    c1_sh = nxt()                            # (1, C1)
    x = jnp.dot(patches, c1_w[...], preferred_element_type=f32) + c1_sh[...]
    x = jnp.maximum(x, 0.0)                  # (16*16, C1)

    # ----- maxpool 3x3 / s2 / p1 as max over 9 tap gathers -----
    s_pool = nxt()                           # (9, Mo, Mi)

    def pool_tap(t, acc):
        return jnp.maximum(acc, jnp.dot(s_pool[t], x, preferred_element_type=f32))

    # zero init is safe: the pooled input is post-ReLU (>= 0).
    x = lax.fori_loop(0, s_pool.shape[0], pool_tap,
                      jnp.zeros((s_pool.shape[1], x.shape[1]), f32))

    # ----- residual stages (layer1 .. layer4) -----
    for has_ds in cfg["has_ds"]:
        if has_ds:
            s_c1, s_s1, s_ds = nxt(), nxt(), nxt()
        else:
            s_s1 = nxt()
            s_c1, s_ds = s_s1, None
        # block 0 (possibly strided; 1x1 downsample conv on the identity)
        w1b, sh1b, w2b, sh2b = nxt(), nxt(), nxt(), nxt()
        if has_ds:
            wd, shd = nxt(), nxt()
            identity = conv_taps(x, s_ds, wd, shd, relu=False)
        else:
            identity = x
        h = conv_taps(x, s_c1, w1b, sh1b, relu=True)
        x = conv_taps(h, s_s1, w2b, sh2b, relu=True, residual=identity)
        # block 1 (stride 1, no downsample)
        w1b, sh1b, w2b, sh2b = nxt(), nxt(), nxt(), nxt()
        identity = x
        h = conv_taps(x, s_s1, w1b, sh1b, relu=True)
        x = conv_taps(h, s_s1, w2b, sh2b, relu=True, residual=identity)

    # ----- flatten: spatial is 1x1 here, so x is already (1, C) -----
    # ----- polynomial head: su = sum_e x**e @ W_e (+1 per const term) + b ----
    for _ in range(cfg["n_poly"]):
        wp, bp = nxt(), nxt()
        acc = jnp.zeros((x.shape[0], wp.shape[2]), f32)
        for i, e in enumerate(cfg["poly_exps"]):
            acc = acc + jnp.dot(x ** e, wp[i], preferred_element_type=f32)
        acc = acc + float(cfg["poly_const"]) + bp[...]
        x = acc

    out_ref[0] = x.astype(out_ref.dtype)     # (1, out_features)


# --------------------------- parameter construction ------------------------

def parse_expression(expr):
    """Minimal stand-in for the sympy Poly parsing (descending exponents).
    The reference forward ignores the coefficients, so only exponents matter."""
    expr = expr.replace("@", "*").replace(" ", "")
    exps = []
    for term in expr.split("+"):
        if "x**" in term:
            exps.append(int(term.split("x**")[1]))
        elif "x" in term:
            exps.append(1)
        else:
            exps.append(0)
    exps.sort(reverse=True)
    return exps


def _bn_affine(c):
    eps = 1e-5
    gamma = np.ones((c,), np.float32)
    beta = np.zeros((c,), np.float32)
    mean = np.zeros((c,), np.float32)
    var = np.ones((c,), np.float32)
    scale = gamma / np.sqrt(var + eps)
    shift = beta - mean * scale
    return jnp.asarray(scale), jnp.asarray(shift)


def _conv_w(key, cout, cin, kh, kw):
    fan_in = cin * kh * kw
    bound = 1.0 / math.sqrt(fan_in)            # kaiming_uniform(a=sqrt(5))
    return jax.random.uniform(key, (cout, cin, kh, kw), jnp.float32, -bound, bound)


def _fold_taps(w, scale):
    """torch (Cout,Cin,kh,kw) -> (kh*kw, Cin, Cout) with BN scale folded in."""
    cout, cin, kh, kw = w.shape
    wt = jnp.transpose(w, (2, 3, 1, 0)).reshape(kh * kw, cin, cout)
    return wt * scale.reshape(1, 1, cout)


def init_model(key, *, batch=2, in_ch=3, hw=32, base=8, out_features=10,
               symbolic_expression="x**2 + x + 1"):
    keys = iter(jax.random.split(key, 64))
    consts = []

    # stem: 7x7/s2/p3 conv + BN (folded) + ReLU
    c1_w = _conv_w(next(keys), base, in_ch, 7, 7)
    c1_scale, c1_shift = _bn_affine(base)
    c1_w2d = (jnp.transpose(c1_w, (2, 3, 1, 0)).reshape(7 * 7 * in_ch, base)
              * c1_scale[None, :])
    consts += [c1_w2d, c1_shift.reshape(1, base)]
    h1 = (hw + 2 * 3 - 7) // 2 + 1                       # conv1 output spatial

    s_pool, (hp, _) = _build_tap_select(h1, h1, 3, 3, 2, 1)
    consts.append(s_pool)

    has_ds = (False, True, True, True)
    strides = (1, 2, 2, 2)
    chans = (base, base * 2, base * 4, base * 8)
    cin, h = base, hp
    for si in range(4):
        cout, s = chans[si], strides[si]
        if has_ds[si]:
            s_c1, (ho, _) = _build_tap_select(h, h, 3, 3, s, 1)
            s_s1, _ = _build_tap_select(ho, ho, 3, 3, 1, 1)
            s_ds, _ = _build_tap_select(h, h, 1, 1, s, 0)
            consts += [s_c1, s_s1, s_ds]
        else:
            s_s1, (ho, _) = _build_tap_select(h, h, 3, 3, 1, 1)
            consts.append(s_s1)
        # block 0
        w = _conv_w(next(keys), cout, cin, 3, 3); sc, sh = _bn_affine(cout)
        consts += [_fold_taps(w, sc), sh.reshape(1, cout)]
        w = _conv_w(next(keys), cout, cout, 3, 3); sc, sh = _bn_affine(cout)
        consts += [_fold_taps(w, sc), sh.reshape(1, cout)]
        if has_ds[si]:
            w = _conv_w(next(keys), cout, cin, 1, 1); sc, sh = _bn_affine(cout)
            consts += [_fold_taps(w, sc), sh.reshape(1, cout)]
        # block 1
        w = _conv_w(next(keys), cout, cout, 3, 3); sc, sh = _bn_affine(cout)
        consts += [_fold_taps(w, sc), sh.reshape(1, cout)]
        w = _conv_w(next(keys), cout, cout, 3, 3); sc, sh = _bn_affine(cout)
        consts += [_fold_taps(w, sc), sh.reshape(1, cout)]
        cin, h = cout, ho

    # polynomial head (exponent-0 terms contribute ones in the forward)
    exps = parse_expression(symbolic_expression)
    nz = tuple(e for e in exps if e > 0)
    n_const = sum(1 for e in exps if e == 0)
    in_features = chans[-1] * h * h
    dims = [(in_features, 512), (512, 512), (512, out_features)]
    for (fi, fo) in dims:
        bound = 1.0 / math.sqrt(fi)
        kk = next(keys)
        ws = [jnp.transpose(jax.random.uniform(jax.random.fold_in(kk, i),
                                               (fo, fi), jnp.float32,
                                               -bound, bound))
              for i in range(len(nz))]
        b = jax.random.uniform(jax.random.fold_in(kk, 1000), (fo,),
                               jnp.float32, -bound, bound)
        consts += [jnp.stack(ws, axis=0), b.reshape(1, fo)]

    cfg = dict(batch=batch, in_ch=in_ch, hw=hw, out_features=out_features,
               has_ds=has_ds, poly_exps=nz, poly_const=n_const,
               n_poly=len(dims), patch_rows=h1 * h1, patch_k=7 * 7 * in_ch)
    return cfg, consts


# ------------------------------ forward wrapper -----------------------------

def _im2col(x, kh, kw, stride, pad):
    """x: NHWC -> patches (N*Ho*Wo, kh*kw*C); only used once, for the network
    input feeding conv1 (no per-layer im2col)."""
    N, H, W, C = x.shape
    xp = jnp.pad(x, ((0, 0), (pad, pad), (pad, pad), (0, 0)))
    Ho = (H + 2 * pad - kh) // stride + 1
    Wo = (W + 2 * pad - kw) // stride + 1
    cols = []
    for ky in range(kh):
        for kx in range(kw):
            cols.append(xp[:, ky:ky + stride * Ho:stride,
                           kx:kx + stride * Wo:stride, :])
    patches = jnp.stack(cols, axis=3).reshape(N * Ho * Wo, kh * kw * C)
    return patches, (Ho, Wo)


def build_forward(cfg, consts):
    batch = cfg["batch"]
    pr, pk = cfg["patch_rows"], cfg["patch_k"]
    out_features = cfg["out_features"]

    in_specs = [pl.BlockSpec((1, pr, pk), lambda i: (i, 0, 0))]
    for a in consts:
        in_specs.append(pl.BlockSpec(a.shape, lambda i, _nd=a.ndim: (0,) * _nd))
    out_spec = pl.BlockSpec((1, 1, out_features), lambda i: (i, 0, 0))

    call = pl.pallas_call(
        partial(_network_kernel, cfg),
        out_shape=jax.ShapeDtypeStruct((batch, 1, out_features), jnp.float32),
        grid=(batch,),
        in_specs=in_specs,
        out_specs=out_spec,
        compiler_params=pltpu.CompilerParams(
            dimension_semantics=("parallel",),        # v7x: one image per TC
            vmem_limit_bytes=48 * 1024 * 1024,
        ),
    )

    @jax.jit
    def forward(x_nchw, *consts_rt):
        x = jnp.transpose(x_nchw, (0, 2, 3, 1)).astype(jnp.float32)   # NHWC
        patches, _ = _im2col(x, 7, 7, 2, 3)
        patches = patches.reshape(batch, pr, pk)
        out = call(patches, *consts_rt)                               # (B,1,O)
        return out.reshape(batch, out_features)

    return forward


# ----------------------------------- main -----------------------------------

if __name__ == "__main__":
    key = jax.random.PRNGKey(0)
    k_x, k_m = jax.random.split(key)

    batch, in_ch, hw = 2, 3, 32
    x = jax.random.normal(k_x, (batch, in_ch, hw, hw), jnp.float32)

    cfg, consts = init_model(k_m, batch=batch, in_ch=in_ch, hw=hw, base=8,
                             out_features=10,
                             symbolic_expression="x**2 + x + 1")
    forward = build_forward(cfg, consts)

    out = jax.block_until_ready(forward(x, *consts))
    assert out.shape == (batch, 10), out.shape
    assert bool(jnp.all(jnp.isfinite(out)))
    print("KERNEL_OK")
</pallas_src>

<mosaic_0001>
module attributes {stable_mosaic.version = 11 : i64} {
  func.func @_network_kernel(%arg0: i32, %arg1: memref<1x256x147xf32, #tpu.memory_space<vmem>>, %arg2: memref<147x8xf32, #tpu.memory_space<vmem>>, %arg3: memref<1x8xf32, #tpu.memory_space<vmem>>, %arg4: memref<9x64x256xf32, #tpu.memory_space<vmem>>, %arg5: memref<9x64x64xf32, #tpu.memory_space<vmem>>, %arg6: memref<9x8x8xf32, #tpu.memory_space<vmem>>, %arg7: memref<1x8xf32, #tpu.memory_space<vmem>>, %arg8: memref<9x8x8xf32, #tpu.memory_space<vmem>>, %arg9: memref<1x8xf32, #tpu.memory_space<vmem>>, %arg10: memref<9x8x8xf32, #tpu.memory_space<vmem>>, %arg11: memref<1x8xf32, #tpu.memory_space<vmem>>, %arg12: memref<9x8x8xf32, #tpu.memory_space<vmem>>, %arg13: memref<1x8xf32, #tpu.memory_space<vmem>>, %arg14: memref<9x16x64xf32, #tpu.memory_space<vmem>>, %arg15: memref<9x16x16xf32, #tpu.memory_space<vmem>>, %arg16: memref<1x16x64xf32, #tpu.memory_space<vmem>>, %arg17: memref<9x8x16xf32, #tpu.memory_space<vmem>>, %arg18: memref<1x16xf32, #tpu.memory_space<vmem>>, %arg19: memref<9x16x16xf32, #tpu.memory_space<vmem>>, %arg20: memref<1x16xf32, #tpu.memory_space<vmem>>, %arg21: memref<1x8x16xf32, #tpu.memory_space<vmem>>, %arg22: memref<1x16xf32, #tpu.memory_space<vmem>>, %arg23: memref<9x16x16xf32, #tpu.memory_space<vmem>>, %arg24: memref<1x16xf32, #tpu.memory_space<vmem>>, %arg25: memref<9x16x16xf32, #tpu.memory_space<vmem>>, %arg26: memref<1x16xf32, #tpu.memory_space<vmem>>, %arg27: memref<9x4x16xf32, #tpu.memory_space<vmem>>, %arg28: memref<9x4x4xf32, #tpu.memory_space<vmem>>, %arg29: memref<1x4x16xf32, #tpu.memory_space<vmem>>, %arg30: memref<9x16x32xf32, #tpu.memory_space<vmem>>, %arg31: memref<1x32xf32, #tpu.memory_space<vmem>>, %arg32: memref<9x32x32xf32, #tpu.memory_space<vmem>>, %arg33: memref<1x32xf32, #tpu.memory_space<vmem>>, %arg34: memref<1x16x32xf32, #tpu.memory_space<vmem>>, %arg35: memref<1x32xf32, #tpu.memory_space<vmem>>, %arg36: memref<9x32x32xf32, #tpu.memory_space<vmem>>, %arg37: memref<1x32xf32, #tpu.memory_space<vmem>>, %arg38: memref<9x32x32xf32, #tpu.memory_space<vmem>>, %arg39: memref<1x32xf32, #tpu.memory_space<vmem>>, %arg40: memref<9x1x4xf32, #tpu.memory_space<vmem>>, %arg41: memref<9x1x1xf32, #tpu.memory_space<vmem>>, %arg42: memref<1x1x4xf32, #tpu.memory_space<vmem>>, %arg43: memref<9x32x64xf32, #tpu.memory_space<vmem>>, %arg44: memref<1x64xf32, #tpu.memory_space<vmem>>, %arg45: memref<9x64x64xf32, #tpu.memory_space<vmem>>, %arg46: memref<1x64xf32, #tpu.memory_space<vmem>>, %arg47: memref<1x32x64xf32, #tpu.memory_space<vmem>>, %arg48: memref<1x64xf32, #tpu.memory_space<vmem>>, %arg49: memref<9x64x64xf32, #tpu.memory_space<vmem>>, %arg50: memref<1x64xf32, #tpu.memory_space<vmem>>, %arg51: memref<9x64x64xf32, #tpu.memory_space<vmem>>, %arg52: memref<1x64xf32, #tpu.memory_space<vmem>>, %arg53: memref<2x64x512xf32, #tpu.memory_space<vmem>>, %arg54: memref<1x512xf32, #tpu.memory_space<vmem>>, %arg55: memref<2x512x512xf32, #tpu.memory_space<vmem>>, %arg56: memref<1x512xf32, #tpu.memory_space<vmem>>, %arg57: memref<2x512x10xf32, #tpu.memory_space<vmem>>, %arg58: memref<1x10xf32, #tpu.memory_space<vmem>>, %arg59: memref<1x1x10xf32, #tpu.memory_space<vmem>>) attributes {dimension_semantics = [#tpu.dimension_semantics<parallel>], iteration_bounds = array<i64: 2>, scalar_prefetch = 0 : i64, scratch_operands = 0 : i64, tpu.core_type = #tpu.core_type<tc>, window_params = [{transform_indices = @transform_0, window_bounds = array<i64: 1, 256, 147>}, {pipeline_mode = #tpu.pipeline_mode<synchronous>, transform_indices = @transform_1, window_bounds = array<i64: 147, 8>}, {pipeline_mode = #tpu.pipeline_mode<synchronous>, transform_indices = @transform_2, window_bounds = array<i64: 1, 8>}, {pipeline_mode = #tpu.pipeline_mode<synchronous>, transform_indices = @transform_3, window_bounds = array<i64: 9, 64, 256>}, {pipeline_mode = #tpu.pipeline_mode<synchronous>, transform_indices = @transform_4, window_bounds = array<i64: 9, 64, 64>}, {pipeline_mode = #tpu.pipeline_mode<synchronous>, transform_indices = @transform_5, window_bounds = array<i64: 9, 8, 8>}, {pipeline_mode = #tpu.pipeline_mode<synchronous>, transform_indices = @transform_6, window_bounds = array<i64: 1, 8>}, {pipeline_mode = #tpu.pipeline_mode<synchronous>, transform_indices = @transform_7, window_bounds = array<i64: 9, 8, 8>}, {pipeline_mode = #tpu.pipeline_mode<synchronous>, transform_indices = @transform_8, window_bounds = array<i64: 1, 8>}, {pipeline_mode = #tpu.pipeline_mode<synchronous>, transform_indices = @transform_9, window_bounds = array<i64: 9, 8, 8>}, {pipeline_mode = #tpu.pipeline_mode<synchronous>, transform_indices = @transform_10, window_bounds = array<i64: 1, 8>}, {pipeline_mode = #tpu.pipeline_mode<synchronous>, transform_indices = @transform_11, window_bounds = array<i64: 9, 8, 8>}, {pipeline_mode = #tpu.pipeline_mode<synchronous>, transform_indices = @transform_12, window_bounds = array<i64: 1, 8>}, {pipeline_mode = #tpu.pipeline_mode<synchronous>, transform_indices = @transform_13, window_bounds = array<i64: 9, 16, 64>}, {pipeline_mode = #tpu.pipeline_mode<synchronous>, transform_indices = @transform_14, window_bounds = array<i64: 9, 16, 16>}, {pipeline_mode = #tpu.pipeline_mode<synchronous>, transform_indices = @transform_15, window_bounds = array<i64: 1, 16, 64>}, {pipeline_mode = #tpu.pipeline_mode<synchronous>, transform_indices = @transform_16, window_bounds = array<i64: 9, 8, 16>}, {pipeline_mode = #tpu.pipeline_mode<synchronous>, transform_indices = @transform_17, window_bounds = array<i64: 1, 16>}, {pipeline_mode = #tpu.pipeline_mode<synchronous>, transform_indices = @transform_18, window_bounds = array<i64: 9, 16, 16>}, {pipeline_mode = #tpu.pipeline_mode<synchronous>, transform_indices = @transform_19, window_bounds = array<i64: 1, 16>}, {pipeline_mode = #tpu.pipeline_mode<synchronous>, transform_indices = @transform_20, window_bounds = array<i64: 1, 8, 16>}, {pipeline_mode = #tpu.pipeline_mode<synchronous>, transform_indices = @transform_21, window_bounds = array<i64: 1, 16>}, {pipeline_mode = #tpu.pipeline_mode<synchronous>, transform_indices = @transform_22, window_bounds = array<i64: 9, 16, 16>}, {pipeline_mode = #tpu.pipeline_mode<synchronous>, transform_indices = @transform_23, window_bounds = array<i64: 1, 16>}, {pipeline_mode = #tpu.pipeline_mode<synchronous>, transform_indices = @transform_24, window_bounds = array<i64: 9, 16, 16>}, {pipeline_mode = #tpu.pipeline_mode<synchronous>, transform_indices = @transform_25, window_bounds = array<i64: 1, 16>}, {pipeline_mode = #tpu.pipeline_mode<synchronous>, transform_indices = @transform_26, window_bounds = array<i64: 9, 4, 16>}, {pipeline_mode = #tpu.pipeline_mode<synchronous>, transform_indices = @transform_27, window_bounds = array<i64: 9, 4, 4>}, {pipeline_mode = #tpu.pipeline_mode<synchronous>, transform_indices = @transform_28, window_bounds = array<i64: 1, 4, 16>}, {pipeline_mode = #tpu.pipeline_mode<synchronous>, transform_indices = @transform_29, window_bounds = array<i64: 9, 16, 32>}, {pipeline_mode = #tpu.pipeline_mode<synchronous>, transform_indices = @transform_30, window_bounds = array<i64: 1, 32>}, {pipeline_mode = #tpu.pipeline_mode<synchronous>, transform_indices = @transform_31, window_bounds = array<i64: 9, 32, 32>}, {pipeline_mode = #tpu.pipeline_mode<synchronous>, transform_indices = @transform_32, window_bounds = array<i64: 1, 32>}, {pipeline_mode = #tpu.pipeline_mode<synchronous>, transform_indices = @transform_33, window_bounds = array<i64: 1, 16, 32>}, {pipeline_mode = #tpu.pipeline_mode<synchronous>, transform_indices = @transform_34, window_bounds = array<i64: 1, 32>}, {pipeline_mode = #tpu.pipeline_mode<synchronous>, transform_indices = @transform_35, window_bounds = array<i64: 9, 32, 32>}, {pipeline_mode = #tpu.pipeline_mode<synchronous>, transform_indices = @transform_36, window_bounds = array<i64: 1, 32>}, {pipeline_mode = #tpu.pipeline_mode<synchronous>, transform_indices = @transform_37, window_bounds = array<i64: 9, 32, 32>}, {pipeline_mode = #tpu.pipeline_mode<synchronous>, transform_indices = @transform_38, window_bounds = array<i64: 1, 32>}, {pipeline_mode = #tpu.pipeline_mode<synchronous>, transform_indices = @transform_39, window_bounds = array<i64: 9, 1, 4>}, {pipeline_mode = #tpu.pipeline_mode<synchronous>, transform_indices = @transform_40, window_bounds = array<i64: 9, 1, 1>}, {pipeline_mode = #tpu.pipeline_mode<synchronous>, transform_indices = @transform_41, window_bounds = array<i64: 1, 1, 4>}, {pipeline_mode = #tpu.pipeline_mode<synchronous>, transform_indices = @transform_42, window_bounds = array<i64: 9, 32, 64>}, {pipeline_mode = #tpu.pipeline_mode<synchronous>, transform_indices = @transform_43, window_bounds = array<i64: 1, 64>}, {pipeline_mode = #tpu.pipeline_mode<synchronous>, transform_indices = @transform_44, window_bounds = array<i64: 9, 64, 64>}, {pipeline_mode = #tpu.pipeline_mode<synchronous>, transform_indices = @transform_45, window_bounds = array<i64: 1, 64>}, {pipeline_mode = #tpu.pipeline_mode<synchronous>, transform_indices = @transform_46, window_bounds = array<i64: 1, 32, 64>}, {pipeline_mode = #tpu.pipeline_mode<synchronous>, transform_indices = @transform_47, window_bounds = array<i64: 1, 64>}, {pipeline_mode = #tpu.pipeline_mode<synchronous>, transform_indices = @transform_48, window_bounds = array<i64: 9, 64, 64>}, {pipeline_mode = #tpu.pipeline_mode<synchronous>, transform_indices = @transform_49, window_bounds = array<i64: 1, 64>}, {pipeline_mode = #tpu.pipeline_mode<synchronous>, transform_indices = @transform_50, window_bounds = array<i64: 9, 64, 64>}, {pipeline_mode = #tpu.pipeline_mode<synchronous>, transform_indices = @transform_51, window_bounds = array<i64: 1, 64>}, {pipeline_mode = #tpu.pipeline_mode<synchronous>, transform_indices = @transform_52, window_bounds = array<i64: 2, 64, 512>}, {pipeline_mode = #tpu.pipeline_mode<synchronous>, transform_indices = @transform_53, window_bounds = array<i64: 1, 512>}, {pipeline_mode = #tpu.pipeline_mode<synchronous>, transform_indices = @transform_54, window_bounds = array<i64: 2, 512, 512>}, {pipeline_mode = #tpu.pipeline_mode<synchronous>, transform_indices = @transform_55, window_bounds = array<i64: 1, 512>}, {pipeline_mode = #tpu.pipeline_mode<synchronous>, transform_indices = @transform_56, window_bounds = array<i64: 2, 512, 10>}, {pipeline_mode = #tpu.pipeline_mode<synchronous>, transform_indices = @transform_57, window_bounds = array<i64: 1, 10>}, {transform_indices = @transform_58, window_bounds = array<i64: 1, 1, 10>}]} {
    %c0 = arith.constant 0 : index
    %c0_0 = arith.constant 0 : index
    %c0_1 = arith.constant 0 : index
    %0 = vector.load %arg1[%c0, %c0_0, %c0_1] : memref<1x256x147xf32, #tpu.memory_space<vmem>>, vector<1x256x147xf32>
    %1 = vector.shape_cast %0 : vector<1x256x147xf32> to vector<256x147xf32>
    %c0_2 = arith.constant 0 : index
    %c0_3 = arith.constant 0 : index
    %2 = vector.load %arg2[%c0_2, %c0_3] : memref<147x8xf32, #tpu.memory_space<vmem>>, vector<147x8xf32>
    %cst = arith.constant dense<0.000000e+00> : vector<256x8xf32>
    %3 = tpu.matmul %1, %2, %cst {dimension_numbers = #tpu.dot_dimension_numbers<[1], [0], [0], [1], [0, 0, 1, 1], [], []>} : vector<256x147xf32>, vector<147x8xf32>, vector<256x8xf32> -> vector<256x8xf32>
    %c0_4 = arith.constant 0 : index
    %c0_5 = arith.constant 0 : index
    %4 = vector.load %arg3[%c0_4, %c0_5] : memref<1x8xf32, #tpu.memory_space<vmem>>, vector<1x8xf32>
    %5 = vector.broadcast %4 : vector<1x8xf32> to vector<256x8xf32>
    %6 = arith.addf %3, %5 : vector<256x8xf32>
    %cst_6 = arith.constant 0.000000e+00 : f32
    %7 = vector.broadcast %cst_6 : f32 to vector<256x8xf32>
    %8 = arith.maximumf %6, %7 : vector<256x8xf32>
    %cst_7 = arith.constant 0.000000e+00 : f32
    %9 = vector.broadcast %cst_7 : f32 to vector<64x8xf32>
    %c0_i32 = arith.constant 0 : i32
    %c9_i32 = arith.constant 9 : i32
    %10 = arith.addi %c0_i32, %c9_i32 : i32
    %c1_i32 = arith.constant 1 : i32
    %11 = scf.for %arg60 = %c0_i32 to %10 step %c1_i32 iter_args(%arg61 = %9) -> (vector<64x8xf32>)  : i32 {
      %221 = arith.index_cast %arg60 : i32 to index
      %c0_208 = arith.constant 0 : index
      %c0_209 = arith.constant 0 : index
      %222 = vector.load %arg4[%221, %c0_208, %c0_209] : memref<9x64x256xf32, #tpu.memory_space<vmem>>, vector<1x64x256xf32>
      %223 = vector.shape_cast %222 : vector<1x64x256xf32> to vector<64x256xf32>
      %cst_210 = arith.constant dense<0.000000e+00> : vector<64x8xf32>
      %224 = tpu.matmul %223, %8, %cst_210 {dimension_numbers = #tpu.dot_dimension_numbers<[1], [0], [0], [1], [0, 0, 1, 1], [], []>} : vector<64x256xf32>, vector<256x8xf32>, vector<64x8xf32> -> vector<64x8xf32>
      %225 = arith.maximumf %arg61, %224 : vector<64x8xf32>
      scf.yield %225 : vector<64x8xf32>
    }
    %c9_i32_8 = arith.constant 9 : i32
    %cst_9 = arith.constant 0.000000e+00 : f32
    %12 = vector.broadcast %cst_9 : f32 to vector<64x8xf32>
    %c0_i32_10 = arith.constant 0 : i32
    %c9_i32_11 = arith.constant 9 : i32
    %13 = arith.addi %c0_i32_10, %c9_i32_11 : i32
    %c1_i32_12 = arith.constant 1 : i32
    %14 = scf.for %arg60 = %c0_i32_10 to %13 step %c1_i32_12 iter_args(%arg61 = %12) -> (vector<64x8xf32>)  : i32 {
      %221 = arith.index_cast %arg60 : i32 to index
      %c0_208 = arith.constant 0 : index
      %c0_209 = arith.constant 0 : index
      %222 = vector.load %arg5[%221, %c0_208, %c0_209] : memref<9x64x64xf32, #tpu.memory_space<vmem>>, vector<1x64x64xf32>
      %223 = vector.shape_cast %222 : vector<1x64x64xf32> to vector<64x64xf32>
      %cst_210 = arith.constant dense<0.000000e+00> : vector<64x8xf32>
      %224 = tpu.matmul %223, %11, %cst_210 {dimension_numbers = #tpu.dot_dimension_numbers<[1], [0], [0], [1], [0, 0, 1, 1], [], []>} : vector<64x64xf32>, vector<64x8xf32>, vector<64x8xf32> -> vector<64x8xf32>
      %225 = arith.index_cast %arg60 : i32 to index
      %c0_211 = arith.constant 0 : index
      %c0_212 = arith.constant 0 : index
      %226 = vector.load %arg6[%225, %c0_211, %c0_212] : memref<9x8x8xf32, #tpu.memory_space<vmem>>, vector<1x8x8xf32>
      %227 = vector.shape_cast %226 : vector<1x8x8xf32> to vector<8x8xf32>
      %cst_213 = arith.constant dense<0.000000e+00> : vector<64x8xf32>
      %228 = tpu.matmul %224, %227, %cst_213 {dimension_numbers = #tpu.dot_dimension_numbers<[1], [0], [0], [1], [0, 0, 1, 1], [], []>} : vector<64x8xf32>, vector<8x8xf32>, vector<64x8xf32> -> vector<64x8xf32>
      %229 = arith.addf %arg61, %228 : vector<64x8xf32>
      scf.yield %229 : vector<64x8xf32>
    }
    %c9_i32_13 = arith.constant 9 : i32
    %c0_14 = arith.constant 0 : index
    %c0_15 = arith.constant 0 : index
    %15 = vector.load %arg7[%c0_14, %c0_15] : memref<1x8xf32, #tpu.memory_space<vmem>>, vector<1x8xf32>
    %16 = vector.broadcast %15 : vector<1x8xf32> to vector<64x8xf32>
    %17 = arith.addf %14, %16 : vector<64x8xf32>
    %cst_16 = arith.constant 0.000000e+00 : f32
    %18 = vector.broadcast %cst_16 : f32 to vector<64x8xf32>
    %19 = arith.maximumf %17, %18 : vector<64x8xf32>
    %cst_17 = arith.constant 0.000000e+00 : f32
    %20 = vector.broadcast %cst_17 : f32 to vector<64x8xf32>
    %c0_i32_18 = arith.constant 0 : i32
    %c9_i32_19 = arith.constant 9 : i32
    %21 = arith.addi %c0_i32_18, %c9_i32_19 : i32
    %c1_i32_20 = arith.constant 1 : i32
    %22 = scf.for %arg60 = %c0_i32_18 to %21 step %c1_i32_20 iter_args(%arg61 = %20) -> (vector<64x8xf32>)  : i32 {
      %221 = arith.index_cast %arg60 : i32 to index
      %c0_208 = arith.constant 0 : index
      %c0_209 = arith.constant 0 : index
      %222 = vector.load %arg5[%221, %c0_208, %c0_209] : memref<9x64x64xf32, #tpu.memory_space<vmem>>, vector<1x64x64xf32>
      %223 = vector.shape_cast %222 : vector<1x64x64xf32> to vector<64x64xf32>
      %cst_210 = arith.constant dense<0.000000e+00> : vector<64x8xf32>
      %224 = tpu.matmul %223, %19, %cst_210 {dimension_numbers = #tpu.dot_dimension_numbers<[1], [0], [0], [1], [0, 0, 1, 1], [], []>} : vector<64x64xf32>, vector<64x8xf32>, vector<64x8xf32> -> vector<64x8xf32>
      %225 = arith.index_cast %arg60 : i32 to index
      %c0_211 = arith.constant 0 : index
      %c0_212 = arith.constant 0 : index
      %226 = vector.load %arg8[%225, %c0_211, %c0_212] : memref<9x8x8xf32, #tpu.memory_space<vmem>>, vector<1x8x8xf32>
      %227 = vector.shape_cast %226 : vector<1x8x8xf32> to vector<8x8xf32>
      %cst_213 = arith.constant dense<0.000000e+00> : vector<64x8xf32>
      %228 = tpu.matmul %224, %227, %cst_213 {dimension_numbers = #tpu.dot_dimension_numbers<[1], [0], [0], [1], [0, 0, 1, 1], [], []>} : vector<64x8xf32>, vector<8x8xf32>, vector<64x8xf32> -> vector<64x8xf32>
      %229 = arith.addf %arg61, %228 : vector<64x8xf32>
      scf.yield %229 : vector<64x8xf32>
    }
    %c9_i32_21 = arith.constant 9 : i32
    %c0_22 = arith.constant 0 : index
    %c0_23 = arith.constant 0 : index
    %23 = vector.load %arg9[%c0_22, %c0_23] : memref<1x8xf32, #tpu.memory_space<vmem>>, vector<1x8xf32>
    %24 = vector.broadcast %23 : vector<1x8xf32> to vector<64x8xf32>
    %25 = arith.addf %22, %24 : vector<64x8xf32>
    %26 = arith.addf %25, %11 : vector<64x8xf32>
    %cst_24 = arith.constant 0.000000e+00 : f32
    %27 = vector.broadcast %cst_24 : f32 to vector<64x8xf32>
    %28 = arith.maximumf %26, %27 : vector<64x8xf32>
    %cst_25 = arith.constant 0.000000e+00 : f32
    %29 = vector.broadcast %cst_25 : f32 to vector<64x8xf32>
    %c0_i32_26 = arith.constant 0 : i32
    %c9_i32_27 = arith.constant 9 : i32
    %30 = arith.addi %c0_i32_26, %c9_i32_27 : i32
    %c1_i32_28 = arith.constant 1 : i32
    %31 = scf.for %arg60 = %c0_i32_26 to %30 step %c1_i32_28 iter_args(%arg61 = %29) -> (vector<64x8xf32>)  : i32 {
      %221 = arith.index_cast %arg60 : i32 to index
      %c0_208 = arith.constant 0 : index
      %c0_209 = arith.constant 0 : index
      %222 = vector.load %arg5[%221, %c0_208, %c0_209] : memref<9x64x64xf32, #tpu.memory_space<vmem>>, vector<1x64x64xf32>
      %223 = vector.shape_cast %222 : vector<1x64x64xf32> to vector<64x64xf32>
      %cst_210 = arith.constant dense<0.000000e+00> : vector<64x8xf32>
      %224 = tpu.matmul %223, %28, %cst_210 {dimension_numbers = #tpu.dot_dimension_numbers<[1], [0], [0], [1], [0, 0, 1, 1], [], []>} : vector<64x64xf32>, vector<64x8xf32>, vector<64x8xf32> -> vector<64x8xf32>
      %225 = arith.index_cast %arg60 : i32 to index
      %c0_211 = arith.constant 0 : index
      %c0_212 = arith.constant 0 : index
      %226 = vector.load %arg10[%225, %c0_211, %c0_212] : memref<9x8x8xf32, #tpu.memory_space<vmem>>, vector<1x8x8xf32>
      %227 = vector.shape_cast %226 : vector<1x8x8xf32> to vector<8x8xf32>
      %cst_213 = arith.constant dense<0.000000e+00> : vector<64x8xf32>
      %228 = tpu.matmul %224, %227, %cst_213 {dimension_numbers = #tpu.dot_dimension_numbers<[1], [0], [0], [1], [0, 0, 1, 1], [], []>} : vector<64x8xf32>, vector<8x8xf32>, vector<64x8xf32> -> vector<64x8xf32>
      %229 = arith.addf %arg61, %228 : vector<64x8xf32>
      scf.yield %229 : vector<64x8xf32>
    }
    %c9_i32_29 = arith.constant 9 : i32
    %c0_30 = arith.constant 0 : index
    %c0_31 = arith.constant 0 : index
    %32 = vector.load %arg11[%c0_30, %c0_31] : memref<1x8xf32, #tpu.memory_space<vmem>>, vector<1x8xf32>
    %33 = vector.broadcast %32 : vector<1x8xf32> to vector<64x8xf32>
    %34 = arith.addf %31, %33 : vector<64x8xf32>
    %cst_32 = arith.constant 0.000000e+00 : f32
    %35 = vector.broadcast %cst_32 : f32 to vector<64x8xf32>
    %36 = arith.maximumf %34, %35 : vector<64x8xf32>
    %cst_33 = arith.constant 0.000000e+00 : f32
    %37 = vector.broadcast %cst_33 : f32 to vector<64x8xf32>
    %c0_i32_34 = arith.constant 0 : i32
    %c9_i32_35 = arith.constant 9 : i32
    %38 = arith.addi %c0_i32_34, %c9_i32_35 : i32
    %c1_i32_36 = arith.constant 1 : i32
    %39 = scf.for %arg60 = %c0_i32_34 to %38 step %c1_i32_36 iter_args(%arg61 = %37) -> (vector<64x8xf32>)  : i32 {
      %221 = arith.index_cast %arg60 : i32 to index
      %c0_208 = arith.constant 0 : index
      %c0_209 = arith.constant 0 : index
      %222 = vector.load %arg5[%221, %c0_208, %c0_209] : memref<9x64x64xf32, #tpu.memory_space<vmem>>, vector<1x64x64xf32>
      %223 = vector.shape_cast %222 : vector<1x64x64xf32> to vector<64x64xf32>
      %cst_210 = arith.constant dense<0.000000e+00> : vector<64x8xf32>
      %224 = tpu.matmul %223, %36, %cst_210 {dimension_numbers = #tpu.dot_dimension_numbers<[1], [0], [0], [1], [0, 0, 1, 1], [], []>} : vector<64x64xf32>, vector<64x8xf32>, vector<64x8xf32> -> vector<64x8xf32>
      %225 = arith.index_cast %arg60 : i32 to index
      %c0_211 = arith.constant 0 : index
      %c0_212 = arith.constant 0 : index
      %226 = vector.load %arg12[%225, %c0_211, %c0_212] : memref<9x8x8xf32, #tpu.memory_space<vmem>>, vector<1x8x8xf32>
      %227 = vector.shape_cast %226 : vector<1x8x8xf32> to vector<8x8xf32>
      %cst_213 = arith.constant dense<0.000000e+00> : vector<64x8xf32>
      %228 = tpu.matmul %224, %227, %cst_213 {dimension_numbers = #tpu.dot_dimension_numbers<[1], [0], [0], [1], [0, 0, 1, 1], [], []>} : vector<64x8xf32>, vector<8x8xf32>, vector<64x8xf32> -> vector<64x8xf32>
      %229 = arith.addf %arg61, %228 : vector<64x8xf32>
      scf.yield %229 : vector<64x8xf32>
    }
    %c9_i32_37 = arith.constant 9 : i32
    %c0_38 = arith.constant 0 : index
    %c0_39 = arith.constant 0 : index
    %40 = vector.load %arg13[%c0_38, %c0_39] : memref<1x8xf32, #tpu.memory_space<vmem>>, vector<1x8xf32>
    %41 = vector.broadcast %40 : vector<1x8xf32> to vector<64x8xf32>
    %42 = arith.addf %39, %41 : vector<64x8xf32>
    %43 = arith.addf %42, %28 : vector<64x8xf32>
    %cst_40 = arith.constant 0.000000e+00 : f32
    %44 = vector.broadcast %cst_40 : f32 to vector<64x8xf32>
    %45 = arith.maximumf %43, %44 : vector<64x8xf32>
    %cst_41 = arith.constant 0.000000e+00 : f32
    %46 = vector.broadcast %cst_41 : f32 to vector<16x16xf32>
    %c0_42 = arith.constant 0 : index
    %c0_43 = arith.constant 0 : index
    %c0_44 = arith.constant 0 : index
    %47 = vector.load %arg16[%c0_42, %c0_43, %c0_44] : memref<1x16x64xf32, #tpu.memory_space<vmem>>, vector<1x16x64xf32>
    %48 = vector.shape_cast %47 : vector<1x16x64xf32> to vector<16x64xf32>
    %cst_45 = arith.constant dense<0.000000e+00> : vector<16x8xf32>
    %49 = tpu.matmul %48, %45, %cst_45 {dimension_numbers = #tpu.dot_dimension_numbers<[1], [0], [0], [1], [0, 0, 1, 1], [], []>} : vector<16x64xf32>, vector<64x8xf32>, vector<16x8xf32> -> vector<16x8xf32>
    %c0_46 = arith.constant 0 : index
    %c0_47 = arith.constant 0 : index
    %c0_48 = arith.constant 0 : index
    %50 = vector.load %arg21[%c0_46, %c0_47, %c0_48] : memref<1x8x16xf32, #tpu.memory_space<vmem>>, vector<1x8x16xf32>
    %51 = vector.shape_cast %50 : vector<1x8x16xf32> to vector<8x16xf32>
    %cst_49 = arith.constant dense<0.000000e+00> : vector<16x16xf32>
    %52 = tpu.matmul %49, %51, %cst_49 {dimension_numbers = #tpu.dot_dimension_numbers<[1], [0], [0], [1], [0, 0, 1, 1], [], []>} : vector<16x8xf32>, vector<8x16xf32>, vector<16x16xf32> -> vector<16x16xf32>
    %53 = arith.addf %46, %52 : vector<16x16xf32>
    %c0_50 = arith.constant 0 : index
    %c0_51 = arith.constant 0 : index
    %54 = vector.load %arg22[%c0_50, %c0_51] : memref<1x16xf32, #tpu.memory_space<vmem>>, vector<1x16xf32>
    %55 = vector.broadcast %54 : vector<1x16xf32> to vector<16x16xf32>
    %56 = arith.addf %53, %55 : vector<16x16xf32>
    %cst_52 = arith.constant 0.000000e+00 : f32
    %57 = vector.broadcast %cst_52 : f32 to vector<16x16xf32>
    %c0_i32_53 = arith.constant 0 : i32
    %c9_i32_54 = arith.constant 9 : i32
    %58 = arith.addi %c0_i32_53, %c9_i32_54 : i32
    %c1_i32_55 = arith.constant 1 : i32
    %59 = scf.for %arg60 = %c0_i32_53 to %58 step %c1_i32_55 iter_args(%arg61 = %57) -> (vector<16x16xf32>)  : i32 {
      %221 = arith.index_cast %arg60 : i32 to index
      %c0_208 = arith.constant 0 : index
      %c0_209 = arith.constant 0 : index
      %222 = vector.load %arg14[%221, %c0_208, %c0_209] : memref<9x16x64xf32, #tpu.memory_space<vmem>>, vector<1x16x64xf32>
      %223 = vector.shape_cast %222 : vector<1x16x64xf32> to vector<16x64xf32>
      %cst_210 = arith.constant dense<0.000000e+00> : vector<16x8xf32>
      %224 = tpu.matmul %223, %45, %cst_210 {dimension_numbers = #tpu.dot_dimension_numbers<[1], [0], [0], [1], [0, 0, 1, 1], [], []>} : vector<16x64xf32>, vector<64x8xf32>, vector<16x8xf32> -> vector<16x8xf32>
      %225 = arith.index_cast %arg60 : i32 to index
      %c0_211 = arith.constant 0 : index
      %c0_212 = arith.constant 0 : index
      %226 = vector.load %arg17[%225, %c0_211, %c0_212] : memref<9x8x16xf32, #tpu.memory_space<vmem>>, vector<1x8x16xf32>
      %227 = vector.shape_cast %226 : vector<1x8x16xf32> to vector<8x16xf32>
      %cst_213 = arith.constant dense<0.000000e+00> : vector<16x16xf32>
      %228 = tpu.matmul %224, %227, %cst_213 {dimension_numbers = #tpu.dot_dimension_numbers<[1], [0], [0], [1], [0, 0, 1, 1], [], []>} : vector<16x8xf32>, vector<8x16xf32>, vector<16x16xf32> -> vector<16x16xf32>
      %229 = arith.addf %arg61, %228 : vector<16x16xf32>
      scf.yield %229 : vector<16x16xf32>
    }
    %c9_i32_56 = arith.constant 9 : i32
    %c0_57 = arith.constant 0 : index
    %c0_58 = arith.constant 0 : index
    %60 = vector.load %arg18[%c0_57, %c0_58] : memref<1x16xf32, #tpu.memory_space<vmem>>, vector<1x16xf32>
    %61 = vector.broadcast %60 : vector<1x16xf32> to vector<16x16xf32>
    %62 = arith.addf %59, %61 : vector<16x16xf32>
    %cst_59 = arith.constant 0.000000e+00 : f32
    %63 = vector.broadcast %cst_59 : f32 to vector<16x16xf32>
    %64 = arith.maximumf %62, %63 : vector<16x16xf32>
    %cst_60 = arith.constant 0.000000e+00 : f32
    %65 = vector.broadcast %cst_60 : f32 to vector<16x16xf32>
    %c0_i32_61 = arith.constant 0 : i32
    %c9_i32_62 = arith.constant 9 : i32
    %66 = arith.addi %c0_i32_61, %c9_i32_62 : i32
    %c1_i32_63 = arith.constant 1 : i32
    %67 = scf.for %arg60 = %c0_i32_61 to %66 step %c1_i32_63 iter_args(%arg61 = %65) -> (vector<16x16xf32>)  : i32 {
      %221 = arith.index_cast %arg60 : i32 to index
      %c0_208 = arith.constant 0 : index
      %c0_209 = arith.constant 0 : index
      %222 = vector.load %arg15[%221, %c0_208, %c0_209] : memref<9x16x16xf32, #tpu.memory_space<vmem>>, vector<1x16x16xf32>
      %223 = vector.shape_cast %222 : vector<1x16x16xf32> to vector<16x16xf32>
      %cst_210 = arith.constant dense<0.000000e+00> : vector<16x16xf32>
      %224 = tpu.matmul %223, %64, %cst_210 {dimension_numbers = #tpu.dot_dimension_numbers<[1], [0], [0], [1], [0, 0, 1, 1], [], []>} : vector<16x16xf32>, vector<16x16xf32>, vector<16x16xf32> -> vector<16x16xf32>
      %225 = arith.index_cast %arg60 : i32 to index
      %c0_211 = arith.constant 0 : index
      %c0_212 = arith.constant 0 : index
      %226 = vector.load %arg19[%225, %c0_211, %c0_212] : memref<9x16x16xf32, #tpu.memory_space<vmem>>, vector<1x16x16xf32>
      %227 = vector.shape_cast %226 : vector<1x16x16xf32> to vector<16x16xf32>
      %cst_213 = arith.constant dense<0.000000e+00> : vector<16x16xf32>
      %228 = tpu.matmul %224, %227, %cst_213 {dimension_numbers = #tpu.dot_dimension_numbers<[1], [0], [0], [1], [0, 0, 1, 1], [], []>} : vector<16x16xf32>, vector<16x16xf32>, vector<16x16xf32> -> vector<16x16xf32>
      %229 = arith.addf %arg61, %228 : vector<16x16xf32>
      scf.yield %229 : vector<16x16xf32>
    }
    %c9_i32_64 = arith.constant 9 : i32
    %c0_65 = arith.constant 0 : index
    %c0_66 = arith.constant 0 : index
    %68 = vector.load %arg20[%c0_65, %c0_66] : memref<1x16xf32, #tpu.memory_space<vmem>>, vector<1x16xf32>
    %69 = vector.broadcast %68 : vector<1x16xf32> to vector<16x16xf32>
    %70 = arith.addf %67, %69 : vector<16x16xf32>
    %71 = arith.addf %70, %56 : vector<16x16xf32>
    %cst_67 = arith.constant 0.000000e+00 : f32
    %72 = vector.broadcast %cst_67 : f32 to vector<16x16xf32>
    %73 = arith.maximumf %71, %72 : vector<16x16xf32>
    %cst_68 = arith.constant 0.000000e+00 : f32
    %74 = vector.broadcast %cst_68 : f32 to vector<16x16xf32>
    %c0_i32_69 = arith.constant 0 : i32
    %c9_i32_70 = arith.constant 9 : i32
    %75 = arith.addi %c0_i32_69, %c9_i32_70 : i32
    %c1_i32_71 = arith.constant 1 : i32
    %76 = scf.for %arg60 = %c0_i32_69 to %75 step %c1_i32_71 iter_args(%arg61 = %74) -> (vector<16x16xf32>)  : i32 {
      %221 = arith.index_cast %arg60 : i32 to index
      %c0_208 = arith.constant 0 : index
      %c0_209 = arith.constant 0 : index
      %222 = vector.load %arg15[%221, %c0_208, %c0_209] : memref<9x16x16xf32, #tpu.memory_space<vmem>>, vector<1x16x16xf32>
      %223 = vector.shape_cast %222 : vector<1x16x16xf32> to vector<16x16xf32>
      %cst_210 = arith.constant dense<0.000000e+00> : vector<16x16xf32>
      %224 = tpu.matmul %223, %73, %cst_210 {dimension_numbers = #tpu.dot_dimension_numbers<[1], [0], [0], [1], [0, 0, 1, 1], [], []>} : vector<16x16xf32>, vector<16x16xf32>, vector<16x16xf32> -> vector<16x16xf32>
      %225 = arith.index_cast %arg60 : i32 to index
      %c0_211 = arith.constant 0 : index
      %c0_212 = arith.constant 0 : index
      %226 = vector.load %arg23[%225, %c0_211, %c0_212] : memref<9x16x16xf32, #tpu.memory_space<vmem>>, vector<1x16x16xf32>
      %227 = vector.shape_cast %226 : vector<1x16x16xf32> to vector<16x16xf32>
      %cst_213 = arith.constant dense<0.000000e+00> : vector<16x16xf32>
      %228 = tpu.matmul %224, %227, %cst_213 {dimension_numbers = #tpu.dot_dimension_numbers<[1], [0], [0], [1], [0, 0, 1, 1], [], []>} : vector<16x16xf32>, vector<16x16xf32>, vector<16x16xf32> -> vector<16x16xf32>
      %229 = arith.addf %arg61, %228 : vector<16x16xf32>
      scf.yield %229 : vector<16x16xf32>
    }
    %c9_i32_72 = arith.constant 9 : i32
    %c0_73 = arith.constant 0 : index
    %c0_74 = arith.constant 0 : index
    %77 = vector.load %arg24[%c0_73, %c0_74] : memref<1x16xf32, #tpu.memory_space<vmem>>, vector<1x16xf32>
    %78 = vector.broadcast %77 : vector<1x16xf32> to vector<16x16xf32>
    %79 = arith.addf %76, %78 : vector<16x16xf32>
    %cst_75 = arith.constant 0.000000e+00 : f32
    %80 = vector.broadcast %cst_75 : f32 to vector<16x16xf32>
    %81 = arith.maximumf %79, %80 : vector<16x16xf32>
    %cst_76 = arith.constant 0.000000e+00 : f32
    %82 = vector.broadcast %cst_76 : f32 to vector<16x16xf32>
    %c0_i32_77 = arith.constant 0 : i32
    %c9_i32_78 = arith.constant 9 : i32
    %83 = arith.addi %c0_i32_77, %c9_i32_78 : i32
    %c1_i32_79 = arith.constant 1 : i32
    %84 = scf.for %arg60 = %c0_i32_77 to %83 step %c1_i32_79 iter_args(%arg61 = %82) -> (vector<16x16xf32>)  : i32 {
      %221 = arith.index_cast %arg60 : i32 to index
      %c0_208 = arith.constant 0 : index
      %c0_209 = arith.constant 0 : index
      %222 = vector.load %arg15[%221, %c0_208, %c0_209] : memref<9x16x16xf32, #tpu.memory_space<vmem>>, vector<1x16x16xf32>
      %223 = vector.shape_cast %222 : vector<1x16x16xf32> to vector<16x16xf32>
      %cst_210 = arith.constant dense<0.000000e+00> : vector<16x16xf32>
      %224 = tpu.matmul %223, %81, %cst_210 {dimension_numbers = #tpu.dot_dimension_numbers<[1], [0], [0], [1], [0, 0, 1, 1], [], []>} : vector<16x16xf32>, vector<16x16xf32>, vector<16x16xf32> -> vector<16x16xf32>
      %225 = arith.index_cast %arg60 : i32 to index
      %c0_211 = arith.constant 0 : index
      %c0_212 = arith.constant 0 : index
      %226 = vector.load %arg25[%225, %c0_211, %c0_212] : memref<9x16x16xf32, #tpu.memory_space<vmem>>, vector<1x16x16xf32>
      %227 = vector.shape_cast %226 : vector<1x16x16xf32> to vector<16x16xf32>
      %cst_213 = arith.constant dense<0.000000e+00> : vector<16x16xf32>
      %228 = tpu.matmul %224, %227, %cst_213 {dimension_numbers = #tpu.dot_dimension_numbers<[1], [0], [0], [1], [0, 0, 1, 1], [], []>} : vector<16x16xf32>, vector<16x16xf32>, vector<16x16xf32> -> vector<16x16xf32>
      %229 = arith.addf %arg61, %228 : vector<16x16xf32>
      scf.yield %229 : vector<16x16xf32>
    }
    %c9_i32_80 = arith.constant 9 : i32
    %c0_81 = arith.constant 0 : index
    %c0_82 = arith.constant 0 : index
    %85 = vector.load %arg26[%c0_81, %c0_82] : memref<1x16xf32, #tpu.memory_space<vmem>>, vector<1x16xf32>
    %86 = vector.broadcast %85 : vector<1x16xf32> to vector<16x16xf32>
    %87 = arith.addf %84, %86 : vector<16x16xf32>
    %88 = arith.addf %87, %73 : vector<16x16xf32>
    %cst_83 = arith.constant 0.000000e+00 : f32
    %89 = vector.broadcast %cst_83 : f32 to vector<16x16xf32>
    %90 = arith.maximumf %88, %89 : vector<16x16xf32>
    %cst_84 = arith.constant 0.000000e+00 : f32
    %91 = vector.broadcast %cst_84 : f32 to vector<4x32xf32>
    %c0_85 = arith.constant 0 : index
    %c0_86 = arith.constant 0 : index
    %c0_87 = arith.constant 0 : index
    %92 = vector.load %arg29[%c0_85, %c0_86, %c0_87] : memref<1x4x16xf32, #tpu.memory_space<vmem>>, vector<1x4x16xf32>
    %93 = vector.shape_cast %92 : vector<1x4x16xf32> to vector<4x16xf32>
    %cst_88 = arith.constant dense<0.000000e+00> : vector<4x16xf32>
    %94 = tpu.matmul %93, %90, %cst_88 {dimension_numbers = #tpu.dot_dimension_numbers<[1], [0], [0], [1], [0, 0, 1, 1], [], []>} : vector<4x16xf32>, vector<16x16xf32>, vector<4x16xf32> -> vector<4x16xf32>
    %c0_89 = arith.constant 0 : index
    %c0_90 = arith.constant 0 : index
    %c0_91 = arith.constant 0 : index
    %95 = vector.load %arg34[%c0_89, %c0_90, %c0_91] : memref<1x16x32xf32, #tpu.memory_space<vmem>>, vector<1x16x32xf32>
    %96 = vector.shape_cast %95 : vector<1x16x32xf32> to vector<16x32xf32>
    %cst_92 = arith.constant dense<0.000000e+00> : vector<4x32xf32>
    %97 = tpu.matmul %94, %96, %cst_92 {dimension_numbers = #tpu.dot_dimension_numbers<[1], [0], [0], [1], [0, 0, 1, 1], [], []>} : vector<4x16xf32>, vector<16x32xf32>, vector<4x32xf32> -> vector<4x32xf32>
    %98 = arith.addf %91, %97 : vector<4x32xf32>
    %c0_93 = arith.constant 0 : index
    %c0_94 = arith.constant 0 : index
    %99 = vector.load %arg35[%c0_93, %c0_94] : memref<1x32xf32, #tpu.memory_space<vmem>>, vector<1x32xf32>
    %100 = vector.broadcast %99 : vector<1x32xf32> to vector<4x32xf32>
    %101 = arith.addf %98, %100 : vector<4x32xf32>
    %cst_95 = arith.constant 0.000000e+00 : f32
    %102 = vector.broadcast %cst_95 : f32 to vector<4x32xf32>
    %c0_i32_96 = arith.constant 0 : i32
    %c9_i32_97 = arith.constant 9 : i32
    %103 = arith.addi %c0_i32_96, %c9_i32_97 : i32
    %c1_i32_98 = arith.constant 1 : i32
    %104 = scf.for %arg60 = %c0_i32_96 to %103 step %c1_i32_98 iter_args(%arg61 = %102) -> (vector<4x32xf32>)  : i32 {
      %221 = arith.index_cast %arg60 : i32 to index
      %c0_208 = arith.constant 0 : index
      %c0_209 = arith.constant 0 : index
      %222 = vector.load %arg27[%221, %c0_208, %c0_209] : memref<9x4x16xf32, #tpu.memory_space<vmem>>, vector<1x4x16xf32>
      %223 = vector.shape_cast %222 : vector<1x4x16xf32> to vector<4x16xf32>
      %cst_210 = arith.constant dense<0.000000e+00> : vector<4x16xf32>
      %224 = tpu.matmul %223, %90, %cst_210 {dimension_numbers = #tpu.dot_dimension_numbers<[1], [0], [0], [1], [0, 0, 1, 1], [], []>} : vector<4x16xf32>, vector<16x16xf32>, vector<4x16xf32> -> vector<4x16xf32>
      %225 = arith.index_cast %arg60 : i32 to index
      %c0_211 = arith.constant 0 : index
      %c0_212 = arith.constant 0 : index
      %226 = vector.load %arg30[%225, %c0_211, %c0_212] : memref<9x16x32xf32, #tpu.memory_space<vmem>>, vector<1x16x32xf32>
      %227 = vector.shape_cast %226 : vector<1x16x32xf32> to vector<16x32xf32>
      %cst_213 = arith.constant dense<0.000000e+00> : vector<4x32xf32>
      %228 = tpu.matmul %224, %227, %cst_213 {dimension_numbers = #tpu.dot_dimension_numbers<[1], [0], [0], [1], [0, 0, 1, 1], [], []>} : vector<4x16xf32>, vector<16x32xf32>, vector<4x32xf32> -> vector<4x32xf32>
      %229 = arith.addf %arg61, %228 : vector<4x32xf32>
      scf.yield %229 : vector<4x32xf32>
    }
    %c9_i32_99 = arith.constant 9 : i32
    %c0_100 = arith.constant 0 : index
    %c0_101 = arith.constant 0 : index
    %105 = vector.load %arg31[%c0_100, %c0_101] : memref<1x32xf32, #tpu.memory_space<vmem>>, vector<1x32xf32>
    %106 = vector.broadcast %105 : vector<1x32xf32> to vector<4x32xf32>
    %107 = arith.addf %104, %106 : vector<4x32xf32>
    %cst_102 = arith.constant 0.000000e+00 : f32
    %108 = vector.broadcast %cst_102 : f32 to vector<4x32xf32>
    %109 = arith.maximumf %107, %108 : vector<4x32xf32>
    %cst_103 = arith.constant 0.000000e+00 : f32
    %110 = vector.broadcast %cst_103 : f32 to vector<4x32xf32>
    %c0_i32_104 = arith.constant 0 : i32
    %c9_i32_105 = arith.constant 9 : i32
    %111 = arith.addi %c0_i32_104, %c9_i32_105 : i32
    %c1_i32_106 = arith.constant 1 : i32
    %112 = scf.for %arg60 = %c0_i32_104 to %111 step %c1_i32_106 iter_args(%arg61 = %110) -> (vector<4x32xf32>)  : i32 {
      %221 = arith.index_cast %arg60 : i32 to index
      %c0_208 = arith.constant 0 : index
      %c0_209 = arith.constant 0 : index
      %222 = vector.load %arg28[%221, %c0_208, %c0_209] : memref<9x4x4xf32, #tpu.memory_space<vmem>>, vector<1x4x4xf32>
      %223 = vector.shape_cast %222 : vector<1x4x4xf32> to vector<4x4xf32>
      %cst_210 = arith.constant dense<0.000000e+00> : vector<4x32xf32>
      %224 = tpu.matmul %223, %109, %cst_210 {dimension_numbers = #tpu.dot_dimension_numbers<[1], [0], [0], [1], [0, 0, 1, 1], [], []>} : vector<4x4xf32>, vector<4x32xf32>, vector<4x32xf32> -> vector<4x32xf32>
      %225 = arith.index_cast %arg60 : i32 to index
      %c0_211 = arith.constant 0 : index
      %c0_212 = arith.constant 0 : index
      %226 = vector.load %arg32[%225, %c0_211, %c0_212] : memref<9x32x32xf32, #tpu.memory_space<vmem>>, vector<1x32x32xf32>
      %227 = vector.shape_cast %226 : vector<1x32x32xf32> to vector<32x32xf32>
      %cst_213 = arith.constant dense<0.000000e+00> : vector<4x32xf32>
      %228 = tpu.matmul %224, %227, %cst_213 {dimension_numbers = #tpu.dot_dimension_numbers<[1], [0], [0], [1], [0, 0, 1, 1], [], []>} : vector<4x32xf32>, vector<32x32xf32>, vector<4x32xf32> -> vector<4x32xf32>
      %229 = arith.addf %arg61, %228 : vector<4x32xf32>
      scf.yield %229 : vector<4x32xf32>
    }
    %c9_i32_107 = arith.constant 9 : i32
    %c0_108 = arith.constant 0 : index
    %c0_109 = arith.constant 0 : index
    %113 = vector.load %arg33[%c0_108, %c0_109] : memref<1x32xf32, #tpu.memory_space<vmem>>, vector<1x32xf32>
    %114 = vector.broadcast %113 : vector<1x32xf32> to vector<4x32xf32>
    %115 = arith.addf %112, %114 : vector<4x32xf32>
    %116 = arith.addf %115, %101 : vector<4x32xf32>
    %cst_110 = arith.constant 0.000000e+00 : f32
    %117 = vector.broadcast %cst_110 : f32 to vector<4x32xf32>
    %118 = arith.maximumf %116, %117 : vector<4x32xf32>
    %cst_111 = arith.constant 0.000000e+00 : f32
    %119 = vector.broadcast %cst_111 : f32 to vector<4x32xf32>
    %c0_i32_112 = arith.constant 0 : i32
    %c9_i32_113 = arith.constant 9 : i32
    %120 = arith.addi %c0_i32_112, %c9_i32_113 : i32
    %c1_i32_114 = arith.constant 1 : i32
    %121 = scf.for %arg60 = %c0_i32_112 to %120 step %c1_i32_114 iter_args(%arg61 = %119) -> (vector<4x32xf32>)  : i32 {
      %221 = arith.index_cast %arg60 : i32 to index
      %c0_208 = arith.constant 0 : index
      %c0_209 = arith.constant 0 : index
      %222 = vector.load %arg28[%221, %c0_208, %c0_209] : memref<9x4x4xf32, #tpu.memory_space<vmem>>, vector<1x4x4xf32>
      %223 = vector.shape_cast %222 : vector<1x4x4xf32> to vector<4x4xf32>
      %cst_210 = arith.constant dense<0.000000e+00> : vector<4x32xf32>
      %224 = tpu.matmul %223, %118, %cst_210 {dimension_numbers = #tpu.dot_dimension_numbers<[1], [0], [0], [1], [0, 0, 1, 1], [], []>} : vector<4x4xf32>, vector<4x32xf32>, vector<4x32xf32> -> vector<4x32xf32>
      %225 = arith.index_cast %arg60 : i32 to index
      %c0_211 = arith.constant 0 : index
      %c0_212 = arith.constant 0 : index
      %226 = vector.load %arg36[%225, %c0_211, %c0_212] : memref<9x32x32xf32, #tpu.memory_space<vmem>>, vector<1x32x32xf32>
      %227 = vector.shape_cast %226 : vector<1x32x32xf32> to vector<32x32xf32>
      %cst_213 = arith.constant dense<0.000000e+00> : vector<4x32xf32>
      %228 = tpu.matmul %224, %227, %cst_213 {dimension_numbers = #tpu.dot_dimension_numbers<[1], [0], [0], [1], [0, 0, 1, 1], [], []>} : vector<4x32xf32>, vector<32x32xf32>, vector<4x32xf32> -> vector<4x32xf32>
      %229 = arith.addf %arg61, %228 : vector<4x32xf32>
      scf.yield %229 : vector<4x32xf32>
    }
    %c9_i32_115 = arith.constant 9 : i32
    %c0_116 = arith.constant 0 : index
    %c0_117 = arith.constant 0 : index
    %122 = vector.load %arg37[%c0_116, %c0_117] : memref<1x32xf32, #tpu.memory_space<vmem>>, vector<1x32xf32>
    %123 = vector.broadcast %122 : vector<1x32xf32> to vector<4x32xf32>
    %124 = arith.addf %121, %123 : vector<4x32xf32>
    %cst_118 = arith.constant 0.000000e+00 : f32
    %125 = vector.broadcast %cst_118 : f32 to vector<4x32xf32>
    %126 = arith.maximumf %124, %125 : vector<4x32xf32>
    %cst_119 = arith.constant 0.000000e+00 : f32
    %127 = vector.broadcast %cst_119 : f32 to vector<4x32xf32>
    %c0_i32_120 = arith.constant 0 : i32
    %c9_i32_121 = arith.constant 9 : i32
    %128 = arith.addi %c0_i32_120, %c9_i32_121 : i32
    %c1_i32_122 = arith.constant 1 : i32
    %129 = scf.for %arg60 = %c0_i32_120 to %128 step %c1_i32_122 iter_args(%arg61 = %127) -> (vector<4x32xf32>)  : i32 {
      %221 = arith.index_cast %arg60 : i32 to index
      %c0_208 = arith.constant 0 : index
      %c0_209 = arith.constant 0 : index
      %222 = vector.load %arg28[%221, %c0_208, %c0_209] : memref<9x4x4xf32, #tpu.memory_space<vmem>>, vector<1x4x4xf32>
      %223 = vector.shape_cast %222 : vector<1x4x4xf32> to vector<4x4xf32>
      %cst_210 = arith.constant dense<0.000000e+00> : vector<4x32xf32>
      %224 = tpu.matmul %223, %126, %cst_210 {dimension_numbers = #tpu.dot_dimension_numbers<[1], [0], [0], [1], [0, 0, 1, 1], [], []>} : vector<4x4xf32>, vector<4x32xf32>, vector<4x32xf32> -> vector<4x32xf32>
      %225 = arith.index_cast %arg60 : i32 to index
      %c0_211 = arith.constant 0 : index
      %c0_212 = arith.constant 0 : index
      %226 = vector.load %arg38[%225, %c0_211, %c0_212] : memref<9x32x32xf32, #tpu.memory_space<vmem>>, vector<1x32x32xf32>
      %227 = vector.shape_cast %226 : vector<1x32x32xf32> to vector<32x32xf32>
      %cst_213 = arith.constant dense<0.000000e+00> : vector<4x32xf32>
      %228 = tpu.matmul %224, %227, %cst_213 {dimension_numbers = #tpu.dot_dimension_numbers<[1], [0], [0], [1], [0, 0, 1, 1], [], []>} : vector<4x32xf32>, vector<32x32xf32>, vector<4x32xf32> -> vector<4x32xf32>
      %229 = arith.addf %arg61, %228 : vector<4x32xf32>
      scf.yield %229 : vector<4x32xf32>
    }
    %c9_i32_123 = arith.constant 9 : i32
    %c0_124 = arith.constant 0 : index
    %c0_125 = arith.constant 0 : index
    %130 = vector.load %arg39[%c0_124, %c0_125] : memref<1x32xf32, #tpu.memory_space<vmem>>, vector<1x32xf32>
    %131 = vector.broadcast %130 : vector<1x32xf32> to vector<4x32xf32>
    %132 = arith.addf %129, %131 : vector<4x32xf32>
    %133 = arith.addf %132, %118 : vector<4x32xf32>
    %cst_126 = arith.constant 0.000000e+00 : f32
    %134 = vector.broadcast %cst_126 : f32 to vector<4x32xf32>
    %135 = arith.maximumf %133, %134 : vector<4x32xf32>
    %cst_127 = arith.constant 0.000000e+00 : f32
    %136 = vector.broadcast %cst_127 : f32 to vector<1x64xf32>
    %c0_128 = arith.constant 0 : index
    %c0_129 = arith.constant 0 : index
    %c0_130 = arith.constant 0 : index
    %137 = vector.load %arg42[%c0_128, %c0_129, %c0_130] : memref<1x1x4xf32, #tpu.memory_space<vmem>>, vector<1x1x4xf32>
    %138 = vector.shape_cast %137 : vector<1x1x4xf32> to vector<1x4xf32>
    %cst_131 = arith.constant dense<0.000000e+00> : vector<1x32xf32>
    %139 = tpu.matmul %138, %135, %cst_131 {dimension_numbers = #tpu.dot_dimension_numbers<[1], [0], [0], [1], [0, 0, 1, 1], [], []>} : vector<1x4xf32>, vector<4x32xf32>, vector<1x32xf32> -> vector<1x32xf32>
    %c0_132 = arith.constant 0 : index
    %c0_133 = arith.constant 0 : index
    %c0_134 = arith.constant 0 : index
    %140 = vector.load %arg47[%c0_132, %c0_133, %c0_134] : memref<1x32x64xf32, #tpu.memory_space<vmem>>, vector<1x32x64xf32>
    %141 = vector.shape_cast %140 : vector<1x32x64xf32> to vector<32x64xf32>
    %cst_135 = arith.constant dense<0.000000e+00> : vector<1x64xf32>
    %142 = tpu.matmul %139, %141, %cst_135 {dimension_numbers = #tpu.dot_dimension_numbers<[1], [0], [0], [1], [0, 0, 1, 1], [], []>} : vector<1x32xf32>, vector<32x64xf32>, vector<1x64xf32> -> vector<1x64xf32>
    %143 = arith.addf %136, %142 : vector<1x64xf32>
    %c0_136 = arith.constant 0 : index
    %c0_137 = arith.constant 0 : index
    %144 = vector.load %arg48[%c0_136, %c0_137] : memref<1x64xf32, #tpu.memory_space<vmem>>, vector<1x64xf32>
    %145 = arith.addf %143, %144 : vector<1x64xf32>
    %cst_138 = arith.constant 0.000000e+00 : f32
    %146 = vector.broadcast %cst_138 : f32 to vector<1x64xf32>
    %c0_i32_139 = arith.constant 0 : i32
    %c9_i32_140 = arith.constant 9 : i32
    %147 = arith.addi %c0_i32_139, %c9_i32_140 : i32
    %c1_i32_141 = arith.constant 1 : i32
    %148 = scf.for %arg60 = %c0_i32_139 to %147 step %c1_i32_141 iter_args(%arg61 = %146) -> (vector<1x64xf32>)  : i32 {
      %221 = arith.index_cast %arg60 : i32 to index
      %c0_208 = arith.constant 0 : index
      %c0_209 = arith.constant 0 : index
      %222 = vector.load %arg40[%221, %c0_208, %c0_209] : memref<9x1x4xf32, #tpu.memory_space<vmem>>, vector<1x1x4xf32>
      %223 = vector.shape_cast %222 : vector<1x1x4xf32> to vector<1x4xf32>
      %cst_210 = arith.constant dense<0.000000e+00> : vector<1x32xf32>
      %224 = tpu.matmul %223, %135, %cst_210 {dimension_numbers = #tpu.dot_dimension_numbers<[1], [0], [0], [1], [0, 0, 1, 1], [], []>} : vector<1x4xf32>, vector<4x32xf32>, vector<1x32xf32> -> vector<1x32xf32>
      %225 = arith.index_cast %arg60 : i32 to index
      %c0_211 = arith.constant 0 : index
      %c0_212 = arith.constant 0 : index
      %226 = vector.load %arg43[%225, %c0_211, %c0_212] : memref<9x32x64xf32, #tpu.memory_space<vmem>>, vector<1x32x64xf32>
      %227 = vector.shape_cast %226 : vector<1x32x64xf32> to vector<32x64xf32>
      %cst_213 = arith.constant dense<0.000000e+00> : vector<1x64xf32>
      %228 = tpu.matmul %224, %227, %cst_213 {dimension_numbers = #tpu.dot_dimension_numbers<[1], [0], [0], [1], [0, 0, 1, 1], [], []>} : vector<1x32xf32>, vector<32x64xf32>, vector<1x64xf32> -> vector<1x64xf32>
      %229 = arith.addf %arg61, %228 : vector<1x64xf32>
      scf.yield %229 : vector<1x64xf32>
    }
    %c9_i32_142 = arith.constant 9 : i32
    %c0_143 = arith.constant 0 : index
    %c0_144 = arith.constant 0 : index
    %149 = vector.load %arg44[%c0_143, %c0_144] : memref<1x64xf32, #tpu.memory_space<vmem>>, vector<1x64xf32>
    %150 = arith.addf %148, %149 : vector<1x64xf32>
    %cst_145 = arith.constant 0.000000e+00 : f32
    %151 = vector.broadcast %cst_145 : f32 to vector<1x64xf32>
    %152 = arith.maximumf %150, %151 : vector<1x64xf32>
    %cst_146 = arith.constant 0.000000e+00 : f32
    %153 = vector.broadcast %cst_146 : f32 to vector<1x64xf32>
    %c0_i32_147 = arith.constant 0 : i32
    %c9_i32_148 = arith.constant 9 : i32
    %154 = arith.addi %c0_i32_147, %c9_i32_148 : i32
    %c1_i32_149 = arith.constant 1 : i32
    %155 = scf.for %arg60 = %c0_i32_147 to %154 step %c1_i32_149 iter_args(%arg61 = %153) -> (vector<1x64xf32>)  : i32 {
      %221 = arith.index_cast %arg60 : i32 to index
      %c0_208 = arith.constant 0 : index
      %c0_209 = arith.constant 0 : index
      %222 = vector.load %arg41[%221, %c0_208, %c0_209] : memref<9x1x1xf32, #tpu.memory_space<vmem>>, vector<1x1x1xf32>
      %223 = vector.shape_cast %222 : vector<1x1x1xf32> to vector<1x1xf32>
      %cst_210 = arith.constant dense<0.000000e+00> : vector<1x64xf32>
      %224 = tpu.matmul %223, %152, %cst_210 {dimension_numbers = #tpu.dot_dimension_numbers<[1], [0], [0], [1], [0, 0, 1, 1], [], []>} : vector<1x1xf32>, vector<1x64xf32>, vector<1x64xf32> -> vector<1x64xf32>
      %225 = arith.index_cast %arg60 : i32 to index
      %c0_211 = arith.constant 0 : index
      %c0_212 = arith.constant 0 : index
      %226 = vector.load %arg45[%225, %c0_211, %c0_212] : memref<9x64x64xf32, #tpu.memory_space<vmem>>, vector<1x64x64xf32>
      %227 = vector.shape_cast %226 : vector<1x64x64xf32> to vector<64x64xf32>
      %cst_213 = arith.constant dense<0.000000e+00> : vector<1x64xf32>
      %228 = tpu.matmul %224, %227, %cst_213 {dimension_numbers = #tpu.dot_dimension_numbers<[1], [0], [0], [1], [0, 0, 1, 1], [], []>} : vector<1x64xf32>, vector<64x64xf32>, vector<1x64xf32> -> vector<1x64xf32>
      %229 = arith.addf %arg61, %228 : vector<1x64xf32>
      scf.yield %229 : vector<1x64xf32>
    }
    %c9_i32_150 = arith.constant 9 : i32
    %c0_151 = arith.constant 0 : index
    %c0_152 = arith.constant 0 : index
    %156 = vector.load %arg46[%c0_151, %c0_152] : memref<1x64xf32, #tpu.memory_space<vmem>>, vector<1x64xf32>
    %157 = arith.addf %155, %156 : vector<1x64xf32>
    %158 = arith.addf %157, %145 : vector<1x64xf32>
    %cst_153 = arith.constant 0.000000e+00 : f32
    %159 = vector.broadcast %cst_153 : f32 to vector<1x64xf32>
    %160 = arith.maximumf %158, %159 : vector<1x64xf32>
    %cst_154 = arith.constant 0.000000e+00 : f32
    %161 = vector.broadcast %cst_154 : f32 to vector<1x64xf32>
    %c0_i32_155 = arith.constant 0 : i32
    %c9_i32_156 = arith.constant 9 : i32
    %162 = arith.addi %c0_i32_155, %c9_i32_156 : i32
    %c1_i32_157 = arith.constant 1 : i32
    %163 = scf.for %arg60 = %c0_i32_155 to %162 step %c1_i32_157 iter_args(%arg61 = %161) -> (vector<1x64xf32>)  : i32 {
      %221 = arith.index_cast %arg60 : i32 to index
      %c0_208 = arith.constant 0 : index
      %c0_209 = arith.constant 0 : index
      %222 = vector.load %arg41[%221, %c0_208, %c0_209] : memref<9x1x1xf32, #tpu.memory_space<vmem>>, vector<1x1x1xf32>
      %223 = vector.shape_cast %222 : vector<1x1x1xf32> to vector<1x1xf32>
      %cst_210 = arith.constant dense<0.000000e+00> : vector<1x64xf32>
      %224 = tpu.matmul %223, %160, %cst_210 {dimension_numbers = #tpu.dot_dimension_numbers<[1], [0], [0], [1], [0, 0, 1, 1], [], []>} : vector<1x1xf32>, vector<1x64xf32>, vector<1x64xf32> -> vector<1x64xf32>
      %225 = arith.index_cast %arg60 : i32 to index
      %c0_211 = arith.constant 0 : index
      %c0_212 = arith.constant 0 : index
      %226 = vector.load %arg49[%225, %c0_211, %c0_212] : memref<9x64x64xf32, #tpu.memory_space<vmem>>, vector<1x64x64xf32>
      %227 = vector.shape_cast %226 : vector<1x64x64xf32> to vector<64x64xf32>
      %cst_213 = arith.constant dense<0.000000e+00> : vector<1x64xf32>
      %228 = tpu.matmul %224, %227, %cst_213 {dimension_numbers = #tpu.dot_dimension_numbers<[1], [0], [0], [1], [0, 0, 1, 1], [], []>} : vector<1x64xf32>, vector<64x64xf32>, vector<1x64xf32> -> vector<1x64xf32>
      %229 = arith.addf %arg61, %228 : vector<1x64xf32>
      scf.yield %229 : vector<1x64xf32>
    }
    %c9_i32_158 = arith.constant 9 : i32
    %c0_159 = arith.constant 0 : index
    %c0_160 = arith.constant 0 : index
    %164 = vector.load %arg50[%c0_159, %c0_160] : memref<1x64xf32, #tpu.memory_space<vmem>>, vector<1x64xf32>
    %165 = arith.addf %163, %164 : vector<1x64xf32>
    %cst_161 = arith.constant 0.000000e+00 : f32
    %166 = vector.broadcast %cst_161 : f32 to vector<1x64xf32>
    %167 = arith.maximumf %165, %166 : vector<1x64xf32>
    %cst_162 = arith.constant 0.000000e+00 : f32
    %168 = vector.broadcast %cst_162 : f32 to vector<1x64xf32>
    %c0_i32_163 = arith.constant 0 : i32
    %c9_i32_164 = arith.constant 9 : i32
    %169 = arith.addi %c0_i32_163, %c9_i32_164 : i32
    %c1_i32_165 = arith.constant 1 : i32
    %170 = scf.for %arg60 = %c0_i32_163 to %169 step %c1_i32_165 iter_args(%arg61 = %168) -> (vector<1x64xf32>)  : i32 {
      %221 = arith.index_cast %arg60 : i32 to index
      %c0_208 = arith.constant 0 : index
      %c0_209 = arith.constant 0 : index
      %222 = vector.load %arg41[%221, %c0_208, %c0_209] : memref<9x1x1xf32, #tpu.memory_space<vmem>>, vector<1x1x1xf32>
      %223 = vector.shape_cast %222 : vector<1x1x1xf32> to vector<1x1xf32>
      %cst_210 = arith.constant dense<0.000000e+00> : vector<1x64xf32>
      %224 = tpu.matmul %223, %167, %cst_210 {dimension_numbers = #tpu.dot_dimension_numbers<[1], [0], [0], [1], [0, 0, 1, 1], [], []>} : vector<1x1xf32>, vector<1x64xf32>, vector<1x64xf32> -> vector<1x64xf32>
      %225 = arith.index_cast %arg60 : i32 to index
      %c0_211 = arith.constant 0 : index
      %c0_212 = arith.constant 0 : index
      %226 = vector.load %arg51[%225, %c0_211, %c0_212] : memref<9x64x64xf32, #tpu.memory_space<vmem>>, vector<1x64x64xf32>
      %227 = vector.shape_cast %226 : vector<1x64x64xf32> to vector<64x64xf32>
      %cst_213 = arith.constant dense<0.000000e+00> : vector<1x64xf32>
      %228 = tpu.matmul %224, %227, %cst_213 {dimension_numbers = #tpu.dot_dimension_numbers<[1], [0], [0], [1], [0, 0, 1, 1], [], []>} : vector<1x64xf32>, vector<64x64xf32>, vector<1x64xf32> -> vector<1x64xf32>
      %229 = arith.addf %arg61, %228 : vector<1x64xf32>
      scf.yield %229 : vector<1x64xf32>
    }
    %c9_i32_166 = arith.constant 9 : i32
    %c0_167 = arith.constant 0 : index
    %c0_168 = arith.constant 0 : index
    %171 = vector.load %arg52[%c0_167, %c0_168] : memref<1x64xf32, #tpu.memory_space<vmem>>, vector<1x64xf32>
    %172 = arith.addf %170, %171 : vector<1x64xf32>
    %173 = arith.addf %172, %160 : vector<1x64xf32>
    %cst_169 = arith.constant 0.000000e+00 : f32
    %174 = vector.broadcast %cst_169 : f32 to vector<1x64xf32>
    %175 = arith.maximumf %173, %174 : vector<1x64xf32>
    %cst_170 = arith.constant 0.000000e+00 : f32
    %176 = vector.broadcast %cst_170 : f32 to vector<1x512xf32>
    %177 = arith.mulf %175, %175 : vector<1x64xf32>
    %c0_171 = arith.constant 0 : index
    %c0_172 = arith.constant 0 : index
    %c0_173 = arith.constant 0 : index
    %178 = vector.load %arg53[%c0_171, %c0_172, %c0_173] : memref<2x64x512xf32, #tpu.memory_space<vmem>>, vector<1x64x512xf32>
    %179 = vector.shape_cast %178 : vector<1x64x512xf32> to vector<64x512xf32>
    %cst_174 = arith.constant dense<0.000000e+00> : vector<1x512xf32>
    %180 = tpu.matmul %177, %179, %cst_174 {dimension_numbers = #tpu.dot_dimension_numbers<[1], [0], [0], [1], [0, 0, 1, 1], [], []>} : vector<1x64xf32>, vector<64x512xf32>, vector<1x512xf32> -> vector<1x512xf32>
    %181 = arith.addf %176, %180 : vector<1x512xf32>
    %c1 = arith.constant 1 : index
    %c0_175 = arith.constant 0 : index
    %c0_176 = arith.constant 0 : index
    %182 = vector.load %arg53[%c1, %c0_175, %c0_176] : memref<2x64x512xf32, #tpu.memory_space<vmem>>, vector<1x64x512xf32>
    %183 = vector.shape_cast %182 : vector<1x64x512xf32> to vector<64x512xf32>
    %cst_177 = arith.constant dense<0.000000e+00> : vector<1x512xf32>
    %184 = tpu.matmul %175, %183, %cst_177 {dimension_numbers = #tpu.dot_dimension_numbers<[1], [0], [0], [1], [0, 0, 1, 1], [], []>} : vector<1x64xf32>, vector<64x512xf32>, vector<1x512xf32> -> vector<1x512xf32>
    %185 = arith.addf %181, %184 : vector<1x512xf32>
    %cst_178 = arith.constant 1.000000e+00 : f32
    %186 = vector.broadcast %cst_178 : f32 to vector<1x512xf32>
    %187 = arith.addf %185, %186 : vector<1x512xf32>
    %c0_179 = arith.constant 0 : index
    %c0_180 = arith.constant 0 : index
    %188 = vector.load %arg54[%c0_179, %c0_180] : memref<1x512xf32, #tpu.memory_space<vmem>>, vector<1x512xf32>
    %189 = arith.addf %187, %188 : vector<1x512xf32>
    %cst_181 = arith.constant 0.000000e+00 : f32
    %190 = vector.broadcast %cst_181 : f32 to vector<1x512xf32>
    %191 = arith.mulf %189, %189 : vector<1x512xf32>
    %c0_182 = arith.constant 0 : index
    %c0_183 = arith.constant 0 : index
    %c0_184 = arith.constant 0 : index
    %192 = vector.load %arg55[%c0_182, %c0_183, %c0_184] : memref<2x512x512xf32, #tpu.memory_space<vmem>>, vector<1x512x512xf32>
    %193 = vector.shape_cast %192 : vector<1x512x512xf32> to vector<512x512xf32>
    %cst_185 = arith.constant dense<0.000000e+00> : vector<1x512xf32>
    %194 = tpu.matmul %191, %193, %cst_185 {dimension_numbers = #tpu.dot_dimension_numbers<[1], [0], [0], [1], [0, 0, 1, 1], [], []>} : vector<1x512xf32>, vector<512x512xf32>, vector<1x512xf32> -> vector<1x512xf32>
    %195 = arith.addf %190, %194 : vector<1x512xf32>
    %c1_186 = arith.constant 1 : index
    %c0_187 = arith.constant 0 : index
    %c0_188 = arith.constant 0 : index
    %196 = vector.load %arg55[%c1_186, %c0_187, %c0_188] : memref<2x512x512xf32, #tpu.memory_space<vmem>>, vector<1x512x512xf32>
    %197 = vector.shape_cast %196 : vector<1x512x512xf32> to vector<512x512xf32>
    %cst_189 = arith.constant dense<0.000000e+00> : vector<1x512xf32>
    %198 = tpu.matmul %189, %197, %cst_189 {dimension_numbers = #tpu.dot_dimension_numbers<[1], [0], [0], [1], [0, 0, 1, 1], [], []>} : vector<1x512xf32>, vector<512x512xf32>, vector<1x512xf32> -> vector<1x512xf32>
    %199 = arith.addf %195, %198 : vector<1x512xf32>
    %cst_190 = arith.constant 1.000000e+00 : f32
    %200 = vector.broadcast %cst_190 : f32 to vector<1x512xf32>
    %201 = arith.addf %199, %200 : vector<1x512xf32>
    %c0_191 = arith.constant 0 : index
    %c0_192 = arith.constant 0 : index
    %202 = vector.load %arg56[%c0_191, %c0_192] : memref<1x512xf32, #tpu.memory_space<vmem>>, vector<1x512xf32>
    %203 = arith.addf %201, %202 : vector<1x512xf32>
    %cst_193 = arith.constant 0.000000e+00 : f32
    %204 = vector.broadcast %cst_193 : f32 to vector<1x10xf32>
    %205 = arith.mulf %203, %203 : vector<1x512xf32>
    %c0_194 = arith.constant 0 : index
    %c0_195 = arith.constant 0 : index
    %c0_196 = arith.constant 0 : index
    %206 = vector.load %arg57[%c0_194, %c0_195, %c0_196] : memref<2x512x10xf32, #tpu.memory_space<vmem>>, vector<1x512x10xf32>
    %207 = vector.shape_cast %206 : vector<1x512x10xf32> to vector<512x10xf32>
    %cst_197 = arith.constant dense<0.000000e+00> : vector<1x10xf32>
    %208 = tpu.matmul %205, %207, %cst_197 {dimension_numbers = #tpu.dot_dimension_numbers<[1], [0], [0], [1], [0, 0, 1, 1], [], []>} : vector<1x512xf32>, vector<512x10xf32>, vector<1x10xf32> -> vector<1x10xf32>
    %209 = arith.addf %204, %208 : vector<1x10xf32>
    %c1_198 = arith.constant 1 : index
    %c0_199 = arith.constant 0 : index
    %c0_200 = arith.constant 0 : index
    %210 = vector.load %arg57[%c1_198, %c0_199, %c0_200] : memref<2x512x10xf32, #tpu.memory_space<vmem>>, vector<1x512x10xf32>
    %211 = vector.shape_cast %210 : vector<1x512x10xf32> to vector<512x10xf32>
    %cst_201 = arith.constant dense<0.000000e+00> : vector<1x10xf32>
    %212 = tpu.matmul %203, %211, %cst_201 {dimension_numbers = #tpu.dot_dimension_numbers<[1], [0], [0], [1], [0, 0, 1, 1], [], []>} : vector<1x512xf32>, vector<512x10xf32>, vector<1x10xf32> -> vector<1x10xf32>
    %213 = arith.addf %209, %212 : vector<1x10xf32>
    %cst_202 = arith.constant 1.000000e+00 : f32
    %214 = vector.broadcast %cst_202 : f32 to vector<1x10xf32>
    %215 = arith.addf %213, %214 : vector<1x10xf32>
    %c0_203 = arith.constant 0 : index
    %c0_204 = arith.constant 0 : index
    %216 = vector.load %arg58[%c0_203, %c0_204] : memref<1x10xf32, #tpu.memory_space<vmem>>, vector<1x10xf32>
    %217 = arith.addf %215, %216 : vector<1x10xf32>
    %c0_205 = arith.constant 0 : index
    %c0_206 = arith.constant 0 : index
    %c0_207 = arith.constant 0 : index
    %218 = vector.load %arg59[%c0_205, %c0_206, %c0_207] : memref<1x1x10xf32, #tpu.memory_space<vmem>>, vector<1x1x10xf32>
    %219 = vector.shape_cast %218 : vector<1x1x10xf32> to vector<1x10xf32>
    %220 = vector.shape_cast %217 : vector<1x10xf32> to vector<1x1x10xf32>
    tpu.vector_store %arg59[%c0_205, %c0_206, %c0_207], %220 {strides = array<i32>} : memref<1x1x10xf32, #tpu.memory_space<vmem>>, vector<1x1x10xf32>,
    return
  }
  func.func @transform_0(%arg0: i32) -> (i32, i32, i32) {
    %c0_i32 = arith.constant 0 : i32
    %c0_i32_0 = arith.constant 0 : i32
    %c0_i32_1 = arith.constant 0 : i32
    return %arg0, %c0_i32, %c0_i32_0 : i32, i32, i32
  }
  func.func @transform_1(%arg0: i32) -> (i32, i32) {
    %c0_i32 = arith.constant 0 : i32
    %c0_i32_0 = arith.constant 0 : i32
    %c0_i32_1 = arith.constant 0 : i32
    return %c0_i32, %c0_i32_0 : i32, i32
  }
  func.func @transform_2(%arg0: i32) -> (i32, i32) {
    %c0_i32 = arith.constant 0 : i32
    %c0_i32_0 = arith.constant 0 : i32
    %c0_i32_1 = arith.constant 0 : i32
    return %c0_i32, %c0_i32_0 : i32, i32
  }
  func.func @transform_3(%arg0: i32) -> (i32, i32, i32) {
    %c0_i32 = arith.constant 0 : i32
    %c0_i32_0 = arith.constant 0 : i32
    %c0_i32_1 = arith.constant 0 : i32
    %c0_i32_2 = arith.constant 0 : i32
    return %c0_i32, %c0_i32_0, %c0_i32_1 : i32, i32, i32
  }
  func.func @transform_4(%arg0: i32) -> (i32, i32, i32) {
    %c0_i32 = arith.constant 0 : i32
    %c0_i32_0 = arith.constant 0 : i32
    %c0_i32_1 = arith.constant 0 : i32
    %c0_i32_2 = arith.constant 0 : i32
    return %c0_i32, %c0_i32_0, %c0_i32_1 : i32, i32, i32
  }
  func.func @transform_5(%arg0: i32) -> (i32, i32, i32) {
    %c0_i32 = arith.constant 0 : i32
    %c0_i32_0 = arith.constant 0 : i32
    %c0_i32_1 = arith.constant 0 : i32
    %c0_i32_2 = arith.constant 0 : i32
    return %c0_i32, %c0_i32_0, %c0_i32_1 : i32, i32, i32
  }
  func.func @transform_6(%arg0: i32) -> (i32, i32) {
    %c0_i32 = arith.constant 0 : i32
    %c0_i32_0 = arith.constant 0 : i32
    %c0_i32_1 = arith.constant 0 : i32
    return %c0_i32, %c0_i32_0 : i32, i32
  }
  func.func @transform_7(%arg0: i32) -> (i32, i32, i32) {
    %c0_i32 = arith.constant 0 : i32
    %c0_i32_0 = arith.constant 0 : i32
    %c0_i32_1 = arith.constant 0 : i32
    %c0_i32_2 = arith.constant 0 : i32
    return %c0_i32, %c0_i32_0, %c0_i32_1 : i32, i32, i32
  }
  func.func @transform_8(%arg0: i32) -> (i32, i32) {
    %c0_i32 = arith.constant 0 : i32
    %c0_i32_0 = arith.constant 0 : i32
    %c0_i32_1 = arith.constant 0 : i32
    return %c0_i32, %c0_i32_0 : i32, i32
  }
  func.func @transform_9(%arg0: i32) -> (i32, i32, i32) {
    %c0_i32 = arith.constant 0 : i32
    %c0_i32_0 = arith.constant 0 : i32
    %c0_i32_1 = arith.constant 0 : i32
    %c0_i32_2 = arith.constant 0 : i32
    return %c0_i32, %c0_i32_0, %c0_i32_1 : i32, i32, i32
  }
  func.func @transform_10(%arg0: i32) -> (i32, i32) {
    %c0_i32 = arith.constant 0 : i32
    %c0_i32_0 = arith.constant 0 : i32
    %c0_i32_1 = arith.constant 0 : i32
    return %c0_i32, %c0_i32_0 : i32, i32
  }
  func.func @transform_11(%arg0: i32) -> (i32, i32, i32) {
    %c0_i32 = arith.constant 0 : i32
    %c0_i32_0 = arith.constant 0 : i32
    %c0_i32_1 = arith.constant 0 : i32
    %c0_i32_2 = arith.constant 0 : i32
    return %c0_i32, %c0_i32_0, %c0_i32_1 : i32, i32, i32
  }
  func.func @transform_12(%arg0: i32) -> (i32, i32) {
    %c0_i32 = arith.constant 0 : i32
    %c0_i32_0 = arith.constant 0 : i32
    %c0_i32_1 = arith.constant 0 : i32
    return %c0_i32, %c0_i32_0 : i32, i32
  }
  func.func @transform_13(%arg0: i32) -> (i32, i32, i32) {
    %c0_i32 = arith.constant 0 : i32
    %c0_i32_0 = arith.constant 0 : i32
    %c0_i32_1 = arith.constant 0 : i32
    %c0_i32_2 = arith.constant 0 : i32
    return %c0_i32, %c0_i32_0, %c0_i32_1 : i32, i32, i32
  }
  func.func @transform_14(%arg0: i32) -> (i32, i32, i32) {
    %c0_i32 = arith.constant 0 : i32
    %c0_i32_0 = arith.constant 0 : i32
    %c0_i32_1 = arith.constant 0 : i32
    %c0_i32_2 = arith.constant 0 : i32
    return %c0_i32, %c0_i32_0, %c0_i32_1 : i32, i32, i32
  }
  func.func @transform_15(%arg0: i32) -> (i32, i32, i32) {
    %c0_i32 = arith.constant 0 : i32
    %c0_i32_0 = arith.constant 0 : i32
    %c0_i32_1 = arith.constant 0 : i32
    %c0_i32_2 = arith.constant 0 : i32
    return %c0_i32, %c0_i32_0, %c0_i32_1 : i32, i32, i32
  }
  func.func @transform_16(%arg0: i32) -> (i32, i32, i32) {
    %c0_i32 = arith.constant 0 : i32
    %c0_i32_0 = arith.constant 0 : i32
    %c0_i32_1 = arith.constant 0 : i32
    %c0_i32_2 = arith.constant 0 : i32
    return %c0_i32, %c0_i32_0, %c0_i32_1 : i32, i32, i32
  }
  func.func @transform_17(%arg0: i32) -> (i32, i32) {
    %c0_i32 = arith.constant 0 : i32
    %c0_i32_0 = arith.constant 0 : i32
    %c0_i32_1 = arith.constant 0 : i32
    return %c0_i32, %c0_i32_0 : i32, i32
  }
  func.func @transform_18(%arg0: i32) -> (i32, i32, i32) {
    %c0_i32 = arith.constant 0 : i32
    %c0_i32_0 = arith.constant 0 : i32
    %c0_i32_1 = arith.constant 0 : i32
    %c0_i32_2 = arith.constant 0 : i32
    return %c0_i32, %c0_i32_0, %c0_i32_1 : i32, i32, i32
  }
  func.func @transform_19(%arg0: i32) -> (i32, i32) {
    %c0_i32 = arith.constant 0 : i32
    %c0_i32_0 = arith.constant 0 : i32
    %c0_i32_1 = arith.constant 0 : i32
    return %c0_i32, %c0_i32_0 : i32, i32
  }
  func.func @transform_20(%arg0: i32) -> (i32, i32, i32) {
    %c0_i32 = arith.constant 0 : i32
    %c0_i32_0 = arith.constant 0 : i32
    %c0_i32_1 = arith.constant 0 : i32
    %c0_i32_2 = arith.constant 0 : i32
    return %c0_i32, %c0_i32_0, %c0_i32_1 : i32, i32, i32
  }
  func.func @transform_21(%arg0: i32) -> (i32, i32) {
    %c0_i32 = arith.constant 0 : i32
    %c0_i32_0 = arith.constant 0 : i32
    %c0_i32_1 = arith.constant 0 : i32
    return %c0_i32, %c0_i32_0 : i32, i32
  }
  func.func @transform_22(%arg0: i32) -> (i32, i32, i32) {
    %c0_i32 = arith.constant 0 : i32
    %c0_i32_0 = arith.constant 0 : i32
    %c0_i32_1 = arith.constant 0 : i32
    %c0_i32_2 = arith.constant 0 : i32
    return %c0_i32, %c0_i32_0, %c0_i32_1 : i32, i32, i32
  }
  func.func @transform_23(%arg0: i32) -> (i32, i32) {
    %c0_i32 = arith.constant 0 : i32
    %c0_i32_0 = arith.constant 0 : i32
    %c0_i32_1 = arith.constant 0 : i32
    return %c0_i32, %c0_i32_0 : i32, i32
  }
  func.func @transform_24(%arg0: i32) -> (i32, i32, i32) {
    %c0_i32 = arith.constant 0 : i32
    %c0_i32_0 = arith.constant 0 : i32
    %c0_i32_1 = arith.constant 0 : i32
    %c0_i32_2 = arith.constant 0 : i32
    return %c0_i32, %c0_i32_0, %c0_i32_1 : i32, i32, i32
  }
  func.func @transform_25(%arg0: i32) -> (i32, i32) {
    %c0_i32 = arith.constant 0 : i32
    %c0_i32_0 = arith.constant 0 : i32
    %c0_i32_1 = arith.constant 0 : i32
    return %c0_i32, %c0_i32_0 : i32, i32
  }
  func.func @transform_26(%arg0: i32) -> (i32, i32, i32) {
    %c0_i32 = arith.constant 0 : i32
    %c0_i32_0 = arith.constant 0 : i32
    %c0_i32_1 = arith.constant 0 : i32
    %c0_i32_2 = arith.constant 0 : i32
    return %c0_i32, %c0_i32_0, %c0_i32_1 : i32, i32, i32
  }
  func.func @transform_27(%arg0: i32) -> (i32, i32, i32) {
    %c0_i32 = arith.constant 0 : i32
    %c0_i32_0 = arith.constant 0 : i32
    %c0_i32_1 = arith.constant 0 : i32
    %c0_i32_2 = arith.constant 0 : i32
    return %c0_i32, %c0_i32_0, %c0_i32_1 : i32, i32, i32
  }
  func.func @transform_28(%arg0: i32) -> (i32, i32, i32) {
    %c0_i32 = arith.constant 0 : i32
    %c0_i32_0 = arith.constant 0 : i32
    %c0_i32_1 = arith.constant 0 : i32
    %c0_i32_2 = arith.constant 0 : i32
    return %c0_i32, %c0_i32_0, %c0_i32_1 : i32, i32, i32
  }
  func.func @transform_29(%arg0: i32) -> (i32, i32, i32) {
    %c0_i32 = arith.constant 0 : i32
    %c0_i32_0 = arith.constant 0 : i32
    %c0_i32_1 = arith.constant 0 : i32
    %c0_i32_2 = arith.constant 0 : i32
    return %c0_i32, %c0_i32_0, %c0_i32_1 : i32, i32, i32
  }
  func.func @transform_30(%arg0: i32) -> (i32, i32) {
    %c0_i32 = arith.constant 0 : i32
    %c0_i32_0 = arith.constant 0 : i32
    %c0_i32_1 = arith.constant 0 : i32
    return %c0_i32, %c0_i32_0 : i32, i32
  }
  func.func @transform_31(%arg0: i32) -> (i32, i32, i32) {
    %c0_i32 = arith.constant 0 : i32
    %c0_i32_0 = arith.constant 0 : i32
    %c0_i32_1 = arith.constant 0 : i32
    %c0_i32_2 = arith.constant 0 : i32
    return %c0_i32, %c0_i32_0, %c0_i32_1 : i32, i32, i32
  }
  func.func @transform_32(%arg0: i32) -> (i32, i32) {
    %c0_i32 = arith.constant 0 : i32
    %c0_i32_0 = arith.constant 0 : i32
    %c0_i32_1 = arith.constant 0 : i32
    return %c0_i32, %c0_i32_0 : i32, i32
  }
  func.func @transform_33(%arg0: i32) -> (i32, i32, i32) {
    %c0_i32 = arith.constant 0 : i32
    %c0_i32_0 = arith.constant 0 : i32
    %c0_i32_1 = arith.constant 0 : i32
    %c0_i32_2 = arith.constant 0 : i32
    return %c0_i32, %c0_i32_0, %c0_i32_1 : i32, i32, i32
  }
  func.func @transform_34(%arg0: i32) -> (i32, i32) {
    %c0_i32 = arith.constant 0 : i32
    %c0_i32_0 = arith.constant 0 : i32
    %c0_i32_1 = arith.constant 0 : i32
    return %c0_i32, %c0_i32_0 : i32, i32
  }
  func.func @transform_35(%arg0: i32) -> (i32, i32, i32) {
    %c0_i32 = arith.constant 0 : i32
    %c0_i32_0 = arith.constant 0 : i32
    %c0_i32_1 = arith.constant 0 : i32
    %c0_i32_2 = arith.constant 0 : i32
    return %c0_i32, %c0_i32_0, %c0_i32_1 : i32, i32, i32
  }
  func.func @transform_36(%arg0: i32) -> (i32, i32) {
    %c0_i32 = arith.constant 0 : i32
    %c0_i32_0 = arith.constant 0 : i32
    %c0_i32_1 = arith.constant 0 : i32
    return %c0_i32, %c0_i32_0 : i32, i32
  }
  func.func @transform_37(%arg0: i32) -> (i32, i32, i32) {
    %c0_i32 = arith.constant 0 : i32
    %c0_i32_0 = arith.constant 0 : i32
    %c0_i32_1 = arith.constant 0 : i32
    %c0_i32_2 = arith.constant 0 : i32
    return %c0_i32, %c0_i32_0, %c0_i32_1 : i32, i32, i32
  }
  func.func @transform_38(%arg0: i32) -> (i32, i32) {
    %c0_i32 = arith.constant 0 : i32
    %c0_i32_0 = arith.constant 0 : i32
    %c0_i32_1 = arith.constant 0 : i32
    return %c0_i32, %c0_i32_0 : i32, i32
  }
  func.func @transform_39(%arg0: i32) -> (i32, i32, i32) {
    %c0_i32 = arith.constant 0 : i32
    %c0_i32_0 = arith.constant 0 : i32
    %c0_i32_1 = arith.constant 0 : i32
    %c0_i32_2 = arith.constant 0 : i32
    return %c0_i32, %c0_i32_0, %c0_i32_1 : i32, i32, i32
  }
  func.func @transform_40(%arg0: i32) -> (i32, i32, i32) {
    %c0_i32 = arith.constant 0 : i32
    %c0_i32_0 = arith.constant 0 : i32
    %c0_i32_1 = arith.constant 0 : i32
    %c0_i32_2 = arith.constant 0 : i32
    return %c0_i32, %c0_i32_0, %c0_i32_1 : i32, i32, i32
  }
  func.func @transform_41(%arg0: i32) -> (i32, i32, i32) {
    %c0_i32 = arith.constant 0 : i32
    %c0_i32_0 = arith.constant 0 : i32
    %c0_i32_1 = arith.constant 0 : i32
    %c0_i32_2 = arith.constant 0 : i32
    return %c0_i32, %c0_i32_0, %c0_i32_1 : i32, i32, i32
  }
  func.func @transform_42(%arg0: i32) -> (i32, i32, i32) {
    %c0_i32 = arith.constant 0 : i32
    %c0_i32_0 = arith.constant 0 : i32
    %c0_i32_1 = arith.constant 0 : i32
    %c0_i32_2 = arith.constant 0 : i32
    return %c0_i32, %c0_i32_0, %c0_i32_1 : i32, i32, i32
  }
  func.func @transform_43(%arg0: i32) -> (i32, i32) {
    %c0_i32 = arith.constant 0 : i32
    %c0_i32_0 = arith.constant 0 : i32
    %c0_i32_1 = arith.constant 0 : i32
    return %c0_i32, %c0_i32_0 : i32, i32
  }
  func.func @transform_44(%arg0: i32) -> (i32, i32, i32) {
    %c0_i32 = arith.constant 0 : i32
    %c0_i32_0 = arith.constant 0 : i32
    %c0_i32_1 = arith.constant 0 : i32
    %c0_i32_2 = arith.constant 0 : i32
    return %c0_i32, %c0_i32_0, %c0_i32_1 : i32, i32, i32
  }
  func.func @transform_45(%arg0: i32) -> (i32, i32) {
    %c0_i32 = arith.constant 0 : i32
    %c0_i32_0 = arith.constant 0 : i32
    %c0_i32_1 = arith.constant 0 : i32
    return %c0_i32, %c0_i32_0 : i32, i32
  }
  func.func @transform_46(%arg0: i32) -> (i32, i32, i32) {
    %c0_i32 = arith.constant 0 : i32
    %c0_i32_0 = arith.constant 0 : i32
    %c0_i32_1 = arith.constant 0 : i32
    %c0_i32_2 = arith.constant 0 : i32
    return %c0_i32, %c0_i32_0, %c0_i32_1 : i32, i32, i32
  }
  func.func @transform_47(%arg0: i32) -> (i32, i32) {
    %c0_i32 = arith.constant 0 : i32
    %c0_i32_0 = arith.constant 0 : i32
    %c0_i32_1 = arith.constant 0 : i32
    return %c0_i32, %c0_i32_0 : i32, i32
  }
  func.func @transform_48(%arg0: i32) -> (i32, i32, i32) {
    %c0_i32 = arith.constant 0 : i32
    %c0_i32_0 = arith.constant 0 : i32
    %c0_i32_1 = arith.constant 0 : i32
    %c0_i32_2 = arith.constant 0 : i32
    return %c0_i32, %c0_i32_0, %c0_i32_1 : i32, i32, i32
  }
  func.func @transform_49(%arg0: i32) -> (i32, i32) {
    %c0_i32 = arith.constant 0 : i32
    %c0_i32_0 = arith.constant 0 : i32
    %c0_i32_1 = arith.constant 0 : i32
    return %c0_i32, %c0_i32_0 : i32, i32
  }
  func.func @transform_50(%arg0: i32) -> (i32, i32, i32) {
    %c0_i32 = arith.constant 0 : i32
    %c0_i32_0 = arith.constant 0 : i32
    %c0_i32_1 = arith.constant 0 : i32
    %c0_i32_2 = arith.constant 0 : i32
    return %c0_i32, %c0_i32_0, %c0_i32_1 : i32, i32, i32
  }
  func.func @transform_51(%arg0: i32) -> (i32, i32) {
    %c0_i32 = arith.constant 0 : i32
    %c0_i32_0 = arith.constant 0 : i32
    %c0_i32_1 = arith.constant 0 : i32
    return %c0_i32, %c0_i32_0 : i32, i32
  }
  func.func @transform_52(%arg0: i32) -> (i32, i32, i32) {
    %c0_i32 = arith.constant 0 : i32
    %c0_i32_0 = arith.constant 0 : i32
    %c0_i32_1 = arith.constant 0 : i32
    %c0_i32_2 = arith.constant 0 : i32
    return %c0_i32, %c0_i32_0, %c0_i32_1 : i32, i32, i32
  }
  func.func @transform_53(%arg0: i32) -> (i32, i32) {
    %c0_i32 = arith.constant 0 : i32
    %c0_i32_0 = arith.constant 0 : i32
    %c0_i32_1 = arith.constant 0 : i32
    return %c0_i32, %c0_i32_0 : i32, i32
  }
  func.func @transform_54(%arg0: i32) -> (i32, i32, i32) {
    %c0_i32 = arith.constant 0 : i32
    %c0_i32_0 = arith.constant 0 : i32
    %c0_i32_1 = arith.constant 0 : i32
    %c0_i32_2 = arith.constant 0 : i32
    return %c0_i32, %c0_i32_0, %c0_i32_1 : i32, i32, i32
  }
  func.func @transform_55(%arg0: i32) -> (i32, i32) {
    %c0_i32 = arith.constant 0 : i32
    %c0_i32_0 = arith.constant 0 : i32
    %c0_i32_1 = arith.constant 0 : i32
    return %c0_i32, %c0_i32_0 : i32, i32
  }
  func.func @transform_56(%arg0: i32) -> (i32, i32, i32) {
    %c0_i32 = arith.constant 0 : i32
    %c0_i32_0 = arith.constant 0 : i32
    %c0_i32_1 = arith.constant 0 : i32
    %c0_i32_2 = arith.constant 0 : i32
    return %c0_i32, %c0_i32_0, %c0_i32_1 : i32, i32, i32
  }
  func.func @transform_57(%arg0: i32) -> (i32, i32) {
    %c0_i32 = arith.constant 0 : i32
    %c0_i32_0 = arith.constant 0 : i32
    %c0_i32_1 = arith.constant 0 : i32
    return %c0_i32, %c0_i32_0 : i32, i32
  }
  func.func @transform_58(%arg0: i32) -> (i32, i32, i32) {
    %c0_i32 = arith.constant 0 : i32
    %c0_i32_0 = arith.constant 0 : i32
    %c0_i32_1 = arith.constant 0 : i32
    return %arg0, %c0_i32, %c0_i32_0 : i32, i32, i32
  }
}

</mosaic_0001>

<bundles_post_ra>
// kernel: forward.1
= control target key start
LH: loop header
LB: loop body
LE: loop exit
PB: predicated region body
PF: predicated region fallthrough
CT: control target
= control target key end

     0   :  { %s12439_s6 = smov 1   ;;  %s12440_s10 = smov 2   ;;  %s15223_s0 = inlined_call_operand.smem [shape: u32[59], index: -1, kind: input, shape index: {}] }
   0x1   :  { %s12540_s5 = sld [smem:[%s15223_s0]]   ;;  %s12441_s14 = smov 3  }
   0x2   :  { %s12545_s9 = sld [smem:[%s15223_s0 + %s12439_s6]]   ;;  %s12442_s18 = smov 4  }
   0x3   :  { %s12550_s13 = sld [smem:[%s15223_s0 + %s12440_s10]]   ;;  %s12443_s22 = smov 5  }
   0x4   :  { %s12555_s17 = sld [smem:[%s15223_s0 + %s12441_s14]]   ;;  %s12444_s26 = smov 6  }
   0x5   :  { %s12560_s21 = sld [smem:[%s15223_s0 + %s12442_s18]]   ;;  %s12445_s30 = smov 7  }
   0x6   :  { %s12565_s25 = sld [smem:[%s15223_s0 + %s12443_s22]]   ;;  %s12446_s4 = smov 8  }
   0x7   :  { %15245 = sst [smem:[#allocation39_spill]] %s12540_s5  ;;  %s12447_s10 = smov 9  }
   0x8   :  { %15246 = sst [smem:[#allocation40_spill]] %s12545_s9  ;;  %s12448_s15 = smov 10  }
   0x9   :  { %15247 = sst [smem:[#allocation41_spill]] %s12550_s13  ;;  %s12449_s20 = smov 11  }
   0xa   :  { %15248 = sst [smem:[#allocation42_spill]] %s12555_s17  ;;  %s12451_s1 = smov 13  }
   0xb   :  { %15249 = sst [smem:[#allocation43_spill]] %s12560_s21  ;;  %s12452_s7 = smov 14  }
   0xc   :  { %15250 = sst [smem:[#allocation44_spill]] %s12565_s25  ;;  %s12454_s22 = smov 16  }
   0xd   :  { %s12570_s29 = sld [smem:[%s15223_s0 + %s12444_s26]]   ;;  %s12450_s26 = smov 12  }
   0xe   :  { %s12575_s3 = sld [smem:[%s15223_s0 + %s12445_s30]]   ;;  %s12455_s28 = smov 17  }
   0xf   :  { %s12580_s8 = sld [smem:[%s15223_s0 + %s12446_s4]]  }
  0x10   :  { %s12585_s14 = sld [smem:[%s15223_s0 + %s12447_s10]]  }
  0x11   :  { %s12590_s19 = sld [smem:[%s15223_s0 + %s12448_s15]]   ;;  %s12453_s15 = smov 15  }
  0x12   :  { %s12595_s24 = sld [smem:[%s15223_s0 + %s12449_s20]]  }
  0x13   :  { %15251 = sst [smem:[#allocation45_spill]] %s12570_s29 }
  0x14   :  { %15252 = sst [smem:[#allocation46_spill]] %s12575_s3 }
  0x15   :  { %15253 = sst [smem:[#allocation47_spill]] %s12580_s8 }
  0x16   :  { %15254 = sst [smem:[#allocation48_spill]] %s12585_s14 }
  0x17   :  { %15255 = sst [smem:[#allocation49_spill]] %s12590_s19 }
  0x18   :  { %15256 = sst [smem:[#allocation50_spill]] %s12595_s24 }
  0x19   :  { %s12600_s30 = sld [smem:[%s15223_s0 + %s12450_s26]]  }
  0x1a   :  { %s12605_s6 = sld [smem:[%s15223_s0 + %s12451_s1]]  }
  0x1b   :  { %s12610_s12 = sld [smem:[%s15223_s0 + %s12452_s7]]   ;;  %s12456_s7 = smov 18  }
  0x1c   :  { %s12615_s20 = sld [smem:[%s15223_s0 + %s12453_s15]]   ;;  %s12457_s15 = smov 19  }
  0x1d   :  { %s12620_s27 = sld [smem:[%s15223_s0 + %s12454_s22]]   ;;  %s12458_s22 = smov 20  }
  0x1e   :  { %s12625_s4 = sld [smem:[%s15223_s0 + %s12455_s28]]   ;;  %s12459_s28 = smov 21  }
  0x1f   :  { %15257 = sst [smem:[#allocation51_spill]] %s12600_s30 }
  0x20   :  { %15258 = sst [smem:[#allocation52_spill]] %s12605_s6 }
  0x21   :  { %15259 = sst [smem:[#allocation53_spill]] %s12610_s12 }
  0x22   :  { %15260 = sst [smem:[#allocation54_spill]] %s12615_s20 }
  0x23   :  { %15261 = sst [smem:[#allocation55_spill]] %s12620_s27 }
  0x24   :  { %15262 = sst [smem:[#allocation56_spill]] %s12625_s4 }
  0x25   :  { %s12630_s12 = sld [smem:[%s15223_s0 + %s12456_s7]]   ;;  %s12460_s7 = smov 22  }
  0x26   :  { %s12635_s6 = sld [smem:[%s15223_s0 + %s12457_s15]]   ;;  %s12461_s15 = smov 23  }
  0x27   :  { %s12640_s27 = sld [smem:[%s15223_s0 + %s12458_s22]]   ;;  %s12462_s22 = smov 24  }
  0x28   :  { %s12645_s4 = sld [smem:[%s15223_s0 + %s12459_s28]]   ;;  %s12463_s28 = smov 25  }
  0x29   :  { %s12655_s20 = sld [smem:[%s15223_s0 + %s12461_s15]]   ;;  %s12465_s15 = smov 27  }
  0x2a   :  { %s12665_s30 = sld [smem:[%s15223_s0 + %s12463_s28]]   ;;  %s12467_s28 = smov 29  }
  0x2b   :  { %15263 = sst [smem:[#allocation57_spill]] %s12630_s12 }
  0x2c   :  { %s12650_s12 = sld [smem:[%s15223_s0 + %s12460_s7]]   ;;  %s12464_s7 = smov 26  }
  0x2d   :  { %15264 = sst [smem:[#allocation58_spill]] %s12640_s27 }
  0x2e   :  { %15265 = sst [smem:[#allocation59_spill]] %s12645_s4 }
  0x2f   :  { %s12660_s27 = sld [smem:[%s15223_s0 + %s12462_s22]]   ;;  %s12466_s22 = smov 28  }
  0x30   :  { %s12675_s24 = sld [smem:[%s15223_s0 + %s12465_s15]]   ;;  %s12469_s15 = smov 31  }
  0x31   :  { %s12685_s19 = sld [smem:[%s15223_s0 + %s12467_s28]]   ;;  %s12471_s28 = smov 33  }
  0x32   :  { %15266 = sst [smem:[#allocation60_spill]] %s12650_s12 }
  0x33   :  { %s12670_s12 = sld [smem:[%s15223_s0 + %s12464_s7]]   ;;  %s12468_s7 = smov 30  }
  0x35   :  { %15267 = sst [smem:[#allocation61_spill]] %s12660_s27 }
  0x36   :  { %15269 = sst [smem:[#allocation63_spill]] %s12675_s24 }
  0x37   :  { %s12680_s27 = sld [smem:[%s15223_s0 + %s12466_s22]]   ;;  %s12470_s22 = smov 32  }
  0x38   :  { %15271 = sst [smem:[#allocation65_spill]] %s12685_s19 }
  0x39   :  { %15268 = sst [smem:[#allocation62_spill]] %s12670_s12 }
  0x3a   :  { %s12690_s12 = sld [smem:[%s15223_s0 + %s12468_s7]]   ;;  %s12472_s7 = smov 34  }
  0x3b   :  { %s12695_s24 = sld [smem:[%s15223_s0 + %s12469_s15]]   ;;  %s12473_s15 = smov 35  }
  0x3c   :  { %s12705_s19 = sld [smem:[%s15223_s0 + %s12471_s28]]   ;;  %s12475_s28 = smov 37  }
  0x3d   :  { %15270 = sst [smem:[#allocation64_spill]] %s12680_s27 }
  0x3e   :  { %s12700_s27 = sld [smem:[%s15223_s0 + %s12470_s22]]   ;;  %s12474_s22 = smov 36  }
  0x3f   :  { %s12710_s14 = sld [smem:[%s15223_s0 + %s12472_s7]]   ;;  %s12476_s7 = smov 38  }
  0x40   :  { %s12720_s8 = sld [smem:[%s15223_s0 + %s12474_s22]]   ;;  %s12478_s22 = smov 40  }
  0x41   :  { %15272 = sst [smem:[#allocation66_spill]] %s12695_s24 }
  0x42   :  { %15273 = sst [smem:[#allocation67_spill]] %s12705_s19 }
  0x43   :  { %s12715_s24 = sld [smem:[%s15223_s0 + %s12473_s15]]   ;;  %s12477_s15 = smov 39  }
  0x44   :  { %s12725_s19 = sld [smem:[%s15223_s0 + %s12475_s28]]   ;;  %s12479_s28 = smov 41  }
  0x45   :  { %s12730_s3 = sld [smem:[%s15223_s0 + %s12476_s7]]   ;;  %s12480_s7 = smov 42  }
  0x46   :  { %15275 = sst [smem:[#allocation69_spill]] %s12720_s8 }
  0x47   :  { %s12740_s29 = sld [smem:[%s15223_s0 + %s12478_s22]]   ;;  %s12482_s22 = smov 44  }
  0x48   :  { %s12750_s25 = sld [smem:[%s15223_s0 + %s12480_s7]]   ;;  %s12484_s7 = smov 46  }
  0x49   :  { %15274 = sst [smem:[#allocation68_spill]] %s12715_s24 }
  0x4a   :  { %15276 = sst [smem:[#allocation70_spill]] %s12725_s19 }
  0x4b   :  { %15277 = sst [smem:[#allocation71_spill]] %s12730_s3 }
  0x4c   :  { %s12735_s24 = sld [smem:[%s15223_s0 + %s12477_s15]]   ;;  %s12481_s15 = smov 43  }
  0x4d   :  { %15279 = sst [smem:[#allocation73_spill]] %s12740_s29 }
  0x4e   :  { %s12745_s19 = sld [smem:[%s15223_s0 + %s12479_s28]]   ;;  %s12483_s28 = smov 45  }
  0x4f   :  { %15280 = sst [smem:[#allocation74_spill]] %s12750_s25 }
  0x50   :  { %s12760_s29 = sld [smem:[%s15223_s0 + %s12482_s22]]   ;;  %s12486_s22 = smov 48  }
  0x51   :  { %s12765_s21 = sld [smem:[%s15223_s0 + %s12483_s28]]   ;;  %s12487_s28 = smov 49  }
  0x52   :  { %15278 = sst [smem:[#allocation72_spill]] %s12735_s24 }
  0x53   :  { %s12755_s24 = sld [smem:[%s15223_s0 + %s12481_s15]]   ;;  %s12485_s15 = smov 47  }
  0x54   :  { %s12770_s25 = sld [smem:[%s15223_s0 + %s12484_s7]]   ;;  %s12488_s7 = smov 50  }
  0x55   :  { %s12775_s17 = sld [smem:[%s15223_s0 + %s12485_s15]]   ;;  %s12489_s15 = smov 51  }
  0x56   :  { %15281 = sst [smem:[#allocation75_spill]] %s12760_s29 }
  0x57   :  { %s12780_s29 = sld [smem:[%s15223_s0 + %s12486_s22]]   ;;  %s12490_s22 = smov 52  }
  0x58   :  { %s12785_s13 = sld [smem:[%s15223_s0 + %s12487_s28]]   ;;  %s12491_s28 = smov 53  }
  0x59   :  { %s12795_s5 = sld [smem:[%s15223_s0 + %s12489_s15]]   ;;  %s12493_s15 = smov 55  }
  0x5a   :  { %15282 = sst [smem:[#allocation76_spill]] %s12770_s25 }
  0x5b   :  { %s12790_s25 = sld [smem:[%s15223_s0 + %s12488_s7]]   ;;  %s12492_s7 = smov 54  }
  0x5c   :  { %s12805_s9 = sld [smem:[%s15223_s0 + %s12491_s28]]   ;;  %s12495_s28 = smov 57  }
  0x5d   :  { %15283 = sst [smem:[#allocation77_spill]] %s12780_s29 }
  0x5e   :  { %s12800_s29 = sld [smem:[%s15223_s0 + %s12490_s22]]   ;;  %s12494_s22 = smov 56  }
  0x5f   :  { %15285 = sst [smem:[#allocation79_spill]] %s12795_s5 }
  0x60   :  { %s12815_s5 = sld [smem:[%s15223_s0 + %s12493_s15]]  }
  0x61   :  { %15284 = sst [smem:[#allocation78_spill]] %s12790_s25 }
  0x62   :  { %15287 = sst [smem:[#allocation81_spill]] %s12805_s9 }
  0x63   :  { %s12810_s25 = sld [smem:[%s15223_s0 + %s12492_s7]]   ;;  %s12496_s7 = smov 58  }
  0x64   :  { %15286 = sst [smem:[#allocation80_spill]] %s12800_s29 }
  0x65   :  { %s12820_s29 = sld [smem:[%s15223_s0 + %s12494_s22]]  }
  0x66   :  { %15289 = sst [smem:[#allocation83_spill]] %s12815_s5 }
  0x67   :  { %s12825_s9 = sld [smem:[%s15223_s0 + %s12495_s28]]  }
  0x69   :  { %15288 = sst [smem:[#allocation82_spill]] %s12810_s25 }
  0x6a   :  { %s12830_s25 = sld [smem:[%s15223_s0 + %s12496_s7]]  }
  0x6b   :  { %122 = vsyncpa [#allocation3], 0 }
  0x6c   :  { %123 = vsyncpa [#allocation6], 0 }
  0x6d   :  { %124 = vsyncpa [#allocation9], 0 }
  0x6e   :  { %125 = vsyncpa [#allocation12], 0 }
  0x6f   :  { %126 = vsyncpa [#allocation15], 0 }
  0x70   :  { %127 = vsyncpa [#allocation18], 0 }
  0x71   :  { %128 = vsyncpa [#allocation21], 0 }
  0x72   :  { %129 = vsyncpa [#allocation24], 0 }
  0x73   :  { %130 = vsyncpa [#allocation27], 0 }
  0x74   :  { %131 = vsyncpa [#allocation4], 0 }
  0x75   :  { %133 = vsyncpa [#allocation4 + $0x1], 0  ;;  %s12832_s15 = smov 0   ;;  %s12834_s16 = smov 0  }
  0x76   :  { %s12836_s18 = smov 0   ;;  %s12838_s22 = smov 0  }
  0x77 LB: > { %15290 = sst [smem:[#allocation84_spill]] %s12133_s15  ;;  %s12853_s0 = sadd.s32 4294967295, %s12145_s22   ;;  %s12145_s22 = sphi %s12838_s22, %s15468_s22   ;;  %s12141_s18 = sphi %s12836_s18, %s15470_s18   ;;  %s12137_s16 = sphi %s12834_s16, %s15472_s16   ;;  %s12133_s15 = sphi %s12832_s15, %s15471_s15  }
  0x78   : > { %15291 = sst [smem:[#allocation85_spill]] %s12141_s18  ;;  %s8961_s23 = sadd.s32 4294967294, %s12145_s22  }
  0x79   : > { %15292 = sst [smem:[#allocation86_spill]] %s12145_s22  ;;  %s12857_s26 = sadd.s32 1, %s12145_s22  }
  0x7a   : > { %15293 = sst [smem:[#allocation87_spill]] %s12857_s26  ;;  %s1369_s28 = sadd.s32 1, %s12141_s18 }
  0x7b   : > { %s1366_s1 = ssub.s32 %s12145_s22, %s12857_s26  ;;  %p1379_p0 = scmp.ne.s32.totalorder %s12141_s18, %s12137_s16 }
  0x7c   : > { %p1367_p1 = scmp.eq.s32.totalorder %s1366_s1, 0  ;;  %p1380_p2 = scmp.eq.s32.totalorder %s12853_s0, 1 }
  0x7d   : > { %p1385_p3 = scmp.ne.s32.totalorder %s12137_s16, %s12133_s15  ;;  %p1386_p4 = scmp.eq.s32.totalorder %s8961_s23, 1 }
  0x7e   : > { %s12868_s2 = scalar_select %p1367_p1, %s12141_s18, %s1369_s28  }
  0x7f   : > { %p12870_p5 = por %p1380_p2, %p1379_p0  ;;  %p12874_p6 = por %p1386_p4, %p1385_p3 }
  0x80   : > { %15294 = sst [smem:[#allocation88_spill]] %s12868_s2  ;;  %p8962_p7 = scmp.ge.s32.totalorder %s12145_s22, 1 }
  0x81   : > { %s15295_s7 = scalar_select %p12870_p5, 1, 0 }
  0x82   : > { %s15296_s10 = scalar_select %p12874_p6, 1, 0 }
  0x83   : > { %p1393_p8 = scmp.lt.s32.totalorder %s12145_s22, 3  ;;  %p15235_p9 = scmp.eq.s32.totalorder %s12853_s0, 0 }
  0x84   : > { %15297 = sst [smem:[#allocation89_spill]] %s15296_s10  ;;  %s12497_s1 = smov [#allocation5]  }
  0x85   : > { %p12881_p10 = pnand %p8962_p7, %p1393_p8  ;;  %s1474_s23 = sshll.u32 %s12497_s1, 4  ;;  %s1475_s23 = int_to_ptr.vmem [resolvable:$true] %s1474_s23 }
  0x86   : > { %s12498_s28 = smov [#allocation8]   ;;  %s12499_s26 = smov [#allocation11]  }
  0x87   : > { %s15298_s11 = scalar_select %p12881_p10, 1, 0 }
  0x88   : > { %p10547_p11 = pneg %p12881_p10  ;;  %s1502_s2 = sshll.u32 %s12498_s28, 4  ;;  %s1503_s2 = int_to_ptr.vmem [resolvable:$true] %s1502_s2 }
  0x89   : > { %s1539_s10 = sshll.u32 %s12499_s26, 4  ;;  %s11352_s1 = scalar_lea.vmem %s1475_s23, 16  ;;  %s12893_s10 = int_to_ptr.vmem [resolvable:$true] %s1539_s10 }
  0x8a   : > { %p12889_p12 = pnand %p15235_p9, %p10547_p11  ;;  %p11353_p0 = scmp.ne.s32.totalorder %s1475_s23, %s11352_s1 }
  0x8b   : > { %s11359_s28 = scalar_lea.vmem %s1475_s23, 32  ;;  %p11360_p3 = scmp.lt.s32.totalorder %s1475_s23, %s1475_s23 }
  0x8c   : > { %p12897_p13 = pneg %p12889_p12  ;;  %p11361_p4 = scmp.lt.s32.totalorder %s11359_s28, %s11352_s1 }
  0x8e   : > { %p11355_p1 = pnand %p11353_p0, %p12897_p13  ;;  %p11362_p7 = por %p11361_p4, %p11360_p3 }
  0x90   : > { %p11356_p2 = pneg %p11355_p1 }
  0x92   : > { %p11363_p8 = pnand %p11362_p7, %p11356_p2 }
  0x94   : > { %11366 = shalt.err (!%p11363_p8)
}
  0x95   : > { %s15301_s4 = sld [smem:[#allocation59_spill]]  ;;  %s11378_s26 = scalar_lea.vmem %s1503_s2, 16 }
  0x96   : > { %p11379_p11 = scmp.ne.s32.totalorder %s1503_s2, %s11378_s26  ;;  %s11385_s22 = scalar_lea.vmem %s1503_s2, 32 }
  0x97   : > { %p11386_p5 = scmp.lt.s32.totalorder %s1503_s2, %s1503_s2  ;;  %p11387_p0 = scmp.lt.s32.totalorder %s11385_s22, %s11378_s26 }
  0x98   : > { %p11381_p9 = pnand %p11379_p11, %p12897_p13 }
  0x99   : > { %p11388_p1 = por %p11387_p0, %p11386_p5 }
  0x9a   : > { %p11382_p6 = pneg %p11381_p9 }
  0x9b   : > { %10553 = dma.hbm_to_vmem [thread:$0]  (!%p12889_p12), %s15301_s4, 16, %s1475_s23, [#allocation6]  }
  0x9c   : > { %p11389_p10 = pnand %p11388_p1, %p11382_p6 }
  0x9e   : > { %11392 = shalt.err (!%p11389_p10)
}
  0x9f   : > { %10559 = dma.hbm_to_vmem [thread:$0]  (!%p12889_p12), %s12665_s30, 16, %s1503_s2, [#allocation9]  }
  0xa0   : > { %s11404_s23 = scalar_lea.vmem %s12893_s10, 16  ;;  %s11411_s1 = scalar_lea.vmem %s12893_s10, 32 }
  0xa1   : > { %p11405_p2 = scmp.ne.s32.totalorder %s12893_s10, %s11404_s23  ;;  %p11412_p4 = scmp.lt.s32.totalorder %s12893_s10, %s12893_s10 }
  0xa2   : > { %p11413_p5 = scmp.lt.s32.totalorder %s11411_s1, %s11404_s23 }
  0xa3   : > { %p11407_p3 = pnand %p11405_p2, %p12897_p13 }
  0xa4   : > { %p11414_p6 = por %p11413_p5, %p11412_p4 }
  0xa5   : > { %p11408_p9 = pneg %p11407_p3 }
  0xa7   : > { %p11415_p10 = pnand %p11414_p6, %p11408_p9 }
  0xa9   : > { %11418 = shalt.err (!%p11415_p10)
}
  0xaa   : > { %10565 = dma.hbm_to_vmem [thread:$0]  (!%p12889_p12), %s12700_s27, 16, %s12893_s10, [#allocation12]  }
  0xab   : > { %s12500_s22 = smov [#allocation14]   ;;  %s12501_s28 = smov [#allocation17]  }
  0xac   : > { %s1567_s2 = sshll.u32 %s12500_s22, 4  ;;  %s1598_s26 = sshll.u32 %s12501_s28, 4  ;;  %s1568_s2 = int_to_ptr.vmem [resolvable:$true] %s1567_s2  ;;  %s1599_s26 = int_to_ptr.vmem [resolvable:$true] %s1598_s26 }
  0xad   : > { %s11430_s4 = scalar_lea.vmem %s1568_s2, 16  ;;  %s11437_s23 = scalar_lea.vmem %s1568_s2, 32 }
  0xae   : > { %p11431_p7 = scmp.ne.s32.totalorder %s1568_s2, %s11430_s4  ;;  %p11438_p0 = scmp.lt.s32.totalorder %s1568_s2, %s1568_s2 }
  0xaf   : > { %p11439_p1 = scmp.lt.s32.totalorder %s11437_s23, %s11430_s4 }
  0xb0   : > { %p11433_p8 = pnand %p11431_p7, %p12897_p13 }
  0xb1   : > { %p11440_p2 = por %p11439_p1, %p11438_p0 }
  0xb2   : > { %p11434_p11 = pneg %p11433_p8 }
  0xb4   : > { %p11441_p3 = pnand %p11440_p2, %p11434_p11 }
  0xb6   : > { %11444 = shalt.err (!%p11441_p3)
}
  0xb7   : > { %s15302_s8 = sld [smem:[#allocation69_spill]]  ;;  %s11456_s10 = scalar_lea.vmem %s1599_s26, 16 }
  0xb8   : > { %p11457_p9 = scmp.ne.s32.totalorder %s1599_s26, %s11456_s10  ;;  %s11463_s1 = scalar_lea.vmem %s1599_s26, 32 }
  0xb9   : > { %p11464_p6 = scmp.lt.s32.totalorder %s1599_s26, %s1599_s26  ;;  %p11465_p10 = scmp.lt.s32.totalorder %s11463_s1, %s11456_s10 }
  0xba   : > { %p11459_p4 = pnand %p11457_p9, %p12897_p13 }
  0xbb   : > { %p11466_p7 = por %p11465_p10, %p11464_p6 }
  0xbc   : > { %p11460_p5 = pneg %p11459_p4 }
  0xbd   : > { %10571 = dma.hbm_to_vmem [thread:$0]  (!%p12889_p12), %s15302_s8, 16, %s1568_s2, [#allocation15]  }
  0xbe   : > { %p11467_p8 = pnand %p11466_p7, %p11460_p5 }
  0xc0   : > { %11470 = shalt.err (!%p11467_p8)
}
  0xc1   : > { %10577 = dma.hbm_to_vmem [thread:$0]  (!%p12889_p12), %s12745_s19, 16, %s1599_s26, [#allocation18]  }
  0xc2   : > { %s12502_s4 = smov [#allocation20]   ;;  %s12503_s2 = smov [#allocation23]  }
  0xc3   : > { %s1626_s22 = sshll.u32 %s12502_s4, 4  ;;  %s1654_s28 = sshll.u32 %s12503_s2, 4  ;;  %s1627_s22 = int_to_ptr.vmem [resolvable:$true] %s1626_s22  ;;  %s1655_s28 = int_to_ptr.vmem [resolvable:$true] %s1654_s28 }
  0xc4   : > { %s11482_s23 = scalar_lea.vmem %s1627_s22, 16  ;;  %s11489_s8 = scalar_lea.vmem %s1627_s22, 32 }
  0xc5   : > { %p11483_p11 = scmp.ne.s32.totalorder %s1627_s22, %s11482_s23  ;;  %p11490_p2 = scmp.lt.s32.totalorder %s1627_s22, %s1627_s22 }
  0xc6   : > { %p11491_p3 = scmp.lt.s32.totalorder %s11489_s8, %s11482_s23 }
  0xc7   : > { %p11485_p0 = pnand %p11483_p11, %p12897_p13 }
  0xc8   : > { %p11492_p9 = por %p11491_p3, %p11490_p2 }
  0xc9   : > { %p11486_p1 = pneg %p11485_p0 }
  0xcb   : > { %p11493_p4 = pnand %p11492_p9, %p11486_p1 }
  0xcd   : > { %11496 = shalt.err (!%p11493_p4)
}
  0xce   : > { %10583 = dma.hbm_to_vmem [thread:$0]  (!%p12889_p12), %s12765_s21, 16, %s1627_s22, [#allocation21]  }
  0xcf   : > { %s11508_s26 = scalar_lea.vmem %s1655_s28, 16  ;;  %s11515_s10 = scalar_lea.vmem %s1655_s28, 32 }
  0xd0   : > { %p11509_p5 = scmp.ne.s32.totalorder %s1655_s28, %s11508_s26  ;;  %p11516_p7 = scmp.lt.s32.totalorder %s1655_s28, %s1655_s28 }
  0xd1   : > { %p11517_p8 = scmp.lt.s32.totalorder %s11515_s10, %s11508_s26 }
  0xd2   : > { %p11511_p6 = pnand %p11509_p5, %p12897_p13 }
  0xd3   : > { %p11518_p11 = por %p11517_p8, %p11516_p7 }
  0xd4   : > { %p11512_p10 = pneg %p11511_p6 }
  0xd6   : > { %p11519_p0 = pnand %p11518_p11, %p11512_p10 }
  0xd8   : > { %11522 = shalt.err (!%p11519_p0)
}
  0xd9   : > { %10589 = dma.hbm_to_vmem [thread:$0]  (!%p12889_p12), %s12785_s13, 16, %s1655_s28, [#allocation24]  }
  0xda   : > { %s12504_s8 = smov [#allocation2]   ;;  %s12505_s4 = smov [#allocation7]  }
  0xdb   : > { %s1460_s1 = sshll.u32 %s12504_s8, 4  ;;  %s1488_s22 = sshll.u32 %s12505_s4, 4  ;;  %s1461_s1 = int_to_ptr.vmem [resolvable:$true] %s1460_s1  ;;  %s1489_s22 = int_to_ptr.vmem [resolvable:$true] %s1488_s22 }
  0xdc   : > { %s11534_s2 = scalar_lea.vmem %s1461_s1, 16  ;;  %s11541_s23 = scalar_lea.vmem %s1461_s1, 32 }
  0xdd   : > { %p11535_p1 = scmp.ne.s32.totalorder %s1461_s1, %s11534_s2  ;;  %p11542_p9 = scmp.lt.s32.totalorder %s1461_s1, %s1461_s1 }
  0xde   : > { %p11543_p4 = scmp.lt.s32.totalorder %s11541_s23, %s11534_s2 }
  0xdf   : > { %p11537_p2 = pnand %p11535_p1, %p12897_p13 }
  0xe0   : > { %p11544_p5 = por %p11543_p4, %p11542_p9 }
  0xe1   : > { %p11538_p3 = pneg %p11537_p2 }
  0xe3   : > { %p11545_p6 = pnand %p11544_p5, %p11538_p3 }
  0xe5   : > { %11548 = shalt.err (!%p11545_p6)
}
  0xe6   : > { %10550 = dma.hbm_to_vmem [thread:$0]  (!%p12889_p12), %s12635_s6, 16, %s1461_s1, [#allocation3]  }
  0xe7   : > { %s11560_s28 = scalar_lea.vmem %s1489_s22, 16  ;;  %s11567_s26 = scalar_lea.vmem %s1489_s22, 32 }
  0xe8   : > { %p11561_p10 = scmp.ne.s32.totalorder %s1489_s22, %s11560_s28  ;;  %p11568_p11 = scmp.lt.s32.totalorder %s1489_s22, %s1489_s22 }
  0xe9   : > { %p11569_p0 = scmp.lt.s32.totalorder %s11567_s26, %s11560_s28 }
  0xea   : > { %p11563_p7 = pnand %p11561_p10, %p12897_p13 }
  0xeb   : > { %p11570_p1 = por %p11569_p0, %p11568_p11 }
  0xec   : > { %p11564_p8 = pneg %p11563_p7 }
  0xee   : > { %p11571_p2 = pnand %p11570_p1, %p11564_p8 }
  0xf0   : > { %11574 = shalt.err (!%p11571_p2)
}
  0xf1   : > { %10556 = dma.hbm_to_vmem [thread:$0]  (!%p12889_p12), %s12655_s20, 16, %s1489_s22, [#allocation6]  }
  0xf2   : > { %s12506_s10 = smov [#allocation10]   ;;  %s12507_s1 = smov [#allocation13]  }
  0xf3   : > { %s1525_s8 = sshll.u32 %s12506_s10, 4  ;;  %s1553_s4 = sshll.u32 %s12507_s1, 4  ;;  %s1526_s8 = int_to_ptr.vmem [resolvable:$true] %s1525_s8  ;;  %s1554_s4 = int_to_ptr.vmem [resolvable:$true] %s1553_s4 }
  0xf4   : > { %s11586_s2 = scalar_lea.vmem %s1526_s8, 16  ;;  %s11593_s23 = scalar_lea.vmem %s1526_s8, 32 }
  0xf5   : > { %p11587_p3 = scmp.ne.s32.totalorder %s1526_s8, %s11586_s2  ;;  %p11594_p5 = scmp.lt.s32.totalorder %s1526_s8, %s1526_s8 }
  0xf6   : > { %p11595_p6 = scmp.lt.s32.totalorder %s11593_s23, %s11586_s2 }
  0xf7   : > { %p11589_p9 = pnand %p11587_p3, %p12897_p13 }
  0xf8   : > { %p11596_p10 = por %p11595_p6, %p11594_p5 }
  0xf9   : > { %p11590_p4 = pneg %p11589_p9 }
  0xfb   : > { %p11597_p7 = pnand %p11596_p10, %p11590_p4 }
  0xfd   : > { %11600 = shalt.err (!%p11597_p7)
}
  0xfe   : > { %10562 = dma.hbm_to_vmem [thread:$0]  (!%p12889_p12), %s12690_s12, 16, %s1526_s8, [#allocation9]  }
  0xff   : > { %s11612_s22 = scalar_lea.vmem %s1554_s4, 16  ;;  %s11619_s28 = scalar_lea.vmem %s1554_s4, 32 }
 0x100   : > { %p11613_p8 = scmp.ne.s32.totalorder %s1554_s4, %s11612_s22  ;;  %p11620_p1 = scmp.lt.s32.totalorder %s1554_s4, %s1554_s4 }
 0x101   : > { %p11621_p2 = scmp.lt.s32.totalorder %s11619_s28, %s11612_s22 }
 0x102   : > { %p11615_p11 = pnand %p11613_p8, %p12897_p13 }
 0x103   : > { %p11622_p3 = por %p11621_p2, %p11620_p1 }
 0x104   : > { %p11616_p0 = pneg %p11615_p11 }
 0x106   : > { %p11623_p9 = pnand %p11622_p3, %p11616_p0 }
 0x108   : > { %11626 = shalt.err (!%p11623_p9)
}
 0x109   : > { %10568 = dma.hbm_to_vmem [thread:$0]  (!%p12889_p12), %s12710_s14, 16, %s1554_s4, [#allocation12]  }
 0x10a   : > { %s12508_s26 = smov [#allocation16]   ;;  %s12509_s8 = smov [#allocation19]  }
 0x10b   : > { %s1581_s10 = sshll.u32 %s12508_s26, 4  ;;  %s1612_s1 = sshll.u32 %s12509_s8, 4  ;;  %s1582_s10 = int_to_ptr.vmem [resolvable:$true] %s1581_s10  ;;  %s1613_s1 = int_to_ptr.vmem [resolvable:$true] %s1612_s1 }
 0x10c   : > { %s11638_s2 = scalar_lea.vmem %s1582_s10, 16  ;;  %s11645_s23 = scalar_lea.vmem %s1582_s10, 32 }
 0x10d   : > { %p11639_p4 = scmp.ne.s32.totalorder %s1582_s10, %s11638_s2  ;;  %p11646_p10 = scmp.lt.s32.totalorder %s1582_s10, %s1582_s10 }
 0x10e   : > { %p11647_p7 = scmp.lt.s32.totalorder %s11645_s23, %s11638_s2 }
 0x10f   : > { %p11641_p5 = pnand %p11639_p4, %p12897_p13 }
 0x110   : > { %p11648_p8 = por %p11647_p7, %p11646_p10 }
 0x111   : > { %p11642_p6 = pneg %p11641_p5 }
 0x113   : > { %p11649_p11 = pnand %p11648_p8, %p11642_p6 }
 0x115   : > { %11652 = shalt.err (!%p11649_p11)
}
 0x116   : > { %s15303_s3 = sld [smem:[#allocation71_spill]]  ;;  %s11664_s4 = scalar_lea.vmem %s1613_s1, 16 }
 0x117   : > { %p11665_p0 = scmp.ne.s32.totalorder %s1613_s1, %s11664_s4  ;;  %s11671_s22 = scalar_lea.vmem %s1613_s1, 32 }
 0x118   : > { %p11672_p3 = scmp.lt.s32.totalorder %s1613_s1, %s1613_s1  ;;  %p11673_p9 = scmp.lt.s32.totalorder %s11671_s22, %s11664_s4 }
 0x119   : > { %p11667_p1 = pnand %p11665_p0, %p12897_p13 }
 0x11a   : > { %p11674_p4 = por %p11673_p9, %p11672_p3 }
 0x11b   : > { %p11668_p2 = pneg %p11667_p1 }
 0x11c   : > { %10574 = dma.hbm_to_vmem [thread:$0]  (!%p12889_p12), %s15303_s3, 16, %s1582_s10, [#allocation15]  }
 0x11d   : > { %p11675_p5 = pnand %p11674_p4, %p11668_p2 }
 0x11f   : > { %11678 = shalt.err (!%p11675_p5)
}
 0x120   : > { %10580 = dma.hbm_to_vmem [thread:$0]  (!%p12889_p12), %s12755_s24, 16, %s1613_s1, [#allocation18]  }
 0x121   : > { %s12510_s28 = smov [#allocation22]   ;;  %s12511_s10 = smov [#allocation25]  }
 0x122   : > { %s1640_s26 = sshll.u32 %s12510_s28, 4  ;;  %s1668_s8 = sshll.u32 %s12511_s10, 4  ;;  %s1641_s26 = int_to_ptr.vmem [resolvable:$true] %s1640_s26  ;;  %s1669_s8 = int_to_ptr.vmem [resolvable:$true] %s1668_s8 }
 0x123   : > { %s11690_s2 = scalar_lea.vmem %s1641_s26, 16  ;;  %s11697_s23 = scalar_lea.vmem %s1641_s26, 32 }
 0x124   : > { %p11691_p6 = scmp.ne.s32.totalorder %s1641_s26, %s11690_s2  ;;  %p11698_p8 = scmp.lt.s32.totalorder %s1641_s26, %s1641_s26 }
 0x125   : > { %p11699_p11 = scmp.lt.s32.totalorder %s11697_s23, %s11690_s2 }
 0x126   : > { %p11693_p10 = pnand %p11691_p6, %p12897_p13 }
 0x127   : > { %p11700_p0 = por %p11699_p11, %p11698_p8 }
 0x128   : > { %p11694_p7 = pneg %p11693_p10 }
 0x12a   : > { %p11701_p1 = pnand %p11700_p0, %p11694_p7 }
 0x12c   : > { %11704 = shalt.err (!%p11701_p1)
}
 0x12d   : > { %10586 = dma.hbm_to_vmem [thread:$0]  (!%p12889_p12), %s12775_s17, 16, %s1641_s26, [#allocation21]  }
 0x12e   : > { %s11716_s1 = scalar_lea.vmem %s1669_s8, 16  ;;  %s11723_s4 = scalar_lea.vmem %s1669_s8, 32 }
 0x12f   : > { %p11717_p2 = scmp.ne.s32.totalorder %s1669_s8, %s11716_s1  ;;  %p11724_p4 = scmp.lt.s32.totalorder %s1669_s8, %s1669_s8 }
 0x130   : > { %p11725_p5 = scmp.lt.s32.totalorder %s11723_s4, %s11716_s1 }
 0x131   : > { %p11719_p3 = pnand %p11717_p2, %p12897_p13 }
 0x132   : > { %p11726_p6 = por %p11725_p5, %p11724_p4 }
 0x133   : > { %p11720_p9 = pneg %p11719_p3 }
 0x135   : > { %p11727_p10 = pnand %p11726_p6, %p11720_p9 }
 0x137   : > { %11730 = shalt.err (!%p11727_p10)
}
 0x138   : > { %s15304_s22 = sld [smem:[#allocation79_spill]]  ;;  %s12512_s28 = smov [#allocation26]  }
 0x139   : > { %s1694_s10 = sshll.u32 %s12512_s28, 4  ;;  %s1695_s10 = int_to_ptr.vmem [resolvable:$true] %s1694_s10 }
 0x13a   : > { %s11742_s26 = scalar_lea.vmem %s1695_s10, 16  ;;  %s11749_s2 = scalar_lea.vmem %s1695_s10, 32 }
 0x13b   : > { %p11743_p7 = scmp.ne.s32.totalorder %s1695_s10, %s11742_s26  ;;  %p11750_p0 = scmp.lt.s32.totalorder %s1695_s10, %s1695_s10 }
 0x13c   : > { %p11751_p1 = scmp.lt.s32.totalorder %s11749_s2, %s11742_s26 }
 0x13d   : > { %p11745_p8 = pnand %p11743_p7, %p12897_p13 }
 0x13e   : > { %10592 = dma.hbm_to_vmem [thread:$0]  (!%p12889_p12), %s15304_s22, 16, %s1669_s8, [#allocation24]  }
 0x13f   : > { %p11746_p11 = pneg %p11745_p8  ;;  %p11752_p2 = por %p11751_p1, %p11750_p0 }
 0x141   : > { %p11753_p3 = pnand %p11752_p2, %p11746_p11 }
 0x143   : > { %11756 = shalt.err (!%p11753_p3)
}
 0x144   : > { %10595 = dma.hbm_to_vmem [thread:$0]  (!%p12889_p12), %s12825_s9, 16, %s1695_s10, [#allocation27]  }
 0x145   : > { %p15305_p9 = scmp.ne.s32.totalorder %s15298_s11, 0 }
 0x146   : > { %p15306_p4 = scmp.eq.s32.totalorder (!%p15305_p9), %s12853_s0, 0 }
 0x147   : > { %1715 = sbr.rel (%p15305_p9) target bundleno = 9494 (0x2516), region = 252 }
 0x14c   : > { %12092 = dma.done.wait (%p15306_p4), [#allocation3], 16   ;;  %p15307_p5 = pmov %p15306_p4 }
 0x14d   : > { %p15308_p13 = pmov %p15306_p4 }
 0x14e   : > { %12094 = vsyncadd (%p15307_p5), [#allocation3], 4294967280 }
 0x14f   : > { %12096 = dma.done.wait (%p15308_p13), [#allocation6], 32   ;;  %p15309_p6 = pmov %p15306_p4 }
 0x150   : > { %p15310_p10 = pmov %p15306_p4 }
 0x151   : > { %12098 = vsyncadd (%p15309_p6), [#allocation6], 4294967264 }
 0x152   : > { %12100 = dma.done.wait (%p15310_p10), [#allocation9], 32   ;;  %p15311_p12 = pmov %p15306_p4 }
 0x153   : > { %p15312_p7 = pmov %p15306_p4 }
 0x154   : > { %12102 = vsyncadd (%p15311_p12), [#allocation9], 4294967264 }
 0x155   : > { %12104 = dma.done.wait (%p15312_p7), [#allocation12], 32   ;;  %p15313_p8 = pmov %p15306_p4 }
 0x156   : > { %p15314_p11 = pmov %p15306_p4 }
 0x157   : > { %12106 = vsyncadd (%p15313_p8), [#allocation12], 4294967264 }
 0x158   : > { %12108 = dma.done.wait (%p15314_p11), [#allocation15], 32   ;;  %p15315_p0 = pmov %p15306_p4 }
 0x15a   : > { %12110 = vsyncadd (%p15315_p0), [#allocation15], 4294967264  ;;  %p15316_p1 = pmov %p15315_p0 }
 0x15b   : > { %p15317_p2 = pmov %p15315_p0 }
 0x15c   : > { %12112 = dma.done.wait (%p15316_p1), [#allocation18], 32  }
 0x15d   : > { %12114 = vsyncadd (%p15317_p2), [#allocation18], 4294967264  ;;  %p15318_p3 = pmov %p15315_p0 }
 0x15e   : > { %p15319_p9 = pmov %p15315_p0 }
 0x15f   : > { %12116 = dma.done.wait (%p15318_p3), [#allocation21], 32  }
 0x160   : > { %12118 = vsyncadd (%p15319_p9), [#allocation21], 4294967264  ;;  %p15320_p4 = pmov %p15315_p0 }
 0x161   : > { %p15321_p5 = pmov %p15315_p0 }
 0x162   : > { %12120 = dma.done.wait (%p15320_p4), [#allocation24], 32  }
 0x163   : > { %12122 = vsyncadd (%p15321_p5), [#allocation24], 4294967264  ;;  %p15322_p13 = pmov %p15315_p0 }
 0x164   : > { %p15323_p6 = pmov %p15315_p0 }
 0x165   : > { %12124 = dma.done.wait (%p15322_p13), [#allocation27], 16  }
 0x166   : > { %12126 = vsyncadd (%p15323_p6), [#allocation27], 4294967280  ;;  %s15324_s15 = sld [smem:[#allocation40_spill]]  ;;  %s1906_s18 = sand.u32 1, %s12137_s16   ;;  %v15239_v0 = vmov 0.0   ;;  %vm2100_vm0 = vcmask 1042432  }
 0x167   : > { %2104 = vmatprep.subr.mxu0 %v15239_v0  ;;  %10411 = vmatprep.subr.mxu1 %v15239_v0  ;;  %p1908_p10 = scmp.lt.s32.totalorder %s12853_s0, 1  ;;  %s15326_s23 = sld [smem:[#allocation39_spill]]  ;;  %vm2003_vm1 = vcmask 154624  }
 0x168   : > { %s15327_s22 = sld [smem:[#allocation41_spill]]  ;;  %s13317_s28 = scalar_lea.vmem [#allocation28], %s1906_s18 }
 0x169   : > { %s1909_s8 = scalar_select %p1908_p10, %s12853_s0, 1 }
 0x16a   : > { %s13335_s10 = smov 0  }
 0x16b   : > { %s9545_s1 = sshll.u32 %s1909_s8, 9 }
 0x16c   : > { %s15325_s11 = smov %s15324_s15  ;;  %v1992_v1 = vld [vmem:[%s15324_s15 + $0x78] sm:$0xff] }
 0x16d   : > { %v1991_v2 = vld [vmem:[%s15325_s11 + $0x70] sm:$0xff]  ;;  %2105 = vmatpush1.msra.mxu0 %v1992_v1  ;;  %10430 = vmatpush1.msra.mxu1 %v1992_v1  ;;  %v1990_v3 = vld [vmem:[%s15325_s11 + $0x68] sm:$0xff]  ;;  %v1989_v4 = vld [vmem:[%s15325_s11 + $0x60] sm:$0xff]  ;;  %s13081_s4 = scalar_lea.vmem %s15326_s23, %s9545_s1 }
 0x16e   : > { %2106 = vmatprep.subr.mxu0 %v15239_v0  ;;  %10412 = vmatprep.subr.mxu1 %v15239_v0  ;;  %v1988_v5 = vld [vmem:[%s15325_s11 + $0x58] sm:$0xff]  ;;  %v1987_v6 = vld [vmem:[%s15325_s11 + $0x50] sm:$0xff]  ;;  %v1986_v7 = vld [vmem:[%s15325_s11 + $0x48] sm:$0xff] }
 0x16f   : > { %2107 = vmatpush1.msra.mxu0 %v1991_v2  ;;  %10431 = vmatpush1.msra.mxu1 %v1991_v2  ;;  %v1985_v8 = vld [vmem:[%s15325_s11 + $0x40] sm:$0xff]  ;;  %v1984_v9 = vld [vmem:[%s15325_s11 + $0x38] sm:$0xff]  ;;  %v1983_v10 = vld [vmem:[%s15325_s11 + $0x30] sm:$0xff] }
 0x170   : > { %2108 = vmatprep.subr.mxu0 %v15239_v0  ;;  %10413 = vmatprep.subr.mxu1 %v15239_v0  ;;  %v1982_v11 = vld [vmem:[%s15325_s11 + $0x28] sm:$0xff]  ;;  %v1981_v12 = vld [vmem:[%s15325_s11 + $0x20] sm:$0xff]  ;;  %v1980_v13 = vld [vmem:[%s15325_s11 + $0x18] sm:$0xff] }
 0x171   : > { %2109 = vmatpush1.msra.mxu0 %v1990_v3  ;;  %10432 = vmatpush1.msra.mxu1 %v1990_v3  ;;  %v1979_v14 = vld [vmem:[%s15325_s11 + $0x10] sm:$0xff]  ;;  %v1978_v15 = vld [vmem:[%s15325_s11 + $0x8] sm:$0xff]  ;;  %v1977_v16 = vld [vmem:[%s15325_s11] sm:$0xff] }
 0x172   : > { %2110 = vmatprep.subr.mxu0 %v15239_v0  ;;  %10414 = vmatprep.subr.mxu1 %v15239_v0  ;;  %v1995_v17 = vld [vmem:[%s15325_s11 + $0x90] sm:$0x7]  ;;  %v1994_v18 = vld [vmem:[%s15325_s11 + $0x88] sm:$0xff]  ;;  %v1993_v19 = vld [vmem:[%s15325_s11 + $0x80] sm:$0xff] }
 0x173   : > { %2111 = vmatpush1.msra.mxu0 %v1989_v4  ;;  %10433 = vmatpush1.msra.mxu1 %v1989_v4  ;;  %v1914_v20 = vld [vmem:[%s13081_s4 + $0x8] sm:$0xff]  ;;  %v1913_v22 = vld [vmem:[%s13081_s4] sm:$0xff]  ;;  %v1916_v24 = vld [vmem:[%s13081_s4 + $0x18] sm:$0xff] }
 0x174   : > { %2112 = vmatprep.subr.mxu0 %v15239_v0  ;;  %10415 = vmatprep.subr.mxu1 %v15239_v0  ;;  %v1946_v21 = vld [vmem:[%s13081_s4 + $0x108] sm:$0xff]  ;;  %v1945_v23 = vld [vmem:[%s13081_s4 + $0x100] sm:$0xff]  ;;  %v1948_v25 = vld [vmem:[%s13081_s4 + $0x118] sm:$0xff] }
 0x175   : > { %2113 = vmatpush1.msra.mxu0 %v1988_v5  ;;  %10434 = vmatpush1.msra.mxu1 %v1988_v5  ;;  %v1915_v26 = vld [vmem:[%s13081_s4 + $0x10] sm:$0xff]  ;;  %v1918_v28 = vld [vmem:[%s13081_s4 + $0x28] sm:$0xff]  ;;  %v1917_v30 = vld [vmem:[%s13081_s4 + $0x20] sm:$0xff] }
 0x176   : > { %2114 = vmatprep.subr.mxu0 %v15239_v0  ;;  %10416 = vmatprep.subr.mxu1 %v15239_v0  ;;  %v1947_v27 = vld [vmem:[%s13081_s4 + $0x110] sm:$0xff]  ;;  %v1950_v29 = vld [vmem:[%s13081_s4 + $0x128] sm:$0xff]  ;;  %v1949_v31 = vld [vmem:[%s13081_s4 + $0x120] sm:$0xff] }
 0x177   : > { %2115 = vmatpush1.msra.mxu0 %v1987_v6  ;;  %10435 = vmatpush1.msra.mxu1 %v1987_v6  ;;  %v1920_v32 = vld [vmem:[%s13081_s4 + $0x38] sm:$0xff]  ;;  %v1919_v34 = vld [vmem:[%s13081_s4 + $0x30] sm:$0xff]  ;;  %v1922_v36 = vld [vmem:[%s13081_s4 + $0x48] sm:$0xff] }
 0x178   : > { %2116 = vmatprep.subr.mxu0 %v15239_v0  ;;  %10417 = vmatprep.subr.mxu1 %v15239_v0  ;;  %v1952_v33 = vld [vmem:[%s13081_s4 + $0x138] sm:$0xff]  ;;  %v1951_v35 = vld [vmem:[%s13081_s4 + $0x130] sm:$0xff]  ;;  %v1954_v37 = vld [vmem:[%s13081_s4 + $0x148] sm:$0xff] }
 0x179   : > { %2117 = vmatpush1.msra.mxu0 %v1986_v7  ;;  %10436 = vmatpush1.msra.mxu1 %v1986_v7  ;;  %v1921_v38 = vld [vmem:[%s13081_s4 + $0x40] sm:$0xff]  ;;  %v1924_v40 = vld [vmem:[%s13081_s4 + $0x58] sm:$0xff]  ;;  %v1923_v42 = vld [vmem:[%s13081_s4 + $0x50] sm:$0xff] }
 0x17a   : > { %2118 = vmatprep.subr.mxu0 %v15239_v0  ;;  %10418 = vmatprep.subr.mxu1 %v15239_v0  ;;  %v1953_v39 = vld [vmem:[%s13081_s4 + $0x140] sm:$0xff]  ;;  %v1956_v41 = vld [vmem:[%s13081_s4 + $0x158] sm:$0xff]  ;;  %v1955_v43 = vld [vmem:[%s13081_s4 + $0x150] sm:$0xff] }
 0x17b   : > { %2119 = vmatpush1.msra.mxu0 %v1985_v8  ;;  %10437 = vmatpush1.msra.mxu1 %v1985_v8  ;;  %v1926_v44 = vld [vmem:[%s13081_s4 + $0x68] sm:$0xff]  ;;  %v1925_v46 = vld [vmem:[%s13081_s4 + $0x60] sm:$0xff]  ;;  %v1928_v48 = vld [vmem:[%s13081_s4 + $0x78] sm:$0xff] }
 0x17c   : > { %2120 = vmatprep.subr.mxu0 %v15239_v0  ;;  %10419 = vmatprep.subr.mxu1 %v15239_v0  ;;  %v1958_v45 = vld [vmem:[%s13081_s4 + $0x168] sm:$0xff]  ;;  %v1957_v47 = vld [vmem:[%s13081_s4 + $0x160] sm:$0xff]  ;;  %v1960_v49 = vld [vmem:[%s13081_s4 + $0x178] sm:$0xff] }
 0x17d   : > { %2121 = vmatpush1.msra.mxu0 %v1984_v9  ;;  %10438 = vmatpush1.msra.mxu1 %v1984_v9  ;;  %v1927_v50 = vld [vmem:[%s13081_s4 + $0x70] sm:$0xff]  ;;  %v1930_v52 = vld [vmem:[%s13081_s4 + $0x88] sm:$0xff]  ;;  %v1929_v54 = vld [vmem:[%s13081_s4 + $0x80] sm:$0xff] }
 0x17e   : > { %2122 = vmatprep.subr.mxu0 %v15239_v0  ;;  %10420 = vmatprep.subr.mxu1 %v15239_v0  ;;  %v1959_v51 = vld [vmem:[%s13081_s4 + $0x170] sm:$0xff]  ;;  %v1962_v53 = vld [vmem:[%s13081_s4 + $0x188] sm:$0xff]  ;;  %v1961_v55 = vld [vmem:[%s13081_s4 + $0x180] sm:$0xff] }
 0x17f   : > { %2123 = vmatpush1.msra.mxu0 %v1983_v10  ;;  %10439 = vmatpush1.msra.mxu1 %v1983_v10  ;;  %v1932_v56 = vld [vmem:[%s13081_s4 + $0x98] sm:$0xff]  ;;  %v1931_v58 = vld [vmem:[%s13081_s4 + $0x90] sm:$0xff]  ;;  %v1934_v60 = vld [vmem:[%s13081_s4 + $0xa8] sm:$0xff] }
 0x180   : > { %2124 = vmatprep.subr.mxu0 %v15239_v0  ;;  %10421 = vmatprep.subr.mxu1 %v15239_v0  ;;  %v1964_v57 = vld [vmem:[%s13081_s4 + $0x198] sm:$0xff]  ;;  %v1963_v59 = vld [vmem:[%s13081_s4 + $0x190] sm:$0xff]  ;;  %v1966_v61 = vld [vmem:[%s13081_s4 + $0x1a8] sm:$0xff] }
 0x181   : > { %2125 = vmatpush1.msra.mxu0 %v1982_v11  ;;  %10440 = vmatpush1.msra.mxu1 %v1982_v11  ;;  %v1933_v62 = vld [vmem:[%s13081_s4 + $0xa0] sm:$0xff]  ;;  %v1936_v1 = vld [vmem:[%s13081_s4 + $0xb8] sm:$0xff]  ;;  %v1935_v3 = vld [vmem:[%s13081_s4 + $0xb0] sm:$0xff] }
 0x182   : > { %2126 = vmatprep.subr.mxu0 %v15239_v0  ;;  %10422 = vmatprep.subr.mxu1 %v15239_v0  ;;  %v1965_v63 = vld [vmem:[%s13081_s4 + $0x1a0] sm:$0xff]  ;;  %v1968_v2 = vld [vmem:[%s13081_s4 + $0x1b8] sm:$0xff]  ;;  %v1967_v4 = vld [vmem:[%s13081_s4 + $0x1b0] sm:$0xff] }
 0x183   : > { %2127 = vmatpush1.msra.mxu0 %v1981_v12  ;;  %10441 = vmatpush1.msra.mxu1 %v1981_v12  ;;  %v1938_v5 = vld [vmem:[%s13081_s4 + $0xc8] sm:$0xff]  ;;  %v1937_v7 = vld [vmem:[%s13081_s4 + $0xc0] sm:$0xff]  ;;  %v1940_v9 = vld [vmem:[%s13081_s4 + $0xd8] sm:$0xff] }
 0x184   : > { %2128 = vmatprep.subr.mxu0 %v15239_v0  ;;  %10423 = vmatprep.subr.mxu1 %v15239_v0  ;;  %v1970_v6 = vld [vmem:[%s13081_s4 + $0x1c8] sm:$0xff]  ;;  %v1969_v8 = vld [vmem:[%s13081_s4 + $0x1c0] sm:$0xff]  ;;  %v1972_v10 = vld [vmem:[%s13081_s4 + $0x1d8] sm:$0xff] }
 0x185   : > { %2129 = vmatpush1.msra.mxu0 %v1980_v13  ;;  %10442 = vmatpush1.msra.mxu1 %v1980_v13  ;;  %v1939_v11 = vld [vmem:[%s13081_s4 + $0xd0] sm:$0xff]  ;;  %v1942_v13 = vld [vmem:[%s13081_s4 + $0xe8] sm:$0xff] }
 0x186   : > { %2130 = vmatprep.subr.mxu0 %v15239_v0  ;;  %10424 = vmatprep.subr.mxu1 %v15239_v0  ;;  %v1971_v12 = vld [vmem:[%s13081_s4 + $0x1d0] sm:$0xff] }
 0x187   : > { %2131 = vmatpush1.msra.mxu0 %v1979_v14  ;;  %10443 = vmatpush1.msra.mxu1 %v1979_v14  ;;  %v1974_v14 = vld [vmem:[%s13081_s4 + $0x1e8] sm:$0xff] }
 0x188   : > { %2132 = vmatprep.subr.mxu0 %v15239_v0  ;;  %10425 = vmatprep.subr.mxu1 %v15239_v0 }
 0x189   : > { %2133 = vmatpush1.msra.mxu0 %v1978_v15  ;;  %10444 = vmatpush1.msra.mxu1 %v1978_v15  ;;  %v1941_v15 = vld [vmem:[%s13081_s4 + $0xe0] sm:$0xff] }
 0x18a   : > { %2134 = vmatprep.subr.mxu0 %v15239_v0  ;;  %10426 = vmatprep.subr.mxu1 %v15239_v0 }
 0x18b   : > { %2135 = vmatpush1.msra.mxu0 %v1977_v16  ;;  %10445 = vmatpush1.msra.mxu1 %v1977_v16  ;;  %v1973_v16 = vld [vmem:[%s13081_s4 + $0x1e0] sm:$0xff] }
 0x18c   : > { %2162 = vmatprep.subr.mxu0 %v15239_v0  ;;  %10427 = vmatprep.subr.mxu1 %v15239_v0 }
 0x18d   : > { %9000 = vmatpush2.msk.msra.mxu0 %vm2100_vm0, %v1995_v17  ;;  %10446 = vmatpush2.msk.msra.mxu1 %vm2100_vm0, %v1995_v17  ;;  %v1944_v17 = vld [vmem:[%s13081_s4 + $0xf8] sm:$0xff] }
 0x18e   : > { %2164 = vmatprep.subr.mxu0 %v15239_v0  ;;  %10428 = vmatprep.subr.mxu1 %v15239_v0 }
 0x18f   : > { %2165 = vmatpush2.msra.mxu0 %v1994_v18  ;;  %10447 = vmatpush2.msra.mxu1 %v1994_v18  ;;  %v1976_v18 = vld [vmem:[%s13081_s4 + $0x1f8] sm:$0xff] }
 0x190   : > { %2166 = vmatprep.subr.mxu0 %v15239_v0  ;;  %10429 = vmatprep.subr.mxu1 %v15239_v0 }
 0x191   : > { %2167 = vmatpush2.msra.mxu0 %v1993_v19  ;;  %10448 = vmatpush2.msra.mxu1 %v1993_v19  ;;  %v1943_v19 = vld [vmem:[%s13081_s4 + $0xf0] sm:$0xff] }
 0x192   : > { %9001 = vmatprep.mubr.msk.f32.mxu0 %vm2003_vm1, %v1914_v20  ;;  %9017 = vmatprep.mubr.msk.f32.mxu1 %vm2003_vm1, %v1946_v21  ;;  %v1975_v20 = vld [vmem:[%s13081_s4 + $0x1f0] sm:$0xff]  ;;  %v13185_v21 = vld [vmem:[%s15327_s22] ss:$0 sm:$0xff] }
 0x193   : > { %2169 = vmatmul.mubr.f32.vlgmr.msra.gmra.mxu0 %v1913_v22  ;;  %2249 = vmatmul.mubr.f32.vlgmr.msra.gmra.mxu1 %v1945_v23 }
 0x194   : > { %9002 = vmatprep.mubr.msk.f32.mxu0 %vm2003_vm1, %v1916_v24  ;;  %9018 = vmatprep.mubr.msk.f32.mxu1 %vm2003_vm1, %v1948_v25 }
 0x197   : > { %2174 = vmatmul.mubr.f32.gmra.mxu0 %v1915_v26  ;;  %2254 = vmatmul.mubr.f32.gmra.mxu1 %v1947_v27 }
 0x198   : > { %9003 = vmatprep.mubr.msk.f32.mxu0 %vm2003_vm1, %v1918_v28  ;;  %9019 = vmatprep.mubr.msk.f32.mxu1 %vm2003_vm1, %v1950_v29 }
 0x19b   : > { %2179 = vmatmul.mubr.f32.gmra.mxu0 %v1917_v30  ;;  %2259 = vmatmul.mubr.f32.gmra.mxu1 %v1949_v31 }
 0x19c   : > { %9004 = vmatprep.mubr.msk.f32.mxu0 %vm2003_vm1, %v1920_v32  ;;  %9020 = vmatprep.mubr.msk.f32.mxu1 %vm2003_vm1, %v1952_v33 }
 0x19f   : > { %2184 = vmatmul.mubr.f32.gmra.mxu0 %v1919_v34  ;;  %2264 = vmatmul.mubr.f32.gmra.mxu1 %v1951_v35 }
 0x1a0   : > { %9005 = vmatprep.mubr.msk.f32.mxu0 %vm2003_vm1, %v1922_v36  ;;  %9021 = vmatprep.mubr.msk.f32.mxu1 %vm2003_vm1, %v1954_v37 }
 0x1a3   : > { %2189 = vmatmul.mubr.f32.gmra.mxu0 %v1921_v38  ;;  %2269 = vmatmul.mubr.f32.gmra.mxu1 %v1953_v39 }
 0x1a4   : > { %9006 = vmatprep.mubr.msk.f32.mxu0 %vm2003_vm1, %v1924_v40  ;;  %9022 = vmatprep.mubr.msk.f32.mxu1 %vm2003_vm1, %v1956_v41 }
 0x1a7   : > { %2194 = vmatmul.mubr.f32.gmra.mxu0 %v1923_v42  ;;  %2274 = vmatmul.mubr.f32.gmra.mxu1 %v1955_v43 }
 0x1a8   : > { %9007 = vmatprep.mubr.msk.f32.mxu0 %vm2003_vm1, %v1926_v44  ;;  %9023 = vmatprep.mubr.msk.f32.mxu1 %vm2003_vm1, %v1958_v45 }
 0x1ab   : > { %2199 = vmatmul.mubr.f32.gmra.mxu0 %v1925_v46  ;;  %2279 = vmatmul.mubr.f32.gmra.mxu1 %v1957_v47 }
 0x1ac   : > { %9008 = vmatprep.mubr.msk.f32.mxu0 %vm2003_vm1, %v1928_v48  ;;  %9024 = vmatprep.mubr.msk.f32.mxu1 %vm2003_vm1, %v1960_v49 }
 0x1af   : > { %2204 = vmatmul.mubr.f32.gmra.mxu0 %v1927_v50  ;;  %2284 = vmatmul.mubr.f32.gmra.mxu1 %v1959_v51 }
 0x1b0   : > { %9009 = vmatprep.mubr.msk.f32.mxu0 %vm2003_vm1, %v1930_v52  ;;  %9025 = vmatprep.mubr.msk.f32.mxu1 %vm2003_vm1, %v1962_v53  ;;  %v13323_v53 = vmov 0.0  }
 0x1b3   : > { %2209 = vmatmul.mubr.f32.gmra.mxu0 %v1929_v54  ;;  %2289 = vmatmul.mubr.f32.gmra.mxu1 %v1961_v55 }
 0x1b4   : > { %9010 = vmatprep.mubr.msk.f32.mxu0 %vm2003_vm1, %v1932_v56  ;;  %9026 = vmatprep.mubr.msk.f32.mxu1 %vm2003_vm1, %v1964_v57 }
 0x1b7   : > { %2214 = vmatmul.mubr.f32.gmra.mxu0 %v1931_v58  ;;  %2294 = vmatmul.mubr.f32.gmra.mxu1 %v1963_v59 }
 0x1b8   : > { %9011 = vmatprep.mubr.msk.f32.mxu0 %vm2003_vm1, %v1934_v60  ;;  %9027 = vmatprep.mubr.msk.f32.mxu1 %vm2003_vm1, %v1966_v61  ;;  %v13327_v60 = vmov 0.0  }
 0x1bb   : > { %2219 = vmatmul.mubr.f32.gmra.mxu0 %v1933_v62  ;;  %2299 = vmatmul.mubr.f32.gmra.mxu1 %v1965_v63 }
 0x1bc   : > { %9012 = vmatprep.mubr.msk.f32.mxu0 %vm2003_vm1, %v1936_v1  ;;  %9028 = vmatprep.mubr.msk.f32.mxu1 %vm2003_vm1, %v1968_v2 }
 0x1bf   : > { %2224 = vmatmul.mubr.f32.gmra.mxu0 %v1935_v3  ;;  %2304 = vmatmul.mubr.f32.gmra.mxu1 %v1967_v4 }
 0x1c0   : > { %9013 = vmatprep.mubr.msk.f32.mxu0 %vm2003_vm1, %v1938_v5  ;;  %9029 = vmatprep.mubr.msk.f32.mxu1 %vm2003_vm1, %v1970_v6 }
 0x1c3   : > { %2229 = vmatmul.mubr.f32.gmra.mxu0 %v1937_v7  ;;  %2309 = vmatmul.mubr.f32.gmra.mxu1 %v1969_v8 }
 0x1c4   : > { %9014 = vmatprep.mubr.msk.f32.mxu0 %vm2003_vm1, %v1940_v9  ;;  %9030 = vmatprep.mubr.msk.f32.mxu1 %vm2003_vm1, %v1972_v10 }
 0x1c7   : > { %2234 = vmatmul.mubr.f32.gmra.mxu0 %v1939_v11  ;;  %2314 = vmatmul.mubr.f32.gmra.mxu1 %v1971_v12 }
 0x1c8   : > { %9015 = vmatprep.mubr.msk.f32.mxu0 %vm2003_vm1, %v1942_v13  ;;  %9031 = vmatprep.mubr.msk.f32.mxu1 %vm2003_vm1, %v1974_v14 }
 0x1cb   : > { %2239 = vmatmul.mubr.f32.gmra.mxu0 %v1941_v15  ;;  %2319 = vmatmul.mubr.f32.gmra.mxu1 %v1973_v16 }
 0x1cc   : > { %9016 = vmatprep.mubr.msk.f32.mxu0 %vm2003_vm1, %v1944_v17  ;;  %9032 = vmatprep.mubr.msk.f32.mxu1 %vm2003_vm1, %v1976_v18 }
 0x1cf   : > { %2244 = vmatmul.mubr.f32.gmra.mxu0 %v1943_v19  ;;  %2324 = vmatmul.mubr.f32.gmra.mxu1 %v1975_v20 }
 0x253   : > { %v2170_v22 = vpop.f32.mrf.mxu0  ;;  %v2250_v23 = vpop.f32.mrf.mxu1 }
 0x254   : > { %v13188_v24 = vadd.f32 %v13185_v21, %v2170_v22  ;;  %v13191_v25 = vadd.f32 %v13185_v21, %v2250_v23 }
 0x255   : > { %v2172_v26 = vpop.f32.mrf.mxu0  ;;  %v2252_v27 = vpop.f32.mrf.mxu1 }
 0x257   : > { %v2175_v30 = vpop.f32.mrf.mxu0  ;;  %v2255_v31 = vpop.f32.mrf.mxu1 }
 0x258   : > { %v13196_v32 = vadd.f32 %v13185_v21, %v2175_v30  ;;  %v13199_v33 = vadd.f32 %v13185_v21, %v2255_v31 }
 0x259   : > { %v2177_v34 = vpop.f32.mrf.mxu0  ;;  %v2257_v35 = vpop.f32.mrf.mxu1 }
 0x25b   : > { %v2180_v38 = vpop.f32.mrf.mxu0  ;;  %v2260_v39 = vpop.f32.mrf.mxu1 }
 0x25c   : > { %v13204_v40 = vadd.f32 %v13185_v21, %v2180_v38  ;;  %v13207_v41 = vadd.f32 %v13185_v21, %v2260_v39 }
 0x25d   : > { %v2182_v42 = vpop.f32.mrf.mxu0  ;;  %v2262_v43 = vpop.f32.mrf.mxu1 }
 0x25f   : > { %v2185_v46 = vpop.f32.mrf.mxu0  ;;  %v2265_v47 = vpop.f32.mrf.mxu1 }
 0x260   : > { %v13212_v48 = vadd.f32 %v13185_v21, %v2185_v46  ;;  %v13215_v49 = vadd.f32 %v13185_v21, %v2265_v47 }
 0x261   : > { %v2187_v50 = vpop.f32.mrf.mxu0  ;;  %v2267_v51 = vpop.f32.mrf.mxu1 }
 0x263   : > { %v2190_v54 = vpop.f32.mrf.mxu0  ;;  %v2270_v55 = vpop.f32.mrf.mxu1 }
 0x264   : > { %v13220_v56 = vadd.f32 %v13185_v21, %v2190_v54  ;;  %v13223_v57 = vadd.f32 %v13185_v21, %v2270_v55 }
 0x265   : > { %v2192_v58 = vpop.f32.mrf.mxu0  ;;  %v2272_v59 = vpop.f32.mrf.mxu1 }
 0x266   : > { %v2349_v61 = vmax.f32 %v13223_v57, 0.0 }
 0x267   : > { %v2195_v62 = vpop.f32.mrf.mxu0  ;;  %v2275_v63 = vpop.f32.mrf.mxu1 }
 0x268   : > { %v13228_v1 = vadd.f32 %v13185_v21, %v2195_v62  ;;  %v13231_v2 = vadd.f32 %v13185_v21, %v2275_v63 }
 0x269   : > { %v2197_v3 = vpop.f32.mrf.mxu0  ;;  %v2277_v4 = vpop.f32.mrf.mxu1 }
 0x26b   : > { %v2200_v7 = vpop.f32.mrf.mxu0  ;;  %v2280_v8 = vpop.f32.mrf.mxu1 }
 0x26c   : > { %v13236_v9 = vadd.f32 %v13185_v21, %v2200_v7  ;;  %v13239_v10 = vadd.f32 %v13185_v21, %v2280_v8 }
 0x26d   : > { %v2202_v11 = vpop.f32.mrf.mxu0  ;;  %v2282_v12 = vpop.f32.mrf.mxu1 }
 0x26f   : > { %v2205_v15 = vpop.f32.mrf.mxu0  ;;  %v2285_v16 = vpop.f32.mrf.mxu1 }
 0x270   : > { %v13244_v17 = vadd.f32 %v13185_v21, %v2205_v15  ;;  %v13247_v18 = vadd.f32 %v13185_v21, %v2285_v16 }
 0x271   : > { %v2207_v19 = vpop.f32.mrf.mxu0  ;;  %v2287_v20 = vpop.f32.mrf.mxu1 }
 0x273   : > { %v2210_v26 = vpop.f32.mrf.mxu0  ;;  %v2290_v27 = vpop.f32.mrf.mxu1 }
 0x274   : > { %v13252_v30 = vadd.f32 %v13185_v21, %v2210_v26  ;;  %v13255_v31 = vadd.f32 %v13185_v21, %v2290_v27 }
 0x275   : > { %v2212_v34 = vpop.f32.mrf.mxu0  ;;  %v2292_v35 = vpop.f32.mrf.mxu1 }
 0x277   : > { %v2215_v42 = vpop.f32.mrf.mxu0  ;;  %v2295_v43 = vpop.f32.mrf.mxu1 }
 0x278   : > { %v13260_v46 = vadd.f32 %v13185_v21, %v2215_v42  ;;  %v13263_v47 = vadd.f32 %v13185_v21, %v2295_v43 }
 0x279   : > { %v2217_v50 = vpop.f32.mrf.mxu0  ;;  %v2297_v51 = vpop.f32.mrf.mxu1 }
 0x27a   : > { %v2338_v54 = vmax.f32 %v13260_v46, 0.0  ;;  %v2354_v55 = vmax.f32 %v13263_v47, 0.0 }
 0x27b   : > { %v2220_v58 = vpop.f32.mrf.mxu0  ;;  %v2300_v59 = vpop.f32.mrf.mxu1 }
 0x27c   : > { %v13268_v62 = vadd.f32 %v13185_v21, %v2220_v58  ;;  %v13271_v63 = vadd.f32 %v13185_v21, %v2300_v59 }
 0x27d   : > { %v2222_v3 = vpop.f32.mrf.mxu0  ;;  %v2302_v4 = vpop.f32.mrf.mxu1 }
 0x27f   : > { %v2225_v11 = vpop.f32.mrf.mxu0  ;;  %v2305_v12 = vpop.f32.mrf.mxu1 }
 0x280   : > { %v13276_v15 = vadd.f32 %v13185_v21, %v2225_v11  ;;  %v13279_v16 = vadd.f32 %v13185_v21, %v2305_v12 }
 0x281   : > { %v2227_v19 = vpop.f32.mrf.mxu0  ;;  %v2307_v20 = vpop.f32.mrf.mxu1 }
 0x283   : > { %v2230_v34 = vpop.f32.mrf.mxu0  ;;  %v2310_v35 = vpop.f32.mrf.mxu1 }
 0x284   : > { %v13284_v42 = vadd.f32 %v13185_v21, %v2230_v34  ;;  %v13287_v43 = vadd.f32 %v13185_v21, %v2310_v35 }
 0x285   : > { %v2232_v50 = vpop.f32.mrf.mxu0  ;;  %v2312_v51 = vpop.f32.mrf.mxu1 }
 0x286   : > { %v2341_v58 = vmax.f32 %v13284_v42, 0.0  ;;  %v2357_v59 = vmax.f32 %v13287_v43, 0.0 }
 0x287   : > { %v2235_v3 = vpop.f32.mrf.mxu0  ;;  %v2315_v4 = vpop.f32.mrf.mxu1 }
 0x288   : > { %v13292_v11 = vadd.f32 %v13185_v21, %v2235_v3  ;;  %v13295_v12 = vadd.f32 %v13185_v21, %v2315_v4 }
 0x289   : > { %v2237_v19 = vpop.f32.mrf.mxu0  ;;  %v2317_v20 = vpop.f32.mrf.mxu1 }
 0x28b   : > { %v2240_v50 = vpop.f32.mrf.mxu0  ;;  %v2320_v51 = vpop.f32.mrf.mxu1 }
 0x28c   : > { %v13300_v0 = vadd.f32 %v13185_v21, %v2240_v50  ;;  %v13303_v28 = vadd.f32 %v13185_v21, %v2320_v51 }
 0x28d   : > { %v2242_v3 = vpop.f32.mrf.mxu0  ;;  %v2322_v29 = vpop.f32.mrf.mxu1 }
 0x28e   : > { %v13319_v29 = vmov 0.0   ;;  %v13321_v3 = vmov 0.0  }
 0x28f   : > { %v2245_v20 = vpop.f32.mrf.mxu0  ;;  %v2325_v36 = vpop.f32.mrf.mxu1 }
 0x290   : > { %v13308_v37 = vadd.f32 %v13185_v21, %v2245_v20  ;;  %v13311_v44 = vadd.f32 %v13185_v21, %v2325_v36  ;;  %v13325_v20 = vmov 0.0   ;;  %v13329_v21 = vmov 0.0  }
 0x291   : > { %v2247_v45 = vpop.f32.mrf.mxu0  ;;  %v2327_v50 = vpop.f32.mrf.mxu1  ;;  %v13331_v36 = vmov 0.0  }
 0x292   : > { %v2344_v52 = vmax.f32 %v13308_v37, 0.0  ;;  %v13333_v45 = vmov 0.0  }
 0x293 LB: >> { %v15328_v51 = vmax.f32 %v13311_v44, 0.0  ;;  %v15329_v19 = vmax.f32 %v13303_v28, 0.0  ;;  %v15330_v4 = vmax.f32 %v13300_v0, 0.0  ;;  %v15331_v35 = vmax.f32 %v13295_v12, 0.0  ;;  %s15344_s26 = sld [smem:[#allocation42_spill]]  ;;  %s9546_s2 = sshll.u32 %s12181_s10, 7  ;;  %s12181_s10 = sphi %s13335_s10, %s2366_s10   ;;  %v12177_v45 = vphi %v13333_v45, %v15379_v45   ;;  %v12173_v36 = vphi %v13331_v36, %v15378_v36   ;;  %v12169_v21 = vphi %v13329_v21, %v15377_v21   ;;  %v12165_v60 = vphi %v13327_v60, %v15376_v60   ;;  %v12161_v20 = vphi %v13325_v20, %v15375_v20   ;;  %v12157_v53 = vphi %v13323_v53, %v15374_v53   ;;  %v12153_v3 = vphi %v13321_v3, %v15373_v3   ;;  %v12149_v29 = vphi %v13319_v29, %v15372_v29  }
 0x294   : >> { %v15332_v34 = vmax.f32 %v13292_v11, 0.0  ;;  %v15333_v27 = vmax.f32 %v13279_v16, 0.0  ;;  %v15334_v26 = vmax.f32 %v13276_v15, 0.0  ;;  %v15335_v8 = vmax.f32 %v13271_v63, 0.0  ;;  %s2366_s10 = sadd.s32 1, %s12181_s10  }
 0x295   : >> { %9547 = vmatprep.subr.mxu0 %v15328_v51  ;;  %10449 = vmatprep.subr.mxu1 %v15328_v51  ;;  %v15336_v7 = vmax.f32 %v13268_v62, 0.0  ;;  %v15337_v39 = vmax.f32 %v13255_v31, 0.0  ;;  %v15338_v38 = vmax.f32 %v13252_v30, 0.0  ;;  %v15339_v23 = vmax.f32 %v13247_v18, 0.0  ;;  %p2363_p12 = scmp.ge.s32.totalorder %s2366_s10, 9  }
 0x296   : >> { %9548 = vmatpush3.msra.mxu0 %v2344_v52  ;;  %10465 = vmatpush3.msra.mxu1 %v2344_v52  ;;  %v15340_v22 = vmax.f32 %v13244_v17, 0.0  ;;  %v15341_v14 = vmax.f32 %v13239_v10, 0.0  ;;  %v15342_v13 = vmax.f32 %v13236_v9, 0.0  ;;  %v15343_v6 = vmax.f32 %v13231_v2, 0.0  ;;  %s13579_s8 = smov (%p2363_p12), 0  }
 0x297   : >> { %9549 = vmatprep.subr.mxu0 %v15329_v19  ;;  %10450 = vmatprep.subr.mxu1 %v15329_v19  ;;  %v15345_v5 = vmax.f32 %v13228_v1, 0.0  ;;  %v15346_v50 = vmax.f32 %v13220_v56, 0.0  ;;  %v15362_v19 = vmax.f32 %v13188_v24, 0.0 }
 0x298   : >> { %9550 = vmatpush3.msra.mxu0 %v15330_v4  ;;  %10466 = vmatpush3.msra.mxu1 %v15330_v4 }
 0x299   : >> { %9551 = vmatprep.subr.mxu0 %v15331_v35  ;;  %10451 = vmatprep.subr.mxu1 %v15331_v35  ;;  %v15347_v4 = vmov %v15346_v50  ;;  %s13474_s15 = scalar_lea.vmem %s15344_s26, %s9546_s2 }
 0x29a   : >> { %9552 = vmatpush3.msra.mxu0 %v15332_v34  ;;  %10467 = vmatpush3.msra.mxu1 %v15332_v34 }
 0x29b   : >> { %9553 = vmatprep.subr.mxu0 %v2357_v59  ;;  %10452 = vmatprep.subr.mxu1 %v2357_v59 }
 0x29c   : >> { %9554 = vmatpush3.msra.mxu0 %v2341_v58  ;;  %10468 = vmatpush3.msra.mxu1 %v2341_v58 }
 0x29d   : >> { %9555 = vmatprep.subr.mxu0 %v15333_v27  ;;  %10453 = vmatprep.subr.mxu1 %v15333_v27  ;;  %v2393_v27 = vld [vmem:[%s13474_s15 + $0x78] sm:$0xff] }
 0x29e   : >> { %9556 = vmatpush3.msra.mxu0 %v15334_v26  ;;  %10469 = vmatpush3.msra.mxu1 %v15334_v26  ;;  %v2390_v26 = vld [vmem:[%s13474_s15 + $0x60] sm:$0xff] }
 0x29f   : >> { %9557 = vmatprep.subr.mxu0 %v15335_v8  ;;  %10454 = vmatprep.subr.mxu1 %v15335_v8 }
 0x2a0   : >> { %9558 = vmatpush3.msra.mxu0 %v15336_v7  ;;  %10470 = vmatpush3.msra.mxu1 %v15336_v7 }
 0x2a1   : >> { %9559 = vmatprep.subr.mxu0 %v2354_v55  ;;  %10455 = vmatprep.subr.mxu1 %v2354_v55 }
 0x2a2   : >> { %9560 = vmatpush3.msra.mxu0 %v2338_v54  ;;  %10471 = vmatpush3.msra.mxu1 %v2338_v54 }
 0x2a3   : >> { %9561 = vmatprep.subr.mxu0 %v15337_v39  ;;  %10456 = vmatprep.subr.mxu1 %v15337_v39 }
 0x2a4   : >> { %9562 = vmatpush3.msra.mxu0 %v15338_v38  ;;  %10472 = vmatpush3.msra.mxu1 %v15338_v38 }
 0x2a5   : >> { %9563 = vmatprep.subr.mxu0 %v15339_v23  ;;  %10457 = vmatprep.subr.mxu1 %v15339_v23  ;;  %v2391_v23 = vld [vmem:[%s13474_s15 + $0x68] sm:$0xff] }
 0x2a6   : >> { %9564 = vmatpush3.msra.mxu0 %v15340_v22  ;;  %10473 = vmatpush3.msra.mxu1 %v15340_v22  ;;  %v2389_v22 = vld [vmem:[%s13474_s15 + $0x58] sm:$0xff] }
 0x2a7   : >> { %9565 = vmatprep.subr.mxu0 %v15341_v14  ;;  %10458 = vmatprep.subr.mxu1 %v15341_v14  ;;  %v2387_v14 = vld [vmem:[%s13474_s15 + $0x48] sm:$0xff] }
 0x2a8   : >> { %9566 = vmatpush3.msra.mxu0 %v15342_v13  ;;  %10474 = vmatpush3.msra.mxu1 %v15342_v13  ;;  %v15352_v13 = vmax.f32 %v13207_v41, 0.0 }
 0x2a9   : >> { %9567 = vmatprep.subr.mxu0 %v15343_v6  ;;  %10459 = vmatprep.subr.mxu1 %v15343_v6  ;;  %v15348_v6 = vmax.f32 %v13215_v49, 0.0 }
 0x2aa   : >> { %9568 = vmatpush3.msra.mxu0 %v15345_v5  ;;  %10475 = vmatpush3.msra.mxu1 %v15345_v5  ;;  %v15350_v5 = vmax.f32 %v13212_v48, 0.0 }
 0x2ab   : >> { %9569 = vmatprep.subr.mxu0 %v2349_v61  ;;  %10460 = vmatprep.subr.mxu1 %v2349_v61  ;;  %v15349_v7 = vmov %v15348_v6 }
 0x2ac   : >> { %9570 = vmatpush3.msra.mxu0 %v15346_v50  ;;  %10476 = vmatpush3.msra.mxu1 %v15347_v4  ;;  %v15351_v8 = vmov %v15350_v5  ;;  %v15353_v50 = vmov %v15352_v13  ;;  %v15354_v4 = vmax.f32 %v13204_v40, 0.0 }
 0x2ad   : >> { %9571 = vmatprep.subr.mxu0 %v15348_v6  ;;  %10461 = vmatprep.subr.mxu1 %v15349_v7  ;;  %v15356_v6 = vmax.f32 %v13199_v33, 0.0  ;;  %v15358_v7 = vmax.f32 %v13196_v32, 0.0 }
 0x2ae   : >> { %9572 = vmatpush3.msra.mxu0 %v15350_v5  ;;  %10477 = vmatpush3.msra.mxu1 %v15351_v8  ;;  %v15355_v5 = vmov %v15354_v4 }
 0x2af   : >> { %9573 = vmatprep.subr.mxu0 %v15352_v13  ;;  %10462 = vmatprep.subr.mxu1 %v15353_v50  ;;  %v15357_v13 = vmov %v15356_v6  ;;  %v15359_v8 = vmov %v15358_v7  ;;  %v2379_v50 = vld [vmem:[%s13474_s15 + $0x8] sm:$0xff] }
 0x2b0   : >> { %9574 = vmatpush3.msra.mxu0 %v15354_v4  ;;  %10478 = vmatpush3.msra.mxu1 %v15355_v5  ;;  %v15360_v4 = vmax.f32 %v13191_v25, 0.0 }
 0x2b1   : >> { %9575 = vmatprep.subr.mxu0 %v15356_v6  ;;  %10463 = vmatprep.subr.mxu1 %v15357_v13  ;;  %v2378_v6 = vld [vmem:[%s13474_s15] sm:$0xff] }
 0x2b2   : >> { %9576 = vmatpush3.msra.mxu0 %v15358_v7  ;;  %10479 = vmatpush3.msra.mxu1 %v15359_v8  ;;  %v15361_v5 = vmov %v15360_v4  ;;  %v2386_v13 = vld [vmem:[%s13474_s15 + $0x40] sm:$0xff]  ;;  %v15363_v7 = vmov %v15362_v19  ;;  %v2381_v8 = vld [vmem:[%s13474_s15 + $0x18] sm:$0xff] }
 0x2b3   : >> { %9577 = vmatprep.subr.mxu0 %v15360_v4  ;;  %10464 = vmatprep.subr.mxu1 %v15361_v5  ;;  %v2380_v4 = vld [vmem:[%s13474_s15 + $0x10] sm:$0xff] }
 0x2b4   : >> { %9578 = vmatpush3.msra.mxu0 %v15362_v19  ;;  %10480 = vmatpush3.msra.mxu1 %v15363_v7  ;;  %v2388_v5 = vld [vmem:[%s13474_s15 + $0x50] sm:$0xff]  ;;  %v2383_v19 = vld [vmem:[%s13474_s15 + $0x28] sm:$0xff]  ;;  %v2382_v7 = vld [vmem:[%s13474_s15 + $0x20] sm:$0xff] }
 0x2b5   : >> { %2458 = vmatprep.mubr.f32.mxu0 %v2379_v50  ;;  %2478 = vmatprep.mubr.f32.mxu1 %v2387_v14  ;;  %v2385_v50 = vld [vmem:[%s13474_s15 + $0x38] sm:$0xff]  ;;  %v2384_v14 = vld [vmem:[%s13474_s15 + $0x30] sm:$0xff] }
 0x2b6   : >> { %2459 = vmatmul.mubr.f32.vlgmr.msra.gmra.mxu0 %v2378_v6  ;;  %2479 = vmatmul.mubr.f32.vlgmr.msra.gmra.mxu1 %v2386_v13 }
 0x2b7   : >> { %2463 = vmatprep.mubr.f32.mxu0 %v2381_v8  ;;  %2483 = vmatprep.mubr.f32.mxu1 %v2389_v22  ;;  %v2392_v22 = vld [vmem:[%s13474_s15 + $0x70] sm:$0xff] }
 0x2ba   : >> { %2464 = vmatmul.mubr.f32.gmra.mxu0 %v2380_v4  ;;  %2484 = vmatmul.mubr.f32.gmra.mxu1 %v2388_v5 }
 0x2bb   : >> { %2468 = vmatprep.mubr.f32.mxu0 %v2383_v19  ;;  %2488 = vmatprep.mubr.f32.mxu1 %v2391_v23 }
 0x2be   : >> { %2469 = vmatmul.mubr.f32.gmra.mxu0 %v2382_v7  ;;  %2489 = vmatmul.mubr.f32.gmra.mxu1 %v2390_v26 }
 0x2bf   : >> { %2473 = vmatprep.mubr.f32.mxu0 %v2385_v50  ;;  %2493 = vmatprep.mubr.f32.mxu1 %v2393_v27 }
 0x2c2   : >> { %2474 = vmatmul.mubr.f32.gmra.mxu0 %v2384_v14  ;;  %2494 = vmatmul.mubr.f32.gmra.mxu1 %v2392_v22 }
 0x376   : >> { %v9579_v6 = vpop.f32.mrf.mxu0  ;;  %v9591_v13 = vpop.f32.mrf.mxu1 }
 0x378   : >> { %v9580_v8 = vpop.f32.mrf.mxu0  ;;  %v9592_v34 = vpop.f32.mrf.mxu1 }
 0x379   : >> { %v9581_v4 = vadd.f32 %v9580_v8, %v9579_v6  ;;  %v9593_v5 = vadd.f32 %v9592_v34, %v9591_v13 }
 0x37a   : >> { %v9582_v19 = vpop.f32.mrf.mxu0  ;;  %v9594_v23 = vpop.f32.mrf.mxu1 }
 0x37b   : >> { %v13513_v45 = vmax.f32 %v12177_v45, %v9581_v4   ;;  %v13516_v20 = vmax.f32 %v12161_v20, %v9593_v5  }
 0x37c   : >> { %v9583_v7 = vpop.f32.mrf.mxu0  ;;  %v9595_v27 = vpop.f32.mrf.mxu1 }
 0x37d   : >> { %v15364_v35 = vmov %v13513_v45  ;;  %v15365_v26 = vmov %v13516_v20  ;;  %v9584_v50 = vadd.f32 %v9583_v7, %v9582_v19  ;;  %v9596_v38 = vadd.f32 %v9595_v27, %v9594_v23 }
 0x37e   : >> { %v9585_v14 = vpop.f32.mrf.mxu0  ;;  %v9597_v22 = vpop.f32.mrf.mxu1 }
 0x37f   : >> { %v13519_v36 = vmax.f32 %v12173_v36, %v9584_v50   ;;  %v13522_v53 = vmax.f32 %v12157_v53, %v9596_v38  }
 0x380   : >> { %v9586_v6 = vpop.f32.mrf.mxu0  ;;  %v9598_v13 = vpop.f32.mrf.mxu1 }
 0x381   : >> { %v15366_v39 = vmov %v13519_v36  ;;  %v15367_v34 = vmov %v13522_v53  ;;  %v9587_v8 = vadd.f32 %v9586_v6, %v9585_v14  ;;  %v9599_v4 = vadd.f32 %v9598_v13, %v9597_v22 }
 0x382   : >> { %v9588_v45 = vpop.f32.mrf.mxu0  ;;  %v9600_v51 = vpop.f32.mrf.mxu1  ;;  %v15374_v53 = vmov %v15367_v34  ;;  %v15378_v36 = vmov %v15366_v39  ;;  %v13565_v14 = vmov (%p2363_p12), 0.0   ;;  %v13567_v22 = vmov (%p2363_p12), 0.0  }
 0x383   : >> { %v13525_v21 = vmax.f32 %v12169_v21, %v9587_v8   ;;  %v13528_v3 = vmax.f32 %v12153_v3, %v9599_v4   ;;  %v13569_v6 = vmov (%p2363_p12), 0.0   ;;  %v13571_v13 = vmov (%p2363_p12), 0.0  }
 0x384   : >> { %v9589_v20 = vpop.f32.mrf.mxu0  ;;  %v9601_v23 = vpop.f32.mrf.mxu1  ;;  %v13573_v8 = vmov (%p2363_p12), 0.0   ;;  %v13575_v4 = vmov (%p2363_p12), 0.0  }
 0x385   : >> { %v15368_v5 = vmov %v13525_v21  ;;  %v15369_v19 = vmov %v13528_v3  ;;  %v9590_v7 = vadd.f32 %v9589_v20, %v9588_v45  ;;  %v9602_v27 = vadd.f32 %v9601_v23, %v9600_v51 }
 0x386   : >> { %v15373_v3 = vmov %v15369_v19  ;;  %v15375_v20 = vmov %v15365_v26  ;;  %v15377_v21 = vmov %v15368_v5  ;;  %v15379_v45 = vmov %v15364_v35  ;;  %2365 = sbr.rel (!%p2363_p12) target bundleno = 659 (0x293), region = 565 }
 0x387   : >> { %v13531_v60 = vmax.f32 %v12165_v60, %v9590_v7   ;;  %v13534_v29 = vmax.f32 %v12149_v29, %v9602_v27   ;;  %v13563_v51 = vmov (%p2363_p12), 0.0   ;;  %v13577_v45 = vmov (%p2363_p12), 0.0  }
 0x389   : >> { %v15370_v38 = vmov %v13531_v60  ;;  %v15371_v50 = vmov %v13534_v29 }
 0x38a   : >> { %v15372_v29 = vmov %v15371_v50  ;;  %v15376_v60 = vmov %v15370_v38 }
 0x38b LB: >> { %s15380_s23 = sld [smem:[#allocation43_spill]]  ;;  %9973 = vmatprep.subr.mxu0 %v15371_v50  ;;  %s9035_s1 = sshll.u32 %s12217_s8, 6  ;;  %vm2531_vm2 = vcmask 523264   ;;  %vm2664_vm3 = vcmask 64512   ;;  %s12217_s8 = sphi %s13579_s8, %s2512_s8   ;;  %v12213_v45 = vphi %v13577_v45, %v15389_v45   ;;  %v12209_v4 = vphi %v13575_v4, %v15388_v4   ;;  %v12205_v8 = vphi %v13573_v8, %v15387_v8   ;;  %v12201_v13 = vphi %v13571_v13, %v15386_v13   ;;  %v12197_v6 = vphi %v13569_v6, %v15385_v6   ;;  %v12193_v22 = vphi %v13567_v22, %v15384_v22   ;;  %v12189_v14 = vphi %v13565_v14, %v15383_v14   ;;  %v12185_v51 = vphi %v13563_v51, %v15382_v51  }
 0x38c   : >> { %9974 = vmatpush3.msra.mxu0 %v15371_v50  ;;  %s15381_s22 = sld [smem:[#allocation44_spill]]  ;;  %s9044_s10 = sshll.u32 %s12217_s8, 3 }
 0x38d   : >> { %9975 = vmatprep.subr.mxu0 %v15369_v19  ;;  %s2512_s8 = sadd.s32 1, %s12217_s8  }
 0x38e   : >> { %9976 = vmatpush3.msra.mxu0 %v15369_v19  ;;  %p2509_p7 = scmp.ge.s32.totalorder %s2512_s8, 9  }
 0x38f   : >> { %9977 = vmatprep.subr.mxu0 %v15367_v34  ;;  %s15390_s2 = sld [smem:[#allocation45_spill]] (%p2509_p7)  ;;  %s13706_s15 = smov (%p2509_p7), 0  }
 0x390   : >> { %9978 = vmatpush3.msra.mxu0 %v15367_v34 }
 0x391   : >> { %s2522_s4 = scalar_lea.vmem %s15380_s23, %s9035_s1  ;;  %9979 = vmatprep.subr.mxu0 %v15365_v26 }
 0x392   : >> { %v2523_v0 = vld [vmem:[%s2522_s4] sm:$0xff]  ;;  %9980 = vmatpush3.msra.mxu0 %v15365_v26  ;;  %v2524_v24 = vld [vmem:[%s2522_s4 + $0x8] sm:$0xff]  ;;  %v2525_v25 = vld [vmem:[%s2522_s4 + $0x10] sm:$0xff]  ;;  %s2662_s26 = scalar_lea.vmem %s15381_s22, %s9044_s10 }
 0x393   : >> { %9989 = vmatprep.mubr.msk.f32.mxu0 %vm2531_vm2, %v2523_v0  ;;  %9981 = vmatprep.subr.mxu0 %v15370_v38  ;;  %v2526_v28 = vld [vmem:[%s2522_s4 + $0x18] sm:$0xff]  ;;  %v2527_v32 = vld [vmem:[%s2522_s4 + $0x20] sm:$0xff]  ;;  %v2528_v33 = vld [vmem:[%s2522_s4 + $0x28] sm:$0xff]  ;;  %v13702_v0 = vmov (%p2509_p7), 0.0  }
 0x394   : >> { %9982 = vmatpush3.msra.mxu0 %v15370_v38  ;;  %v2529_v37 = vld [vmem:[%s2522_s4 + $0x30] sm:$0xff]  ;;  %v2530_v40 = vld [vmem:[%s2522_s4 + $0x38] sm:$0xff]  ;;  %v2663_v41 = vld [vmem:[%s2662_s26] sm:$0xff] }
 0x395   : >> { %9983 = vmatprep.subr.mxu0 %v15368_v5  ;;  %10001 = vmatprep.subr.mxu1 %v2663_v41  ;;  %v9053_v16 = vld [vmem:[%s15390_s2] ss:$0 sm:$0xff] (%p2509_p7) }
 0x396   : >> { %9984 = vmatpush3.msra.mxu0 %v15368_v5  ;;  %10002 = vmatpush3.msra.mxu1 %v2663_v41 }
 0x397   : >> { %9985 = vmatprep.subr.mxu0 %v15366_v39 }
 0x398   : >> { %9986 = vmatpush3.msra.mxu0 %v15366_v39 }
 0x399   : >> { %9987 = vmatprep.subr.mxu0 %v15364_v35 }
 0x39a   : >> { %9988 = vmatpush3.msra.mxu0 %v15364_v35 }
 0x39b   : >> { %9990 = vmatmul.mubr.msk.f32.vlgmr.msra.gmra.mxu0 %vm2531_vm2, %v2524_v24  ;;  %v13704_v24 = vmov (%p2509_p7), 0.0  }
 0x39c   : >> { %9992 = vmatprep.mubr.msk.f32.mxu0 %vm2531_vm2, %v2525_v25 }
 0x39f   : >> { %9993 = vmatmul.mubr.msk.f32.gmra.mxu0 %vm2531_vm2, %v2526_v28 }
 0x3a0   : >> { %9995 = vmatprep.mubr.msk.f32.mxu0 %vm2531_vm2, %v2527_v32 }
 0x3a3   : >> { %9996 = vmatmul.mubr.msk.f32.gmra.mxu0 %vm2531_vm2, %v2528_v33 }
 0x3a4   : >> { %9998 = vmatprep.mubr.msk.f32.mxu0 %vm2531_vm2, %v2529_v37 }
 0x3a7   : >> { %9999 = vmatmul.mubr.msk.f32.gmra.mxu0 %vm2531_vm2, %v2530_v40 }
 0x45b   : >> { %v9991_v44 = vpop.f32.mrf.mxu0 }
 0x45d   : >> { %v2622_v48 = vpop.f32.mrf.mxu0 }
 0x45e   : >> { %10003 = vmatprep.mubr.msk.f32.mxu1 %vm2664_vm3, %v2622_v48 }
 0x45f   : >> { %v9994_v49 = vpop.f32.mrf.mxu0  ;;  %10004 = vmatmul.mubr.msk.f32.vlgmr.msra.gmra.mxu1 %vm2664_vm3, %v9991_v44 }
 0x461   : >> { %v2632_v52 = vpop.f32.mrf.mxu0 }
 0x462   : >> { %10006 = vmatprep.mubr.msk.f32.mxu1 %vm2664_vm3, %v2632_v52 }
 0x463   : >> { %v9997_v53 = vpop.f32.mrf.mxu0  ;;  %10007 = vmatmul.mubr.msk.f32.gmra.mxu1 %vm2664_vm3, %v9994_v49 }
 0x465   : >> { %v2642_v56 = vpop.f32.mrf.mxu0 }
 0x466   : >> { %10009 = vmatprep.mubr.msk.f32.mxu1 %vm2664_vm3, %v2642_v56 }
 0x467   : >> { %v10000_v57 = vpop.f32.mrf.mxu0  ;;  %10010 = vmatmul.mubr.msk.f32.gmra.mxu1 %vm2664_vm3, %v9997_v53 }
 0x469   : >> { %v2652_v60 = vpop.f32.mrf.mxu0 }
 0x46a   : >> { %10012 = vmatprep.mubr.msk.f32.mxu1 %vm2664_vm3, %v2652_v60 }
 0x46b   : >> { %10013 = vmatmul.mubr.msk.f32.gmra.mxu1 %vm2664_vm3, %v10000_v57 }
 0x51f   : >> { %v10005_v61 = vpop.f32.mrf.mxu1 }
 0x520   : >> { %v2795_v1 = vadd.f32 %v12209_v4, %v10005_v61  }
 0x521   : >> { %v2755_v2 = vpop.f32.mrf.mxu1 }
 0x522   : >> { %v2794_v9 = vadd.f32 %v12213_v45, %v2755_v2   ;;  %v15388_v4 = vmov %v2795_v1  ;;  %v13668_v43 = vadd.f32 (%p2509_p7), %v9053_v16, %v2795_v1 }
 0x523   : >> { %v10008_v10 = vpop.f32.mrf.mxu1  ;;  %v13698_v4 = vmov (%p2509_p7), 0.0  }
 0x524   : >> { %v2797_v17 = vadd.f32 %v12201_v13, %v10008_v10   ;;  %v15389_v45 = vmov %v2794_v9  ;;  %v13666_v42 = vadd.f32 (%p2509_p7), %v9053_v16, %v2794_v9  ;;  %v2818_v36 = vmax.f32 (%p2509_p7), %v13668_v43, 0.0 }
 0x525   : >> { %v2765_v18 = vpop.f32.mrf.mxu1  ;;  %v13700_v45 = vmov (%p2509_p7), 0.0  }
 0x526   : >> { %v2796_v30 = vadd.f32 %v12205_v8, %v2765_v18   ;;  %v15386_v13 = vmov %v2797_v17  ;;  %v13672_v59 = vadd.f32 (%p2509_p7), %v9053_v16, %v2797_v17  ;;  %v2817_v21 = vmax.f32 (%p2509_p7), %v13666_v42, 0.0 }
 0x527   : >> { %v10011_v31 = vpop.f32.mrf.mxu1  ;;  %v13694_v13 = vmov (%p2509_p7), 0.0  }
 0x528   : >> { %v2799_v46 = vadd.f32 %v12193_v22, %v10011_v31   ;;  %v15387_v8 = vmov %v2796_v30  ;;  %v13670_v58 = vadd.f32 (%p2509_p7), %v9053_v16, %v2796_v30  ;;  %v2820_v23 = vmax.f32 (%p2509_p7), %v13672_v59, 0.0 }
 0x529   : >> { %v2775_v47 = vpop.f32.mrf.mxu1  ;;  %v13696_v8 = vmov (%p2509_p7), 0.0  }
 0x52a   : >> { %v2798_v54 = vadd.f32 %v12197_v6, %v2775_v47   ;;  %v15384_v22 = vmov %v2799_v46  ;;  %v13676_v12 = vadd.f32 (%p2509_p7), %v9053_v16, %v2799_v46  ;;  %v2819_v20 = vmax.f32 (%p2509_p7), %v13670_v58, 0.0 }
 0x52b   : >> { %v10014_v55 = vpop.f32.mrf.mxu1  ;;  %v13690_v22 = vmov (%p2509_p7), 0.0  }
 0x52c   : >> { %v2801_v62 = vadd.f32 %v12185_v51, %v10014_v55   ;;  %v15385_v6 = vmov %v2798_v54  ;;  %2511 = sbr.rel (!%p2509_p7) target bundleno = 907 (0x38b), region = 576  ;;  %v13674_v11 = vadd.f32 (%p2509_p7), %v9053_v16, %v2798_v54  ;;  %v2822_v27 = vmax.f32 (%p2509_p7), %v13676_v12, 0.0 }
 0x52d   : >> { %v2785_v63 = vpop.f32.mrf.mxu1  ;;  %v13692_v6 = vmov (%p2509_p7), 0.0  }
 0x52e   : >> { %v2800_v15 = vadd.f32 %v12189_v14, %v2785_v63   ;;  %v15382_v51 = vmov %v2801_v62  ;;  %v13680_v3 = vadd.f32 (%p2509_p7), %v9053_v16, %v2801_v62  ;;  %v2821_v7 = vmax.f32 (%p2509_p7), %v13674_v11, 0.0 }
 0x530   : >> { %v15383_v14 = vmov %v2800_v15  ;;  %v13678_v29 = vadd.f32 (%p2509_p7), %v9053_v16, %v2800_v15 }
 0x531   : > { %v2824_v14 = vmax.f32 %v13680_v3, 0.0 }
 0x532   : > { %v2823_v51 = vmax.f32 %v13678_v29, 0.0 }
 0x533 LB: >> { %s15391_s8 = sld [smem:[#allocation43_spill]]  ;;  %10015 = vmatprep.subr.mxu0 %v2824_v14  ;;  %s9054_s23 = sshll.u32 %s12253_s15, 6  ;;  %s12253_s15 = sphi %s13706_s15, %s2830_s15   ;;  %v12249_v24 = vphi %v13704_v24, %v15400_v24   ;;  %v12245_v0 = vphi %v13702_v0, %v15399_v0   ;;  %v12241_v45 = vphi %v13700_v45, %v15398_v45   ;;  %v12237_v4 = vphi %v13698_v4, %v15397_v4   ;;  %v12233_v8 = vphi %v13696_v8, %v15396_v8   ;;  %v12229_v13 = vphi %v13694_v13, %v15395_v13   ;;  %v12225_v6 = vphi %v13692_v6, %v15394_v6   ;;  %v12221_v22 = vphi %v13690_v22, %v15393_v22  }
 0x534   : >> { %10016 = vmatpush3.msra.mxu0 %v2824_v14  ;;  %s15392_s4 = sld [smem:[#allocation46_spill]]  ;;  %s9063_s22 = sshll.u32 %s12253_s15, 3 }
 0x535   : >> { %10017 = vmatprep.subr.mxu0 %v2823_v51  ;;  %s2830_s15 = sadd.s32 1, %s12253_s15  }
 0x536   : >> { %10018 = vmatpush3.msra.mxu0 %v2823_v51  ;;  %p2827_p8 = scmp.ge.s32.totalorder %s2830_s15, 9  }
 0x537   : >> { %10019 = vmatprep.subr.mxu0 %v2822_v27  ;;  %s15401_s26 = sld [smem:[#allocation47_spill]] (%p2827_p8)  ;;  %v13839_v29 = vmov (%p2827_p8), 0.0   ;;  %v13841_v3 = vmov (%p2827_p8), 0.0   ;;  %s13849_s2 = smov (%p2827_p8), 0  }
 0x538   : >> { %10020 = vmatpush3.msra.mxu0 %v2822_v27 }
 0x539   : >> { %s2840_s1 = scalar_lea.vmem %s15391_s8, %s9054_s23  ;;  %10021 = vmatprep.subr.mxu0 %v2821_v7 }
 0x53a   : >> { %v2841_v25 = vld [vmem:[%s2840_s1] sm:$0xff]  ;;  %10022 = vmatpush3.msra.mxu0 %v2821_v7  ;;  %v2842_v28 = vld [vmem:[%s2840_s1 + $0x8] sm:$0xff]  ;;  %v2843_v32 = vld [vmem:[%s2840_s1 + $0x10] sm:$0xff]  ;;  %s2980_s10 = scalar_lea.vmem %s15392_s4, %s9063_s22 }
 0x53b   : >> { %10031 = vmatprep.mubr.msk.f32.mxu0 %vm2531_vm2, %v2841_v25  ;;  %10023 = vmatprep.subr.mxu0 %v2820_v23  ;;  %v2844_v33 = vld [vmem:[%s2840_s1 + $0x18] sm:$0xff]  ;;  %v2845_v37 = vld [vmem:[%s2840_s1 + $0x20] sm:$0xff]  ;;  %v2846_v40 = vld [vmem:[%s2840_s1 + $0x28] sm:$0xff] }
 0x53c   : >> { %10024 = vmatpush3.msra.mxu0 %v2820_v23  ;;  %v2847_v41 = vld [vmem:[%s2840_s1 + $0x30] sm:$0xff]  ;;  %v2848_v44 = vld [vmem:[%s2840_s1 + $0x38] sm:$0xff]  ;;  %v2981_v48 = vld [vmem:[%s2980_s10] sm:$0xff] }
 0x53d   : >> { %10025 = vmatprep.subr.mxu0 %v2819_v20  ;;  %10043 = vmatprep.subr.mxu1 %v2981_v48 }
 0x53e   : >> { %10026 = vmatpush3.msra.mxu0 %v2819_v20  ;;  %10044 = vmatpush3.msra.mxu1 %v2981_v48  ;;  %v13847_v20 = vmov (%p2827_p8), 0.0  }
 0x53f   : >> { %10027 = vmatprep.subr.mxu0 %v2818_v36 }
 0x540   : >> { %10028 = vmatpush3.msra.mxu0 %v2818_v36  ;;  %v13845_v36 = vmov (%p2827_p8), 0.0  }
 0x541   : >> { %10029 = vmatprep.subr.mxu0 %v2817_v21 }
 0x542   : >> { %10030 = vmatpush3.msra.mxu0 %v2817_v21  ;;  %v13843_v21 = vmov (%p2827_p8), 0.0  }
 0x543   : >> { %10032 = vmatmul.mubr.msk.f32.vlgmr.msra.gmra.mxu0 %vm2531_vm2, %v2842_v28 }
 0x544   : >> { %10034 = vmatprep.mubr.msk.f32.mxu0 %vm2531_vm2, %v2843_v32 }
 0x547   : >> { %10035 = vmatmul.mubr.msk.f32.gmra.mxu0 %vm2531_vm2, %v2844_v33 }
 0x548   : >> { %10037 = vmatprep.mubr.msk.f32.mxu0 %vm2531_vm2, %v2845_v37 }
 0x54b   : >> { %10038 = vmatmul.mubr.msk.f32.gmra.mxu0 %vm2531_vm2, %v2846_v40 }
 0x54c   : >> { %10040 = vmatprep.mubr.msk.f32.mxu0 %vm2531_vm2, %v2847_v41 }
 0x54f   : >> { %10041 = vmatmul.mubr.msk.f32.gmra.mxu0 %vm2531_vm2, %v2848_v44 }
 0x603   : >> { %v10033_v49 = vpop.f32.mrf.mxu0 }
 0x605   : >> { %v2940_v52 = vpop.f32.mrf.mxu0 }
 0x606   : >> { %10045 = vmatprep.mubr.msk.f32.mxu1 %vm2664_vm3, %v2940_v52 }
 0x607   : >> { %v10036_v53 = vpop.f32.mrf.mxu0  ;;  %10046 = vmatmul.mubr.msk.f32.vlgmr.msra.gmra.mxu1 %vm2664_vm3, %v10033_v49 }
 0x609   : >> { %v2950_v56 = vpop.f32.mrf.mxu0 }
 0x60a   : >> { %10048 = vmatprep.mubr.msk.f32.mxu1 %vm2664_vm3, %v2950_v56 }
 0x60b   : >> { %v10039_v57 = vpop.f32.mrf.mxu0  ;;  %10049 = vmatmul.mubr.msk.f32.gmra.mxu1 %vm2664_vm3, %v10036_v53 }
 0x60d   : >> { %v2960_v60 = vpop.f32.mrf.mxu0 }
 0x60e   : >> { %10051 = vmatprep.mubr.msk.f32.mxu1 %vm2664_vm3, %v2960_v60 }
 0x60f   : >> { %v10042_v61 = vpop.f32.mrf.mxu0  ;;  %10052 = vmatmul.mubr.msk.f32.gmra.mxu1 %vm2664_vm3, %v10039_v57 }
 0x611   : >> { %v2970_v1 = vpop.f32.mrf.mxu0 }
 0x612   : >> { %10054 = vmatprep.mubr.msk.f32.mxu1 %vm2664_vm3, %v2970_v1 }
 0x613   : >> { %10055 = vmatmul.mubr.msk.f32.gmra.mxu1 %vm2664_vm3, %v10042_v61 }
 0x6c7   : >> { %v10047_v2 = vpop.f32.mrf.mxu1 }
 0x6c8   : >> { %v3113_v9 = vadd.f32 %v12245_v0, %v10047_v2  }
 0x6c9   : >> { %v3073_v10 = vpop.f32.mrf.mxu1 }
 0x6ca   : >> { %v3112_v17 = vadd.f32 %v12249_v24, %v3073_v10   ;;  %v15399_v0 = vmov %v3113_v9 }
 0x6cb   : >> { %v10050_v18 = vpop.f32.mrf.mxu1 }
 0x6cc   : >> { %v3115_v30 = vadd.f32 %v12237_v4, %v10050_v18   ;;  %v15400_v24 = vmov %v3112_v17 }
 0x6cd   : >> { %v3083_v31 = vpop.f32.mrf.mxu1  ;;  %v9072_v24 = vld [vmem:[%s15401_s26] ss:$0 sm:$0xff] (%p2827_p8) }
 0x6ce   : >> { %v3114_v46 = vadd.f32 %v12241_v45, %v3083_v31   ;;  %v15397_v4 = vmov %v3115_v30  ;;  %v3127_v28 = vadd.f32 (%p2827_p8), %v9072_v24, %v3112_v17  ;;  %v3128_v32 = vadd.f32 (%p2827_p8), %v9072_v24, %v3113_v9 }
 0x6cf   : >> { %v10053_v47 = vpop.f32.mrf.mxu1  ;;  %v3130_v37 = vadd.f32 (%p2827_p8), %v9072_v24, %v3115_v30 }
 0x6d0   : >> { %v3117_v54 = vadd.f32 %v12229_v13, %v10053_v47   ;;  %v15398_v45 = vmov %v3114_v46  ;;  %v3129_v33 = vadd.f32 (%p2827_p8), %v9072_v24, %v3114_v46  ;;  %v3135_v49 = vadd.f32 (%p2827_p8), %v3127_v28, %v15364_v35 }
 0x6d1   : >> { %v3093_v55 = vpop.f32.mrf.mxu1  ;;  %v3136_v52 = vadd.f32 (%p2827_p8), %v3128_v32, %v15366_v39  ;;  %v3138_v56 = vadd.f32 (%p2827_p8), %v3130_v37, %v15370_v38 }
 0x6d2   : >> { %v3116_v62 = vadd.f32 %v12233_v8, %v3093_v55   ;;  %v15395_v13 = vmov %v3117_v54  ;;  %v3132_v41 = vadd.f32 (%p2827_p8), %v9072_v24, %v3117_v54  ;;  %v3137_v53 = vadd.f32 (%p2827_p8), %v3129_v33, %v15368_v5 }
 0x6d3   : >> { %v10056_v63 = vpop.f32.mrf.mxu1  ;;  %v13817_v59 = vmax.f32 (%p2827_p8), %v3135_v49, 0.0  ;;  %v13819_v11 = vmax.f32 (%p2827_p8), %v3136_v52, 0.0  ;;  %v13823_v35 = vmax.f32 (%p2827_p8), %v3138_v56, 0.0 }
 0x6d4   : >> { %v3119_v15 = vadd.f32 %v12221_v22, %v10056_v63   ;;  %v15396_v8 = vmov %v3116_v62  ;;  %2829 = sbr.rel (!%p2827_p8) target bundleno = 1331 (0x533), region = 587  ;;  %v3131_v40 = vadd.f32 (%p2827_p8), %v9072_v24, %v3116_v62  ;;  %v3140_v42 = vadd.f32 (%p2827_p8), %v3132_v41, %v15367_v34 }
 0x6d5   : >> { %v3103_v16 = vpop.f32.mrf.mxu1  ;;  %v13821_v12 = vmax.f32 (%p2827_p8), %v3137_v53, 0.0  ;;  %v13833_v34 = vmov (%p2827_p8), 0.0  }
 0x6d6   : >> { %v3118_v25 = vadd.f32 %v12225_v6, %v3103_v16   ;;  %v15393_v22 = vmov %v3119_v15  ;;  %v3134_v48 = vadd.f32 (%p2827_p8), %v9072_v24, %v3119_v15  ;;  %v3139_v57 = vadd.f32 (%p2827_p8), %v3131_v40, %v15365_v26 }
 0x6d7   : > { %v13827_v5 = vmax.f32 (%p2827_p8), %v3140_v42, 0.0 }
 0x6d8   : >> { %v15394_v6 = vmov %v3118_v25  ;;  %v3133_v44 = vadd.f32 (%p2827_p8), %v9072_v24, %v3118_v25  ;;  %v3142_v58 = vadd.f32 (%p2827_p8), %v3134_v48, %v15371_v50  ;;  %v13825_v39 = vmax.f32 (%p2827_p8), %v3139_v57, 0.0 }
 0x6d9   : > { %v13837_v50 = vmov 0.0  }
 0x6da   : > { %v3141_v43 = vadd.f32 %v3133_v44, %v15369_v19  ;;  %v13831_v26 = vmax.f32 %v3142_v58, 0.0  ;;  %v13835_v19 = vmov 0.0  }
 0x6dc   : > { %v13829_v38 = vmax.f32 %v3141_v43, 0.0 }
 0x6dd LB: >> { %s15402_s15 = sld [smem:[#allocation43_spill]]  ;;  %10057 = vmatprep.subr.mxu0 %v13831_v26  ;;  %s9073_s8 = sshll.u32 %s12289_s2, 6  ;;  %s12289_s2 = sphi %s13849_s2, %s3156_s2   ;;  %v12285_v20 = vphi %v13847_v20, %v15411_v20   ;;  %v12281_v36 = vphi %v13845_v36, %v15410_v36   ;;  %v12277_v21 = vphi %v13843_v21, %v15409_v21   ;;  %v12273_v3 = vphi %v13841_v3, %v15408_v3   ;;  %v12269_v29 = vphi %v13839_v29, %v15407_v29   ;;  %v12265_v50 = vphi %v13837_v50, %v15406_v50   ;;  %v12261_v19 = vphi %v13835_v19, %v15405_v19   ;;  %v12257_v34 = vphi %v13833_v34, %v15404_v34  }
 0x6de   : >> { %10058 = vmatpush3.msra.mxu0 %v13831_v26  ;;  %s15403_s1 = sld [smem:[#allocation48_spill]]  ;;  %s9082_s4 = sshll.u32 %s12289_s2, 3 }
 0x6df   : >> { %10059 = vmatprep.subr.mxu0 %v13829_v38  ;;  %s3156_s2 = sadd.s32 1, %s12289_s2  }
 0x6e0   : >> { %10060 = vmatpush3.msra.mxu0 %v13829_v38  ;;  %p3153_p11 = scmp.ge.s32.totalorder %s3156_s2, 9  }
 0x6e1   : >> { %10061 = vmatprep.subr.mxu0 %v13827_v5  ;;  %s15412_s10 = sld [smem:[#allocation49_spill]] (%p3153_p11)  ;;  %s13976_s26 = smov (%p3153_p11), 0  }
 0x6e2   : >> { %10062 = vmatpush3.msra.mxu0 %v13827_v5 }
 0x6e3   : >> { %s3166_s23 = scalar_lea.vmem %s15402_s15, %s9073_s8  ;;  %10063 = vmatprep.subr.mxu0 %v13825_v39 }
 0x6e4   : >> { %v3167_v23 = vld [vmem:[%s3166_s23] sm:$0xff]  ;;  %10064 = vmatpush3.msra.mxu0 %v13825_v39  ;;  %v3168_v7 = vld [vmem:[%s3166_s23 + $0x8] sm:$0xff]  ;;  %v3169_v27 = vld [vmem:[%s3166_s23 + $0x10] sm:$0xff]  ;;  %s3306_s22 = scalar_lea.vmem %s15403_s1, %s9082_s4 }
 0x6e5   : >> { %10073 = vmatprep.mubr.msk.f32.mxu0 %vm2531_vm2, %v3167_v23  ;;  %10065 = vmatprep.subr.mxu0 %v13823_v35  ;;  %v3170_v51 = vld [vmem:[%s3166_s23 + $0x18] sm:$0xff]  ;;  %v3171_v14 = vld [vmem:[%s3166_s23 + $0x20] sm:$0xff]  ;;  %v3172_v22 = vld [vmem:[%s3166_s23 + $0x28] sm:$0xff]  ;;  %v13972_v23 = vmov (%p3153_p11), 0.0  }
 0x6e6   : >> { %10066 = vmatpush3.msra.mxu0 %v13823_v35  ;;  %v3173_v6 = vld [vmem:[%s3166_s23 + $0x30] sm:$0xff]  ;;  %v3174_v13 = vld [vmem:[%s3166_s23 + $0x38] sm:$0xff]  ;;  %v3307_v8 = vld [vmem:[%s3306_s22] sm:$0xff] }
 0x6e7   : >> { %10067 = vmatprep.subr.mxu0 %v13821_v12  ;;  %10085 = vmatprep.subr.mxu1 %v3307_v8  ;;  %v9091_v32 = vld [vmem:[%s15412_s10] ss:$0 sm:$0xff] (%p3153_p11) }
 0x6e8   : >> { %10068 = vmatpush3.msra.mxu0 %v13821_v12  ;;  %10086 = vmatpush3.msra.mxu1 %v3307_v8 }
 0x6e9   : >> { %10069 = vmatprep.subr.mxu0 %v13819_v11 }
 0x6ea   : >> { %10070 = vmatpush3.msra.mxu0 %v13819_v11 }
 0x6eb   : >> { %10071 = vmatprep.subr.mxu0 %v13817_v59 }
 0x6ec   : >> { %10072 = vmatpush3.msra.mxu0 %v13817_v59 }
 0x6ed   : >> { %10074 = vmatmul.mubr.msk.f32.vlgmr.msra.gmra.mxu0 %vm2531_vm2, %v3168_v7  ;;  %v13974_v7 = vmov (%p3153_p11), 0.0  }
 0x6ee   : >> { %10076 = vmatprep.mubr.msk.f32.mxu0 %vm2531_vm2, %v3169_v27 }
 0x6f1   : >> { %10077 = vmatmul.mubr.msk.f32.gmra.mxu0 %vm2531_vm2, %v3170_v51 }
 0x6f2   : >> { %10079 = vmatprep.mubr.msk.f32.mxu0 %vm2531_vm2, %v3171_v14 }
 0x6f5   : >> { %10080 = vmatmul.mubr.msk.f32.gmra.mxu0 %vm2531_vm2, %v3172_v22 }
 0x6f6   : >> { %10082 = vmatprep.mubr.msk.f32.mxu0 %vm2531_vm2, %v3173_v6 }
 0x6f9   : >> { %10083 = vmatmul.mubr.msk.f32.gmra.mxu0 %vm2531_vm2, %v3174_v13 }
 0x7ad   : >> { %v10075_v4 = vpop.f32.mrf.mxu0 }
 0x7af   : >> { %v3266_v45 = vpop.f32.mrf.mxu0 }
 0x7b0   : >> { %10087 = vmatprep.mubr.msk.f32.mxu1 %vm2664_vm3, %v3266_v45 }
 0x7b1   : >> { %v10078_v0 = vpop.f32.mrf.mxu0  ;;  %10088 = vmatmul.mubr.msk.f32.vlgmr.msra.gmra.mxu1 %vm2664_vm3, %v10075_v4 }
 0x7b3   : >> { %v3276_v60 = vpop.f32.mrf.mxu0 }
 0x7b4   : >> { %10090 = vmatprep.mubr.msk.f32.mxu1 %vm2664_vm3, %v3276_v60 }
 0x7b5   : >> { %v10081_v61 = vpop.f32.mrf.mxu0  ;;  %10091 = vmatmul.mubr.msk.f32.gmra.mxu1 %vm2664_vm3, %v10078_v0 }
 0x7b7   : >> { %v3286_v1 = vpop.f32.mrf.mxu0 }
 0x7b8   : >> { %10093 = vmatprep.mubr.msk.f32.mxu1 %vm2664_vm3, %v3286_v1 }
 0x7b9   : >> { %v10084_v2 = vpop.f32.mrf.mxu0  ;;  %10094 = vmatmul.mubr.msk.f32.gmra.mxu1 %vm2664_vm3, %v10081_v61 }
 0x7bb   : >> { %v3296_v9 = vpop.f32.mrf.mxu0 }
 0x7bc   : >> { %10096 = vmatprep.mubr.msk.f32.mxu1 %vm2664_vm3, %v3296_v9 }
 0x7bd   : >> { %10097 = vmatmul.mubr.msk.f32.gmra.mxu1 %vm2664_vm3, %v10084_v2 }
 0x871   : >> { %v10089_v10 = vpop.f32.mrf.mxu1 }
 0x872   : >> { %v3439_v17 = vadd.f32 %v12281_v36, %v10089_v10  }
 0x873   : >> { %v3399_v18 = vpop.f32.mrf.mxu1 }
 0x874   : >> { %v3438_v30 = vadd.f32 %v12285_v20, %v3399_v18   ;;  %v15410_v36 = vmov %v3439_v17  ;;  %v13938_v37 = vadd.f32 (%p3153_p11), %v9091_v32, %v3439_v17 }
 0x875   : >> { %v10092_v31 = vpop.f32.mrf.mxu1  ;;  %v13968_v36 = vmov (%p3153_p11), 0.0  }
 0x876   : >> { %v3441_v46 = vadd.f32 %v12273_v3, %v10092_v31   ;;  %v15411_v20 = vmov %v3438_v30  ;;  %v13936_v33 = vadd.f32 (%p3153_p11), %v9091_v32, %v3438_v30  ;;  %v3462_v56 = vmax.f32 (%p3153_p11), %v13938_v37, 0.0 }
 0x877   : >> { %v3409_v47 = vpop.f32.mrf.mxu1  ;;  %v13970_v20 = vmov (%p3153_p11), 0.0  }
 0x878   : >> { %v3440_v54 = vadd.f32 %v12277_v21, %v3409_v47   ;;  %v15408_v3 = vmov %v3441_v46  ;;  %v13942_v41 = vadd.f32 (%p3153_p11), %v9091_v32, %v3441_v46  ;;  %v3461_v53 = vmax.f32 (%p3153_p11), %v13936_v33, 0.0 }
 0x879   : >> { %v10095_v55 = vpop.f32.mrf.mxu1  ;;  %v13964_v3 = vmov (%p3153_p11), 0.0  }
 0x87a   : >> { %v3443_v62 = vadd.f32 %v12265_v50, %v10095_v55   ;;  %v15409_v21 = vmov %v3440_v54  ;;  %v13940_v40 = vadd.f32 (%p3153_p11), %v9091_v32, %v3440_v54  ;;  %v3464_v42 = vmax.f32 (%p3153_p11), %v13942_v41, 0.0 }
 0x87b   : >> { %v3419_v63 = vpop.f32.mrf.mxu1  ;;  %v13966_v21 = vmov (%p3153_p11), 0.0  }
 0x87c   : >> { %v3442_v15 = vadd.f32 %v12269_v29, %v3419_v63   ;;  %v15406_v50 = vmov %v3443_v62  ;;  %v13946_v48 = vadd.f32 (%p3153_p11), %v9091_v32, %v3443_v62  ;;  %v3463_v57 = vmax.f32 (%p3153_p11), %v13940_v40, 0.0 }
 0x87d   : >> { %v10098_v16 = vpop.f32.mrf.mxu1  ;;  %v13960_v50 = vmov (%p3153_p11), 0.0  }
 0x87e   : >> { %v3445_v25 = vadd.f32 %v12257_v34, %v10098_v16   ;;  %v15407_v29 = vmov %v3442_v15  ;;  %3155 = sbr.rel (!%p3153_p11) target bundleno = 1757 (0x6dd), region = 598  ;;  %v13944_v44 = vadd.f32 (%p3153_p11), %v9091_v32, %v3442_v15  ;;  %v3466_v58 = vmax.f32 (%p3153_p11), %v13946_v48, 0.0 }
 0x87f   : >> { %v3429_v24 = vpop.f32.mrf.mxu1  ;;  %v13962_v29 = vmov (%p3153_p11), 0.0  }
 0x880   : >> { %v3444_v28 = vadd.f32 %v12261_v19, %v3429_v24   ;;  %v15404_v34 = vmov %v3445_v25  ;;  %v13950_v52 = vadd.f32 (%p3153_p11), %v9091_v32, %v3445_v25  ;;  %v3465_v43 = vmax.f32 (%p3153_p11), %v13944_v44, 0.0 }
 0x882   : >> { %v15405_v19 = vmov %v3444_v28  ;;  %v13948_v49 = vadd.f32 (%p3153_p11), %v9091_v32, %v3444_v28 }
 0x883   : > { %v3468_v19 = vmax.f32 %v13950_v52, 0.0 }
 0x884   : > { %v3467_v34 = vmax.f32 %v13948_v49, 0.0 }
 0x885 LB: >> { %s15413_s2 = sld [smem:[#allocation43_spill]]  ;;  %10099 = vmatprep.subr.mxu0 %v3468_v19  ;;  %s9092_s15 = sshll.u32 %s12325_s26, 6  ;;  %s12325_s26 = sphi %s13976_s26, %s3474_s26   ;;  %v12321_v7 = vphi %v13974_v7, %v15422_v7   ;;  %v12317_v23 = vphi %v13972_v23, %v15421_v23   ;;  %v12313_v20 = vphi %v13970_v20, %v15420_v20   ;;  %v12309_v36 = vphi %v13968_v36, %v15419_v36   ;;  %v12305_v21 = vphi %v13966_v21, %v15418_v21   ;;  %v12301_v3 = vphi %v13964_v3, %v15417_v3   ;;  %v12297_v29 = vphi %v13962_v29, %v15416_v29   ;;  %v12293_v50 = vphi %v13960_v50, %v15415_v50  }
 0x886   : >> { %10100 = vmatpush3.msra.mxu0 %v3468_v19  ;;  %s15414_s23 = sld [smem:[#allocation50_spill]]  ;;  %s9101_s1 = sshll.u32 %s12325_s26, 3 }
 0x887   : >> { %10101 = vmatprep.subr.mxu0 %v3467_v34  ;;  %s3474_s26 = sadd.s32 1, %s12325_s26  }
 0x888   : >> { %10102 = vmatpush3.msra.mxu0 %v3467_v34  ;;  %p3471_p0 = scmp.ge.s32.totalorder %s3474_s26, 9  }
 0x889   : >> { %10103 = vmatprep.subr.mxu0 %v3466_v58  ;;  %s15423_s22 = sld [smem:[#allocation51_spill]] (%p3471_p0)  ;;  %v12327_v19 = vmov (%p3471_p0), 0.0  }
 0x88a   : >> { %10104 = vmatpush3.msra.mxu0 %v3466_v58  ;;  %s15424_s10 = sld [smem:[#allocation54_spill]] (%p3471_p0) }
 0x88b   : >> { %s3484_s8 = scalar_lea.vmem %s15413_s2, %s9092_s15  ;;  %10105 = vmatprep.subr.mxu0 %v3465_v43  ;;  %s15425_s26 = sld [smem:[#allocation58_spill]] (%p3471_p0) }
 0x88c   : >> { %v3485_v27 = vld [vmem:[%s3484_s8] sm:$0xff]  ;;  %10106 = vmatpush3.msra.mxu0 %v3465_v43  ;;  %v3486_v51 = vld [vmem:[%s3484_s8 + $0x8] sm:$0xff]  ;;  %v3487_v14 = vld [vmem:[%s3484_s8 + $0x10] sm:$0xff]  ;;  %s3624_s4 = scalar_lea.vmem %s15414_s23, %s9101_s1  ;;  %s14130_s2 = smov (%p3471_p0), 0  }
 0x88d   : >> { %10115 = vmatprep.mubr.msk.f32.mxu0 %vm2531_vm2, %v3485_v27  ;;  %10107 = vmatprep.subr.mxu0 %v3464_v42  ;;  %v3488_v22 = vld [vmem:[%s3484_s8 + $0x18] sm:$0xff]  ;;  %v3489_v6 = vld [vmem:[%s3484_s8 + $0x20] sm:$0xff]  ;;  %v3490_v13 = vld [vmem:[%s3484_s8 + $0x28] sm:$0xff] }
 0x88e   : >> { %10108 = vmatpush3.msra.mxu0 %v3464_v42  ;;  %v3491_v8 = vld [vmem:[%s3484_s8 + $0x30] sm:$0xff]  ;;  %v3492_v4 = vld [vmem:[%s3484_s8 + $0x38] sm:$0xff]  ;;  %v3625_v45 = vld [vmem:[%s3624_s4] sm:$0xff] }
 0x88f   : >> { %10109 = vmatprep.subr.mxu0 %v3463_v57  ;;  %10127 = vmatprep.subr.mxu1 %v3625_v45 }
 0x890   : >> { %10110 = vmatpush3.msra.mxu0 %v3463_v57  ;;  %10128 = vmatpush3.msra.mxu1 %v3625_v45  ;;  %v3796_v52 = vld [vmem:[%s15424_s10 + $0x8] sm:$0xff] (%p3471_p0)  ;;  %v9113_v57 = vld [vmem:[#allocation5] ss:$0 sm:$0xff] (%p3471_p0) }
 0x891   : >> { %10111 = vmatprep.subr.mxu0 %v3462_v56 }
 0x892   : >> { %10112 = vmatpush3.msra.mxu0 %v3462_v56 }
 0x893   : >> { %10113 = vmatprep.subr.mxu0 %v3461_v53 }
 0x894   : >> { %10114 = vmatpush3.msra.mxu0 %v3461_v53 }
 0x895   : >> { %10116 = vmatmul.mubr.msk.f32.vlgmr.msra.gmra.mxu0 %vm2531_vm2, %v3486_v51  ;;  %v3795_v51 = vld [vmem:[%s15424_s10] sm:$0xff] (%p3471_p0) }
 0x896   : >> { %10118 = vmatprep.mubr.msk.f32.mxu0 %vm2531_vm2, %v3487_v14 }
 0x899   : >> { %10119 = vmatmul.mubr.msk.f32.gmra.mxu0 %vm2531_vm2, %v3488_v22 }
 0x89a   : >> { %10121 = vmatprep.mubr.msk.f32.mxu0 %vm2531_vm2, %v3489_v6 }
 0x89d   : >> { %10122 = vmatmul.mubr.msk.f32.gmra.mxu0 %vm2531_vm2, %v3490_v13 }
 0x89e   : >> { %10124 = vmatprep.mubr.msk.f32.mxu0 %vm2531_vm2, %v3491_v8 }
 0x8a1   : >> { %10125 = vmatmul.mubr.msk.f32.gmra.mxu0 %vm2531_vm2, %v3492_v4 }
 0x8a2   : > { %10157 = vmatprep.mubr.msk.f32.mxu0 (%p3471_p0), %vm2531_vm2, %v3795_v51 }
 0x955   : >> { %v10117_v0 = vpop.f32.mrf.mxu0 }
 0x957   : >> { %v3584_v60 = vpop.f32.mrf.mxu0 }
 0x958   : >> { %10129 = vmatprep.mubr.msk.f32.mxu1 %vm2664_vm3, %v3584_v60 }
 0x959   : >> { %v10120_v61 = vpop.f32.mrf.mxu0  ;;  %10130 = vmatmul.mubr.msk.f32.vlgmr.msra.gmra.mxu1 %vm2664_vm3, %v10117_v0 }
 0x95b   : >> { %v3594_v1 = vpop.f32.mrf.mxu0 }
 0x95c   : >> { %10132 = vmatprep.mubr.msk.f32.mxu1 %vm2664_vm3, %v3594_v1 }
 0x95d   : >> { %v10123_v2 = vpop.f32.mrf.mxu0  ;;  %10133 = vmatmul.mubr.msk.f32.gmra.mxu1 %vm2664_vm3, %v10120_v61 }
 0x95f   : >> { %v3604_v9 = vpop.f32.mrf.mxu0 }
 0x960   : >> { %10135 = vmatprep.mubr.msk.f32.mxu1 %vm2664_vm3, %v3604_v9 }
 0x961   : >> { %v10126_v10 = vpop.f32.mrf.mxu0  ;;  %10136 = vmatmul.mubr.msk.f32.gmra.mxu1 %vm2664_vm3, %v10123_v2 }
 0x963   : >> { %v3614_v17 = vpop.f32.mrf.mxu0 }
 0x964   : >> { %10138 = vmatprep.mubr.msk.f32.mxu1 %vm2664_vm3, %v3614_v17 }
 0x965   : >> { %10139 = vmatmul.mubr.msk.f32.gmra.mxu1 %vm2664_vm3, %v10126_v10 }
 0xa19   : >> { %v10131_v18 = vpop.f32.mrf.mxu1 }
 0xa1a   : >> { %v3757_v30 = vadd.f32 %v12317_v23, %v10131_v18  }
 0xa1b   : >> { %v3717_v31 = vpop.f32.mrf.mxu1 }
 0xa1c   : >> { %v3756_v46 = vadd.f32 %v12321_v7, %v3717_v31   ;;  %v15421_v23 = vmov %v3757_v30 }
 0xa1d   : >> { %v10134_v47 = vpop.f32.mrf.mxu1 }
 0xa1e   : >> { %v3759_v54 = vadd.f32 %v12309_v36, %v10134_v47   ;;  %v15422_v7 = vmov %v3756_v46 }
 0xa1f   : >> { %v3727_v55 = vpop.f32.mrf.mxu1  ;;  %v9110_v7 = vld [vmem:[%s15423_s22] ss:$0 sm:$0xff] (%p3471_p0) }
 0xa20   : >> { %v3758_v62 = vadd.f32 %v12313_v20, %v3727_v55   ;;  %v15419_v36 = vmov %v3759_v54  ;;  %v3774_v0 = vadd.f32 (%p3471_p0), %v9110_v7, %v3759_v54  ;;  %v3772_v44 = vadd.f32 (%p3471_p0), %v9110_v7, %v3757_v30 }
 0xa21   : >> { %v10137_v63 = vpop.f32.mrf.mxu1 }
 0xa22   : >> { %v3761_v15 = vadd.f32 %v12301_v3, %v10137_v63   ;;  %v15420_v20 = vmov %v3758_v62  ;;  %v3773_v37 = vadd.f32 (%p3471_p0), %v9110_v7, %v3758_v62  ;;  %v3782_v41 = vadd.f32 (%p3471_p0), %v3774_v0, %v13823_v35 }
 0xa23   : >> { %v3737_v16 = vpop.f32.mrf.mxu1  ;;  %v3780_v48 = vadd.f32 (%p3471_p0), %v3772_v44, %v13819_v11 }
 0xa24   : >> { %v3760_v25 = vadd.f32 %v12305_v21, %v3737_v16   ;;  %v15417_v3 = vmov %v3761_v15  ;;  %v3776_v6 = vadd.f32 (%p3471_p0), %v9110_v7, %v3761_v15 }
 0xa25   : >> { %v10140_v24 = vpop.f32.mrf.mxu1 }
 0xa26   : >> { %v3763_v28 = vadd.f32 %v12293_v50, %v10140_v24   ;;  %v15418_v21 = vmov %v3760_v25  ;;  %3473 = sbr.rel (!%p3471_p0) target bundleno = 2181 (0x885), region = 609  ;;  %v3775_v13 = vadd.f32 (%p3471_p0), %v9110_v7, %v3760_v25  ;;  %v3784_v45 = vadd.f32 (%p3471_p0), %v3776_v6, %v13827_v5 }
 0xa27   : >> { %v3747_v32 = vpop.f32.mrf.mxu1 }
 0xa28   : >> { %v3762_v27 = vadd.f32 %v12297_v29, %v3747_v32   ;;  %v15415_v50 = vmov %v3763_v28  ;;  %v3778_v14 = vadd.f32 (%p3471_p0), %v9110_v7, %v3763_v28  ;;  %v3783_v33 = vadd.f32 (%p3471_p0), %v3775_v13, %v13825_v39 }
 0xa29   : > { %v14090_v40 = vmax.f32 (%p3471_p0), %v3784_v45, 0.0  ;;  %v14100_v39 = vmax.f32 (%p3471_p0), %v3782_v41, 0.0  ;;  %v12331_v50 = vmov (%p3471_p0), 0.0  }
 0xa2a   : >> { %v15416_v29 = vmov %v3762_v27  ;;  %v3777_v22 = vadd.f32 (%p3471_p0), %v9110_v7, %v3762_v27  ;;  %v3786_v8 = vadd.f32 (%p3471_p0), %v3778_v14, %v13831_v26  ;;  %v14095_v5 = vmax.f32 (%p3471_p0), %v3783_v33, 0.0 }
 0xa2b   : > { %v3771_v26 = vadd.f32 %v9110_v7, %v3756_v46 }
 0xa2c   : > { %v3785_v4 = vadd.f32 %v3777_v22, %v13829_v38  ;;  %v14084_v60 = vmax.f32 %v3786_v8, 0.0  ;;  %v3781_v38 = vadd.f32 %v3773_v37, %v13821_v12  ;;  %v14110_v12 = vmax.f32 %v3780_v48, 0.0 }
 0xa2d   : > { %v3779_v49 = vadd.f32 %v3771_v26, %v13817_v59  ;;  %v3879_v59 = vld [vmem:[%s15425_s26] sm:$0xff] }
 0xa2e   : > { %v14086_v61 = vmax.f32 %v3785_v4, 0.0  ;;  %10141 = vmatprep.subr.mxu0 %v14084_v60  ;;  %v14105_v35 = vmax.f32 %v3781_v38, 0.0  ;;  %10160 = vmatprep.subr.mxu1 %v3879_v59 }
 0xa2f   : > { %10142 = vmatpush3.msra.mxu0 %v14084_v60  ;;  %v14114_v11 = vmax.f32 %v3779_v49, 0.0  ;;  %10161 = vmatpush3.msra.mxu1 %v3879_v59 }
 0xa30   : > { %10143 = vmatprep.subr.mxu0 %v14086_v61 }
 0xa31   : > { %10144 = vmatpush3.msra.mxu0 %v14086_v61 }
 0xa32   : > { %10145 = vmatprep.subr.mxu0 %v14090_v40 }
 0xa33   : > { %10146 = vmatpush3.msra.mxu0 %v14090_v40 }
 0xa34   : > { %10147 = vmatprep.subr.mxu0 %v14095_v5 }
 0xa35   : > { %10148 = vmatpush3.msra.mxu0 %v14095_v5 }
 0xa36   : > { %10149 = vmatprep.subr.mxu0 %v14100_v39 }
 0xa37   : > { %10150 = vmatpush3.msra.mxu0 %v14100_v39 }
 0xa38   : > { %10151 = vmatprep.subr.mxu0 %v14105_v35 }
 0xa39   : > { %10152 = vmatpush3.msra.mxu0 %v14105_v35 }
 0xa3a   : > { %10153 = vmatprep.subr.mxu0 %v14110_v12 }
 0xa3b   : > { %10154 = vmatpush3.msra.mxu0 %v14110_v12 }
 0xa3c   : > { %10155 = vmatprep.subr.mxu0 %v14114_v11 }
 0xa3d   : > { %10156 = vmatpush3.msra.mxu0 %v14114_v11 }
 0xa3e   : > { %10158 = vmatmul.mubr.msk.f32.vlgmr.msra.gmra.mxu0 %vm2531_vm2, %v3796_v52 }
 0xafe   : > { %v10159_v53 = vpop.f32.mrf.mxu0 }
 0xb00   : > { %v3870_v56 = vpop.f32.mrf.mxu0 }
 0xb01   : > { %10162 = vmatprep.mubr.msk.f32.mxu1 %vm2664_vm3, %v3870_v56 }
 0xb02   : > { %10163 = vmatmul.mubr.msk.f32.vlgmr.msra.gmra.mxu1 %vm2664_vm3, %v10159_v53 }
 0xbc2   : > { %v10164_v42 = vpop.f32.mrf.mxu1 }
 0xbc3   : > { %v14126_v43 = vadd.f32 %v10164_v42, %v9113_v57 }
 0xbc4   : > { %v3960_v58 = vpop.f32.mrf.mxu1 }
 0xbc5   : > { %v14128_v34 = vadd.f32 %v9113_v57, %v3960_v58 }
 0xbc6 LB: >> { %s15426_s15 = sld [smem:[#allocation52_spill]]  ;;  %10165 = vmatprep.subr.mxu0 %v14084_v60  ;;  %s9116_s8 = sshll.u32 %s12337_s2, 4  ;;  %s12337_s2 = sphi %s14130_s2, %s3974_s2   ;;  %v12333_v50 = vphi %v12331_v50, %v12332_v50   ;;  %v12329_v19 = vphi %v12327_v19, %v12328_v19  }
 0xbc7   : >> { %10166 = vmatpush3.msra.mxu0 %v14084_v60  ;;  %s15427_s1 = sld [smem:[#allocation55_spill]]  ;;  %s9119_s4 = sshll.u32 %s12337_s2, 3 }
 0xbc8   : >> { %10167 = vmatprep.subr.mxu0 %v14086_v61  ;;  %s3974_s2 = sadd.s32 1, %s12337_s2  }
 0xbc9   : >> { %10168 = vmatpush3.msra.mxu0 %v14086_v61  ;;  %p3971_p1 = scmp.ge.s32.totalorder %s3974_s2, 9  }
 0xbca   : >> { %10169 = vmatprep.subr.mxu0 %v14090_v40  ;;  %s15428_s26 = sld [smem:[#allocation56_spill]] (%p3971_p1)  ;;  %v12339_v46 = vmov (%p3971_p1), 0.0   ;;  %v12343_v47 = vmov (%p3971_p1), 0.0  }
 0xbcb   : >> { %10170 = vmatpush3.msra.mxu0 %v14090_v40 }
 0xbcc   : >> { %s3978_s23 = scalar_lea.vmem %s15426_s15, %s9116_s8  ;;  %10171 = vmatprep.subr.mxu0 %v14095_v5  ;;  %s14163_s15 = smov (%p3971_p1), 0  }
 0xbcd   : >> { %v3979_v29 = vld [vmem:[%s3978_s23] sm:$0xff]  ;;  %10172 = vmatpush3.msra.mxu0 %v14095_v5  ;;  %v3980_v3 = vld [vmem:[%s3978_s23 + $0x8] sm:$0xff]  ;;  %s4063_s22 = scalar_lea.vmem %s15427_s1, %s9119_s4 }
 0xbce   : >> { %10181 = vmatprep.mubr.msk.f32.mxu0 %vm2531_vm2, %v3979_v29  ;;  %10173 = vmatprep.subr.mxu0 %v14100_v39  ;;  %v4064_v21 = vld [vmem:[%s4063_s22] sm:$0xff] }
 0xbcf   : >> { %10174 = vmatpush3.msra.mxu0 %v14100_v39  ;;  %10184 = vmatprep.subr.mxu1 %v4064_v21 }
 0xbd0   : >> { %10175 = vmatprep.subr.mxu0 %v14105_v35  ;;  %10185 = vmatpush3.msra.mxu1 %v4064_v21  ;;  %v9122_v10 = vld [vmem:[%s15428_s26] ss:$0 sm:$0xff] (%p3971_p1) }
 0xbd1   : >> { %10176 = vmatpush3.msra.mxu0 %v14105_v35 }
 0xbd2   : >> { %10177 = vmatprep.subr.mxu0 %v14110_v12 }
 0xbd3   : >> { %10178 = vmatpush3.msra.mxu0 %v14110_v12 }
 0xbd4   : >> { %10179 = vmatprep.subr.mxu0 %v14114_v11 }
 0xbd5   : >> { %10180 = vmatpush3.msra.mxu0 %v14114_v11 }
 0xbd6   : >> { %10182 = vmatmul.mubr.msk.f32.vlgmr.msra.gmra.mxu0 %vm2531_vm2, %v3980_v3 }
 0xc96   : >> { %v10183_v36 = vpop.f32.mrf.mxu0 }
 0xc98   : >> { %v4053_v20 = vpop.f32.mrf.mxu0 }
 0xc99   : >> { %10186 = vmatprep.mubr.msk.f32.mxu1 %vm2664_vm3, %v4053_v20 }
 0xc9a   : >> { %10187 = vmatmul.mubr.msk.f32.vlgmr.msra.gmra.mxu1 %vm2664_vm3, %v10183_v36 }
 0xd5a   : >> { %v10188_v23 = vpop.f32.mrf.mxu1 }
 0xd5b   : >> { %v4147_v1 = vadd.f32 %v12329_v19, %v10188_v23   ;;  %3973 = sbr.rel (!%p3971_p1) target bundleno = 3014 (0xbc6), region = 620 }
 0xd5c   : >> { %v4137_v2 = vpop.f32.mrf.mxu1 }
 0xd5d   : >> { %v4146_v9 = vadd.f32 %v12333_v50, %v4137_v2   ;;  %v12328_v19 = vmov %v4147_v1   ;;  %v4156_v18 = vadd.f32 (%p3971_p1), %v9122_v10, %v4147_v1 }
 0xd5f   : >> { %v12332_v50 = vmov %v4146_v9   ;;  %v4155_v17 = vadd.f32 (%p3971_p1), %v9122_v10, %v4146_v9  ;;  %v4158_v31 = vmax.f32 (%p3971_p1), %v4156_v18, 0.0 }
 0xd61   : > { %v4157_v30 = vmax.f32 %v4155_v17, 0.0 }
 0xd62 LB: >> { %s15429_s8 = sld [smem:[#allocation53_spill]]  ;;  %10189 = vmatprep.subr.mxu0 %v4158_v31  ;;  %s9123_s2 = sshll.u32 %s12349_s15, 4  ;;  %vm4171_vm4 = vcmask 130048   ;;  %s12349_s15 = sphi %s14163_s15, %s4164_s15   ;;  %v12345_v47 = vphi %v12343_v47, %v12344_v47   ;;  %v12341_v46 = vphi %v12339_v46, %v12340_v46  }
 0xd63   : >> { %s15430_s23 = sld [smem:[#allocation57_spill]]  ;;  %10190 = vmatpush3.msra.mxu0 %v4158_v31  ;;  %s4164_s15 = sadd.s32 1, %s12349_s15  }
 0xd64   : >> { %10191 = vmatprep.subr.mxu0 %v4157_v30  ;;  %p4161_p2 = scmp.ge.s32.totalorder %s4164_s15, 9  }
 0xd65   : >> { %10192 = vmatpush3.msra.mxu0 %v4157_v30  ;;  %v9128_v27 = vld [vmem:[#allocation2] ss:$0 sm:$0xff] (%p4161_p2)  ;;  %v12351_v8 = vmov (%p4161_p2), 0.0   ;;  %v12355_v4 = vmov (%p4161_p2), 0.0   ;;  %s14184_s22 = smov (%p4161_p2), 0  }
 0xd68   : >> { %s4168_s1 = scalar_lea.vmem %s15429_s8, %s9123_s2 }
 0xd69   : >> { %v4169_v54 = vld [vmem:[%s4168_s1] sm:$0xff]  ;;  %v4170_v55 = vld [vmem:[%s4168_s1 + $0x8] sm:$0xff]  ;;  %s4253_s4 = scalar_lea.vmem %s15430_s23, %s9123_s2 }
 0xd6a   : >> { %10193 = vmatprep.mubr.msk.f32.mxu0 %vm4171_vm4, %v4169_v54  ;;  %v4255_v62 = vld [vmem:[%s4253_s4 + $0x8] sm:$0xff]  ;;  %v4254_v63 = vld [vmem:[%s4253_s4] sm:$0xff] }
 0xd6b   : >> { %10194 = vmatmul.mubr.msk.f32.vlgmr.msra.gmra.mxu0 %vm4171_vm4, %v4170_v55  ;;  %10196 = vmatprep.subr.mxu1 %v4255_v62 }
 0xd6c   : >> { %10197 = vmatpush3.msra.mxu1 %v4255_v62 }
 0xd6d   : >> { %10198 = vmatprep.subr.mxu1 %v4254_v63 }
 0xd6e   : >> { %10199 = vmatpush3.msra.mxu1 %v4254_v63 }
 0xe2b   : >> { %v10195_v15 = vpop.f32.mrf.mxu0 }
 0xe2d   : >> { %v4244_v16 = vpop.f32.mrf.mxu0 }
 0xe2e   : >> { %10200 = vmatprep.mubr.msk.f32.mxu1 %vm4171_vm4, %v4244_v16 }
 0xe2f   : >> { %10201 = vmatmul.mubr.msk.f32.vlgmr.msra.gmra.mxu1 %vm4171_vm4, %v10195_v15 }
 0xeef   : >> { %v10202_v25 = vpop.f32.mrf.mxu1 }
 0xef0   : >> { %v4338_v24 = vadd.f32 %v12341_v46, %v10202_v25   ;;  %4163 = sbr.rel (!%p4161_p2) target bundleno = 3426 (0xd62), region = 631 }
 0xef1   : >> { %v4328_v28 = vpop.f32.mrf.mxu1 }
 0xef2   : >> { %v4337_v32 = vadd.f32 %v12345_v47, %v4328_v28   ;;  %v12340_v46 = vmov %v4338_v24   ;;  %v4347_v51 = vadd.f32 (%p4161_p2), %v9128_v27, %v4338_v24 }
 0xef4   : >> { %v12344_v47 = vmov %v4337_v32   ;;  %v4346_v7 = vadd.f32 (%p4161_p2), %v9128_v27, %v4337_v32  ;;  %v4349_v22 = vadd.f32 (%p4161_p2), %v4347_v51, %v14126_v43 }
 0xef6   : > { %v4348_v14 = vadd.f32 %v4346_v7, %v14128_v34  ;;  %v14182_v13 = vmax.f32 %v4349_v22, 0.0 }
 0xef8   : > { %v14180_v6 = vmax.f32 %v4348_v14, 0.0 }
 0xef9 LB: >> { %s15431_s26 = sld [smem:[#allocation53_spill]]  ;;  %10203 = vmatprep.subr.mxu0 %v14182_v13  ;;  %s9129_s8 = sshll.u32 %s12361_s22, 4  ;;  %s12361_s22 = sphi %s14184_s22, %s4357_s22   ;;  %v12357_v4 = vphi %v12355_v4, %v12356_v4   ;;  %v12353_v8 = vphi %v12351_v8, %v12352_v8  }
 0xefa   : >> { %s15432_s15 = sld [smem:[#allocation60_spill]]  ;;  %10204 = vmatpush3.msra.mxu0 %v14182_v13  ;;  %s4357_s22 = sadd.s32 1, %s12361_s22  }
 0xefb   : >> { %10205 = vmatprep.subr.mxu0 %v14180_v6  ;;  %p4354_p3 = scmp.ge.s32.totalorder %s4357_s22, 9  }
 0xefc   : >> { %10206 = vmatpush3.msra.mxu0 %v14180_v6  ;;  %v9134_v38 = vld [vmem:[#allocation7] ss:$0 sm:$0xff] (%p4354_p3)  ;;  %v12363_v49 = vmov (%p4354_p3), 0.0   ;;  %v12367_v12 = vmov (%p4354_p3), 0.0   ;;  %s14203_s1 = smov (%p4354_p3), 0  }
 0xeff   : >> { %s4361_s23 = scalar_lea.vmem %s15431_s26, %s9129_s8 }
 0xf00   : >> { %v4362_v45 = vld [vmem:[%s4361_s23] sm:$0xff]  ;;  %v4363_v0 = vld [vmem:[%s4361_s23 + $0x8] sm:$0xff]  ;;  %s4446_s2 = scalar_lea.vmem %s15432_s15, %s9129_s8 }
 0xf01   : >> { %10207 = vmatprep.mubr.msk.f32.mxu0 %vm4171_vm4, %v4362_v45  ;;  %v4448_v60 = vld [vmem:[%s4446_s2 + $0x8] sm:$0xff]  ;;  %v4447_v61 = vld [vmem:[%s4446_s2] sm:$0xff] }
 0xf02   : >> { %10208 = vmatmul.mubr.msk.f32.vlgmr.msra.gmra.mxu0 %vm4171_vm4, %v4363_v0  ;;  %10210 = vmatprep.subr.mxu1 %v4448_v60 }
 0xf03   : >> { %10211 = vmatpush3.msra.mxu1 %v4448_v60 }
 0xf04   : >> { %10212 = vmatprep.subr.mxu1 %v4447_v61 }
 0xf05   : >> { %10213 = vmatpush3.msra.mxu1 %v4447_v61 }
 0xfc2   : >> { %v10209_v33 = vpop.f32.mrf.mxu0 }
 0xfc4   : >> { %v4437_v37 = vpop.f32.mrf.mxu0 }
 0xfc5   : >> { %10214 = vmatprep.mubr.msk.f32.mxu1 %vm4171_vm4, %v4437_v37 }
 0xfc6   : >> { %10215 = vmatmul.mubr.msk.f32.vlgmr.msra.gmra.mxu1 %vm4171_vm4, %v10209_v33 }
0x1086   : >> { %v10216_v40 = vpop.f32.mrf.mxu1 }
0x1087   : >> { %v4531_v41 = vadd.f32 %v12353_v8, %v10216_v40   ;;  %4356 = sbr.rel (!%p4354_p3) target bundleno = 3833 (0xef9), region = 642 }
0x1088   : >> { %v4521_v44 = vpop.f32.mrf.mxu1 }
0x1089   : >> { %v4530_v5 = vadd.f32 %v12357_v4, %v4521_v44   ;;  %v12352_v8 = vmov %v4531_v41   ;;  %v4540_v39 = vadd.f32 (%p4354_p3), %v9134_v38, %v4531_v41 }
0x108b   : >> { %v12356_v4 = vmov %v4530_v5   ;;  %v4539_v26 = vadd.f32 (%p4354_p3), %v9134_v38, %v4530_v5  ;;  %v4542_v35 = vmax.f32 (%p4354_p3), %v4540_v39, 0.0 }
0x108d   : > { %v4541_v48 = vmax.f32 %v4539_v26, 0.0 }
0x108e LB: >> { %s15433_s4 = sld [smem:[#allocation53_spill]]  ;;  %10217 = vmatprep.subr.mxu0 %v4542_v35  ;;  %s9135_s22 = sshll.u32 %s12373_s1, 4  ;;  %s12373_s1 = sphi %s14203_s1, %s4548_s1   ;;  %v12369_v12 = vphi %v12367_v12, %v12368_v12   ;;  %v12365_v49 = vphi %v12363_v49, %v12364_v49  }
0x108f   : >> { %s15434_s26 = sld [smem:[#allocation61_spill]]  ;;  %10218 = vmatpush3.msra.mxu0 %v4542_v35  ;;  %s4548_s1 = sadd.s32 1, %s12373_s1  }
0x1090   : >> { %10219 = vmatprep.subr.mxu0 %v4541_v48  ;;  %p4545_p9 = scmp.ge.s32.totalorder %s4548_s1, 9  }
0x1091   : >> { %10220 = vmatpush3.msra.mxu0 %v4541_v48  ;;  %v15435_v19 = vmov (%p4545_p9), 0.0   ;;  %s15436_s23 = sld [smem:[#allocation67_spill]] (%p4545_p9)  ;;  %v9140_v50 = vld [vmem:[#allocation8] ss:$0 sm:$0xff] (%p4545_p9)  ;;  %vm12514_vm5 = vmmov (%p4545_p9), 0   ;;  %v12375_v47 = vmov (%p4545_p9), 0.0  }
0x1092   : > { %10231 = vmatprep.subr.mxu0 (%p4545_p9), %v15435_v19  ;;  %s15437_s2 = sld [smem:[#allocation64_spill]] (%p4545_p9)  ;;  %v9142_v18 = vld [vmem:[#allocation13] ss:$0 sm:$0xff] (%p4545_p9)  ;;  %s14235_s1 = smov (%p4545_p9), 0  }
0x1094   : >> { %s4552_s15 = scalar_lea.vmem %s15433_s4, %s9135_s22 }
0x1095   : >> { %v4553_v11 = vld [vmem:[%s4552_s15] sm:$0xff]  ;;  %v4554_v52 = vld [vmem:[%s4552_s15 + $0x8] sm:$0xff]  ;;  %s4637_s8 = scalar_lea.vmem %s15434_s26, %s9135_s22 }
0x1096   : >> { %10221 = vmatprep.mubr.msk.f32.mxu0 %vm4171_vm4, %v4553_v11  ;;  %v4639_v59 = vld [vmem:[%s4637_s8 + $0x8] sm:$0xff]  ;;  %v4638_v53 = vld [vmem:[%s4637_s8] sm:$0xff] }
0x1097   : >> { %10222 = vmatmul.mubr.msk.f32.vlgmr.msra.gmra.mxu0 %vm4171_vm4, %v4554_v52  ;;  %10224 = vmatprep.subr.mxu1 %v4639_v59  ;;  %v4812_v29 = vld [vmem:[%s15436_s23 + $0x8] sm:$0xff] (%p4545_p9)  ;;  %v4811_v9 = vld [vmem:[%s15436_s23] sm:$0xff] (%p4545_p9) }
0x1098   : >> { %10225 = vmatpush3.msra.mxu1 %v4639_v59  ;;  %10235 = vmatprep.mubr.msk.f32.mxu0 (%p4545_p9), %vm12514_vm5, %v15435_v19  ;;  %v4736_v2 = vld [vmem:[%s15437_s2] sm:$0xf] (%p4545_p9) }
0x1099   : >> { %10226 = vmatprep.subr.mxu1 %v4638_v53 }
0x109a   : >> { %10227 = vmatpush3.msra.mxu1 %v4638_v53 }
0x109b   : > { %10238 = vmatprep.subr.mxu1 (%p4545_p9), %v15435_v19 }
0x1157   : >> { %v10223_v56 = vpop.f32.mrf.mxu0 }
0x1159   : >> { %v4628_v57 = vpop.f32.mrf.mxu0 }
0x115a   : >> { %10228 = vmatprep.mubr.msk.f32.mxu1 %vm4171_vm4, %v4628_v57 }
0x115b   : >> { %10229 = vmatmul.mubr.msk.f32.vlgmr.msra.gmra.mxu1 %vm4171_vm4, %v10223_v56 }
0x115c   : > { %10239 = vmatpush3.msra.mxu1 (%p4545_p9), %v4812_v29  ;;  %10242 = vmatprep.mubr.msk.f32.mxu1 (%p4545_p9), %vm12514_vm5, %v15435_v19 }
0x115d   : > { %10240 = vmatprep.subr.mxu1 (%p4545_p9), %v15435_v19 }
0x115e   : > { %10241 = vmatpush3.msra.mxu1 (%p4545_p9), %v4811_v9 }
0x121b   : >> { %v10230_v42 = vpop.f32.mrf.mxu1 }
0x121c   : >> { %v4722_v43 = vadd.f32 %v12365_v49, %v10230_v42   ;;  %4547 = sbr.rel (!%p4545_p9) target bundleno = 4238 (0x108e), region = 653 }
0x121d   : >> { %v4712_v58 = vpop.f32.mrf.mxu1 }
0x121e   : >> { %v4721_v34 = vadd.f32 %v12369_v12, %v4712_v58   ;;  %v12364_v49 = vmov %v4722_v43   ;;  %v4731_v21 = vadd.f32 (%p4545_p9), %v9140_v50, %v4722_v43 }
0x1220   : >> { %v12368_v12 = vmov %v4721_v34   ;;  %v4730_v3 = vadd.f32 (%p4545_p9), %v9140_v50, %v4721_v34  ;;  %v4733_v36 = vadd.f32 (%p4545_p9), %v4731_v21, %v14182_v13 }
0x1222   : > { %v4732_v20 = vadd.f32 %v4730_v3, %v14180_v6  ;;  %v4735_v23 = vmax.f32 %v4733_v36, 0.0 }
0x1224   : > { %v4734_v1 = vmax.f32 %v4732_v20, 0.0  ;;  %10232 = vmatpush3.msra.mxu0 %v4735_v23 }
0x1225   : > { %10233 = vmatprep.subr.mxu0 %v15435_v19 }
0x1226   : > { %10234 = vmatpush3.msra.mxu0 %v4734_v1 }
0x1227   : > { %10236 = vmatmul.mubr.msk.f32.vlgmr.msra.gmra.mxu0 %vm4171_vm4, %v4736_v2 }
0x12e7   : > { %v4807_v10 = vpop.f32.mrf.mxu0 }
0x12e8   : > { %10243 = vmatmul.mubr.msk.f32.vlgmr.msra.gmra.mxu1 %vm4171_vm4, %v4807_v10 }
0x12e9   : > { %v10237_v17 = vpop.f32.mrf.mxu0 }
0x13a8   : > { %v4889_v30 = vpop.f32.mrf.mxu1 }
0x13a9   : > { %v14233_v31 = vadd.f32 %v9142_v18, %v4889_v30 }
0x13aa   : > { %v10244_v46 = vpop.f32.mrf.mxu1 }
0x13ab LB: >> { %s15438_s4 = sld [smem:[#allocation62_spill]]  ;;  %v12515_v54 = vmov 0.0   ;;  %vm12516_vm6 = vmmov 0   ;;  %s9144_s22 = sshll.u32 %s12381_s1, 2  ;;  %s12381_s1 = sphi %s14235_s1, %s4898_s1   ;;  %v12377_v47 = vphi %v12375_v47, %v12376_v47  }
0x13ac   : >> { %s15439_s26 = sld [smem:[#allocation65_spill]]  ;;  %10245 = vmatprep.subr.mxu0 %v12515_v54  ;;  %10249 = vmatprep.mubr.msk.f32.mxu0 %vm12516_vm6, %v12515_v54  ;;  %s9146_s15 = sshll.u32 %s12381_s1, 4 }
0x13ad   : >> { %10246 = vmatpush3.msra.mxu0 %v4735_v23  ;;  %10252 = vmatprep.subr.mxu1 %v12515_v54  ;;  %s4898_s1 = sadd.s32 1, %s12381_s1  }
0x13ae   : >> { %10247 = vmatprep.subr.mxu0 %v12515_v54  ;;  %10256 = vmatprep.mubr.msk.f32.mxu1 %vm12516_vm6, %v12515_v54  ;;  %p4895_p4 = scmp.ge.s32.totalorder %s4898_s1, 9  }
0x13af   : >> { %10248 = vmatpush3.msra.mxu0 %v4734_v1  ;;  %v9148_v32 = vld [vmem:[#allocation10] ss:$0 sm:$0xff] (%p4895_p4)  ;;  %v12383_v51 = vmov (%p4895_p4), 0.0  }
0x13b1   : >> { %s4901_s8 = scalar_lea.vmem %s15438_s4, %s9144_s22  ;;  %s14249_s4 = smov (%p4895_p4), 0  }
0x13b2   : >> { %s4977_s2 = scalar_lea.vmem %s15439_s26, %s9146_s15  ;;  %v4902_v55 = vld [vmem:[%s4901_s8] sm:$0xf] }
0x13b3   : >> { %v4979_v62 = vld [vmem:[%s4977_s2 + $0x8] sm:$0xff]  ;;  %10250 = vmatmul.mubr.msk.f32.vlgmr.msra.gmra.mxu0 %vm4171_vm4, %v4902_v55  ;;  %v4978_v63 = vld [vmem:[%s4977_s2] sm:$0xff] }
0x13b4   : >> { %10253 = vmatpush3.msra.mxu1 %v4979_v62 }
0x13b5   : >> { %10254 = vmatprep.subr.mxu1 %v12515_v54 }
0x13b6   : >> { %10255 = vmatpush3.msra.mxu1 %v4978_v63 }
0x1473   : >> { %v4972_v15 = vpop.f32.mrf.mxu0 }
0x1474   : >> { %10257 = vmatmul.mubr.msk.f32.vlgmr.msra.gmra.mxu1 %vm4171_vm4, %v4972_v15 }
0x1475   : >> { %v10251_v16 = vpop.f32.mrf.mxu0 }
0x1533   : > { %4897 = sbr.rel (!%p4895_p4) target bundleno = 5035 (0x13ab), region = 664 }
0x1534   : >> { %v5049_v25 = vpop.f32.mrf.mxu1 }
0x1535   : >> { %v5053_v24 = vadd.f32 %v12377_v47, %v5049_v25  }
0x1536   : >> { %v10258_v28 = vpop.f32.mrf.mxu1 }
0x1537   : >> { %v12376_v47 = vmov %v5053_v24   ;;  %v5061_v27 = vadd.f32 (%p4895_p4), %v9148_v32, %v5053_v24 }
0x1539   : > { %v5062_v7 = vmax.f32 %v5061_v27, 0.0 }
0x153a LB: >> { %s15440_s26 = sld [smem:[#allocation63_spill]]  ;;  %vm5077_vm7 = vcmask 1043456   ;;  %v12517_v14 = vmov 0.0   ;;  %vm12518_vm8 = vmmov 0   ;;  %s9149_s1 = sshll.u32 %s12389_s4, 2  ;;  %vm5073_vm9 = vcmask 31744   ;;  %s12389_s4 = sphi %s14249_s4, %s5068_s4   ;;  %v12385_v51 = vphi %v12383_v51, %v12384_v51  }
0x153b   : >> { %s15441_s22 = sld [smem:[#allocation66_spill]]  ;;  %10259 = vmatprep.subr.mxu0 %v12517_v14  ;;  %10261 = vmatprep.mubr.msk.f32.mxu0 %vm12518_vm8, %v12517_v14  ;;  %s9152_s15 = sshll.u32 %s12389_s4, 5  ;;  %vm5157_vm10 = vcmask 261120  }
0x153c   : >> { %10260 = vmatpush3.msk.msra.mxu0 %vm5077_vm7, %v5062_v7  ;;  %10264 = vmatprep.subr.mxu1 %v12517_v14  ;;  %s5068_s4 = sadd.s32 1, %s12389_s4  }
0x153d   : >> { %10272 = vmatprep.mubr.msk.f32.mxu1 %vm12518_vm8, %v12517_v14  ;;  %p5065_p5 = scmp.ge.s32.totalorder %s5068_s4, 9  }
0x153e   : > { %v9154_v37 = vld [vmem:[#allocation11] ss:$0 sm:$0xff] (%p5065_p5)  ;;  %v12391_v5 = vmov (%p5065_p5), 0.0  }
0x1540   : >> { %s5071_s8 = scalar_lea.vmem %s15440_s26, %s9149_s1  ;;  %s14268_s26 = smov (%p5065_p5), 0  }
0x1541   : >> { %s5152_s2 = scalar_lea.vmem %s15441_s22, %s9152_s15  ;;  %v5072_v22 = vld [vmem:[%s5071_s8] sm:$0xf] }
0x1542   : >> { %v5156_v6 = vld [vmem:[%s5152_s2 + $0x18] sm:$0xff]  ;;  %v5155_v13 = vld [vmem:[%s5152_s2 + $0x10] sm:$0xff]  ;;  %10262 = vmatmul.mubr.msk.f32.vlgmr.msra.gmra.mxu0 %vm5073_vm9, %v5072_v22  ;;  %v5154_v8 = vld [vmem:[%s5152_s2 + $0x8] sm:$0xff] }
0x1543   : >> { %10265 = vmatpush3.msra.mxu1 %v5156_v6  ;;  %v5153_v4 = vld [vmem:[%s5152_s2] sm:$0xff] }
0x1544   : >> { %10266 = vmatprep.subr.mxu1 %v12517_v14 }
0x1545   : >> { %10267 = vmatpush3.msra.mxu1 %v5155_v13 }
0x1546   : >> { %10268 = vmatprep.subr.mxu1 %v12517_v14 }
0x1547   : >> { %10269 = vmatpush3.msra.mxu1 %v5154_v8 }
0x1548   : >> { %10270 = vmatprep.subr.mxu1 %v12517_v14 }
0x1549   : >> { %10271 = vmatpush3.msra.mxu1 %v5153_v4 }
0x1602   : >> { %v5147_v45 = vpop.f32.mrf.mxu0 }
0x1603   : >> { %10273 = vmatmul.mubr.msk.f32.vlgmr.msra.gmra.mxu1 %vm5157_vm10, %v5147_v45 }
0x1604   : >> { %v10263_v0 = vpop.f32.mrf.mxu0 }
0x16c2   : > { %5067 = sbr.rel (!%p5065_p5) target bundleno = 5434 (0x153a), region = 675 }
0x16c3   : >> { %v5227_v60 = vpop.f32.mrf.mxu1 }
0x16c4   : >> { %v5231_v61 = vadd.f32 %v12385_v51, %v5227_v60  }
0x16c5   : >> { %v10274_v33 = vpop.f32.mrf.mxu1 }
0x16c6   : >> { %v12384_v51 = vmov %v5231_v61   ;;  %v5239_v40 = vadd.f32 (%p5065_p5), %v9154_v37, %v5231_v61 }
0x16c8   : > { %v14265_v41 = vadd.f32 %v5239_v40, %v14233_v31 }
0x16ca   : > { %v5241_v44 = vmax.f32 %v14265_v41, 0.0 }
0x16cb LB: >> { %s15442_s22 = sld [smem:[#allocation63_spill]]  ;;  %v12519_v38 = vmov 0.0   ;;  %vm12520_vm11 = vmmov 0   ;;  %s9155_s4 = sshll.u32 %s12397_s26, 2  ;;  %s12397_s26 = sphi %s14268_s26, %s5247_s26   ;;  %v12393_v5 = vphi %v12391_v5, %v12392_v5  }
0x16cc   : >> { %s15443_s1 = sld [smem:[#allocation68_spill]]  ;;  %10275 = vmatprep.subr.mxu0 %v12519_v38  ;;  %10277 = vmatprep.mubr.msk.f32.mxu0 %vm12520_vm11, %v12519_v38  ;;  %s9158_s15 = sshll.u32 %s12397_s26, 5 }
0x16cd   : >> { %10276 = vmatpush3.msk.msra.mxu0 %vm5077_vm7, %v5241_v44  ;;  %10280 = vmatprep.subr.mxu1 %v12519_v38  ;;  %s5247_s26 = sadd.s32 1, %s12397_s26  }
0x16ce   : >> { %10288 = vmatprep.mubr.msk.f32.mxu1 %vm12520_vm11, %v12519_v38  ;;  %p5244_p13 = scmp.ge.s32.totalorder %s5247_s26, 9  }
0x16cf   : > { %v9160_v56 = vld [vmem:[#allocation14] ss:$0 sm:$0xff] (%p5244_p13)  ;;  %v12399_v43 = vmov (%p5244_p13), 0.0  }
0x16d1   : >> { %s5250_s8 = scalar_lea.vmem %s15442_s22, %s9155_s4  ;;  %s14285_s22 = smov (%p5244_p13), 0  }
0x16d2   : >> { %s5331_s2 = scalar_lea.vmem %s15443_s1, %s9158_s15  ;;  %v5251_v26 = vld [vmem:[%s5250_s8] sm:$0xf] }
0x16d3   : >> { %v5335_v39 = vld [vmem:[%s5331_s2 + $0x18] sm:$0xff]  ;;  %v5334_v48 = vld [vmem:[%s5331_s2 + $0x10] sm:$0xff]  ;;  %10278 = vmatmul.mubr.msk.f32.vlgmr.msra.gmra.mxu0 %vm5073_vm9, %v5251_v26  ;;  %v5333_v35 = vld [vmem:[%s5331_s2 + $0x8] sm:$0xff] }
0x16d4   : >> { %10281 = vmatpush3.msra.mxu1 %v5335_v39  ;;  %v5332_v49 = vld [vmem:[%s5331_s2] sm:$0xff] }
0x16d5   : >> { %10282 = vmatprep.subr.mxu1 %v12519_v38 }
0x16d6   : >> { %10283 = vmatpush3.msra.mxu1 %v5334_v48 }
0x16d7   : >> { %10284 = vmatprep.subr.mxu1 %v12519_v38 }
0x16d8   : >> { %10285 = vmatpush3.msra.mxu1 %v5333_v35 }
0x16d9   : >> { %10286 = vmatprep.subr.mxu1 %v12519_v38 }
0x16da   : >> { %10287 = vmatpush3.msra.mxu1 %v5332_v49 }
0x1793   : >> { %v5326_v12 = vpop.f32.mrf.mxu0 }
0x1794   : >> { %10289 = vmatmul.mubr.msk.f32.vlgmr.msra.gmra.mxu1 %vm5157_vm10, %v5326_v12 }
0x1795   : >> { %v10279_v11 = vpop.f32.mrf.mxu0 }
0x1853   : > { %5246 = sbr.rel (!%p5244_p13) target bundleno = 5835 (0x16cb), region = 686 }
0x1854   : >> { %v5406_v52 = vpop.f32.mrf.mxu1 }
0x1855   : >> { %v5410_v59 = vadd.f32 %v12393_v5, %v5406_v52  }
0x1856   : >> { %v10290_v53 = vpop.f32.mrf.mxu1 }
0x1857   : >> { %v12392_v5 = vmov %v5410_v59   ;;  %v5418_v57 = vadd.f32 (%p5244_p13), %v9160_v56, %v5410_v59 }
0x1859   : > { %v5419_v42 = vmax.f32 %v5418_v57, 0.0 }
0x185a LB: >> { %s15444_s1 = sld [smem:[#allocation63_spill]]  ;;  %v12521_v58 = vmov 0.0   ;;  %vm12522_vm12 = vmmov 0   ;;  %s9161_s26 = sshll.u32 %s12405_s22, 2  ;;  %s12405_s22 = sphi %s14285_s22, %s5425_s22   ;;  %v12401_v43 = vphi %v12399_v43, %v12400_v43  }
0x185b   : >> { %s15445_s4 = sld [smem:[#allocation70_spill]]  ;;  %10291 = vmatprep.subr.mxu0 %v12521_v58  ;;  %10293 = vmatprep.mubr.msk.f32.mxu0 %vm12522_vm12, %v12521_v58  ;;  %s9164_s15 = sshll.u32 %s12405_s22, 5 }
0x185c   : >> { %10292 = vmatpush3.msk.msra.mxu0 %vm5077_vm7, %v5419_v42  ;;  %10296 = vmatprep.subr.mxu1 %v12521_v58  ;;  %s5425_s22 = sadd.s32 1, %s12405_s22  }
0x185d   : >> { %10304 = vmatprep.mubr.msk.f32.mxu1 %vm12522_vm12, %v12521_v58  ;;  %p5422_p6 = scmp.ge.s32.totalorder %s5425_s22, 9  }
0x185e   : > { %v15446_v2 = vmov (%p5422_p6), 0.0   ;;  %v9166_v9 = vld [vmem:[#allocation16] ss:$0 sm:$0xff] (%p5422_p6)  ;;  %v5599_v47 = vld [vmem:[#allocation17] sm:$0x1] (%p5422_p6)  ;;  %v12407_v24 = vmov (%p5422_p6), 0.0  }
0x185f   : > { %10307 = vmatprep.subr.mxu0 (%p5422_p6), %v15446_v2  ;;  %v5682_v63 = vld [vmem:[#allocation22] sm:$0x1] (%p5422_p6)  ;;  %s14320_s22 = smov (%p5422_p6), 0  }
0x1860   : >> { %s5428_s8 = scalar_lea.vmem %s15444_s1, %s9161_s26  ;;  %s15447_s1 = sld [smem:[#allocation76_spill]] (%p5422_p6) }
0x1861   : >> { %s5509_s2 = scalar_lea.vmem %s15445_s4, %s9164_s15  ;;  %v5429_v34 = vld [vmem:[%s5428_s8] sm:$0xf] }
0x1862   : >> { %v5513_v19 = vld [vmem:[%s5509_s2 + $0x18] sm:$0xff]  ;;  %v5512_v50 = vld [vmem:[%s5509_s2 + $0x10] sm:$0xff]  ;;  %10294 = vmatmul.mubr.msk.f32.vlgmr.msra.gmra.mxu0 %vm5073_vm9, %v5429_v34  ;;  %v5511_v29 = vld [vmem:[%s5509_s2 + $0x8] sm:$0xff] }
0x1863   : >> { %10297 = vmatpush3.msra.mxu1 %v5513_v19  ;;  %v5510_v3 = vld [vmem:[%s5509_s2] sm:$0xff]  ;;  %10309 = vmatprep.mubr.msk.f32.mxu0 (%p5422_p6), %vm12514_vm5, %v15446_v2 }
0x1864   : >> { %10298 = vmatprep.subr.mxu1 %v12521_v58 }
0x1865   : >> { %10299 = vmatpush3.msra.mxu1 %v5512_v50 }
0x1866   : >> { %10300 = vmatprep.subr.mxu1 %v12521_v58  ;;  %v5681_v10 = vld [vmem:[%s15447_s1 + $0x18] sm:$0xff] (%p5422_p6)  ;;  %v5680_v18 = vld [vmem:[%s15447_s1 + $0x10] sm:$0xff] (%p5422_p6)  ;;  %v5679_v31 = vld [vmem:[%s15447_s1 + $0x8] sm:$0xff] (%p5422_p6) }
0x1867   : >> { %10301 = vmatpush3.msra.mxu1 %v5511_v29  ;;  %v5678_v54 = vld [vmem:[%s15447_s1] sm:$0xff] (%p5422_p6) }
0x1868   : >> { %10302 = vmatprep.subr.mxu1 %v12521_v58 }
0x1869   : >> { %10303 = vmatpush3.msra.mxu1 %v5510_v3 }
0x186a   : > { %10312 = vmatprep.subr.mxu1 (%p5422_p6), %v15446_v2 }
0x1922   : >> { %v5504_v21 = vpop.f32.mrf.mxu0 }
0x1923   : >> { %10305 = vmatmul.mubr.msk.f32.vlgmr.msra.gmra.mxu1 %vm5157_vm10, %v5504_v21 }
0x1924   : >> { %v10295_v36 = vpop.f32.mrf.mxu0  ;;  %10320 = vmatprep.mubr.msk.f32.mxu1 (%p5422_p6), %vm12514_vm5, %v15446_v2  ;;  %10313 = vmatpush3.msra.mxu1 (%p5422_p6), %v5681_v10 }
0x1925   : > { %10314 = vmatprep.subr.mxu1 (%p5422_p6), %v15446_v2 }
0x1926   : > { %10315 = vmatpush3.msra.mxu1 (%p5422_p6), %v5680_v18 }
0x1927   : > { %10316 = vmatprep.subr.mxu1 (%p5422_p6), %v15446_v2 }
0x1928   : > { %10317 = vmatpush3.msra.mxu1 (%p5422_p6), %v5679_v31 }
0x1929   : > { %10318 = vmatprep.subr.mxu1 (%p5422_p6), %v15446_v2 }
0x192a   : > { %10319 = vmatpush3.msra.mxu1 (%p5422_p6), %v5678_v54 }
0x19e2   : > { %5424 = sbr.rel (!%p5422_p6) target bundleno = 6234 (0x185a), region = 697 }
0x19e3   : >> { %v5584_v20 = vpop.f32.mrf.mxu1 }
0x19e4   : >> { %v5588_v23 = vadd.f32 %v12401_v43, %v5584_v20  }
0x19e5   : >> { %v10306_v1 = vpop.f32.mrf.mxu1 }
0x19e6   : >> { %v12400_v43 = vmov %v5588_v23   ;;  %v5596_v17 = vadd.f32 (%p5422_p6), %v9166_v9, %v5588_v23 }
0x19e8   : > { %v5597_v30 = vadd.f32 %v5596_v17, %v5241_v44 }
0x19ea   : > { %v5598_v46 = vmax.f32 %v5597_v30, 0.0 }
0x19ec   : > { %10308 = vmatpush3.msk.msra.mxu0 %vm5077_vm7, %v5598_v46 }
0x19ed   : > { %10310 = vmatmul.mubr.msk.f32.vlgmr.msra.gmra.mxu0 %vm5073_vm9, %v5599_v47 }
0x1aad   : > { %v5674_v55 = vpop.f32.mrf.mxu0 }
0x1aae   : > { %10321 = vmatmul.mubr.msk.f32.vlgmr.msra.gmra.mxu1 %vm5157_vm10, %v5674_v55 }
0x1aaf   : > { %v10311_v62 = vpop.f32.mrf.mxu0 }
0x1b6e   : > { %v5753_v15 = vpop.f32.mrf.mxu1 }
0x1b6f   : > { %v14318_v16 = vadd.f32 %v5753_v15, %v5682_v63 }
0x1b70   : > { %v10322_v25 = vpop.f32.mrf.mxu1 }
0x1b71 LB: >> { %s15448_s4 = sld [smem:[#allocation72_spill]]  ;;  %v12523_v28 = vmov 0.0   ;;  %vm12524_vm13 = vmmov 0   ;;  %s9172_s8 = sshll.u32 %s12413_s22, 5  ;;  %s12413_s22 = sphi %s14320_s22, %s5762_s22   ;;  %v12409_v24 = vphi %v12407_v24, %v12408_v24  }
0x1b72   : >> { %s15449_s26 = sld [smem:[#allocation74_spill]]  ;;  %10323 = vmatprep.subr.mxu0 %v12523_v28  ;;  %10325 = vmatprep.mubr.msk.f32.mxu0 %vm12524_vm13, %v12523_v28 }
0x1b73   : >> { %10324 = vmatpush3.msk.msra.mxu0 %vm5077_vm7, %v5598_v46  ;;  %10328 = vmatprep.subr.mxu1 %v12523_v28 }
0x1b74   : >> { %10336 = vmatprep.mubr.msk.f32.mxu1 %vm12524_vm13, %v12523_v28 }
0x1b77   : >> { %s5764_s15 = scalar_lea.vmem %s15448_s4, %s12413_s22  ;;  %s5762_s22 = sadd.s32 1, %s12413_s22  }
0x1b78   : >> { %v5765_v32 = vld [vmem:[%s5764_s15] sm:$0x1]  ;;  %s5840_s2 = scalar_lea.vmem %s15449_s26, %s9172_s8  ;;  %p5759_p10 = scmp.ge.s32.totalorder %s5762_s22, 9  }
0x1b79   : >> { %10326 = vmatmul.mubr.msk.f32.vlgmr.msra.gmra.mxu0 %vm5073_vm9, %v5765_v32  ;;  %v5844_v27 = vld [vmem:[%s5840_s2 + $0x18] sm:$0xff]  ;;  %v5843_v7 = vld [vmem:[%s5840_s2 + $0x10] sm:$0xff]  ;;  %v5842_v51 = vld [vmem:[%s5840_s2 + $0x8] sm:$0xff]  ;;  %v12415_v61 = vmov (%p5759_p10), 0.0   ;;  %s14335_s4 = smov (%p5759_p10), 0  }
0x1b7a   : >> { %10329 = vmatpush3.msra.mxu1 %v5844_v27  ;;  %v5841_v14 = vld [vmem:[%s5840_s2] sm:$0xff]  ;;  %v5919_v45 = vld [vmem:[#allocation19] sm:$0x1] (%p5759_p10) }
0x1b7b   : >> { %10330 = vmatprep.subr.mxu1 %v12523_v28 }
0x1b7c   : >> { %10331 = vmatpush3.msra.mxu1 %v5843_v7 }
0x1b7d   : >> { %10332 = vmatprep.subr.mxu1 %v12523_v28 }
0x1b7e   : >> { %10333 = vmatpush3.msra.mxu1 %v5842_v51 }
0x1b7f   : >> { %10334 = vmatprep.subr.mxu1 %v12523_v28 }
0x1b80   : >> { %10335 = vmatpush3.msra.mxu1 %v5841_v14 }
0x1c39   : >> { %v5835_v22 = vpop.f32.mrf.mxu0 }
0x1c3a   : >> { %10337 = vmatmul.mubr.msk.f32.vlgmr.msra.gmra.mxu1 %vm5157_vm10, %v5835_v22 }
0x1c3b   : >> { %v10327_v6 = vpop.f32.mrf.mxu0 }
0x1cf9   : > { %5761 = sbr.rel (!%p5759_p10) target bundleno = 7025 (0x1b71), region = 708 }
0x1cfa   : >> { %v5914_v13 = vpop.f32.mrf.mxu1 }
0x1cfb   : >> { %v5918_v8 = vadd.f32 %v12409_v24, %v5914_v13  }
0x1cfc   : >> { %v10338_v4 = vpop.f32.mrf.mxu1 }
0x1cfd   : >> { %v12408_v24 = vmov %v5918_v8   ;;  %v5920_v0 = vadd.f32 (%p5759_p10), %v5919_v45, %v5918_v8 }
0x1cff   : > { %v5921_v60 = vmax.f32 %v5920_v0, 0.0 }
0x1d00 LB: >> { %s15450_s26 = sld [smem:[#allocation73_spill]]  ;;  %vm5935_vm14 = vcmask 1040384   ;;  %v12525_v33 = vmov 0.0   ;;  %vm12526_vm15 = vmmov 0   ;;  %vm5931_vm0 = vcmask 7168   ;;  %s9176_s8 = sshll.u32 %s12421_s4, 6  ;;  %s12421_s4 = sphi %s14335_s4, %s5927_s4   ;;  %v12417_v61 = vphi %v12415_v61, %v12416_v61  }
0x1d01   : >> { %s15451_s15 = sld [smem:[#allocation75_spill]]  ;;  %10339 = vmatprep.subr.mxu0 %v12525_v33  ;;  %10341 = vmatprep.mubr.msk.f32.mxu0 %vm12526_vm15, %v12525_v33 }
0x1d02   : >> { %10340 = vmatpush3.msk.msra.mxu0 %vm5935_vm14, %v5921_v60  ;;  %10344 = vmatprep.subr.mxu1 %v12525_v33 }
0x1d03   : >> { %10360 = vmatprep.mubr.msk.f32.mxu1 %vm12526_vm15, %v12525_v33 }
0x1d06   : >> { %s5929_s22 = scalar_lea.vmem %s15450_s26, %s12421_s4  ;;  %s5927_s4 = sadd.s32 1, %s12421_s4  }
0x1d07   : >> { %v5930_v37 = vld [vmem:[%s5929_s22] sm:$0x1]  ;;  %s6010_s2 = scalar_lea.vmem %s15451_s15, %s9176_s8  ;;  %p5924_p12 = scmp.ge.s32.totalorder %s5927_s4, 9  }
0x1d08   : >> { %10342 = vmatmul.mubr.msk.f32.vlgmr.msra.gmra.mxu0 %vm5931_vm0, %v5930_v37  ;;  %v6018_v40 = vld [vmem:[%s6010_s2 + $0x38] sm:$0xff]  ;;  %v6017_v41 = vld [vmem:[%s6010_s2 + $0x30] sm:$0xff]  ;;  %v6016_v44 = vld [vmem:[%s6010_s2 + $0x28] sm:$0xff]  ;;  %v12423_v42 = vmov (%p5924_p12), 0.0   ;;  %s14354_s26 = smov (%p5924_p12), 0  }
0x1d09   : >> { %10345 = vmatpush3.msra.mxu1 %v6018_v40  ;;  %v6015_v5 = vld [vmem:[%s6010_s2 + $0x20] sm:$0xff]  ;;  %v6014_v38 = vld [vmem:[%s6010_s2 + $0x18] sm:$0xff]  ;;  %v6013_v26 = vld [vmem:[%s6010_s2 + $0x10] sm:$0xff] }
0x1d0a   : >> { %10346 = vmatprep.subr.mxu1 %v12525_v33  ;;  %v6012_v39 = vld [vmem:[%s6010_s2 + $0x8] sm:$0xff]  ;;  %v6011_v48 = vld [vmem:[%s6010_s2] sm:$0xff]  ;;  %v6093_v59 = vld [vmem:[#allocation20] sm:$0x1] (%p5924_p12) }
0x1d0b   : >> { %10347 = vmatpush3.msra.mxu1 %v6017_v41 }
0x1d0c   : >> { %10348 = vmatprep.subr.mxu1 %v12525_v33 }
0x1d0d   : >> { %10349 = vmatpush3.msra.mxu1 %v6016_v44 }
0x1d0e   : >> { %10350 = vmatprep.subr.mxu1 %v12525_v33 }
0x1d0f   : >> { %10351 = vmatpush3.msra.mxu1 %v6015_v5 }
0x1d10   : >> { %10352 = vmatprep.subr.mxu1 %v12525_v33 }
0x1d11   : >> { %10353 = vmatpush3.msra.mxu1 %v6014_v38 }
0x1d12   : >> { %10354 = vmatprep.subr.mxu1 %v12525_v33 }
0x1d13   : >> { %10355 = vmatpush3.msra.mxu1 %v6013_v26 }
0x1d14   : >> { %10356 = vmatprep.subr.mxu1 %v12525_v33 }
0x1d15   : >> { %10357 = vmatpush3.msra.mxu1 %v6012_v39 }
0x1d16   : >> { %10358 = vmatprep.subr.mxu1 %v12525_v33 }
0x1d17   : >> { %10359 = vmatpush3.msra.mxu1 %v6011_v48 }
0x1dc8   : >> { %v6005_v35 = vpop.f32.mrf.mxu0 }
0x1dc9   : >> { %10361 = vmatmul.mubr.msk.f32.vlgmr.msra.gmra.mxu1 %vm2531_vm2, %v6005_v35 }
0x1dca   : >> { %v10343_v49 = vpop.f32.mrf.mxu0 }
0x1e88   : > { %5926 = sbr.rel (!%p5924_p12) target bundleno = 7424 (0x1d00), region = 719 }
0x1e89   : >> { %v6088_v12 = vpop.f32.mrf.mxu1 }
0x1e8a   : >> { %v6092_v11 = vadd.f32 %v12417_v61, %v6088_v12  }
0x1e8b   : >> { %v10362_v52 = vpop.f32.mrf.mxu1 }
0x1e8c   : >> { %v12416_v61 = vmov %v6092_v11   ;;  %v6094_v53 = vadd.f32 (%p5924_p12), %v6093_v59, %v6092_v11 }
0x1e8e   : > { %v14351_v56 = vadd.f32 %v6094_v53, %v14318_v16 }
0x1e90   : > { %v6096_v57 = vmax.f32 %v14351_v56, 0.0 }
0x1e91 LB: >> { %s15452_s15 = sld [smem:[#allocation73_spill]]  ;;  %v12527_v43 = vmov 0.0   ;;  %vm12528_vm1 = vmmov 0   ;;  %s9180_s8 = sshll.u32 %s12429_s26, 6  ;;  %s12429_s26 = sphi %s14354_s26, %s6102_s26   ;;  %v12425_v42 = vphi %v12423_v42, %v12424_v42  }
0x1e92   : >> { %s15453_s22 = sld [smem:[#allocation77_spill]]  ;;  %10363 = vmatprep.subr.mxu0 %v12527_v43  ;;  %10365 = vmatprep.mubr.msk.f32.mxu0 %vm12528_vm1, %v12527_v43 }
0x1e93   : >> { %10364 = vmatpush3.msk.msra.mxu0 %vm5935_vm14, %v6096_v57  ;;  %10368 = vmatprep.subr.mxu1 %v12527_v43 }
0x1e94   : >> { %10384 = vmatprep.mubr.msk.f32.mxu1 %vm12528_vm1, %v12527_v43 }
0x1e97   : >> { %s6104_s4 = scalar_lea.vmem %s15452_s15, %s12429_s26  ;;  %s6102_s26 = sadd.s32 1, %s12429_s26  }
0x1e98   : >> { %v6105_v58 = vld [vmem:[%s6104_s4] sm:$0x1]  ;;  %s6185_s2 = scalar_lea.vmem %s15453_s22, %s9180_s8  ;;  %p6099_p7 = scmp.ge.s32.totalorder %s6102_s26, 9  }
0x1e99   : >> { %10366 = vmatmul.mubr.msk.f32.vlgmr.msra.gmra.mxu0 %vm5931_vm0, %v6105_v58  ;;  %v6193_v34 = vld [vmem:[%s6185_s2 + $0x38] sm:$0xff]  ;;  %v6192_v19 = vld [vmem:[%s6185_s2 + $0x30] sm:$0xff]  ;;  %v6191_v50 = vld [vmem:[%s6185_s2 + $0x28] sm:$0xff]  ;;  %v12431_v31 = vmov (%p6099_p7), 0.0   ;;  %s14371_s15 = smov (%p6099_p7), 0  }
0x1e9a   : >> { %10369 = vmatpush3.msra.mxu1 %v6193_v34  ;;  %v6190_v29 = vld [vmem:[%s6185_s2 + $0x20] sm:$0xff]  ;;  %v6189_v3 = vld [vmem:[%s6185_s2 + $0x18] sm:$0xff]  ;;  %v6188_v21 = vld [vmem:[%s6185_s2 + $0x10] sm:$0xff] }
0x1e9b   : >> { %10370 = vmatprep.subr.mxu1 %v12527_v43  ;;  %v6187_v36 = vld [vmem:[%s6185_s2 + $0x8] sm:$0xff]  ;;  %v6186_v20 = vld [vmem:[%s6185_s2] sm:$0xff]  ;;  %v6268_v17 = vld [vmem:[#allocation23] sm:$0x1] (%p6099_p7) }
0x1e9c   : >> { %10371 = vmatpush3.msra.mxu1 %v6192_v19 }
0x1e9d   : >> { %10372 = vmatprep.subr.mxu1 %v12527_v43 }
0x1e9e   : >> { %10373 = vmatpush3.msra.mxu1 %v6191_v50 }
0x1e9f   : >> { %10374 = vmatprep.subr.mxu1 %v12527_v43 }
0x1ea0   : >> { %10375 = vmatpush3.msra.mxu1 %v6190_v29 }
0x1ea1   : >> { %10376 = vmatprep.subr.mxu1 %v12527_v43 }
0x1ea2   : >> { %10377 = vmatpush3.msra.mxu1 %v6189_v3 }
0x1ea3   : >> { %10378 = vmatprep.subr.mxu1 %v12527_v43 }
0x1ea4   : >> { %10379 = vmatpush3.msra.mxu1 %v6188_v21 }
0x1ea5   : >> { %10380 = vmatprep.subr.mxu1 %v12527_v43 }
0x1ea6   : >> { %10381 = vmatpush3.msra.mxu1 %v6187_v36 }
0x1ea7   : >> { %10382 = vmatprep.subr.mxu1 %v12527_v43 }
0x1ea8   : >> { %10383 = vmatpush3.msra.mxu1 %v6186_v20 }
0x1f59   : >> { %v6180_v23 = vpop.f32.mrf.mxu0 }
0x1f5a   : >> { %10385 = vmatmul.mubr.msk.f32.vlgmr.msra.gmra.mxu1 %vm2531_vm2, %v6180_v23 }
0x1f5b   : >> { %v10367_v1 = vpop.f32.mrf.mxu0 }
0x2019   : > { %6101 = sbr.rel (!%p6099_p7) target bundleno = 7825 (0x1e91), region = 730 }
0x201a   : >> { %v6263_v2 = vpop.f32.mrf.mxu1 }
0x201b   : >> { %v6267_v9 = vadd.f32 %v12425_v42, %v6263_v2  }
0x201c   : >> { %v10386_v10 = vpop.f32.mrf.mxu1 }
0x201d   : >> { %v12424_v42 = vmov %v6267_v9   ;;  %v6269_v18 = vadd.f32 (%p6099_p7), %v6268_v17, %v6267_v9 }
0x201f   : > { %v6270_v30 = vmax.f32 %v6269_v18, 0.0 }
0x2020 LB: >> { %s15454_s22 = sld [smem:[#allocation73_spill]]  ;;  %v12529_v46 = vmov 0.0   ;;  %vm12530_vm3 = vmmov 0   ;;  %s9184_s8 = sshll.u32 %s12437_s15, 6  ;;  %s12437_s15 = sphi %s14371_s15, %s6276_s15   ;;  %v12433_v31 = vphi %v12431_v31, %v12432_v31  }
0x2021   : >> { %s15455_s4 = sld [smem:[#allocation78_spill]]  ;;  %10387 = vmatprep.subr.mxu0 %v12529_v46  ;;  %10389 = vmatprep.mubr.msk.f32.mxu0 %vm12530_vm3, %v12529_v46 }
0x2022   : >> { %10388 = vmatpush3.msk.msra.mxu0 %vm5935_vm14, %v6270_v30  ;;  %10392 = vmatprep.subr.mxu1 %v12529_v46 }
0x2023   : >> { %10408 = vmatprep.mubr.msk.f32.mxu1 %vm12530_vm3, %v12529_v46 }
0x2026   : >> { %s6278_s26 = scalar_lea.vmem %s15454_s22, %s12437_s15  ;;  %s6276_s15 = sadd.s32 1, %s12437_s15  }
0x2027   : >> { %v6279_v47 = vld [vmem:[%s6278_s26] sm:$0x1]  ;;  %s6359_s2 = scalar_lea.vmem %s15455_s4, %s9184_s8  ;;  %p6273_p8 = scmp.ge.s32.totalorder %s6276_s15, 9  }
0x2028   : >> { %10390 = vmatmul.mubr.msk.f32.vlgmr.msra.gmra.mxu0 %vm5931_vm0, %v6279_v47  ;;  %v6367_v54 = vld [vmem:[%s6359_s2 + $0x38] sm:$0xff]  ;;  %v6366_v55 = vld [vmem:[%s6359_s2 + $0x30] sm:$0xff]  ;;  %v6365_v62 = vld [vmem:[%s6359_s2 + $0x28] sm:$0xff]  ;;  %s15456_s22 = sld [smem:[#allocation80_spill]] (%p6273_p8)  ;;  %v15458_v13 = vmov (%p6273_p8), 0.0   ;;  %p15463_p0 = scmp.ne.s32.totalorder (%p6273_p8), %s15295_s7, 0 }
0x2029   : >> { %10393 = vmatpush3.msra.mxu1 %v6367_v54  ;;  %v6364_v63 = vld [vmem:[%s6359_s2 + $0x20] sm:$0xff]  ;;  %v6363_v15 = vld [vmem:[%s6359_s2 + $0x18] sm:$0xff]  ;;  %v6362_v16 = vld [vmem:[%s6359_s2 + $0x10] sm:$0xff]  ;;  %6579 = vmatprep.mubr.f32.mxu0 (%p6273_p8), %v15458_v13  ;;  %s15459_s15 = sld [smem:[#allocation82_spill]] (%p6273_p8)  ;;  %s12531_s3 = smov (%p6273_p8), [#allocation28]  }
0x202a   : >> { %10394 = vmatprep.subr.mxu1 %v12529_v46  ;;  %v6361_v25 = vld [vmem:[%s6359_s2 + $0x8] sm:$0xff]  ;;  %v6360_v24 = vld [vmem:[%s6359_s2] sm:$0xff]  ;;  %v6442_v42 = vld [vmem:[#allocation25] sm:$0x1] (%p6273_p8)  ;;  %s15461_s8 = sld [smem:[#allocation81_spill]] (%p6273_p8)  ;;  %s9542_s2 = sshll.u32 (%p6273_p8), %s12853_s0, 4 }
0x202b   : >> { %10395 = vmatpush3.msra.mxu1 %v6366_v55  ;;  %s15462_s5 = sld [smem:[#allocation83_spill]] (%p6273_p8) }
0x202c   : >> { %10396 = vmatprep.subr.mxu1 %v12529_v46 }
0x202d   : >> { %10397 = vmatpush3.msra.mxu1 %v6365_v62 }
0x202e   : >> { %10398 = vmatprep.subr.mxu1 %v12529_v46  ;;  %s15457_s4 = smov (%p6273_p8), %s15456_s22  ;;  %v9215_v14 = vld [vmem:[%s15456_s22 + $0x1e8] sm:$0xff] (%p6273_p8)  ;;  %s8378_s22 = sshll.u32 (%p6273_p8), %s13317_s28, 4  ;;  %s8379_s22 = int_to_ptr.vmem [resolvable:$true] %s8378_s22 }
0x202f   : >> { %10399 = vmatpush3.msra.mxu1 %v6364_v63  ;;  %v9217_v22 = vld [vmem:[%s15457_s4 + $0x1f8] sm:$0xff] (%p6273_p8)  ;;  %v9214_v6 = vld [vmem:[%s15457_s4 + $0x1e0] sm:$0xff] (%p6273_p8)  ;;  %6531 = vmatprep.subr.mxu0 (%p6273_p8), %v9215_v14  ;;  %v9216_v8 = vld [vmem:[%s15457_s4 + $0x1f0] sm:$0xff] (%p6273_p8)  ;;  %s15460_s26 = smov (%p6273_p8), %s15459_s15  ;;  %s11757_s1 = scalar_lea.vmem (%p6273_p8), %s8379_s22, 16 }
0x2030   : >> { %10400 = vmatprep.subr.mxu1 %v12529_v46  ;;  %v9211_v4 = vld [vmem:[%s15457_s4 + $0x1c8] sm:$0xff] (%p6273_p8)  ;;  %v9213_v45 = vld [vmem:[%s15457_s4 + $0x1d8] sm:$0xff] (%p6273_p8)  ;;  %6532 = vmatpush1.msra.mxu0 (%p6273_p8), %v9214_v6  ;;  %v9210_v0 = vld [vmem:[%s15457_s4 + $0x1c0] sm:$0xff] (%p6273_p8)  ;;  %p11758_p11 = scmp.ne.s32.totalorder (%p6273_p8), %s8379_s22, %s11757_s1 }
0x2031   : >> { %10401 = vmatpush3.msra.mxu1 %v6363_v15  ;;  %v9212_v60 = vld [vmem:[%s15457_s4 + $0x1d0] sm:$0xff] (%p6273_p8)  ;;  %v9207_v61 = vld [vmem:[%s15457_s4 + $0x1a8] sm:$0xff] (%p6273_p8)  ;;  %6533 = vmatprep.subr.mxu0 (%p6273_p8), %v9211_v4  ;;  %v9209_v33 = vld [vmem:[%s15457_s4 + $0x1b8] sm:$0xff] (%p6273_p8) }
0x2032   : >> { %10402 = vmatprep.subr.mxu1 %v12529_v46  ;;  %v9206_v37 = vld [vmem:[%s15457_s4 + $0x1a0] sm:$0xff] (%p6273_p8)  ;;  %v9208_v40 = vld [vmem:[%s15457_s4 + $0x1b0] sm:$0xff] (%p6273_p8)  ;;  %6534 = vmatpush1.msra.mxu0 (%p6273_p8), %v9210_v0  ;;  %v9203_v41 = vld [vmem:[%s15457_s4 + $0x188] sm:$0xff] (%p6273_p8)  ;;  %p11759_p1 = pnand (%p6273_p8), %p11758_p11, %p15463_p0 }
0x2033   : >> { %10403 = vmatpush3.msra.mxu1 %v6362_v16  ;;  %v9205_v44 = vld [vmem:[%s15457_s4 + $0x198] sm:$0xff] (%p6273_p8)  ;;  %6535 = vmatprep.subr.mxu0 (%p6273_p8), %v9207_v61  ;;  %v9202_v5 = vld [vmem:[%s15457_s4 + $0x180] sm:$0xff] (%p6273_p8)  ;;  %v9204_v38 = vld [vmem:[%s15457_s4 + $0x190] sm:$0xff] (%p6273_p8) }
0x2034   : >> { %10404 = vmatprep.subr.mxu1 %v12529_v46  ;;  %6536 = vmatpush1.msra.mxu0 (%p6273_p8), %v9206_v37  ;;  %v9199_v26 = vld [vmem:[%s15457_s4 + $0x168] sm:$0xff] (%p6273_p8)  ;;  %v9201_v39 = vld [vmem:[%s15457_s4 + $0x178] sm:$0xff] (%p6273_p8)  ;;  %v9198_v48 = vld [vmem:[%s15457_s4 + $0x160] sm:$0xff] (%p6273_p8)  ;;  %p11760_p2 = pneg (%p6273_p8), %p11759_p1 }
0x2035   : >> { %10405 = vmatpush3.msra.mxu1 %v6361_v25  ;;  %6537 = vmatprep.subr.mxu0 (%p6273_p8), %v9203_v41  ;;  %v9200_v35 = vld [vmem:[%s15457_s4 + $0x170] sm:$0xff] (%p6273_p8)  ;;  %v9195_v49 = vld [vmem:[%s15457_s4 + $0x148] sm:$0xff] (%p6273_p8)  ;;  %v9197_v12 = vld [vmem:[%s15457_s4 + $0x158] sm:$0xff] (%p6273_p8) }
0x2036   : >> { %10406 = vmatprep.subr.mxu1 %v12529_v46  ;;  %6538 = vmatpush1.msra.mxu0 (%p6273_p8), %v9202_v5  ;;  %v9194_v11 = vld [vmem:[%s15457_s4 + $0x140] sm:$0xff] (%p6273_p8)  ;;  %v9196_v52 = vld [vmem:[%s15457_s4 + $0x150] sm:$0xff] (%p6273_p8)  ;;  %v9191_v59 = vld [vmem:[%s15457_s4 + $0x128] sm:$0xff] (%p6273_p8) }
0x2037   : >> { %10407 = vmatpush3.msra.mxu1 %v6360_v24  ;;  %6539 = vmatprep.subr.mxu0 (%p6273_p8), %v9199_v26  ;;  %v9193_v53 = vld [vmem:[%s15457_s4 + $0x138] sm:$0xff] (%p6273_p8)  ;;  %v9190_v43 = vld [vmem:[%s15457_s4 + $0x120] sm:$0xff] (%p6273_p8)  ;;  %v9192_v58 = vld [vmem:[%s15457_s4 + $0x130] sm:$0xff] (%p6273_p8) }
0x2038   : > { %6602 = vmatprep.subr.mxu1 (%p6273_p8), %v9217_v22  ;;  %6540 = vmatpush1.msra.mxu0 (%p6273_p8), %v9198_v48  ;;  %v9187_v19 = vld [vmem:[%s15457_s4 + $0x108] sm:$0xff] (%p6273_p8)  ;;  %v9189_v50 = vld [vmem:[%s15457_s4 + $0x118] sm:$0xff] (%p6273_p8)  ;;  %v9186_v29 = vld [vmem:[%s15457_s4 + $0x100] sm:$0xff] (%p6273_p8) }
0x2039   : > { %6541 = vmatprep.subr.mxu0 (%p6273_p8), %v9195_v49  ;;  %v9188_v3 = vld [vmem:[%s15457_s4 + $0x110] sm:$0xff] (%p6273_p8)  ;;  %v6476_v36 = vld [vmem:[%s15457_s4 + $0xe8] sm:$0xff] (%p6273_p8)  ;;  %v6478_v23 = vld [vmem:[%s15457_s4 + $0xf8] sm:$0xff] (%p6273_p8) }
0x203a   : > { %6542 = vmatpush1.msra.mxu0 (%p6273_p8), %v9194_v11  ;;  %v6475_v1 = vld [vmem:[%s15457_s4 + $0xe0] sm:$0xff] (%p6273_p8)  ;;  %v6477_v2 = vld [vmem:[%s15457_s4 + $0xf0] sm:$0xff] (%p6273_p8)  ;;  %v6472_v56 = vld [vmem:[%s15457_s4 + $0xc8] sm:$0xff] (%p6273_p8) }
0x203b   : > { %6543 = vmatprep.subr.mxu0 (%p6273_p8), %v9191_v59  ;;  %v6471_v9 = vld [vmem:[%s15457_s4 + $0xc0] sm:$0xff] (%p6273_p8)  ;;  %v6473_v10 = vld [vmem:[%s15457_s4 + $0xd0] sm:$0xff] (%p6273_p8)  ;;  %v6468_v17 = vld [vmem:[%s15457_s4 + $0xa8] sm:$0xff] (%p6273_p8) }
0x203c   : > { %6544 = vmatpush1.msra.mxu0 (%p6273_p8), %v9190_v43  ;;  %v6470_v18 = vld [vmem:[%s15457_s4 + $0xb8] sm:$0xff] (%p6273_p8)  ;;  %v6467_v30 = vld [vmem:[%s15457_s4 + $0xa0] sm:$0xff] (%p6273_p8)  ;;  %v6464_v46 = vld [vmem:[%s15457_s4 + $0x88] sm:$0xff] (%p6273_p8) }
0x203d   : > { %6545 = vmatprep.subr.mxu0 (%p6273_p8), %v9187_v19  ;;  %v6466_v47 = vld [vmem:[%s15457_s4 + $0x98] sm:$0xff] (%p6273_p8)  ;;  %v6463_v54 = vld [vmem:[%s15457_s4 + $0x80] sm:$0xff] (%p6273_p8)  ;;  %v6465_v55 = vld [vmem:[%s15457_s4 + $0x90] sm:$0xff] (%p6273_p8) }
0x203e   : > { %6546 = vmatpush1.msra.mxu0 (%p6273_p8), %v9186_v29  ;;  %v6460_v62 = vld [vmem:[%s15457_s4 + $0x68] sm:$0xff] (%p6273_p8)  ;;  %v6462_v63 = vld [vmem:[%s15457_s4 + $0x78] sm:$0xff] (%p6273_p8)  ;;  %v6459_v15 = vld [vmem:[%s15457_s4 + $0x60] sm:$0xff] (%p6273_p8) }
0x203f   : > { %6676 = vmatprep.subr.mxu0 (%p6273_p8), %v6476_v36  ;;  %v6461_v16 = vld [vmem:[%s15457_s4 + $0x70] sm:$0xff] (%p6273_p8)  ;;  %v6456_v25 = vld [vmem:[%s15457_s4 + $0x48] sm:$0xff] (%p6273_p8)  ;;  %v6458_v24 = vld [vmem:[%s15457_s4 + $0x58] sm:$0xff] (%p6273_p8) }
0x2040   : > { %v6453_v14 = vld [vmem:[%s15457_s4 + $0x30] sm:$0xff] (%p6273_p8)  ;;  %v6448_v22 = vld [vmem:[%s15457_s4 + $0x8] sm:$0xff] (%p6273_p8)  ;;  %v6450_v6 = vld [vmem:[%s15457_s4 + $0x18] sm:$0xff] (%p6273_p8) }
0x2041   : > { %v6449_v4 = vld [vmem:[%s15457_s4 + $0x10] sm:$0xff] (%p6273_p8)  ;;  %v9283_v0 = vld [vmem:[%s15459_s15 + $0x9e8] sm:$0xff] (%p6273_p8)  ;;  %v9282_v61 = vld [vmem:[%s15460_s26 + $0x9e0] sm:$0xff] (%p6273_p8)  ;;  %s8376_s15 = scalar_lea.hbm (%p6273_p8), %s12830_s25, %s9542_s2 }
0x2042   : > { %v9279_v37 = vld [vmem:[%s15460_s26 + $0x9c8] sm:$0xff] (%p6273_p8)  ;;  %v9278_v41 = vld [vmem:[%s15460_s26 + $0x9c0] sm:$0xff] (%p6273_p8) }
0x2043   : > { %v9403_v5 = vld [vmem:[%s15460_s26 + $0xda8] sm:$0xff] (%p6273_p8)  ;;  %v9402_v26 = vld [vmem:[%s15460_s26 + $0xda0] sm:$0xff] (%p6273_p8) }
0x2044   : > { %v9399_v48 = vld [vmem:[%s15460_s26 + $0xd88] sm:$0xff] (%p6273_p8)  ;;  %v9398_v49 = vld [vmem:[%s15460_s26 + $0xd80] sm:$0xff] (%p6273_p8) }
0x2045   : > { %v9395_v11 = vld [vmem:[%s15460_s26 + $0xd68] sm:$0xff] (%p6273_p8)  ;;  %v9394_v59 = vld [vmem:[%s15460_s26 + $0xd60] sm:$0xff] (%p6273_p8) }
0x2046   : > { %v9262_v43 = vld [vmem:[%s15460_s26 + $0x940] sm:$0xff] (%p6273_p8)  ;;  %v9387_v19 = vld [vmem:[%s15460_s26 + $0xd28] sm:$0xff] (%p6273_p8) }
0x2047   : > { %v9386_v29 = vld [vmem:[%s15460_s26 + $0xd20] sm:$0xff] (%p6273_p8) }
0x2048   : > { %v9254_v36 = vld [vmem:[%s15460_s26 + $0x900] sm:$0xff] (%p6273_p8) }
0x20e8   : >> { %v6354_v28 = vpop.f32.mrf.mxu0 }
0x20e9   : >> { %10409 = vmatmul.mubr.msk.f32.vlgmr.msra.gmra.mxu1 %vm2531_vm2, %v6354_v28  ;;  %v6455_v28 = vld [vmem:[%s15457_s4 + $0x40] sm:$0xff] (%p6273_p8) }
0x20ea   : >> { %v10391_v32 = vpop.f32.mrf.mxu0  ;;  %6650 = vmatprep.mubr.f32.mxu1 (%p6273_p8), %v15458_v13  ;;  %6603 = vmatpush1.msra.mxu1 (%p6273_p8), %v9216_v8  ;;  %v6447_v8 = vld [vmem:[%s15457_s4] sm:$0xff] (%p6273_p8) }
0x20eb   : > { %6604 = vmatprep.subr.mxu1 (%p6273_p8), %v9213_v45  ;;  %v6457_v32 = vld [vmem:[%s15457_s4 + $0x50] sm:$0xff] (%p6273_p8) }
0x20ec   : > { %6605 = vmatpush1.msra.mxu1 (%p6273_p8), %v9212_v60  ;;  %v9411_v60 = vld [vmem:[%s15460_s26 + $0xde8] sm:$0xff] (%p6273_p8) }
0x20ed   : > { %6606 = vmatprep.subr.mxu1 (%p6273_p8), %v9209_v33  ;;  %v9410_v33 = vld [vmem:[%s15460_s26 + $0xde0] sm:$0xff] (%p6273_p8) }
0x20ee   : > { %6607 = vmatpush1.msra.mxu1 (%p6273_p8), %v9208_v40  ;;  %v9407_v40 = vld [vmem:[%s15460_s26 + $0xdc8] sm:$0xff] (%p6273_p8) }
0x20ef   : > { %6608 = vmatprep.subr.mxu1 (%p6273_p8), %v9205_v44  ;;  %v9406_v44 = vld [vmem:[%s15460_s26 + $0xdc0] sm:$0xff] (%p6273_p8) }
0x20f0   : > { %6609 = vmatpush1.msra.mxu1 (%p6273_p8), %v9204_v38  ;;  %v9274_v38 = vld [vmem:[%s15460_s26 + $0x9a0] sm:$0xff] (%p6273_p8) }
0x20f1   : > { %6610 = vmatprep.subr.mxu1 (%p6273_p8), %v9201_v39  ;;  %v9271_v39 = vld [vmem:[%s15460_s26 + $0x988] sm:$0xff] (%p6273_p8) }
0x20f2   : > { %6611 = vmatpush1.msra.mxu1 (%p6273_p8), %v9200_v35  ;;  %v9270_v35 = vld [vmem:[%s15460_s26 + $0x980] sm:$0xff] (%p6273_p8) }
0x20f3   : > { %6612 = vmatprep.subr.mxu1 (%p6273_p8), %v9197_v12  ;;  %v9267_v12 = vld [vmem:[%s15460_s26 + $0x968] sm:$0xff] (%p6273_p8) }
0x20f4   : > { %6613 = vmatpush1.msra.mxu1 (%p6273_p8), %v9196_v52  ;;  %v9266_v52 = vld [vmem:[%s15460_s26 + $0x960] sm:$0xff] (%p6273_p8) }
0x20f5   : > { %6614 = vmatprep.subr.mxu1 (%p6273_p8), %v9193_v53  ;;  %v9263_v53 = vld [vmem:[%s15460_s26 + $0x948] sm:$0xff] (%p6273_p8) }
0x20f6   : > { %6615 = vmatpush1.msra.mxu1 (%p6273_p8), %v9192_v58  ;;  %v9390_v58 = vld [vmem:[%s15460_s26 + $0xd40] sm:$0xff] (%p6273_p8) }
0x20f7   : > { %6616 = vmatprep.subr.mxu1 (%p6273_p8), %v9189_v50  ;;  %v9258_v50 = vld [vmem:[%s15460_s26 + $0x920] sm:$0xff] (%p6273_p8) }
0x20f8   : > { %6617 = vmatpush1.msra.mxu1 (%p6273_p8), %v9188_v3  ;;  %v9255_v3 = vld [vmem:[%s15460_s26 + $0x908] sm:$0xff] (%p6273_p8) }
0x20f9   : > { %6747 = vmatprep.subr.mxu1 (%p6273_p8), %v6478_v23  ;;  %v9251_v23 = vld [vmem:[%s15460_s26 + $0x8e8] sm:$0xff] (%p6273_p8) }
0x21a8   : > { %6275 = sbr.rel (!%p6273_p8) target bundleno = 8224 (0x2020), region = 741 }
0x21a9   : >> { %v6437_v27 = vpop.f32.mrf.mxu1 }
0x21aa   : >> { %v6441_v7 = vadd.f32 %v12433_v31, %v6437_v27   ;;  %v6452_v27 = vld [vmem:[%s15457_s4 + $0x28] sm:$0xff] (%p6273_p8) }
0x21ab   : >> { %v10410_v51 = vpop.f32.mrf.mxu1 }
0x21ac   : >> { %v12432_v31 = vmov %v6441_v7   ;;  %v6443_v34 = vadd.f32 (%p6273_p8), %v6442_v42, %v6441_v7  ;;  %v6454_v7 = vld [vmem:[%s15457_s4 + $0x38] sm:$0xff] (%p6273_p8)  ;;  %v6451_v51 = vld [vmem:[%s15457_s4 + $0x20] sm:$0xff] (%p6273_p8)  ;;  %v9391_v42 = vld [vmem:[%s15460_s26 + $0xd48] sm:$0xff] (%p6273_p8) }
0x21ad   : > { %v6469_v31 = vld [vmem:[%s15457_s4 + $0xb0] sm:$0xff] }
0x21ae   : > { %v6444_v21 = vadd.f32 %v6443_v34, %v6096_v57  ;;  %v6474_v57 = vld [vmem:[%s15457_s4 + $0xd8] sm:$0xff]  ;;  %v9259_v34 = vld [vmem:[%s15460_s26 + $0x928] sm:$0xff]  ;;  %s11761_s4 = sshll.u32 %s12531_s3, 4  ;;  %s11762_s4 = int_to_ptr.vmem [resolvable:$false] %s11761_s4 }
0x21af   : > { %p11764_p3 = scmp.lt.s32.totalorder %s8379_s22, %s11762_s4 }
0x21b0   : > { %v14423_v20 = vmax.f32 %v6444_v21, 0.0  ;;  %v9383_v21 = vld [vmem:[%s15460_s26 + $0xd08] sm:$0xff] }
0x21b2   : > { %9218 = vmatmul.mubr.msk.f32.vlgmr.msra.gmra.mxu0 %vm2531_vm2, %v14423_v20  ;;  %9219 = vmatmul.mubr.msk.f32.vlgmr.msra.gmra.mxu1 %vm2531_vm2, %v14423_v20  ;;  %v6446_v45 = vmul.f32 %v14423_v20, %v14423_v20  ;;  %v9382_v20 = vld [vmem:[%s15460_s26 + $0xd00] sm:$0xff] }
0x21b3   : > { %6677 = vmatpush1.msra.mxu0 %v6475_v1  ;;  %6748 = vmatpush1.msra.mxu1 %v6477_v2  ;;  %v9379_v1 = vld [vmem:[%s15460_s26 + $0xce8] sm:$0xff]  ;;  %v9250_v2 = vld [vmem:[%s15460_s26 + $0x8e0] sm:$0xff] }
0x21b4   : > { %6678 = vmatprep.subr.mxu0 %v6472_v56  ;;  %6749 = vmatprep.subr.mxu1 %v6474_v57  ;;  %v9378_v56 = vld [vmem:[%s15460_s26 + $0xce0] sm:$0xff]  ;;  %v9247_v57 = vld [vmem:[%s15460_s26 + $0x8c8] sm:$0xff] }
0x21b5   : > { %6679 = vmatpush1.msra.mxu0 %v6471_v9  ;;  %6750 = vmatpush1.msra.mxu1 %v6473_v10  ;;  %v9375_v9 = vld [vmem:[%s15460_s26 + $0xcc8] sm:$0xff]  ;;  %v9246_v10 = vld [vmem:[%s15460_s26 + $0x8c0] sm:$0xff] }
0x21b6   : > { %6680 = vmatprep.subr.mxu0 %v6468_v17  ;;  %6751 = vmatprep.subr.mxu1 %v6470_v18  ;;  %v9374_v17 = vld [vmem:[%s15460_s26 + $0xcc0] sm:$0xff]  ;;  %v9243_v18 = vld [vmem:[%s15460_s26 + $0x8a8] sm:$0xff] }
0x21b7   : > { %6681 = vmatpush1.msra.mxu0 %v6467_v30  ;;  %6752 = vmatpush1.msra.mxu1 %v6469_v31  ;;  %v9371_v30 = vld [vmem:[%s15460_s26 + $0xca8] sm:$0xff]  ;;  %v9242_v31 = vld [vmem:[%s15460_s26 + $0x8a0] sm:$0xff] }
0x21b8   : > { %6682 = vmatprep.subr.mxu0 %v6464_v46  ;;  %6753 = vmatprep.subr.mxu1 %v6466_v47  ;;  %v9370_v46 = vld [vmem:[%s15460_s26 + $0xca0] sm:$0xff]  ;;  %v9239_v47 = vld [vmem:[%s15460_s26 + $0x888] sm:$0xff] }
0x21b9   : > { %6683 = vmatpush1.msra.mxu0 %v6463_v54  ;;  %6754 = vmatpush1.msra.mxu1 %v6465_v55  ;;  %v9367_v54 = vld [vmem:[%s15460_s26 + $0xc88] sm:$0xff]  ;;  %v9238_v55 = vld [vmem:[%s15460_s26 + $0x880] sm:$0xff] }
0x21ba   : > { %6684 = vmatprep.subr.mxu0 %v6460_v62  ;;  %6755 = vmatprep.subr.mxu1 %v6462_v63  ;;  %v9366_v62 = vld [vmem:[%s15460_s26 + $0xc80] sm:$0xff]  ;;  %v9235_v63 = vld [vmem:[%s15460_s26 + $0x868] sm:$0xff] }
0x21bb   : > { %6685 = vmatpush1.msra.mxu0 %v6459_v15  ;;  %6756 = vmatpush1.msra.mxu1 %v6461_v16  ;;  %v9363_v15 = vld [vmem:[%s15460_s26 + $0xc68] sm:$0xff]  ;;  %v9234_v16 = vld [vmem:[%s15460_s26 + $0x860] sm:$0xff] }
0x21bc   : > { %6686 = vmatprep.subr.mxu0 %v6456_v25  ;;  %6757 = vmatprep.subr.mxu1 %v6458_v24  ;;  %v9362_v25 = vld [vmem:[%s15460_s26 + $0xc60] sm:$0xff]  ;;  %v9231_v24 = vld [vmem:[%s15460_s26 + $0x848] sm:$0xff] }
0x21bd   : > { %6687 = vmatpush1.msra.mxu0 %v6455_v28  ;;  %6758 = vmatpush1.msra.mxu1 %v6457_v32  ;;  %v9359_v28 = vld [vmem:[%s15460_s26 + $0xc48] sm:$0xff]  ;;  %v9230_v32 = vld [vmem:[%s15460_s26 + $0x840] sm:$0xff] }
0x21be   : > { %6688 = vmatprep.subr.mxu0 %v6452_v27  ;;  %6759 = vmatprep.subr.mxu1 %v6454_v7  ;;  %v9358_v27 = vld [vmem:[%s15460_s26 + $0xc40] sm:$0xff]  ;;  %v9227_v7 = vld [vmem:[%s15460_s26 + $0x828] sm:$0xff] }
0x21bf   : > { %6689 = vmatpush1.msra.mxu0 %v6451_v51  ;;  %6760 = vmatpush1.msra.mxu1 %v6453_v14  ;;  %v9355_v51 = vld [vmem:[%s15460_s26 + $0xc28] sm:$0xff]  ;;  %v9226_v14 = vld [vmem:[%s15460_s26 + $0x820] sm:$0xff] }
0x21c0   : > { %6690 = vmatprep.subr.mxu0 %v6448_v22  ;;  %6761 = vmatprep.subr.mxu1 %v6450_v6  ;;  %v9354_v22 = vld [vmem:[%s15460_s26 + $0xc20] sm:$0xff]  ;;  %v9223_v6 = vld [vmem:[%s15460_s26 + $0x808] sm:$0xff] }
0x21c1   : > { %6691 = vmatpush1.msra.mxu0 %v6447_v8  ;;  %6724 = vmatprep.mubr.f32.mxu0 %v15458_v13  ;;  %v9351_v8 = vld [vmem:[%s15460_s26 + $0xc08] sm:$0xff] }
0x21c2   : > { %6762 = vmatpush1.msra.mxu1 %v6449_v4  ;;  %6795 = vmatprep.mubr.f32.mxu1 %v15458_v13  ;;  %v9275_v13 = vld [vmem:[%s15460_s26 + $0x9a8] sm:$0xff]  ;;  %v9222_v4 = vld [vmem:[%s15460_s26 + $0x800] sm:$0xff] }
0x21c3   : > { %9220 = vmatmul.mubr.msk.f32.vlgmr.msra.gmra.mxu0 %vm2531_vm2, %v6446_v45  ;;  %9221 = vmatmul.mubr.msk.f32.vlgmr.msra.gmra.mxu1 %vm2531_vm2, %v6446_v45  ;;  %v9350_v45 = vld [vmem:[%s15460_s26 + $0xc00] sm:$0xff]  ;;  %vm8363_vm2 = vcmask 73728  }
0x21c4   : > { %7349 = vmatprep.subr.mxu0 %v9283_v0  ;;  %7420 = vmatprep.subr.mxu1 %v9411_v60  ;;  %v9347_v0 = vld [vmem:[%s15460_s26 + $0xbe8] sm:$0xff] }
0x21c5   : > { %7350 = vmatpush1.msra.mxu0 %v9282_v61  ;;  %7421 = vmatpush1.msra.mxu1 %v9410_v33  ;;  %v9475_v60 = vld [vmem:[%s15460_s26 + $0xfe8] sm:$0xff]  ;;  %v9346_v61 = vld [vmem:[%s15460_s26 + $0xbe0] sm:$0xff] }
0x21c6   : > { %7351 = vmatprep.subr.mxu0 %v9279_v37  ;;  %7422 = vmatprep.subr.mxu1 %v9407_v40  ;;  %v9474_v33 = vld [vmem:[%s15460_s26 + $0xfe0] sm:$0xff]  ;;  %v9343_v37 = vld [vmem:[%s15460_s26 + $0xbc8] sm:$0xff] }
0x21c7   : > { %7352 = vmatpush1.msra.mxu0 %v9278_v41  ;;  %7423 = vmatpush1.msra.mxu1 %v9406_v44  ;;  %v9471_v40 = vld [vmem:[%s15460_s26 + $0xfc8] sm:$0xff]  ;;  %v9342_v41 = vld [vmem:[%s15460_s26 + $0xbc0] sm:$0xff] }
0x21c8   : > { %7353 = vmatprep.subr.mxu0 %v9275_v13  ;;  %7424 = vmatprep.subr.mxu1 %v9403_v5  ;;  %v9470_v44 = vld [vmem:[%s15460_s26 + $0xfc0] sm:$0xff]  ;;  %v9339_v13 = vld [vmem:[%s15460_s26 + $0xba8] sm:$0xff] }
0x21c9   : > { %7354 = vmatpush1.msra.mxu0 %v9274_v38  ;;  %7425 = vmatpush1.msra.mxu1 %v9402_v26  ;;  %v9467_v5 = vld [vmem:[%s15460_s26 + $0xfa8] sm:$0xff]  ;;  %v9338_v38 = vld [vmem:[%s15460_s26 + $0xba0] sm:$0xff] }
0x21ca   : > { %7355 = vmatprep.subr.mxu0 %v9271_v39  ;;  %7426 = vmatprep.subr.mxu1 %v9399_v48  ;;  %v9466_v26 = vld [vmem:[%s15460_s26 + $0xfa0] sm:$0xff]  ;;  %v9335_v39 = vld [vmem:[%s15460_s26 + $0xb88] sm:$0xff] }
0x21cb   : > { %7356 = vmatpush1.msra.mxu0 %v9270_v35  ;;  %7427 = vmatpush1.msra.mxu1 %v9398_v49  ;;  %v9463_v48 = vld [vmem:[%s15460_s26 + $0xf88] sm:$0xff]  ;;  %v9334_v35 = vld [vmem:[%s15460_s26 + $0xb80] sm:$0xff] }
0x21cc   : > { %7357 = vmatprep.subr.mxu0 %v9267_v12  ;;  %7428 = vmatprep.subr.mxu1 %v9395_v11  ;;  %v9462_v49 = vld [vmem:[%s15460_s26 + $0xf80] sm:$0xff]  ;;  %v9331_v12 = vld [vmem:[%s15460_s26 + $0xb68] sm:$0xff] }
0x21cd   : > { %7358 = vmatpush1.msra.mxu0 %v9266_v52  ;;  %7429 = vmatpush1.msra.mxu1 %v9394_v59  ;;  %v9459_v11 = vld [vmem:[%s15460_s26 + $0xf68] sm:$0xff]  ;;  %v9330_v52 = vld [vmem:[%s15460_s26 + $0xb60] sm:$0xff] }
0x21ce   : > { %7359 = vmatprep.subr.mxu0 %v9263_v53  ;;  %7430 = vmatprep.subr.mxu1 %v9391_v42  ;;  %v9458_v59 = vld [vmem:[%s15460_s26 + $0xf60] sm:$0xff]  ;;  %v9327_v53 = vld [vmem:[%s15460_s26 + $0xb48] sm:$0xff] }
0x21cf   : > { %7360 = vmatpush1.msra.mxu0 %v9262_v43  ;;  %7431 = vmatpush1.msra.mxu1 %v9390_v58  ;;  %v9455_v42 = vld [vmem:[%s15460_s26 + $0xf48] sm:$0xff]  ;;  %v9326_v43 = vld [vmem:[%s15460_s26 + $0xb40] sm:$0xff] }
0x21d0   : > { %7361 = vmatprep.subr.mxu0 %v9259_v34  ;;  %7432 = vmatprep.subr.mxu1 %v9387_v19  ;;  %v9454_v58 = vld [vmem:[%s15460_s26 + $0xf40] sm:$0xff]  ;;  %v9323_v34 = vld [vmem:[%s15460_s26 + $0xb28] sm:$0xff] }
0x21d1   : > { %7362 = vmatpush1.msra.mxu0 %v9258_v50  ;;  %7433 = vmatpush1.msra.mxu1 %v9386_v29  ;;  %v9451_v19 = vld [vmem:[%s15460_s26 + $0xf28] sm:$0xff]  ;;  %v9322_v50 = vld [vmem:[%s15460_s26 + $0xb20] sm:$0xff] }
0x21d2   : > { %7363 = vmatprep.subr.mxu0 %v9255_v3  ;;  %7434 = vmatprep.subr.mxu1 %v9383_v21  ;;  %v9450_v29 = vld [vmem:[%s15460_s26 + $0xf20] sm:$0xff]  ;;  %v9319_v3 = vld [vmem:[%s15460_s26 + $0xb08] sm:$0xff] }
0x21d3   : > { %7364 = vmatpush1.msra.mxu0 %v9254_v36  ;;  %7435 = vmatpush1.msra.mxu1 %v9382_v20  ;;  %v9447_v21 = vld [vmem:[%s15460_s26 + $0xf08] sm:$0xff]  ;;  %v9318_v36 = vld [vmem:[%s15460_s26 + $0xb00] sm:$0xff] }
0x21d4   : > { %7365 = vmatprep.subr.mxu0 %v9251_v23  ;;  %7436 = vmatprep.subr.mxu1 %v9379_v1  ;;  %v9446_v20 = vld [vmem:[%s15460_s26 + $0xf00] sm:$0xff]  ;;  %v9315_v23 = vld [vmem:[%s15460_s26 + $0xae8] sm:$0xff] }
0x21d5   : > { %7366 = vmatpush1.msra.mxu0 %v9250_v2  ;;  %7437 = vmatpush1.msra.mxu1 %v9378_v56  ;;  %v9443_v1 = vld [vmem:[%s15460_s26 + $0xee8] sm:$0xff]  ;;  %v9314_v2 = vld [vmem:[%s15460_s26 + $0xae0] sm:$0xff] }
0x21d6   : > { %7367 = vmatprep.subr.mxu0 %v9247_v57  ;;  %7438 = vmatprep.subr.mxu1 %v9375_v9  ;;  %v9442_v56 = vld [vmem:[%s15460_s26 + $0xee0] sm:$0xff]  ;;  %v9311_v57 = vld [vmem:[%s15460_s26 + $0xac8] sm:$0xff] }
0x21d7   : > { %7368 = vmatpush1.msra.mxu0 %v9246_v10  ;;  %7439 = vmatpush1.msra.mxu1 %v9374_v17  ;;  %v9439_v9 = vld [vmem:[%s15460_s26 + $0xec8] sm:$0xff]  ;;  %v9310_v10 = vld [vmem:[%s15460_s26 + $0xac0] sm:$0xff] }
0x21d8   : > { %7369 = vmatprep.subr.mxu0 %v9243_v18  ;;  %7440 = vmatprep.subr.mxu1 %v9371_v30  ;;  %v9438_v17 = vld [vmem:[%s15460_s26 + $0xec0] sm:$0xff]  ;;  %v9307_v18 = vld [vmem:[%s15460_s26 + $0xaa8] sm:$0xff] }
0x21d9   : > { %7370 = vmatpush1.msra.mxu0 %v9242_v31  ;;  %7441 = vmatpush1.msra.mxu1 %v9370_v46  ;;  %v9435_v30 = vld [vmem:[%s15460_s26 + $0xea8] sm:$0xff]  ;;  %v9306_v31 = vld [vmem:[%s15460_s26 + $0xaa0] sm:$0xff] }
0x21da   : > { %7371 = vmatprep.subr.mxu0 %v9239_v47  ;;  %7442 = vmatprep.subr.mxu1 %v9367_v54  ;;  %v9434_v46 = vld [vmem:[%s15460_s26 + $0xea0] sm:$0xff]  ;;  %v9303_v47 = vld [vmem:[%s15460_s26 + $0xa88] sm:$0xff] }
0x21db   : > { %7372 = vmatpush1.msra.mxu0 %v9238_v55  ;;  %7443 = vmatpush1.msra.mxu1 %v9366_v62  ;;  %v9431_v54 = vld [vmem:[%s15460_s26 + $0xe88] sm:$0xff]  ;;  %v9302_v55 = vld [vmem:[%s15460_s26 + $0xa80] sm:$0xff] }
0x21dc   : > { %7373 = vmatprep.subr.mxu0 %v9235_v63  ;;  %7444 = vmatprep.subr.mxu1 %v9363_v15  ;;  %v9430_v62 = vld [vmem:[%s15460_s26 + $0xe80] sm:$0xff]  ;;  %v9299_v63 = vld [vmem:[%s15460_s26 + $0xa68] sm:$0xff] }
0x21dd   : > { %7374 = vmatpush1.msra.mxu0 %v9234_v16  ;;  %7445 = vmatpush1.msra.mxu1 %v9362_v25  ;;  %v9427_v15 = vld [vmem:[%s15460_s26 + $0xe68] sm:$0xff]  ;;  %v9298_v16 = vld [vmem:[%s15460_s26 + $0xa60] sm:$0xff] }
0x21de   : > { %7375 = vmatprep.subr.mxu0 %v9231_v24  ;;  %7446 = vmatprep.subr.mxu1 %v9359_v28  ;;  %v9426_v25 = vld [vmem:[%s15460_s26 + $0xe60] sm:$0xff]  ;;  %v9295_v24 = vld [vmem:[%s15460_s26 + $0xa48] sm:$0xff] }
0x21df   : > { %7376 = vmatpush1.msra.mxu0 %v9230_v32  ;;  %7447 = vmatpush1.msra.mxu1 %v9358_v27  ;;  %v9423_v28 = vld [vmem:[%s15460_s26 + $0xe48] sm:$0xff]  ;;  %v9294_v32 = vld [vmem:[%s15460_s26 + $0xa40] sm:$0xff] }
0x21e0   : > { %7377 = vmatprep.subr.mxu0 %v9227_v7  ;;  %7448 = vmatprep.subr.mxu1 %v9355_v51  ;;  %v9422_v27 = vld [vmem:[%s15460_s26 + $0xe40] sm:$0xff]  ;;  %v9291_v7 = vld [vmem:[%s15460_s26 + $0xa28] sm:$0xff] }
0x21e1   : > { %7378 = vmatpush1.msra.mxu0 %v9226_v14  ;;  %7449 = vmatpush1.msra.mxu1 %v9354_v22  ;;  %v9419_v51 = vld [vmem:[%s15460_s26 + $0xe28] sm:$0xff]  ;;  %v9290_v14 = vld [vmem:[%s15460_s26 + $0xa20] sm:$0xff] }
0x21e2   : > { %7379 = vmatprep.subr.mxu0 %v9223_v6  ;;  %7450 = vmatprep.subr.mxu1 %v9351_v8  ;;  %v9418_v22 = vld [vmem:[%s15460_s26 + $0xe20] sm:$0xff]  ;;  %v9287_v6 = vld [vmem:[%s15460_s26 + $0xa08] sm:$0xff] }
0x21e3   : > { %7380 = vmatpush1.msra.mxu0 %v9222_v4  ;;  %7451 = vmatpush1.msra.mxu1 %v9350_v45  ;;  %v9415_v8 = vld [vmem:[%s15460_s26 + $0xe08] sm:$0xff]  ;;  %v9286_v4 = vld [vmem:[%s15460_s26 + $0xa00] sm:$0xff] }
0x21e4   : > { %7381 = vmatprep.subr.mxu0 %v9347_v0  ;;  %7452 = vmatprep.subr.mxu1 %v9475_v60  ;;  %v9414_v45 = vld [vmem:[%s15460_s26 + $0xe00] sm:$0xff]  ;;  %v9285_v0 = vld [vmem:[%s15460_s26 + $0x9f8] sm:$0xff] }
0x21e5   : > { %7382 = vmatpush2.msra.mxu0 %v9346_v61  ;;  %7453 = vmatpush2.msra.mxu1 %v9474_v33  ;;  %v9413_v60 = vld [vmem:[%s15460_s26 + $0xdf8] sm:$0xff]  ;;  %v6808_v61 = vlaneseq }
0x21e6   : > { %7383 = vmatprep.subr.mxu0 %v9343_v37  ;;  %7454 = vmatprep.subr.mxu1 %v9471_v40 }
0x21e7   : > { %7384 = vmatpush2.msra.mxu0 %v9342_v41  ;;  %7455 = vmatpush2.msra.mxu1 %v9470_v44  ;;  %v14596_v40 = vshrl.u32 %v6808_v61, 7  ;;  %v9380_v61 = vld [vmem:[%s15460_s26 + $0xcf0] sm:$0xff] }
0x21e8   : > { %7385 = vmatprep.subr.mxu0 %v9339_v13  ;;  %7456 = vmatprep.subr.mxu1 %v9467_v5 }
0x21e9   : > { %7386 = vmatpush2.msra.mxu0 %v9338_v38  ;;  %7457 = vmatpush2.msra.mxu1 %v9466_v26  ;;  %v6814_v13 = vsub.s32 1, %v14596_v40  ;;  %v6822_v5 = vsub.s32 3, %v14596_v40  ;;  %v6810_v26 = vsub.s32 0, %v14596_v40 }
0x21ea   : > { %7387 = vmatprep.subr.mxu0 %v9335_v39  ;;  %7458 = vmatprep.subr.mxu1 %v9463_v48  ;;  %v6818_v48 = vsub.s32 2, %v14596_v40  ;;  %v8012_v40 = vld [vmem:[%s12820_s29 + $0x1e8] sm:$0xff] }
0x21eb   : > { %7388 = vmatpush2.msra.mxu0 %v9334_v35  ;;  %7459 = vmatpush2.msra.mxu1 %v9462_v49  ;;  %v6806_v49 = vld [vmem:[%s15461_s8] sm:$0xf]  ;;  %s8366_s8 = scalar_lea.sflag [#allocation4], %s1906_s18 }
0x21ec   : > { %7389 = vmatprep.subr.mxu0 %v9331_v12  ;;  %7460 = vmatprep.subr.mxu1 %v9459_v11 }
0x21ed   : > { %7390 = vmatpush2.msra.mxu0 %v9330_v52  ;;  %7461 = vmatpush2.msra.mxu1 %v9458_v59 }
0x21ee   : > { %7391 = vmatprep.subr.mxu0 %v9327_v53  ;;  %7462 = vmatprep.subr.mxu1 %v9455_v42  ;;  %v6815_v53 = vrot.slane %v6806_v49, %v6814_v13 }
0x21ef   : > { %7392 = vmatpush2.msra.mxu0 %v9326_v43  ;;  %7463 = vmatpush2.msra.mxu1 %v9454_v58  ;;  %v6823_v43 = vrot.slane %v6806_v49, %v6822_v5 }
0x21f0   : > { %7393 = vmatprep.subr.mxu0 %v9323_v34  ;;  %7464 = vmatprep.subr.mxu1 %v9451_v19  ;;  %v6811_v34 = vrot.slane %v6806_v49, %v6810_v26 }
0x21f1   : > { %7394 = vmatpush2.msra.mxu0 %v9322_v50  ;;  %7465 = vmatpush2.msra.mxu1 %v9450_v29  ;;  %v6819_v50 = vrot.slane %v6806_v49, %v6818_v48  ;;  %v9372_v49 = vld [vmem:[%s15460_s26 + $0xcb0] sm:$0xff] }
0x21f2   : > { %7395 = vmatprep.subr.mxu0 %v9319_v3  ;;  %7466 = vmatprep.subr.mxu1 %v9447_v21 }
0x21f3   : > { %7396 = vmatpush2.msra.mxu0 %v9318_v36  ;;  %7467 = vmatpush2.msra.mxu1 %v9446_v20 }
0x21f4   : > { %7397 = vmatprep.subr.mxu0 %v9315_v23  ;;  %7468 = vmatprep.subr.mxu1 %v9443_v1  ;;  %v9284_v1 = vld [vmem:[%s15460_s26 + $0x9f0] sm:$0xff] }
0x21f5   : > { %7398 = vmatpush2.msra.mxu0 %v9314_v2  ;;  %7469 = vmatpush2.msra.mxu1 %v9442_v56  ;;  %v9412_v2 = vld [vmem:[%s15460_s26 + $0xdf0] sm:$0xff]  ;;  %v9281_v56 = vld [vmem:[%s15460_s26 + $0x9d8] sm:$0xff] }
0x21f6   : > { %7399 = vmatprep.subr.mxu0 %v9311_v57  ;;  %7470 = vmatprep.subr.mxu1 %v9439_v9  ;;  %v9409_v57 = vld [vmem:[%s15460_s26 + $0xdd8] sm:$0xff]  ;;  %v9280_v9 = vld [vmem:[%s15460_s26 + $0x9d0] sm:$0xff] }
0x21f7   : > { %7400 = vmatpush2.msra.mxu0 %v9310_v10  ;;  %7471 = vmatpush2.msra.mxu1 %v9438_v17  ;;  %v9408_v10 = vld [vmem:[%s15460_s26 + $0xdd0] sm:$0xff]  ;;  %v9277_v17 = vld [vmem:[%s15460_s26 + $0x9b8] sm:$0xff] }
0x21f8   : > { %7401 = vmatprep.subr.mxu0 %v9307_v18  ;;  %7472 = vmatprep.subr.mxu1 %v9435_v30  ;;  %v9405_v18 = vld [vmem:[%s15460_s26 + $0xdb8] sm:$0xff]  ;;  %v9276_v30 = vld [vmem:[%s15460_s26 + $0x9b0] sm:$0xff] }
0x21f9   : > { %7402 = vmatpush2.msra.mxu0 %v9306_v31  ;;  %7473 = vmatpush2.msra.mxu1 %v9434_v46  ;;  %v9404_v31 = vld [vmem:[%s15460_s26 + $0xdb0] sm:$0xff]  ;;  %v9273_v46 = vld [vmem:[%s15460_s26 + $0x998] sm:$0xff] }
0x21fa   : > { %7403 = vmatprep.subr.mxu0 %v9303_v47  ;;  %7474 = vmatprep.subr.mxu1 %v9431_v54  ;;  %v9401_v47 = vld [vmem:[%s15460_s26 + $0xd98] sm:$0xff]  ;;  %v9272_v54 = vld [vmem:[%s15460_s26 + $0x990] sm:$0xff] }
0x21fb   : > { %7404 = vmatpush2.msra.mxu0 %v9302_v55  ;;  %7475 = vmatpush2.msra.mxu1 %v9430_v62  ;;  %v9400_v55 = vld [vmem:[%s15460_s26 + $0xd90] sm:$0xff]  ;;  %v9269_v62 = vld [vmem:[%s15460_s26 + $0x978] sm:$0xff] }
0x21fc   : > { %7405 = vmatprep.subr.mxu0 %v9299_v63  ;;  %7476 = vmatprep.subr.mxu1 %v9427_v15  ;;  %v9397_v63 = vld [vmem:[%s15460_s26 + $0xd78] sm:$0xff]  ;;  %v9268_v15 = vld [vmem:[%s15460_s26 + $0x970] sm:$0xff] }
0x21fd   : > { %7406 = vmatpush2.msra.mxu0 %v9298_v16  ;;  %7477 = vmatpush2.msra.mxu1 %v9426_v25  ;;  %v9396_v16 = vld [vmem:[%s15460_s26 + $0xd70] sm:$0xff]  ;;  %v9265_v25 = vld [vmem:[%s15460_s26 + $0x958] sm:$0xff] }
0x21fe   : > { %7407 = vmatprep.subr.mxu0 %v9295_v24  ;;  %7478 = vmatprep.subr.mxu1 %v9423_v28  ;;  %v9393_v24 = vld [vmem:[%s15460_s26 + $0xd58] sm:$0xff]  ;;  %v9264_v28 = vld [vmem:[%s15460_s26 + $0x950] sm:$0xff] }
0x21ff   : > { %7408 = vmatpush2.msra.mxu0 %v9294_v32  ;;  %7479 = vmatpush2.msra.mxu1 %v9422_v27  ;;  %v9392_v32 = vld [vmem:[%s15460_s26 + $0xd50] sm:$0xff]  ;;  %v9261_v27 = vld [vmem:[%s15460_s26 + $0x938] sm:$0xff] }
0x2200   : > { %7409 = vmatprep.subr.mxu0 %v9291_v7  ;;  %7480 = vmatprep.subr.mxu1 %v9419_v51  ;;  %v9389_v7 = vld [vmem:[%s15460_s26 + $0xd38] sm:$0xff]  ;;  %v9260_v51 = vld [vmem:[%s15460_s26 + $0x930] sm:$0xff] }
0x2201   : > { %7410 = vmatpush2.msra.mxu0 %v9290_v14  ;;  %7481 = vmatpush2.msra.mxu1 %v9418_v22  ;;  %v9388_v14 = vld [vmem:[%s15460_s26 + $0xd30] sm:$0xff]  ;;  %v9257_v22 = vld [vmem:[%s15460_s26 + $0x918] sm:$0xff] }
0x2202   : > { %7411 = vmatprep.subr.mxu0 %v9287_v6  ;;  %7482 = vmatprep.subr.mxu1 %v9415_v8  ;;  %v9385_v6 = vld [vmem:[%s15460_s26 + $0xd18] sm:$0xff]  ;;  %v9256_v8 = vld [vmem:[%s15460_s26 + $0x910] sm:$0xff] }
0x2203   : > { %7412 = vmatpush2.msra.mxu0 %v9286_v4  ;;  %7483 = vmatpush2.msra.mxu1 %v9414_v45  ;;  %v9384_v4 = vld [vmem:[%s15460_s26 + $0xd10] sm:$0xff]  ;;  %v9253_v45 = vld [vmem:[%s15460_s26 + $0x8f8] sm:$0xff] }
0x2204   : > { %7491 = vmatprep.subr.mxu0 %v9285_v0  ;;  %7562 = vmatprep.subr.mxu1 %v9413_v60  ;;  %v9381_v0 = vld [vmem:[%s15460_s26 + $0xcf8] sm:$0xff]  ;;  %v9252_v60 = vld [vmem:[%s15460_s26 + $0x8f0] sm:$0xff] }
0x2272   : > { %v6581_v33 = vpop.f32.mrf.mxu0  ;;  %v6652_v37 = vpop.f32.mrf.mxu1 }
0x2274   : > { %v6583_v41 = vpop.f32.mrf.mxu0  ;;  %v6654_v44 = vpop.f32.mrf.mxu1 }
0x2283   : > { %v6726_v38 = vpop.f32.mrf.mxu0  ;;  %v6797_v39 = vpop.f32.mrf.mxu1 }
0x2284   : > { %v6727_v35 = vadd.f32 %v6726_v38, %v6581_v33  ;;  %v6798_v12 = vadd.f32 %v6797_v39, %v6652_v37  ;;  %v9249_v33 = vld [vmem:[%s15460_s26 + $0x8d8] sm:$0xff] }
0x2285   : > { %v6728_v11 = vpop.f32.mrf.mxu0  ;;  %v6799_v52 = vpop.f32.mrf.mxu1  ;;  %v9377_v37 = vld [vmem:[%s15460_s26 + $0xcd8] sm:$0xff] }
0x2286   : > { %v6729_v59 = vadd.f32 %v6728_v11, %v6583_v41  ;;  %v6800_v42 = vadd.f32 %v6799_v52, %v6654_v44  ;;  %v6802_v58 = vadd.f32 1.0, %v6727_v35  ;;  %v6804_v19 = vadd.f32 1.0, %v6798_v12  ;;  %v9248_v41 = vld [vmem:[%s15460_s26 + $0x8d0] sm:$0xff]  ;;  %v9245_v38 = vld [vmem:[%s15460_s26 + $0x8b8] sm:$0xff] }
0x2287   : > { %v9376_v44 = vld [vmem:[%s15460_s26 + $0xcd0] sm:$0xff]  ;;  %v9373_v39 = vld [vmem:[%s15460_s26 + $0xcb8] sm:$0xff] }
0x2288   : > { %v6803_v29 = vadd.f32 1.0, %v6729_v59  ;;  %v6805_v3 = vadd.f32 1.0, %v6800_v42  ;;  %v14615_v20 = vadd.f32 %v6811_v34, %v6802_v58  ;;  %v14617_v23 = vadd.f32 %v6819_v50, %v6804_v19  ;;  %v9244_v35 = vld [vmem:[%s15460_s26 + $0x8b0] sm:$0xff]  ;;  %v9241_v12 = vld [vmem:[%s15460_s26 + $0x898] sm:$0xff] }
0x2289   : > { %v9369_v11 = vld [vmem:[%s15460_s26 + $0xc98] sm:$0xff]  ;;  %v9240_v52 = vld [vmem:[%s15460_s26 + $0x890] sm:$0xff] }
0x228a   : > { %v14611_v21 = vadd.f32 %v6815_v53, %v6803_v29  ;;  %v14613_v36 = vadd.f32 %v6823_v43, %v6805_v3  ;;  %v9368_v59 = vld [vmem:[%s15460_s26 + $0xc90] sm:$0xff]  ;;  %v9237_v53 = vld [vmem:[%s15460_s26 + $0x878] sm:$0xff] }
0x228b   : > { %v9365_v42 = vld [vmem:[%s15460_s26 + $0xc78] sm:$0xff]  ;;  %v9236_v43 = vld [vmem:[%s15460_s26 + $0x870] sm:$0xff] }
0x228c   : > { %7413 = vmatprep.mubr.f32.mxu0 %v14611_v21  ;;  %7484 = vmatprep.mubr.f32.mxu1 %v14613_v36  ;;  %v9364_v58 = vld [vmem:[%s15460_s26 + $0xc70] sm:$0xff]  ;;  %v9233_v34 = vld [vmem:[%s15460_s26 + $0x858] sm:$0xff] }
0x228d   : > { %7414 = vmatmul.mubr.f32.vlgmr.msra.gmra.mxu0 %v14615_v20  ;;  %7485 = vmatmul.mubr.f32.vlgmr.msra.gmra.mxu1 %v14617_v23  ;;  %v9361_v19 = vld [vmem:[%s15460_s26 + $0xc58] sm:$0xff]  ;;  %v9232_v50 = vld [vmem:[%s15460_s26 + $0x850] sm:$0xff] }
0x228e   : > { %7492 = vmatpush1.msra.mxu0 %v9284_v1  ;;  %7563 = vmatpush1.msra.mxu1 %v9412_v2  ;;  %v9360_v29 = vld [vmem:[%s15460_s26 + $0xc50] sm:$0xff]  ;;  %v9229_v3 = vld [vmem:[%s15460_s26 + $0x838] sm:$0xff] }
0x228f   : > { %7493 = vmatprep.subr.mxu0 %v9281_v56  ;;  %7555 = vmatprep.mubr.f32.mxu0 %v14611_v21  ;;  %v9357_v1 = vld [vmem:[%s15460_s26 + $0xc38] sm:$0xff]  ;;  %v9228_v2 = vld [vmem:[%s15460_s26 + $0x830] sm:$0xff] }
0x2290   : > { %7564 = vmatprep.subr.mxu1 %v9409_v57  ;;  %7626 = vmatprep.mubr.f32.mxu1 %v14613_v36  ;;  %v9356_v56 = vld [vmem:[%s15460_s26 + $0xc30] sm:$0xff]  ;;  %v9225_v57 = vld [vmem:[%s15460_s26 + $0x818] sm:$0xff] }
0x2291   : > { %7494 = vmatpush1.msra.mxu0 %v9280_v9  ;;  %7565 = vmatpush1.msra.mxu1 %v9408_v10  ;;  %v9353_v9 = vld [vmem:[%s15460_s26 + $0xc18] sm:$0xff]  ;;  %v9224_v10 = vld [vmem:[%s15460_s26 + $0x810] sm:$0xff] }
0x2292   : > { %7495 = vmatprep.subr.mxu0 %v9277_v17  ;;  %7566 = vmatprep.subr.mxu1 %v9405_v18  ;;  %v9352_v17 = vld [vmem:[%s15460_s26 + $0xc10] sm:$0xff]  ;;  %v9349_v18 = vld [vmem:[%s15460_s26 + $0xbf8] sm:$0xff] }
0x2293   : > { %7496 = vmatpush1.msra.mxu0 %v9276_v30  ;;  %7567 = vmatpush1.msra.mxu1 %v9404_v31  ;;  %v9477_v30 = vld [vmem:[%s15460_s26 + $0xff8] sm:$0xff]  ;;  %v9348_v31 = vld [vmem:[%s15460_s26 + $0xbf0] sm:$0xff] }
0x2294   : > { %7497 = vmatprep.subr.mxu0 %v9273_v46  ;;  %7568 = vmatprep.subr.mxu1 %v9401_v47  ;;  %v9476_v46 = vld [vmem:[%s15460_s26 + $0xff0] sm:$0xff]  ;;  %v9345_v47 = vld [vmem:[%s15460_s26 + $0xbd8] sm:$0xff] }
0x2295   : > { %7498 = vmatpush1.msra.mxu0 %v9272_v54  ;;  %7569 = vmatpush1.msra.mxu1 %v9400_v55  ;;  %v9473_v54 = vld [vmem:[%s15460_s26 + $0xfd8] sm:$0xff]  ;;  %v9344_v55 = vld [vmem:[%s15460_s26 + $0xbd0] sm:$0xff] }
0x2296   : > { %7499 = vmatprep.subr.mxu0 %v9269_v62  ;;  %7570 = vmatprep.subr.mxu1 %v9397_v63  ;;  %v9472_v62 = vld [vmem:[%s15460_s26 + $0xfd0] sm:$0xff]  ;;  %v9341_v63 = vld [vmem:[%s15460_s26 + $0xbb8] sm:$0xff] }
0x2297   : > { %7500 = vmatpush1.msra.mxu0 %v9268_v15  ;;  %7571 = vmatpush1.msra.mxu1 %v9396_v16  ;;  %v9469_v15 = vld [vmem:[%s15460_s26 + $0xfb8] sm:$0xff]  ;;  %v9340_v16 = vld [vmem:[%s15460_s26 + $0xbb0] sm:$0xff] }
0x2298   : > { %7501 = vmatprep.subr.mxu0 %v9265_v25  ;;  %7572 = vmatprep.subr.mxu1 %v9393_v24  ;;  %v9468_v25 = vld [vmem:[%s15460_s26 + $0xfb0] sm:$0xff]  ;;  %v9337_v24 = vld [vmem:[%s15460_s26 + $0xb98] sm:$0xff] }
0x2299   : > { %7502 = vmatpush1.msra.mxu0 %v9264_v28  ;;  %7573 = vmatpush1.msra.mxu1 %v9392_v32  ;;  %v9465_v28 = vld [vmem:[%s15460_s26 + $0xf98] sm:$0xff]  ;;  %v9336_v32 = vld [vmem:[%s15460_s26 + $0xb90] sm:$0xff] }
0x229a   : > { %7503 = vmatprep.subr.mxu0 %v9261_v27  ;;  %7574 = vmatprep.subr.mxu1 %v9389_v7  ;;  %v9464_v27 = vld [vmem:[%s15460_s26 + $0xf90] sm:$0xff]  ;;  %v9333_v7 = vld [vmem:[%s15460_s26 + $0xb78] sm:$0xff] }
0x229b   : > { %7504 = vmatpush1.msra.mxu0 %v9260_v51  ;;  %7575 = vmatpush1.msra.mxu1 %v9388_v14  ;;  %v9461_v51 = vld [vmem:[%s15460_s26 + $0xf78] sm:$0xff]  ;;  %v9332_v14 = vld [vmem:[%s15460_s26 + $0xb70] sm:$0xff] }
0x229c   : > { %7505 = vmatprep.subr.mxu0 %v9257_v22  ;;  %7576 = vmatprep.subr.mxu1 %v9385_v6  ;;  %v9460_v22 = vld [vmem:[%s15460_s26 + $0xf70] sm:$0xff]  ;;  %v9329_v6 = vld [vmem:[%s15460_s26 + $0xb58] sm:$0xff] }
0x229d   : > { %7506 = vmatpush1.msra.mxu0 %v9256_v8  ;;  %7577 = vmatpush1.msra.mxu1 %v9384_v4  ;;  %v9457_v8 = vld [vmem:[%s15460_s26 + $0xf58] sm:$0xff]  ;;  %v9328_v4 = vld [vmem:[%s15460_s26 + $0xb50] sm:$0xff] }
0x229e   : > { %7507 = vmatprep.subr.mxu0 %v9253_v45  ;;  %7578 = vmatprep.subr.mxu1 %v9381_v0  ;;  %v9456_v45 = vld [vmem:[%s15460_s26 + $0xf50] sm:$0xff]  ;;  %v9325_v0 = vld [vmem:[%s15460_s26 + $0xb38] sm:$0xff] }
0x229f   : > { %7508 = vmatpush1.msra.mxu0 %v9252_v60  ;;  %7579 = vmatpush1.msra.mxu1 %v9380_v61  ;;  %v9453_v60 = vld [vmem:[%s15460_s26 + $0xf38] sm:$0xff]  ;;  %v9324_v61 = vld [vmem:[%s15460_s26 + $0xb30] sm:$0xff] }
0x22a0   : > { %7509 = vmatprep.subr.mxu0 %v9249_v33  ;;  %7580 = vmatprep.subr.mxu1 %v9377_v37  ;;  %v9452_v33 = vld [vmem:[%s15460_s26 + $0xf30] sm:$0xff]  ;;  %v9321_v37 = vld [vmem:[%s15460_s26 + $0xb18] sm:$0xff] }
0x22a1   : > { %7510 = vmatpush1.msra.mxu0 %v9248_v41  ;;  %7581 = vmatpush1.msra.mxu1 %v9376_v44  ;;  %v9449_v41 = vld [vmem:[%s15460_s26 + $0xf18] sm:$0xff]  ;;  %v9320_v44 = vld [vmem:[%s15460_s26 + $0xb10] sm:$0xff] }
0x22a2   : > { %7511 = vmatprep.subr.mxu0 %v9245_v38  ;;  %7582 = vmatprep.subr.mxu1 %v9373_v39  ;;  %v9448_v38 = vld [vmem:[%s15460_s26 + $0xf10] sm:$0xff]  ;;  %v9317_v39 = vld [vmem:[%s15460_s26 + $0xaf8] sm:$0xff] }
0x22a3   : > { %7512 = vmatpush1.msra.mxu0 %v9244_v35  ;;  %7583 = vmatpush1.msra.mxu1 %v9372_v49  ;;  %v9445_v35 = vld [vmem:[%s15460_s26 + $0xef8] sm:$0xff]  ;;  %v9316_v49 = vld [vmem:[%s15460_s26 + $0xaf0] sm:$0xff] }
0x22a4   : > { %7513 = vmatprep.subr.mxu0 %v9241_v12  ;;  %7584 = vmatprep.subr.mxu1 %v9369_v11  ;;  %v9444_v12 = vld [vmem:[%s15460_s26 + $0xef0] sm:$0xff]  ;;  %v9313_v11 = vld [vmem:[%s15460_s26 + $0xad8] sm:$0xff] }
0x22a5   : > { %7514 = vmatpush1.msra.mxu0 %v9240_v52  ;;  %7585 = vmatpush1.msra.mxu1 %v9368_v59  ;;  %v9441_v52 = vld [vmem:[%s15460_s26 + $0xed8] sm:$0xff]  ;;  %v9312_v59 = vld [vmem:[%s15460_s26 + $0xad0] sm:$0xff] }
0x22a6   : > { %7515 = vmatprep.subr.mxu0 %v9237_v53  ;;  %7586 = vmatprep.subr.mxu1 %v9365_v42  ;;  %v9440_v53 = vld [vmem:[%s15460_s26 + $0xed0] sm:$0xff]  ;;  %v9309_v42 = vld [vmem:[%s15460_s26 + $0xab8] sm:$0xff] }
0x22a7   : > { %7516 = vmatpush1.msra.mxu0 %v9236_v43  ;;  %7587 = vmatpush1.msra.mxu1 %v9364_v58  ;;  %v9437_v43 = vld [vmem:[%s15460_s26 + $0xeb8] sm:$0xff]  ;;  %v9308_v58 = vld [vmem:[%s15460_s26 + $0xab0] sm:$0xff] }
0x22a8   : > { %7517 = vmatprep.subr.mxu0 %v9233_v34  ;;  %7588 = vmatprep.subr.mxu1 %v9361_v19  ;;  %v9436_v34 = vld [vmem:[%s15460_s26 + $0xeb0] sm:$0xff]  ;;  %v9305_v19 = vld [vmem:[%s15460_s26 + $0xa98] sm:$0xff] }
0x22a9   : > { %7518 = vmatpush1.msra.mxu0 %v9232_v50  ;;  %7589 = vmatpush1.msra.mxu1 %v9360_v29  ;;  %v9433_v50 = vld [vmem:[%s15460_s26 + $0xe98] sm:$0xff]  ;;  %v9304_v29 = vld [vmem:[%s15460_s26 + $0xa90] sm:$0xff] }
0x22aa   : > { %7519 = vmatprep.subr.mxu0 %v9229_v3  ;;  %7590 = vmatprep.subr.mxu1 %v9357_v1  ;;  %v9432_v3 = vld [vmem:[%s15460_s26 + $0xe90] sm:$0xff]  ;;  %v9301_v1 = vld [vmem:[%s15460_s26 + $0xa78] sm:$0xff] }
0x22ab   : > { %7520 = vmatpush1.msra.mxu0 %v9228_v2  ;;  %7591 = vmatpush1.msra.mxu1 %v9356_v56  ;;  %v9429_v2 = vld [vmem:[%s15460_s26 + $0xe78] sm:$0xff]  ;;  %v9300_v56 = vld [vmem:[%s15460_s26 + $0xa70] sm:$0xff] }
0x22ac   : > { %7521 = vmatprep.subr.mxu0 %v9225_v57  ;;  %7592 = vmatprep.subr.mxu1 %v9353_v9  ;;  %v9428_v57 = vld [vmem:[%s15460_s26 + $0xe70] sm:$0xff]  ;;  %v9297_v9 = vld [vmem:[%s15460_s26 + $0xa58] sm:$0xff] }
0x22ad   : > { %7522 = vmatpush1.msra.mxu0 %v9224_v10  ;;  %7593 = vmatpush1.msra.mxu1 %v9352_v17  ;;  %v9425_v10 = vld [vmem:[%s15460_s26 + $0xe58] sm:$0xff]  ;;  %v9296_v17 = vld [vmem:[%s15460_s26 + $0xa50] sm:$0xff] }
0x22ae   : > { %7523 = vmatprep.subr.mxu0 %v9349_v18  ;;  %7594 = vmatprep.subr.mxu1 %v9477_v30  ;;  %v9424_v18 = vld [vmem:[%s15460_s26 + $0xe50] sm:$0xff]  ;;  %v9293_v30 = vld [vmem:[%s15460_s26 + $0xa38] sm:$0xff] }
0x22af   : > { %7524 = vmatpush2.msra.mxu0 %v9348_v31  ;;  %7595 = vmatpush2.msra.mxu1 %v9476_v46  ;;  %v9421_v31 = vld [vmem:[%s15460_s26 + $0xe38] sm:$0xff]  ;;  %v9292_v46 = vld [vmem:[%s15460_s26 + $0xa30] sm:$0xff] }
0x22b0   : > { %7525 = vmatprep.subr.mxu0 %v9345_v47  ;;  %7596 = vmatprep.subr.mxu1 %v9473_v54  ;;  %v9420_v47 = vld [vmem:[%s15460_s26 + $0xe30] sm:$0xff]  ;;  %v9289_v54 = vld [vmem:[%s15460_s26 + $0xa18] sm:$0xff] }
0x22b1   : > { %7526 = vmatpush2.msra.mxu0 %v9344_v55  ;;  %7597 = vmatpush2.msra.mxu1 %v9472_v62  ;;  %v9417_v55 = vld [vmem:[%s15460_s26 + $0xe18] sm:$0xff]  ;;  %v9288_v62 = vld [vmem:[%s15460_s26 + $0xa10] sm:$0xff] }
0x22b2   : > { %7527 = vmatprep.subr.mxu0 %v9341_v63  ;;  %7598 = vmatprep.subr.mxu1 %v9469_v15  ;;  %v9416_v63 = vld [vmem:[%s15460_s26 + $0xe10] sm:$0xff]  ;;  %v6897_v15 = vld [vmem:[%s15460_s26 + $0x1e8] sm:$0xff] }
0x22b3   : > { %7528 = vmatpush2.msra.mxu0 %v9340_v16  ;;  %7599 = vmatpush2.msra.mxu1 %v9468_v25  ;;  %v7025_v16 = vld [vmem:[%s15460_s26 + $0x5e8] sm:$0xff]  ;;  %v6896_v25 = vld [vmem:[%s15460_s26 + $0x1e0] sm:$0xff] }
0x22b4   : > { %7529 = vmatprep.subr.mxu0 %v9337_v24  ;;  %7600 = vmatprep.subr.mxu1 %v9465_v28  ;;  %v14758_v24 = vmul.f32 %v14611_v21, %v14611_v21  ;;  %v7024_v28 = vld [vmem:[%s15460_s26 + $0x5e0] sm:$0xff] }
0x22b5   : > { %7530 = vmatpush2.msra.mxu0 %v9336_v32  ;;  %7601 = vmatpush2.msra.mxu1 %v9464_v27  ;;  %v14763_v32 = vmul.f32 %v14613_v36, %v14613_v36  ;;  %v6893_v27 = vld [vmem:[%s15460_s26 + $0x1c8] sm:$0xff]  ;;  %v7020_v21 = vld [vmem:[%s15460_s26 + $0x5c0] sm:$0xff] }
0x22b6   : > { %7531 = vmatprep.subr.mxu0 %v9333_v7  ;;  %7602 = vmatprep.subr.mxu1 %v9461_v51  ;;  %v7021_v7 = vld [vmem:[%s15460_s26 + $0x5c8] sm:$0xff]  ;;  %v6892_v51 = vld [vmem:[%s15460_s26 + $0x1c0] sm:$0xff] }
0x22b7   : > { %7532 = vmatpush2.msra.mxu0 %v9332_v14  ;;  %7603 = vmatpush2.msra.mxu1 %v9460_v22  ;;  %v6889_v14 = vld [vmem:[%s15460_s26 + $0x1a8] sm:$0xff]  ;;  %v6888_v36 = vld [vmem:[%s15460_s26 + $0x1a0] sm:$0xff] }
0x22b8   : > { %7533 = vmatprep.subr.mxu0 %v9329_v6  ;;  %7604 = vmatprep.subr.mxu1 %v9457_v8  ;;  %v7017_v22 = vld [vmem:[%s15460_s26 + $0x5a8] sm:$0xff]  ;;  %v7016_v6 = vld [vmem:[%s15460_s26 + $0x5a0] sm:$0xff] }
0x22b9   : > { %7534 = vmatpush2.msra.mxu0 %v9328_v4  ;;  %7605 = vmatpush2.msra.mxu1 %v9456_v45  ;;  %v6885_v8 = vld [vmem:[%s15460_s26 + $0x188] sm:$0xff]  ;;  %v6884_v45 = vld [vmem:[%s15460_s26 + $0x180] sm:$0xff] }
0x22ba   : > { %7535 = vmatprep.subr.mxu0 %v9325_v0  ;;  %7606 = vmatprep.subr.mxu1 %v9453_v60  ;;  %v7013_v4 = vld [vmem:[%s15460_s26 + $0x588] sm:$0xff]  ;;  %v7012_v0 = vld [vmem:[%s15460_s26 + $0x580] sm:$0xff] }
0x22bb   : > { %7536 = vmatpush2.msra.mxu0 %v9324_v61  ;;  %7607 = vmatpush2.msra.mxu1 %v9452_v33  ;;  %v6881_v60 = vld [vmem:[%s15460_s26 + $0x168] sm:$0xff]  ;;  %v6880_v33 = vld [vmem:[%s15460_s26 + $0x160] sm:$0xff] }
0x22bc   : > { %7537 = vmatprep.subr.mxu0 %v9321_v37  ;;  %7608 = vmatprep.subr.mxu1 %v9449_v41  ;;  %v7009_v61 = vld [vmem:[%s15460_s26 + $0x568] sm:$0xff]  ;;  %v7008_v37 = vld [vmem:[%s15460_s26 + $0x560] sm:$0xff] }
0x22bd   : > { %7538 = vmatpush2.msra.mxu0 %v9320_v44  ;;  %7609 = vmatpush2.msra.mxu1 %v9448_v38  ;;  %v6877_v41 = vld [vmem:[%s15460_s26 + $0x148] sm:$0xff]  ;;  %v6876_v38 = vld [vmem:[%s15460_s26 + $0x140] sm:$0xff] }
0x22be   : > { %7539 = vmatprep.subr.mxu0 %v9317_v39  ;;  %7610 = vmatprep.subr.mxu1 %v9445_v35  ;;  %v7005_v44 = vld [vmem:[%s15460_s26 + $0x548] sm:$0xff]  ;;  %v7004_v39 = vld [vmem:[%s15460_s26 + $0x540] sm:$0xff] }
0x22bf   : > { %7540 = vmatpush2.msra.mxu0 %v9316_v49  ;;  %7611 = vmatpush2.msra.mxu1 %v9444_v12  ;;  %v6873_v35 = vld [vmem:[%s15460_s26 + $0x128] sm:$0xff]  ;;  %v6872_v12 = vld [vmem:[%s15460_s26 + $0x120] sm:$0xff] }
0x22c0   : > { %7541 = vmatprep.subr.mxu0 %v9313_v11  ;;  %7612 = vmatprep.subr.mxu1 %v9441_v52  ;;  %v7001_v49 = vld [vmem:[%s15460_s26 + $0x528] sm:$0xff]  ;;  %v7000_v11 = vld [vmem:[%s15460_s26 + $0x520] sm:$0xff] }
0x22c1   : > { %7542 = vmatpush2.msra.mxu0 %v9312_v59  ;;  %7613 = vmatpush2.msra.mxu1 %v9440_v53  ;;  %v6869_v52 = vld [vmem:[%s15460_s26 + $0x108] sm:$0xff]  ;;  %v6868_v53 = vld [vmem:[%s15460_s26 + $0x100] sm:$0xff] }
0x22c2   : > { %7543 = vmatprep.subr.mxu0 %v9309_v42  ;;  %7614 = vmatprep.subr.mxu1 %v9437_v43  ;;  %v6997_v59 = vld [vmem:[%s15460_s26 + $0x508] sm:$0xff]  ;;  %v6996_v42 = vld [vmem:[%s15460_s26 + $0x500] sm:$0xff] }
0x22c3   : > { %7544 = vmatpush2.msra.mxu0 %v9308_v58  ;;  %7615 = vmatpush2.msra.mxu1 %v9436_v34  ;;  %v6865_v43 = vld [vmem:[%s15460_s26 + $0xe8] sm:$0xff]  ;;  %v6864_v34 = vld [vmem:[%s15460_s26 + $0xe0] sm:$0xff] }
0x22c4   : > { %7545 = vmatprep.subr.mxu0 %v9305_v19  ;;  %7616 = vmatprep.subr.mxu1 %v9433_v50  ;;  %v6993_v58 = vld [vmem:[%s15460_s26 + $0x4e8] sm:$0xff]  ;;  %v6992_v19 = vld [vmem:[%s15460_s26 + $0x4e0] sm:$0xff] }
0x22c5   : > { %7546 = vmatpush2.msra.mxu0 %v9304_v29  ;;  %7617 = vmatpush2.msra.mxu1 %v9432_v3  ;;  %v6861_v50 = vld [vmem:[%s15460_s26 + $0xc8] sm:$0xff]  ;;  %v6860_v3 = vld [vmem:[%s15460_s26 + $0xc0] sm:$0xff] }
0x22c6   : > { %7547 = vmatprep.subr.mxu0 %v9301_v1  ;;  %7618 = vmatprep.subr.mxu1 %v9429_v2  ;;  %v6989_v29 = vld [vmem:[%s15460_s26 + $0x4c8] sm:$0xff]  ;;  %v6988_v1 = vld [vmem:[%s15460_s26 + $0x4c0] sm:$0xff] }
0x22c7   : > { %7548 = vmatpush2.msra.mxu0 %v9300_v56  ;;  %7619 = vmatpush2.msra.mxu1 %v9428_v57  ;;  %v6857_v2 = vld [vmem:[%s15460_s26 + $0xa8] sm:$0xff]  ;;  %v6856_v57 = vld [vmem:[%s15460_s26 + $0xa0] sm:$0xff] }
0x22c8   : > { %7549 = vmatprep.subr.mxu0 %v9297_v9  ;;  %7620 = vmatprep.subr.mxu1 %v9425_v10  ;;  %v6985_v56 = vld [vmem:[%s15460_s26 + $0x4a8] sm:$0xff]  ;;  %v6984_v9 = vld [vmem:[%s15460_s26 + $0x4a0] sm:$0xff] }
0x22c9   : > { %7550 = vmatpush2.msra.mxu0 %v9296_v17  ;;  %7621 = vmatpush2.msra.mxu1 %v9424_v18  ;;  %v6853_v10 = vld [vmem:[%s15460_s26 + $0x88] sm:$0xff]  ;;  %v6852_v18 = vld [vmem:[%s15460_s26 + $0x80] sm:$0xff] }
0x22ca   : > { %7551 = vmatprep.subr.mxu0 %v9293_v30  ;;  %7622 = vmatprep.subr.mxu1 %v9421_v31  ;;  %v6981_v17 = vld [vmem:[%s15460_s26 + $0x488] sm:$0xff]  ;;  %v6980_v30 = vld [vmem:[%s15460_s26 + $0x480] sm:$0xff] }
0x22cb   : > { %7552 = vmatpush2.msra.mxu0 %v9292_v46  ;;  %7623 = vmatpush2.msra.mxu1 %v9420_v47  ;;  %v6849_v31 = vld [vmem:[%s15460_s26 + $0x68] sm:$0xff]  ;;  %v6848_v47 = vld [vmem:[%s15460_s26 + $0x60] sm:$0xff] }
0x22cc   : > { %7553 = vmatprep.subr.mxu0 %v9289_v54  ;;  %7624 = vmatprep.subr.mxu1 %v9417_v55  ;;  %v6977_v46 = vld [vmem:[%s15460_s26 + $0x468] sm:$0xff]  ;;  %v6976_v54 = vld [vmem:[%s15460_s26 + $0x460] sm:$0xff] }
0x22cd   : > { %7554 = vmatpush2.msra.mxu0 %v9288_v62  ;;  %7625 = vmatpush2.msra.mxu1 %v9416_v63  ;;  %v6845_v55 = vld [vmem:[%s15460_s26 + $0x48] sm:$0xff]  ;;  %v6844_v63 = vld [vmem:[%s15460_s26 + $0x40] sm:$0xff] }
0x22ce   : > { %7556 = vmatmul.mubr.f32.vlgmr.msra.gmra.mxu0 %v14615_v20  ;;  %7627 = vmatmul.mubr.f32.vlgmr.msra.gmra.mxu1 %v14617_v23  ;;  %v6973_v62 = vld [vmem:[%s15460_s26 + $0x448] sm:$0xff] }
0x22cf   : > { %7633 = vmatprep.subr.mxu0 %v6897_v15  ;;  %7704 = vmatprep.subr.mxu1 %v7025_v16  ;;  %v6972_v15 = vld [vmem:[%s15460_s26 + $0x440] sm:$0xff]  ;;  %v6841_v16 = vld [vmem:[%s15460_s26 + $0x28] sm:$0xff] }
0x22d0   : > { %7634 = vmatpush1.msra.mxu0 %v6896_v25  ;;  %7697 = vmatprep.mubr.f32.mxu0 %v14758_v24  ;;  %v6969_v25 = vld [vmem:[%s15460_s26 + $0x428] sm:$0xff] }
0x22d1   : > { %7705 = vmatpush1.msra.mxu1 %v7024_v28  ;;  %7768 = vmatprep.mubr.f32.mxu1 %v14763_v32  ;;  %v6840_v28 = vld [vmem:[%s15460_s26 + $0x20] sm:$0xff] }
0x22d2   : > { %7635 = vmatprep.subr.mxu0 %v6893_v27  ;;  %7706 = vmatprep.subr.mxu1 %v7021_v7  ;;  %v6968_v27 = vld [vmem:[%s15460_s26 + $0x420] sm:$0xff]  ;;  %v6837_v7 = vld [vmem:[%s15460_s26 + $0x8] sm:$0xff] }
0x22d3   : > { %7636 = vmatpush1.msra.mxu0 %v6892_v51  ;;  %7707 = vmatpush1.msra.mxu1 %v7020_v21  ;;  %v6965_v51 = vld [vmem:[%s15460_s26 + $0x408] sm:$0xff]  ;;  %v6836_v21 = vld [vmem:[%s15460_s26] sm:$0xff] }
0x22d4   : > { %7637 = vmatprep.subr.mxu0 %v6889_v14  ;;  %7708 = vmatprep.subr.mxu1 %v7017_v22  ;;  %v6964_v14 = vld [vmem:[%s15460_s26 + $0x400] sm:$0xff]  ;;  %v6961_v22 = vld [vmem:[%s15460_s26 + $0x3e8] sm:$0xff] }
0x22d5   : > { %7638 = vmatpush1.msra.mxu0 %v6888_v36  ;;  %7709 = vmatpush1.msra.mxu1 %v7016_v6  ;;  %v7089_v36 = vld [vmem:[%s15460_s26 + $0x7e8] sm:$0xff]  ;;  %v6960_v6 = vld [vmem:[%s15460_s26 + $0x3e0] sm:$0xff] }
0x22d6   : > { %7639 = vmatprep.subr.mxu0 %v6885_v8  ;;  %7710 = vmatprep.subr.mxu1 %v7013_v4  ;;  %v7088_v8 = vld [vmem:[%s15460_s26 + $0x7e0] sm:$0xff]  ;;  %v6957_v4 = vld [vmem:[%s15460_s26 + $0x3c8] sm:$0xff] }
0x22d7   : > { %7640 = vmatpush1.msra.mxu0 %v6884_v45  ;;  %7711 = vmatpush1.msra.mxu1 %v7012_v0  ;;  %v7085_v45 = vld [vmem:[%s15460_s26 + $0x7c8] sm:$0xff]  ;;  %v6956_v0 = vld [vmem:[%s15460_s26 + $0x3c0] sm:$0xff] }
0x22d8   : > { %7641 = vmatprep.subr.mxu0 %v6881_v60  ;;  %7712 = vmatprep.subr.mxu1 %v7009_v61  ;;  %v7084_v60 = vld [vmem:[%s15460_s26 + $0x7c0] sm:$0xff]  ;;  %v6953_v61 = vld [vmem:[%s15460_s26 + $0x3a8] sm:$0xff] }
0x22d9   : > { %7642 = vmatpush1.msra.mxu0 %v6880_v33  ;;  %7713 = vmatpush1.msra.mxu1 %v7008_v37  ;;  %v7081_v33 = vld [vmem:[%s15460_s26 + $0x7a8] sm:$0xff]  ;;  %v6952_v37 = vld [vmem:[%s15460_s26 + $0x3a0] sm:$0xff] }
0x22da   : > { %7643 = vmatprep.subr.mxu0 %v6877_v41  ;;  %7714 = vmatprep.subr.mxu1 %v7005_v44  ;;  %v7080_v41 = vld [vmem:[%s15460_s26 + $0x7a0] sm:$0xff]  ;;  %v6949_v44 = vld [vmem:[%s15460_s26 + $0x388] sm:$0xff] }
0x22db   : > { %7644 = vmatpush1.msra.mxu0 %v6876_v38  ;;  %7715 = vmatpush1.msra.mxu1 %v7004_v39  ;;  %v7077_v38 = vld [vmem:[%s15460_s26 + $0x788] sm:$0xff]  ;;  %v6948_v39 = vld [vmem:[%s15460_s26 + $0x380] sm:$0xff] }
0x22dc   : > { %7645 = vmatprep.subr.mxu0 %v6873_v35  ;;  %7716 = vmatprep.subr.mxu1 %v7001_v49  ;;  %v7076_v35 = vld [vmem:[%s15460_s26 + $0x780] sm:$0xff]  ;;  %v6945_v49 = vld [vmem:[%s15460_s26 + $0x368] sm:$0xff] }
0x22dd   : > { %7646 = vmatpush1.msra.mxu0 %v6872_v12  ;;  %7717 = vmatpush1.msra.mxu1 %v7000_v11  ;;  %v7073_v12 = vld [vmem:[%s15460_s26 + $0x768] sm:$0xff]  ;;  %v6944_v11 = vld [vmem:[%s15460_s26 + $0x360] sm:$0xff] }
0x22de   : > { %7647 = vmatprep.subr.mxu0 %v6869_v52  ;;  %7718 = vmatprep.subr.mxu1 %v6997_v59  ;;  %v7072_v52 = vld [vmem:[%s15460_s26 + $0x760] sm:$0xff]  ;;  %v6941_v59 = vld [vmem:[%s15460_s26 + $0x348] sm:$0xff] }
0x22df   : > { %7648 = vmatpush1.msra.mxu0 %v6868_v53  ;;  %7719 = vmatpush1.msra.mxu1 %v6996_v42  ;;  %v7069_v53 = vld [vmem:[%s15460_s26 + $0x748] sm:$0xff]  ;;  %v6940_v42 = vld [vmem:[%s15460_s26 + $0x340] sm:$0xff] }
0x22e0   : > { %7649 = vmatprep.subr.mxu0 %v6865_v43  ;;  %7720 = vmatprep.subr.mxu1 %v6993_v58  ;;  %v7068_v43 = vld [vmem:[%s15460_s26 + $0x740] sm:$0xff]  ;;  %v6937_v58 = vld [vmem:[%s15460_s26 + $0x328] sm:$0xff] }
0x22e1   : > { %7650 = vmatpush1.msra.mxu0 %v6864_v34  ;;  %7721 = vmatpush1.msra.mxu1 %v6992_v19  ;;  %v7065_v34 = vld [vmem:[%s15460_s26 + $0x728] sm:$0xff]  ;;  %v6936_v19 = vld [vmem:[%s15460_s26 + $0x320] sm:$0xff] }
0x22e2   : > { %7651 = vmatprep.subr.mxu0 %v6861_v50  ;;  %7722 = vmatprep.subr.mxu1 %v6989_v29  ;;  %v7064_v50 = vld [vmem:[%s15460_s26 + $0x720] sm:$0xff]  ;;  %v6933_v29 = vld [vmem:[%s15460_s26 + $0x308] sm:$0xff] }
0x22e3   : > { %7652 = vmatpush1.msra.mxu0 %v6860_v3  ;;  %7723 = vmatpush1.msra.mxu1 %v6988_v1  ;;  %v7061_v3 = vld [vmem:[%s15460_s26 + $0x708] sm:$0xff]  ;;  %v6932_v1 = vld [vmem:[%s15460_s26 + $0x300] sm:$0xff] }
0x22e4   : > { %7653 = vmatprep.subr.mxu0 %v6857_v2  ;;  %7724 = vmatprep.subr.mxu1 %v6985_v56  ;;  %v7060_v2 = vld [vmem:[%s15460_s26 + $0x700] sm:$0xff]  ;;  %v6929_v56 = vld [vmem:[%s15460_s26 + $0x2e8] sm:$0xff] }
0x22e5   : > { %7654 = vmatpush1.msra.mxu0 %v6856_v57  ;;  %7725 = vmatpush1.msra.mxu1 %v6984_v9  ;;  %v7057_v57 = vld [vmem:[%s15460_s26 + $0x6e8] sm:$0xff]  ;;  %v6928_v9 = vld [vmem:[%s15460_s26 + $0x2e0] sm:$0xff] }
0x22e6   : > { %7655 = vmatprep.subr.mxu0 %v6853_v10  ;;  %7726 = vmatprep.subr.mxu1 %v6981_v17  ;;  %v7056_v10 = vld [vmem:[%s15460_s26 + $0x6e0] sm:$0xff]  ;;  %v6925_v17 = vld [vmem:[%s15460_s26 + $0x2c8] sm:$0xff] }
0x22e7   : > { %7656 = vmatpush1.msra.mxu0 %v6852_v18  ;;  %7727 = vmatpush1.msra.mxu1 %v6980_v30  ;;  %v7053_v18 = vld [vmem:[%s15460_s26 + $0x6c8] sm:$0xff]  ;;  %v6924_v30 = vld [vmem:[%s15460_s26 + $0x2c0] sm:$0xff] }
0x22e8   : > { %7657 = vmatprep.subr.mxu0 %v6849_v31  ;;  %7728 = vmatprep.subr.mxu1 %v6977_v46  ;;  %v7052_v31 = vld [vmem:[%s15460_s26 + $0x6c0] sm:$0xff]  ;;  %v6921_v46 = vld [vmem:[%s15460_s26 + $0x2a8] sm:$0xff] }
0x22e9   : > { %7658 = vmatpush1.msra.mxu0 %v6848_v47  ;;  %7729 = vmatpush1.msra.mxu1 %v6976_v54  ;;  %v7049_v47 = vld [vmem:[%s15460_s26 + $0x6a8] sm:$0xff]  ;;  %v6920_v54 = vld [vmem:[%s15460_s26 + $0x2a0] sm:$0xff] }
0x22ea   : > { %7659 = vmatprep.subr.mxu0 %v6845_v55  ;;  %7730 = vmatprep.subr.mxu1 %v6973_v62  ;;  %v7048_v55 = vld [vmem:[%s15460_s26 + $0x6a0] sm:$0xff]  ;;  %v6917_v62 = vld [vmem:[%s15460_s26 + $0x288] sm:$0xff] }
0x22eb   : > { %7660 = vmatpush1.msra.mxu0 %v6844_v63  ;;  %7731 = vmatpush1.msra.mxu1 %v6972_v15  ;;  %v7045_v63 = vld [vmem:[%s15460_s26 + $0x688] sm:$0xff]  ;;  %v6916_v15 = vld [vmem:[%s15460_s26 + $0x280] sm:$0xff] }
0x22ec   : > { %7661 = vmatprep.subr.mxu0 %v6841_v16  ;;  %7732 = vmatprep.subr.mxu1 %v6969_v25  ;;  %v7044_v16 = vld [vmem:[%s15460_s26 + $0x680] sm:$0xff]  ;;  %v6913_v25 = vld [vmem:[%s15460_s26 + $0x268] sm:$0xff] }
0x22ed   : > { %7662 = vmatpush1.msra.mxu0 %v6840_v28  ;;  %7733 = vmatpush1.msra.mxu1 %v6968_v27  ;;  %v7041_v28 = vld [vmem:[%s15460_s26 + $0x668] sm:$0xff]  ;;  %v6912_v27 = vld [vmem:[%s15460_s26 + $0x260] sm:$0xff] }
0x22ee   : > { %7663 = vmatprep.subr.mxu0 %v6837_v7  ;;  %7734 = vmatprep.subr.mxu1 %v6965_v51  ;;  %v7040_v7 = vld [vmem:[%s15460_s26 + $0x660] sm:$0xff]  ;;  %v6909_v51 = vld [vmem:[%s15460_s26 + $0x248] sm:$0xff] }
0x22ef   : > { %7664 = vmatpush1.msra.mxu0 %v6836_v21  ;;  %7735 = vmatpush1.msra.mxu1 %v6964_v14  ;;  %v7037_v21 = vld [vmem:[%s15460_s26 + $0x648] sm:$0xff]  ;;  %v6908_v14 = vld [vmem:[%s15460_s26 + $0x240] sm:$0xff] }
0x22f0   : > { %7665 = vmatprep.subr.mxu0 %v6961_v22  ;;  %7736 = vmatprep.subr.mxu1 %v7089_v36  ;;  %v7036_v22 = vld [vmem:[%s15460_s26 + $0x640] sm:$0xff]  ;;  %v6905_v36 = vld [vmem:[%s15460_s26 + $0x228] sm:$0xff] }
0x22f1   : > { %7666 = vmatpush2.msra.mxu0 %v6960_v6  ;;  %7737 = vmatpush2.msra.mxu1 %v7088_v8  ;;  %v7033_v6 = vld [vmem:[%s15460_s26 + $0x628] sm:$0xff]  ;;  %v6904_v8 = vld [vmem:[%s15460_s26 + $0x220] sm:$0xff] }
0x22f2   : > { %7667 = vmatprep.subr.mxu0 %v6957_v4  ;;  %7738 = vmatprep.subr.mxu1 %v7085_v45  ;;  %v7032_v4 = vld [vmem:[%s15460_s26 + $0x620] sm:$0xff]  ;;  %v6901_v45 = vld [vmem:[%s15460_s26 + $0x208] sm:$0xff] }
0x22f3   : > { %7668 = vmatpush2.msra.mxu0 %v6956_v0  ;;  %7739 = vmatpush2.msra.mxu1 %v7084_v60  ;;  %v7029_v0 = vld [vmem:[%s15460_s26 + $0x608] sm:$0xff]  ;;  %v6900_v60 = vld [vmem:[%s15460_s26 + $0x200] sm:$0xff] }
0x22f4   : > { %7669 = vmatprep.subr.mxu0 %v6953_v61  ;;  %7740 = vmatprep.subr.mxu1 %v7081_v33  ;;  %v7028_v61 = vld [vmem:[%s15460_s26 + $0x600] sm:$0xff]  ;;  %v14893_v33 = vmul.f32 %v14615_v20, %v14615_v20  ;;  %v7026_v20 = vld [vmem:[%s15460_s26 + $0x5f0] sm:$0xff] }
0x22f5   : > { %7670 = vmatpush2.msra.mxu0 %v6952_v37  ;;  %7741 = vmatpush2.msra.mxu1 %v7080_v41  ;;  %v14897_v37 = vmul.f32 %v14617_v23, %v14617_v23  ;;  %v6899_v41 = vld [vmem:[%s15460_s26 + $0x1f8] sm:$0xff] }
0x22f6   : > { %7671 = vmatprep.subr.mxu0 %v6949_v44  ;;  %7742 = vmatprep.subr.mxu1 %v7077_v38  ;;  %v7027_v44 = vld [vmem:[%s15460_s26 + $0x5f8] sm:$0xff]  ;;  %v6898_v38 = vld [vmem:[%s15460_s26 + $0x1f0] sm:$0xff] }
0x22f7   : > { %7672 = vmatpush2.msra.mxu0 %v6948_v39  ;;  %7743 = vmatpush2.msra.mxu1 %v7076_v35  ;;  %v6895_v39 = vld [vmem:[%s15460_s26 + $0x1d8] sm:$0xff]  ;;  %v6894_v35 = vld [vmem:[%s15460_s26 + $0x1d0] sm:$0xff] }
0x22f8   : > { %7673 = vmatprep.subr.mxu0 %v6945_v49  ;;  %7744 = vmatprep.subr.mxu1 %v7073_v12  ;;  %v7023_v23 = vld [vmem:[%s15460_s26 + $0x5d8] sm:$0xff]  ;;  %v7022_v49 = vld [vmem:[%s15460_s26 + $0x5d0] sm:$0xff] }
0x22f9   : > { %7674 = vmatpush2.msra.mxu0 %v6944_v11  ;;  %7745 = vmatpush2.msra.mxu1 %v7072_v52  ;;  %v6891_v12 = vld [vmem:[%s15460_s26 + $0x1b8] sm:$0xff]  ;;  %v6890_v52 = vld [vmem:[%s15460_s26 + $0x1b0] sm:$0xff] }
0x22fa   : > { %7675 = vmatprep.subr.mxu0 %v6941_v59  ;;  %7746 = vmatprep.subr.mxu1 %v7069_v53  ;;  %v7019_v11 = vld [vmem:[%s15460_s26 + $0x5b8] sm:$0xff]  ;;  %v7018_v59 = vld [vmem:[%s15460_s26 + $0x5b0] sm:$0xff] }
0x22fb   : > { %7676 = vmatpush2.msra.mxu0 %v6940_v42  ;;  %7747 = vmatpush2.msra.mxu1 %v7068_v43  ;;  %v7015_v53 = vld [vmem:[%s15460_s26 + $0x598] sm:$0xff]  ;;  %v6886_v42 = vld [vmem:[%s15460_s26 + $0x190] sm:$0xff] }
0x22fc   : > { %7677 = vmatprep.subr.mxu0 %v6937_v58  ;;  %7748 = vmatprep.subr.mxu1 %v7065_v34  ;;  %v6883_v43 = vld [vmem:[%s15460_s26 + $0x178] sm:$0xff]  ;;  %v6882_v34 = vld [vmem:[%s15460_s26 + $0x170] sm:$0xff] }
0x22fd   : > { %7678 = vmatpush2.msra.mxu0 %v6936_v19  ;;  %7749 = vmatpush2.msra.mxu1 %v7064_v50  ;;  %v7011_v58 = vld [vmem:[%s15460_s26 + $0x578] sm:$0xff]  ;;  %v7010_v19 = vld [vmem:[%s15460_s26 + $0x570] sm:$0xff] }
0x22fe   : > { %7679 = vmatprep.subr.mxu0 %v6933_v29  ;;  %7750 = vmatprep.subr.mxu1 %v7061_v3  ;;  %v6879_v50 = vld [vmem:[%s15460_s26 + $0x158] sm:$0xff]  ;;  %v6878_v3 = vld [vmem:[%s15460_s26 + $0x150] sm:$0xff] }
0x22ff   : > { %7680 = vmatpush2.msra.mxu0 %v6932_v1  ;;  %7751 = vmatpush2.msra.mxu1 %v7060_v2  ;;  %v7007_v29 = vld [vmem:[%s15460_s26 + $0x558] sm:$0xff]  ;;  %v7006_v1 = vld [vmem:[%s15460_s26 + $0x550] sm:$0xff] }
0x2300   : > { %7681 = vmatprep.subr.mxu0 %v6929_v56  ;;  %7752 = vmatprep.subr.mxu1 %v7057_v57  ;;  %v6875_v2 = vld [vmem:[%s15460_s26 + $0x138] sm:$0xff]  ;;  %v6874_v57 = vld [vmem:[%s15460_s26 + $0x130] sm:$0xff] }
0x2301   : > { %7682 = vmatpush2.msra.mxu0 %v6928_v9  ;;  %7753 = vmatpush2.msra.mxu1 %v7056_v10  ;;  %v7003_v56 = vld [vmem:[%s15460_s26 + $0x538] sm:$0xff]  ;;  %v7002_v9 = vld [vmem:[%s15460_s26 + $0x530] sm:$0xff] }
0x2302   : > { %7683 = vmatprep.subr.mxu0 %v6925_v17  ;;  %7754 = vmatprep.subr.mxu1 %v7053_v18  ;;  %v6871_v10 = vld [vmem:[%s15460_s26 + $0x118] sm:$0xff]  ;;  %v6870_v18 = vld [vmem:[%s15460_s26 + $0x110] sm:$0xff] }
0x2303   : > { %7684 = vmatpush2.msra.mxu0 %v6924_v30  ;;  %7755 = vmatpush2.msra.mxu1 %v7052_v31  ;;  %v6999_v17 = vld [vmem:[%s15460_s26 + $0x518] sm:$0xff]  ;;  %v6998_v30 = vld [vmem:[%s15460_s26 + $0x510] sm:$0xff] }
0x2304   : > { %7685 = vmatprep.subr.mxu0 %v6921_v46  ;;  %7756 = vmatprep.subr.mxu1 %v7049_v47  ;;  %v6867_v31 = vld [vmem:[%s15460_s26 + $0xf8] sm:$0xff]  ;;  %v6866_v47 = vld [vmem:[%s15460_s26 + $0xf0] sm:$0xff] }
0x2305   : > { %7686 = vmatpush2.msra.mxu0 %v6920_v54  ;;  %7757 = vmatpush2.msra.mxu1 %v7048_v55  ;;  %v6995_v46 = vld [vmem:[%s15460_s26 + $0x4f8] sm:$0xff]  ;;  %v6994_v54 = vld [vmem:[%s15460_s26 + $0x4f0] sm:$0xff] }
0x2306   : > { %7687 = vmatprep.subr.mxu0 %v6917_v62  ;;  %7758 = vmatprep.subr.mxu1 %v7045_v63  ;;  %v6863_v55 = vld [vmem:[%s15460_s26 + $0xd8] sm:$0xff]  ;;  %v6862_v63 = vld [vmem:[%s15460_s26 + $0xd0] sm:$0xff] }
0x2307   : > { %7688 = vmatpush2.msra.mxu0 %v6916_v15  ;;  %7759 = vmatpush2.msra.mxu1 %v7044_v16  ;;  %v6991_v62 = vld [vmem:[%s15460_s26 + $0x4d8] sm:$0xff]  ;;  %v6990_v15 = vld [vmem:[%s15460_s26 + $0x4d0] sm:$0xff] }
0x2308   : > { %7689 = vmatprep.subr.mxu0 %v6913_v25  ;;  %7760 = vmatprep.subr.mxu1 %v7041_v28  ;;  %v6859_v16 = vld [vmem:[%s15460_s26 + $0xb8] sm:$0xff]  ;;  %v6858_v28 = vld [vmem:[%s15460_s26 + $0xb0] sm:$0xff] }
0x2309   : > { %7690 = vmatpush2.msra.mxu0 %v6912_v27  ;;  %7761 = vmatpush2.msra.mxu1 %v7040_v7  ;;  %v6987_v25 = vld [vmem:[%s15460_s26 + $0x4b8] sm:$0xff]  ;;  %v6986_v27 = vld [vmem:[%s15460_s26 + $0x4b0] sm:$0xff] }
0x230a   : > { %7691 = vmatprep.subr.mxu0 %v6909_v51  ;;  %7762 = vmatprep.subr.mxu1 %v7037_v21  ;;  %v6855_v7 = vld [vmem:[%s15460_s26 + $0x98] sm:$0xff]  ;;  %v6854_v21 = vld [vmem:[%s15460_s26 + $0x90] sm:$0xff] }
0x230b   : > { %7692 = vmatpush2.msra.mxu0 %v6908_v14  ;;  %7763 = vmatpush2.msra.mxu1 %v7036_v22  ;;  %v6983_v51 = vld [vmem:[%s15460_s26 + $0x498] sm:$0xff]  ;;  %v6982_v14 = vld [vmem:[%s15460_s26 + $0x490] sm:$0xff] }
0x230c   : > { %7693 = vmatprep.subr.mxu0 %v6905_v36  ;;  %7764 = vmatprep.subr.mxu1 %v7033_v6  ;;  %v6851_v22 = vld [vmem:[%s15460_s26 + $0x78] sm:$0xff]  ;;  %v6850_v6 = vld [vmem:[%s15460_s26 + $0x70] sm:$0xff] }
0x230d   : > { %7694 = vmatpush2.msra.mxu0 %v6904_v8  ;;  %7765 = vmatpush2.msra.mxu1 %v7032_v4  ;;  %v6979_v36 = vld [vmem:[%s15460_s26 + $0x478] sm:$0xff]  ;;  %v6978_v8 = vld [vmem:[%s15460_s26 + $0x470] sm:$0xff] }
0x230e   : > { %7695 = vmatprep.subr.mxu0 %v6901_v45  ;;  %7766 = vmatprep.subr.mxu1 %v7029_v0  ;;  %v6847_v4 = vld [vmem:[%s15460_s26 + $0x58] sm:$0xff]  ;;  %v6846_v0 = vld [vmem:[%s15460_s26 + $0x50] sm:$0xff] }
0x230f   : > { %7696 = vmatpush2.msra.mxu0 %v6900_v60  ;;  %7767 = vmatpush2.msra.mxu1 %v7028_v61  ;;  %v6975_v45 = vld [vmem:[%s15460_s26 + $0x458] sm:$0xff]  ;;  %v6974_v60 = vld [vmem:[%s15460_s26 + $0x450] sm:$0xff] }
0x2310   : > { %7698 = vmatmul.mubr.f32.vlgmr.msra.gmra.mxu0 %v14893_v33  ;;  %7769 = vmatmul.mubr.f32.vlgmr.msra.gmra.mxu1 %v14897_v37  ;;  %v6843_v61 = vld [vmem:[%s15460_s26 + $0x38] sm:$0xff] }
0x2311   : > { %7775 = vmatprep.subr.mxu0 %v6899_v41  ;;  %7846 = vmatprep.subr.mxu1 %v7027_v44  ;;  %v6971_v41 = vld [vmem:[%s15460_s26 + $0x438] sm:$0xff]  ;;  %v6842_v44 = vld [vmem:[%s15460_s26 + $0x30] sm:$0xff] }
0x2312   : > { %7776 = vmatpush1.msra.mxu0 %v6898_v38  ;;  %7839 = vmatprep.mubr.f32.mxu0 %v14758_v24  ;;  %v6887_v24 = vld [vmem:[%s15460_s26 + $0x198] sm:$0xff]  ;;  %v6970_v38 = vld [vmem:[%s15460_s26 + $0x430] sm:$0xff] }
0x2313   : > { %7847 = vmatpush1.msra.mxu1 %v7026_v20  ;;  %7910 = vmatprep.mubr.f32.mxu1 %v14763_v32  ;;  %v7014_v32 = vld [vmem:[%s15460_s26 + $0x590] sm:$0xff]  ;;  %v6839_v20 = vld [vmem:[%s15460_s26 + $0x18] sm:$0xff] }
0x2314   : > { %7777 = vmatprep.subr.mxu0 %v6895_v39  ;;  %7848 = vmatprep.subr.mxu1 %v7023_v23  ;;  %v6967_v39 = vld [vmem:[%s15460_s26 + $0x418] sm:$0xff]  ;;  %v6838_v23 = vld [vmem:[%s15460_s26 + $0x10] sm:$0xff] }
0x2315   : > { %7778 = vmatpush1.msra.mxu0 %v6894_v35  ;;  %7849 = vmatpush1.msra.mxu1 %v7022_v49  ;;  %v6966_v35 = vld [vmem:[%s15460_s26 + $0x410] sm:$0xff]  ;;  %v6963_v49 = vld [vmem:[%s15460_s26 + $0x3f8] sm:$0xff] }
0x2316   : > { %7779 = vmatprep.subr.mxu0 %v6891_v12  ;;  %7850 = vmatprep.subr.mxu1 %v7019_v11  ;;  %v7091_v12 = vld [vmem:[%s15460_s26 + $0x7f8] sm:$0xff]  ;;  %v6962_v11 = vld [vmem:[%s15460_s26 + $0x3f0] sm:$0xff] }
0x2317   : > { %7780 = vmatpush1.msra.mxu0 %v6890_v52  ;;  %7851 = vmatpush1.msra.mxu1 %v7018_v59  ;;  %v7090_v52 = vld [vmem:[%s15460_s26 + $0x7f0] sm:$0xff]  ;;  %v6959_v59 = vld [vmem:[%s15460_s26 + $0x3d8] sm:$0xff] }
0x2318   : > { %7781 = vmatprep.subr.mxu0 %v6887_v24  ;;  %7852 = vmatprep.subr.mxu1 %v7015_v53  ;;  %v7087_v24 = vld [vmem:[%s15460_s26 + $0x7d8] sm:$0xff]  ;;  %v6958_v53 = vld [vmem:[%s15460_s26 + $0x3d0] sm:$0xff] }
0x2319   : > { %7782 = vmatpush1.msra.mxu0 %v6886_v42  ;;  %7853 = vmatpush1.msra.mxu1 %v7014_v32  ;;  %v7086_v42 = vld [vmem:[%s15460_s26 + $0x7d0] sm:$0xff]  ;;  %v6955_v32 = vld [vmem:[%s15460_s26 + $0x3b8] sm:$0xff] }
0x231a   : > { %7783 = vmatprep.subr.mxu0 %v6883_v43  ;;  %7854 = vmatprep.subr.mxu1 %v7011_v58  ;;  %v7083_v43 = vld [vmem:[%s15460_s26 + $0x7b8] sm:$0xff]  ;;  %v6954_v58 = vld [vmem:[%s15460_s26 + $0x3b0] sm:$0xff] }
0x231b   : > { %7784 = vmatpush1.msra.mxu0 %v6882_v34  ;;  %7855 = vmatpush1.msra.mxu1 %v7010_v19  ;;  %v7082_v34 = vld [vmem:[%s15460_s26 + $0x7b0] sm:$0xff]  ;;  %v6951_v19 = vld [vmem:[%s15460_s26 + $0x398] sm:$0xff] }
0x231c   : > { %7785 = vmatprep.subr.mxu0 %v6879_v50  ;;  %7856 = vmatprep.subr.mxu1 %v7007_v29  ;;  %v7079_v50 = vld [vmem:[%s15460_s26 + $0x798] sm:$0xff]  ;;  %v6950_v29 = vld [vmem:[%s15460_s26 + $0x390] sm:$0xff] }
0x231d   : > { %7786 = vmatpush1.msra.mxu0 %v6878_v3  ;;  %7857 = vmatpush1.msra.mxu1 %v7006_v1  ;;  %v7078_v3 = vld [vmem:[%s15460_s26 + $0x790] sm:$0xff]  ;;  %v6947_v1 = vld [vmem:[%s15460_s26 + $0x378] sm:$0xff] }
0x231e   : > { %7787 = vmatprep.subr.mxu0 %v6875_v2  ;;  %7858 = vmatprep.subr.mxu1 %v7003_v56  ;;  %v7075_v2 = vld [vmem:[%s15460_s26 + $0x778] sm:$0xff]  ;;  %v6946_v56 = vld [vmem:[%s15460_s26 + $0x370] sm:$0xff] }
0x231f   : > { %7788 = vmatpush1.msra.mxu0 %v6874_v57  ;;  %7859 = vmatpush1.msra.mxu1 %v7002_v9  ;;  %v7074_v57 = vld [vmem:[%s15460_s26 + $0x770] sm:$0xff]  ;;  %v6943_v9 = vld [vmem:[%s15460_s26 + $0x358] sm:$0xff] }
0x2320   : > { %7789 = vmatprep.subr.mxu0 %v6871_v10  ;;  %7860 = vmatprep.subr.mxu1 %v6999_v17  ;;  %v7071_v10 = vld [vmem:[%s15460_s26 + $0x758] sm:$0xff]  ;;  %v6942_v17 = vld [vmem:[%s15460_s26 + $0x350] sm:$0xff] }
0x2321   : > { %7790 = vmatpush1.msra.mxu0 %v6870_v18  ;;  %7861 = vmatpush1.msra.mxu1 %v6998_v30  ;;  %v7070_v18 = vld [vmem:[%s15460_s26 + $0x750] sm:$0xff]  ;;  %v6939_v30 = vld [vmem:[%s15460_s26 + $0x338] sm:$0xff] }
0x2322   : > { %7791 = vmatprep.subr.mxu0 %v6867_v31  ;;  %7862 = vmatprep.subr.mxu1 %v6995_v46  ;;  %v7067_v31 = vld [vmem:[%s15460_s26 + $0x738] sm:$0xff]  ;;  %v6938_v46 = vld [vmem:[%s15460_s26 + $0x330] sm:$0xff] }
0x2323   : > { %7792 = vmatpush1.msra.mxu0 %v6866_v47  ;;  %7863 = vmatpush1.msra.mxu1 %v6994_v54  ;;  %v7066_v47 = vld [vmem:[%s15460_s26 + $0x730] sm:$0xff]  ;;  %v6935_v54 = vld [vmem:[%s15460_s26 + $0x318] sm:$0xff] }
0x2324   : > { %7793 = vmatprep.subr.mxu0 %v6863_v55  ;;  %7864 = vmatprep.subr.mxu1 %v6991_v62  ;;  %v7063_v55 = vld [vmem:[%s15460_s26 + $0x718] sm:$0xff]  ;;  %v6934_v62 = vld [vmem:[%s15460_s26 + $0x310] sm:$0xff] }
0x2325   : > { %7794 = vmatpush1.msra.mxu0 %v6862_v63  ;;  %7865 = vmatpush1.msra.mxu1 %v6990_v15  ;;  %v7062_v63 = vld [vmem:[%s15460_s26 + $0x710] sm:$0xff]  ;;  %v6931_v15 = vld [vmem:[%s15460_s26 + $0x2f8] sm:$0xff] }
0x2326   : > { %7795 = vmatprep.subr.mxu0 %v6859_v16  ;;  %7866 = vmatprep.subr.mxu1 %v6987_v25  ;;  %v7059_v16 = vld [vmem:[%s15460_s26 + $0x6f8] sm:$0xff]  ;;  %v6930_v25 = vld [vmem:[%s15460_s26 + $0x2f0] sm:$0xff] }
0x2327   : > { %7796 = vmatpush1.msra.mxu0 %v6858_v28  ;;  %7867 = vmatpush1.msra.mxu1 %v6986_v27  ;;  %v7058_v28 = vld [vmem:[%s15460_s26 + $0x6f0] sm:$0xff]  ;;  %v6927_v27 = vld [vmem:[%s15460_s26 + $0x2d8] sm:$0xff] }
0x2328   : > { %7797 = vmatprep.subr.mxu0 %v6855_v7  ;;  %7868 = vmatprep.subr.mxu1 %v6983_v51  ;;  %v7055_v7 = vld [vmem:[%s15460_s26 + $0x6d8] sm:$0xff]  ;;  %v6926_v51 = vld [vmem:[%s15460_s26 + $0x2d0] sm:$0xff] }
0x2329   : > { %7798 = vmatpush1.msra.mxu0 %v6854_v21  ;;  %7869 = vmatpush1.msra.mxu1 %v6982_v14  ;;  %v7054_v21 = vld [vmem:[%s15460_s26 + $0x6d0] sm:$0xff]  ;;  %v6923_v14 = vld [vmem:[%s15460_s26 + $0x2b8] sm:$0xff] }
0x232a   : > { %7799 = vmatprep.subr.mxu0 %v6851_v22  ;;  %7870 = vmatprep.subr.mxu1 %v6979_v36  ;;  %v7051_v22 = vld [vmem:[%s15460_s26 + $0x6b8] sm:$0xff]  ;;  %v6922_v36 = vld [vmem:[%s15460_s26 + $0x2b0] sm:$0xff] }
0x232b   : > { %7800 = vmatpush1.msra.mxu0 %v6850_v6  ;;  %7871 = vmatpush1.msra.mxu1 %v6978_v8  ;;  %v7050_v6 = vld [vmem:[%s15460_s26 + $0x6b0] sm:$0xff]  ;;  %v6919_v8 = vld [vmem:[%s15460_s26 + $0x298] sm:$0xff] }
0x232c   : > { %7801 = vmatprep.subr.mxu0 %v6847_v4  ;;  %7872 = vmatprep.subr.mxu1 %v6975_v45  ;;  %v7047_v4 = vld [vmem:[%s15460_s26 + $0x698] sm:$0xff]  ;;  %v6918_v45 = vld [vmem:[%s15460_s26 + $0x290] sm:$0xff] }
0x232d   : > { %7802 = vmatpush1.msra.mxu0 %v6846_v0  ;;  %7873 = vmatpush1.msra.mxu1 %v6974_v60  ;;  %v7046_v0 = vld [vmem:[%s15460_s26 + $0x690] sm:$0xff]  ;;  %v6915_v60 = vld [vmem:[%s15460_s26 + $0x278] sm:$0xff] }
0x232e   : > { %7803 = vmatprep.subr.mxu0 %v6843_v61  ;;  %7874 = vmatprep.subr.mxu1 %v6971_v41  ;;  %v7043_v61 = vld [vmem:[%s15460_s26 + $0x678] sm:$0xff]  ;;  %v6914_v41 = vld [vmem:[%s15460_s26 + $0x270] sm:$0xff] }
0x232f   : > { %7804 = vmatpush1.msra.mxu0 %v6842_v44  ;;  %7875 = vmatpush1.msra.mxu1 %v6970_v38  ;;  %v7042_v44 = vld [vmem:[%s15460_s26 + $0x670] sm:$0xff]  ;;  %v6911_v38 = vld [vmem:[%s15460_s26 + $0x258] sm:$0xff] }
0x2330   : > { %7805 = vmatprep.subr.mxu0 %v6839_v20  ;;  %7876 = vmatprep.subr.mxu1 %v6967_v39  ;;  %v7039_v20 = vld [vmem:[%s15460_s26 + $0x658] sm:$0xff]  ;;  %v6910_v39 = vld [vmem:[%s15460_s26 + $0x250] sm:$0xff] }
0x2331   : > { %7806 = vmatpush1.msra.mxu0 %v6838_v23  ;;  %7877 = vmatpush1.msra.mxu1 %v6966_v35  ;;  %v7038_v23 = vld [vmem:[%s15460_s26 + $0x650] sm:$0xff]  ;;  %v6907_v35 = vld [vmem:[%s15460_s26 + $0x238] sm:$0xff] }
0x2332   : > { %7807 = vmatprep.subr.mxu0 %v6963_v49  ;;  %7878 = vmatprep.subr.mxu1 %v7091_v12  ;;  %v7035_v49 = vld [vmem:[%s15460_s26 + $0x638] sm:$0xff]  ;;  %v6906_v12 = vld [vmem:[%s15460_s26 + $0x230] sm:$0xff] }
0x2333   : > { %7808 = vmatpush2.msra.mxu0 %v6962_v11  ;;  %7879 = vmatpush2.msra.mxu1 %v7090_v52  ;;  %v7034_v11 = vld [vmem:[%s15460_s26 + $0x630] sm:$0xff]  ;;  %v6903_v52 = vld [vmem:[%s15460_s26 + $0x218] sm:$0xff] }
0x2334   : > { %7809 = vmatprep.subr.mxu0 %v6959_v59  ;;  %7880 = vmatprep.subr.mxu1 %v7087_v24  ;;  %v7031_v59 = vld [vmem:[%s15460_s26 + $0x618] sm:$0xff]  ;;  %v6902_v24 = vld [vmem:[%s15460_s26 + $0x210] sm:$0xff] }
0x2335   : > { %7810 = vmatpush2.msra.mxu0 %v6958_v53  ;;  %7881 = vmatpush2.msra.mxu1 %v7086_v42  ;;  %v7030_v53 = vld [vmem:[%s15460_s26 + $0x610] sm:$0xff]  ;;  %v9509_v42 = vld [vmem:[%s12820_s29 + $0x2f8] sm:$0xff] }
0x2336   : > { %7811 = vmatprep.subr.mxu0 %v6955_v32  ;;  %7882 = vmatprep.subr.mxu1 %v7083_v43  ;;  %v9493_v32 = vld [vmem:[%s12820_s29 + $0x278] sm:$0xff]  ;;  %v9508_v43 = vld [vmem:[%s12820_s29 + $0x2f0] sm:$0xff] }
0x2337   : > { %7812 = vmatpush2.msra.mxu0 %v6954_v58  ;;  %7883 = vmatpush2.msra.mxu1 %v7082_v34  ;;  %v9492_v58 = vld [vmem:[%s12820_s29 + $0x270] sm:$0xff]  ;;  %v9507_v34 = vld [vmem:[%s12820_s29 + $0x2e8] sm:$0xff] }
0x2338   : > { %7813 = vmatprep.subr.mxu0 %v6951_v19  ;;  %7884 = vmatprep.subr.mxu1 %v7079_v50  ;;  %v9491_v19 = vld [vmem:[%s12820_s29 + $0x268] sm:$0xff]  ;;  %v9506_v50 = vld [vmem:[%s12820_s29 + $0x2e0] sm:$0xff] }
0x2339   : > { %7814 = vmatpush2.msra.mxu0 %v6950_v29  ;;  %7885 = vmatpush2.msra.mxu1 %v7078_v3  ;;  %v9490_v29 = vld [vmem:[%s12820_s29 + $0x260] sm:$0xff]  ;;  %v9504_v3 = vld [vmem:[%s12820_s29 + $0x2d0] sm:$0xff] }
0x233a   : > { %7815 = vmatprep.subr.mxu0 %v6947_v1  ;;  %7886 = vmatprep.subr.mxu1 %v7075_v2  ;;  %v9488_v1 = vld [vmem:[%s12820_s29 + $0x250] sm:$0xff]  ;;  %v9503_v2 = vld [vmem:[%s12820_s29 + $0x2c8] sm:$0xff] }
0x233b   : > { %7816 = vmatpush2.msra.mxu0 %v6946_v56  ;;  %7887 = vmatpush2.msra.mxu1 %v7074_v57  ;;  %v9487_v56 = vld [vmem:[%s12820_s29 + $0x248] sm:$0xff]  ;;  %v9502_v57 = vld [vmem:[%s12820_s29 + $0x2c0] sm:$0xff] }
0x233c   : > { %7817 = vmatprep.subr.mxu0 %v6943_v9  ;;  %7888 = vmatprep.subr.mxu1 %v7071_v10  ;;  %v9486_v9 = vld [vmem:[%s12820_s29 + $0x240] sm:$0xff]  ;;  %v9501_v10 = vld [vmem:[%s12820_s29 + $0x2b8] sm:$0xff] }
0x233d   : > { %7818 = vmatpush2.msra.mxu0 %v6942_v17  ;;  %7889 = vmatpush2.msra.mxu1 %v7070_v18  ;;  %v9485_v17 = vld [vmem:[%s12820_s29 + $0x238] sm:$0xff]  ;;  %v9500_v18 = vld [vmem:[%s12820_s29 + $0x2b0] sm:$0xff] }
0x233e   : > { %7819 = vmatprep.subr.mxu0 %v6939_v30  ;;  %7890 = vmatprep.subr.mxu1 %v7067_v31  ;;  %v9484_v30 = vld [vmem:[%s12820_s29 + $0x230] sm:$0xff]  ;;  %v9499_v31 = vld [vmem:[%s12820_s29 + $0x2a8] sm:$0xff] }
0x233f   : > { %7820 = vmatpush2.msra.mxu0 %v6938_v46  ;;  %7891 = vmatpush2.msra.mxu1 %v7066_v47  ;;  %v9483_v46 = vld [vmem:[%s12820_s29 + $0x228] sm:$0xff]  ;;  %v9498_v47 = vld [vmem:[%s12820_s29 + $0x2a0] sm:$0xff] }
0x2340   : > { %7821 = vmatprep.subr.mxu0 %v6935_v54  ;;  %7892 = vmatprep.subr.mxu1 %v7063_v55  ;;  %v9482_v54 = vld [vmem:[%s12820_s29 + $0x220] sm:$0xff]  ;;  %v9497_v55 = vld [vmem:[%s12820_s29 + $0x298] sm:$0xff] }
0x2341   : > { %7822 = vmatpush2.msra.mxu0 %v6934_v62  ;;  %7893 = vmatpush2.msra.mxu1 %v7062_v63  ;;  %v9481_v62 = vld [vmem:[%s12820_s29 + $0x218] sm:$0xff]  ;;  %v9496_v63 = vld [vmem:[%s12820_s29 + $0x290] sm:$0xff] }
0x2342   : > { %7823 = vmatprep.subr.mxu0 %v6931_v15  ;;  %7894 = vmatprep.subr.mxu1 %v7059_v16  ;;  %v9480_v15 = vld [vmem:[%s12820_s29 + $0x210] sm:$0xff]  ;;  %v9495_v16 = vld [vmem:[%s12820_s29 + $0x288] sm:$0xff] }
0x2343   : > { %7824 = vmatpush2.msra.mxu0 %v6930_v25  ;;  %7895 = vmatpush2.msra.mxu1 %v7058_v28  ;;  %v9479_v25 = vld [vmem:[%s12820_s29 + $0x208] sm:$0xff]  ;;  %v9494_v28 = vld [vmem:[%s12820_s29 + $0x280] sm:$0xff] }
0x2344   : > { %7825 = vmatprep.subr.mxu0 %v6927_v27  ;;  %7896 = vmatprep.subr.mxu1 %v7055_v7  ;;  %v9478_v27 = vld [vmem:[%s12820_s29 + $0x200] sm:$0xff]  ;;  %v7982_v7 = vld [vmem:[%s12820_s29 + $0xf8] sm:$0xff] }
0x2345   : > { %7826 = vmatpush2.msra.mxu0 %v6926_v51  ;;  %7897 = vmatpush2.msra.mxu1 %v7054_v21  ;;  %v9541_v51 = vld [vmem:[%s12820_s29 + $0x3f8] sm:$0xff] }
0x2346   : > { %7827 = vmatprep.subr.mxu0 %v6923_v14  ;;  %7898 = vmatprep.subr.mxu1 %v7051_v22  ;;  %v9525_v21 = vld [vmem:[%s12820_s29 + $0x378] sm:$0xff]  ;;  %v9540_v14 = vld [vmem:[%s12820_s29 + $0x3f0] sm:$0xff] }
0x2347   : > { %7828 = vmatpush2.msra.mxu0 %v6922_v36  ;;  %7899 = vmatpush2.msra.mxu1 %v7050_v6  ;;  %v9524_v22 = vld [vmem:[%s12820_s29 + $0x370] sm:$0xff]  ;;  %v9539_v36 = vld [vmem:[%s12820_s29 + $0x3e8] sm:$0xff] }
0x2348   : > { %7829 = vmatprep.subr.mxu0 %v6919_v8  ;;  %7900 = vmatprep.subr.mxu1 %v7047_v4  ;;  %v9523_v6 = vld [vmem:[%s12820_s29 + $0x368] sm:$0xff]  ;;  %v9538_v8 = vld [vmem:[%s12820_s29 + $0x3e0] sm:$0xff] }
0x2349   : > { %7830 = vmatpush2.msra.mxu0 %v6918_v45  ;;  %7901 = vmatpush2.msra.mxu1 %v7046_v0  ;;  %v9522_v4 = vld [vmem:[%s12820_s29 + $0x360] sm:$0xff]  ;;  %v9537_v45 = vld [vmem:[%s12820_s29 + $0x3d8] sm:$0xff] }
0x234a   : > { %7831 = vmatprep.subr.mxu0 %v6915_v60  ;;  %7902 = vmatprep.subr.mxu1 %v7043_v61  ;;  %v9521_v0 = vld [vmem:[%s12820_s29 + $0x358] sm:$0xff]  ;;  %v9536_v60 = vld [vmem:[%s12820_s29 + $0x3d0] sm:$0xff] }
0x234b   : > { %7832 = vmatpush2.msra.mxu0 %v6914_v41  ;;  %7903 = vmatpush2.msra.mxu1 %v7042_v44  ;;  %v9520_v61 = vld [vmem:[%s12820_s29 + $0x350] sm:$0xff]  ;;  %v9535_v41 = vld [vmem:[%s12820_s29 + $0x3c8] sm:$0xff] }
0x234c   : > { %7833 = vmatprep.subr.mxu0 %v6911_v38  ;;  %7904 = vmatprep.subr.mxu1 %v7039_v20  ;;  %v9519_v44 = vld [vmem:[%s12820_s29 + $0x348] sm:$0xff]  ;;  %v9534_v38 = vld [vmem:[%s12820_s29 + $0x3c0] sm:$0xff] }
0x234d   : > { %7834 = vmatpush2.msra.mxu0 %v6910_v39  ;;  %7905 = vmatpush2.msra.mxu1 %v7038_v23  ;;  %v7415_v20 = vpop.f32.mrf.mxu0  ;;  %v7486_v39 = vpop.f32.mrf.mxu1  ;;  %v9518_v23 = vld [vmem:[%s12820_s29 + $0x340] sm:$0xff] }
0x234e   : > { %7835 = vmatprep.subr.mxu0 %v6907_v35  ;;  %7906 = vmatprep.subr.mxu1 %v7035_v49  ;;  %v9533_v35 = vld [vmem:[%s12820_s29 + $0x3b8] sm:$0xff] }
0x234f   : > { %7836 = vmatpush2.msra.mxu0 %v6906_v12  ;;  %7907 = vmatpush2.msra.mxu1 %v7034_v11  ;;  %v9517_v49 = vld [vmem:[%s12820_s29 + $0x338] sm:$0xff]  ;;  %v9532_v12 = vld [vmem:[%s12820_s29 + $0x3b0] sm:$0xff]  ;;  %v7417_v11 = vpop.f32.mrf.mxu0 }
0x2350   : > { %7837 = vmatprep.subr.mxu0 %v6903_v52  ;;  %7908 = vmatprep.subr.mxu1 %v7031_v59  ;;  %v7488_v52 = vpop.f32.mrf.mxu1  ;;  %v9516_v59 = vld [vmem:[%s12820_s29 + $0x330] sm:$0xff] }
0x2351   : > { %7838 = vmatpush2.msra.mxu0 %v6902_v24  ;;  %7909 = vmatpush2.msra.mxu1 %v7030_v53  ;;  %v9531_v24 = vld [vmem:[%s12820_s29 + $0x3a8] sm:$0xff] }
0x2352   : > { %7840 = vmatmul.mubr.f32.vlgmr.msra.gmra.mxu0 %v14893_v33  ;;  %7911 = vmatmul.mubr.f32.vlgmr.msra.gmra.mxu1 %v14897_v37  ;;  %v9505_v33 = vld [vmem:[%s12820_s29 + $0x2d8] sm:$0xff] }
0x2353   : > { %9833 = vmatprep.subr.mxu0 %v9509_v42  ;;  %v9489_v37 = vld [vmem:[%s12820_s29 + $0x258] sm:$0xff]  ;;  %9868 = vmatprep.subr.mxu1 %v9541_v51 }
0x2354   : > { %9834 = vmatpush3.msra.mxu0 %v9493_v32  ;;  %9869 = vmatpush3.msra.mxu1 %v9525_v21  ;;  %v7966_v21 = vld [vmem:[%s12820_s29 + $0x78] sm:$0xff] }
0x2355   : > { %9835 = vmatprep.subr.mxu0 %v9508_v43  ;;  %9870 = vmatprep.subr.mxu1 %v9540_v14  ;;  %v7981_v14 = vld [vmem:[%s12820_s29 + $0xf0] sm:$0xff] }
0x2356   : > { %9836 = vmatpush3.msra.mxu0 %v9492_v58  ;;  %9871 = vmatpush3.msra.mxu1 %v9524_v22 }
0x2357   : > { %9837 = vmatprep.subr.mxu0 %v9507_v34  ;;  %9872 = vmatprep.subr.mxu1 %v9539_v36  ;;  %v7964_v36 = vld [vmem:[%s12820_s29 + $0x68] sm:$0xff] }
0x2358   : > { %9838 = vmatpush3.msra.mxu0 %v9491_v19  ;;  %9873 = vmatpush3.msra.mxu1 %v9523_v6  ;;  %v9515_v19 = vld [vmem:[%s12820_s29 + $0x328] sm:$0xff]  ;;  %v7979_v6 = vld [vmem:[%s12820_s29 + $0xe0] sm:$0xff] }
0x2359   : > { %9839 = vmatprep.subr.mxu0 %v9506_v50  ;;  %9874 = vmatprep.subr.mxu1 %v9538_v8  ;;  %v9530_v50 = vld [vmem:[%s12820_s29 + $0x3a0] sm:$0xff] }
0x235a   : > { %9840 = vmatpush3.msra.mxu0 %v9490_v29  ;;  %9875 = vmatpush3.msra.mxu1 %v9522_v4  ;;  %v9514_v29 = vld [vmem:[%s12820_s29 + $0x320] sm:$0xff]  ;;  %v7978_v4 = vld [vmem:[%s12820_s29 + $0xd8] sm:$0xff] }
0x235b   : > { %9841 = vmatprep.subr.mxu0 %v9505_v33  ;;  %9876 = vmatprep.subr.mxu1 %v9537_v45  ;;  %v9529_v33 = vld [vmem:[%s12820_s29 + $0x398] sm:$0xff]  ;;  %v7963_v8 = vld [vmem:[%s12820_s29 + $0x60] sm:$0xff] }
0x235c   : > { %9842 = vmatpush3.msra.mxu0 %v9489_v37  ;;  %9877 = vmatpush3.msra.mxu1 %v9521_v0  ;;  %v9513_v37 = vld [vmem:[%s12820_s29 + $0x318] sm:$0xff]  ;;  %v7977_v0 = vld [vmem:[%s12820_s29 + $0xd0] sm:$0xff] }
0x235d   : > { %9843 = vmatprep.subr.mxu0 %v9504_v3  ;;  %9878 = vmatprep.subr.mxu1 %v9536_v60  ;;  %v9528_v3 = vld [vmem:[%s12820_s29 + $0x390] sm:$0xff]  ;;  %v7962_v45 = vld [vmem:[%s12820_s29 + $0x58] sm:$0xff] }
0x235e   : > { %9844 = vmatpush3.msra.mxu0 %v9488_v1  ;;  %9879 = vmatpush3.msra.mxu1 %v9520_v61  ;;  %v9512_v1 = vld [vmem:[%s12820_s29 + $0x310] sm:$0xff]  ;;  %v7976_v61 = vld [vmem:[%s12820_s29 + $0xc8] sm:$0xff] }
0x235f   : > { %9845 = vmatprep.subr.mxu0 %v9503_v2  ;;  %9880 = vmatprep.subr.mxu1 %v9535_v41  ;;  %v9527_v2 = vld [vmem:[%s12820_s29 + $0x388] sm:$0xff]  ;;  %v7961_v60 = vld [vmem:[%s12820_s29 + $0x50] sm:$0xff] }
0x2360   : > { %9846 = vmatpush3.msra.mxu0 %v9487_v56  ;;  %9881 = vmatpush3.msra.mxu1 %v9519_v44  ;;  %v9511_v56 = vld [vmem:[%s12820_s29 + $0x308] sm:$0xff]  ;;  %v7975_v44 = vld [vmem:[%s12820_s29 + $0xc0] sm:$0xff] }
0x2361   : > { %9847 = vmatprep.subr.mxu0 %v9502_v57  ;;  %9882 = vmatprep.subr.mxu1 %v9534_v38  ;;  %v9526_v57 = vld [vmem:[%s12820_s29 + $0x380] sm:$0xff]  ;;  %v7960_v41 = vld [vmem:[%s12820_s29 + $0x48] sm:$0xff] }
0x2362   : > { %9848 = vmatpush3.msra.mxu0 %v9486_v9  ;;  %9883 = vmatpush3.msra.mxu1 %v9518_v23  ;;  %v9510_v9 = vld [vmem:[%s12820_s29 + $0x300] sm:$0xff]  ;;  %v7973_v23 = vld [vmem:[%s12820_s29 + $0xb0] sm:$0xff] }
0x2363   : > { %9849 = vmatprep.subr.mxu0 %v9501_v10  ;;  %9884 = vmatprep.subr.mxu1 %v9533_v35  ;;  %v8014_v10 = vld [vmem:[%s12820_s29 + $0x1f8] sm:$0xff]  ;;  %v7959_v38 = vld [vmem:[%s12820_s29 + $0x40] sm:$0xff]  ;;  %v7957_v35 = vld [vmem:[%s12820_s29 + $0x30] sm:$0xff] }
0x2364   : > { %9850 = vmatpush3.msra.mxu0 %v9485_v17  ;;  %9885 = vmatpush3.msra.mxu1 %v9517_v49  ;;  %v7487_v17 = vadd.f32 %v7486_v39, %v7415_v20  ;;  %v7974_v20 = vld [vmem:[%s12820_s29 + $0xb8] sm:$0xff]  ;;  %v7972_v49 = vld [vmem:[%s12820_s29 + $0xa8] sm:$0xff] }
0x2365   : > { %9851 = vmatprep.subr.mxu0 %v9500_v18  ;;  %9886 = vmatprep.subr.mxu1 %v9532_v12  ;;  %v7958_v39 = vld [vmem:[%s12820_s29 + $0x38] sm:$0xff]  ;;  %v7956_v12 = vld [vmem:[%s12820_s29 + $0x28] sm:$0xff] }
0x2366   : > { %9852 = vmatpush3.msra.mxu0 %v9484_v30  ;;  %9887 = vmatpush3.msra.mxu1 %v9516_v59  ;;  %v7970_v59 = vld [vmem:[%s12820_s29 + $0x98] sm:$0xff] }
0x2367   : > { %9853 = vmatprep.subr.mxu0 %v9499_v31  ;;  %9888 = vmatprep.subr.mxu1 %v9531_v24  ;;  %v7489_v31 = vadd.f32 %v7488_v52, %v7417_v11  ;;  %v7971_v11 = vld [vmem:[%s12820_s29 + $0xa0] sm:$0xff]  ;;  %v7954_v24 = vld [vmem:[%s12820_s29 + $0x18] sm:$0xff] }
0x2368   : > { %9854 = vmatpush3.msra.mxu0 %v9483_v46  ;;  %9889 = vmatpush3.msra.mxu1 %v9515_v19  ;;  %v7955_v52 = vld [vmem:[%s12820_s29 + $0x20] sm:$0xff] }
0x2369   : > { %9855 = vmatprep.subr.mxu0 %v9498_v47  ;;  %9890 = vmatprep.subr.mxu1 %v9530_v50  ;;  %v7967_v19 = vld [vmem:[%s12820_s29 + $0x80] sm:$0xff] }
0x236a   : > { %9856 = vmatpush3.msra.mxu0 %v9482_v54  ;;  %9891 = vmatpush3.msra.mxu1 %v9514_v29  ;;  %v7951_v50 = vld [vmem:[%s12820_s29] sm:$0xff] }
0x236b   : > { %9857 = vmatprep.subr.mxu0 %v9497_v55  ;;  %9892 = vmatprep.subr.mxu1 %v9529_v33  ;;  %v15104_v55 = vld [vmem:[%s15462_s5] sm:$0xf]  ;;  %s11763_s5 = scalar_lea.vmem %s11762_s4, 32 }
0x236c   : > { %9858 = vmatpush3.msra.mxu0 %v9481_v62  ;;  %9893 = vmatpush3.msra.mxu1 %v9513_v37  ;;  %p11765_p9 = scmp.lt.s32.totalorder %s11763_s5, %s11757_s1 }
0x236d   : > { %9859 = vmatprep.subr.mxu0 %v9496_v63  ;;  %9894 = vmatprep.subr.mxu1 %v9528_v3 }
0x236e   : > { %9860 = vmatpush3.msra.mxu0 %v9480_v15  ;;  %9895 = vmatpush3.msra.mxu1 %v9512_v1  ;;  %p11766_p4 = por %p11765_p9, %p11764_p3 }
0x236f   : > { %9861 = vmatprep.subr.mxu0 %v9495_v16  ;;  %9896 = vmatprep.subr.mxu1 %v9527_v2  ;;  %v7930_v16 = vrot.slane %v15104_v55, %v6814_v13  ;;  %v7965_v13 = vld [vmem:[%s12820_s29 + $0x70] sm:$0xff] }
0x2370   : > { %9862 = vmatpush3.msra.mxu0 %v9479_v25  ;;  %9897 = vmatpush3.msra.mxu1 %v9511_v56  ;;  %p11767_p5 = pnand %p11766_p4, %p11760_p2 }
0x2371   : > { %9863 = vmatprep.subr.mxu0 %v9494_v28  ;;  %9898 = vmatprep.subr.mxu1 %v9526_v57  ;;  %v7926_v28 = vrot.slane %v15104_v55, %v6810_v26  ;;  %v7980_v26 = vld [vmem:[%s12820_s29 + $0xe8] sm:$0xff] }
0x2372   : > { %9864 = vmatpush3.msra.mxu0 %v9478_v27  ;;  %9899 = vmatpush3.msra.mxu1 %v9510_v9 }
0x2373   : > { %9903 = vmatprep.subr.mxu0 %v7982_v7  ;;  %9938 = vmatprep.subr.mxu1 %v8014_v10  ;;  %v7938_v10 = vrot.slane %v15104_v55, %v6822_v5  ;;  %v7997_v5 = vld [vmem:[%s12820_s29 + $0x170] sm:$0xff] }
0x238e   : > { %v7557_v53 = vpop.f32.mrf.mxu0  ;;  %v7628_v42 = vpop.f32.mrf.mxu1 }
0x238f   : > { %v15087_v32 = vadd.f32 %v7628_v42, %v7557_v53  ;;  %v7969_v53 = vld [vmem:[%s12820_s29 + $0x90] sm:$0xff] }
0x2390   : > { %v7559_v43 = vpop.f32.mrf.mxu0  ;;  %v7630_v58 = vpop.f32.mrf.mxu1  ;;  %v7953_v42 = vld [vmem:[%s12820_s29 + $0x10] sm:$0xff] }
0x2391   : > { %v15089_v34 = vadd.f32 %v7630_v58, %v7559_v43  ;;  %v7968_v43 = vld [vmem:[%s12820_s29 + $0x88] sm:$0xff] }
0x2392   : > { %v7952_v58 = vld [vmem:[%s12820_s29 + $0x8] sm:$0xff] }
0x23d0   : > { %v7699_v18 = vpop.f32.mrf.mxu0  ;;  %v7770_v30 = vpop.f32.mrf.mxu1 }
0x23d1   : > { %v7700_v46 = vadd.f32 %v7699_v18, %v7487_v17  ;;  %v7934_v18 = vrot.slane %v15104_v55, %v6818_v48  ;;  %v7996_v48 = vld [vmem:[%s12820_s29 + $0x168] sm:$0xff]  ;;  %v7995_v55 = vld [vmem:[%s12820_s29 + $0x160] sm:$0xff] }
0x23d2   : > { %v7701_v47 = vpop.f32.mrf.mxu0  ;;  %v7772_v63 = vpop.f32.mrf.mxu1 }
0x23d3   : > { %v7771_v54 = vadd.f32 %v7770_v30, %v7700_v46  ;;  %v7702_v62 = vadd.f32 %v7701_v47, %v7489_v31  ;;  %v8013_v46 = vld [vmem:[%s12820_s29 + $0x1f0] sm:$0xff] }
0x23d5   : > { %v7773_v15 = vadd.f32 %v7772_v63, %v7702_v62  ;;  %v7917_v25 = vadd.f32 1.0, %v7771_v54  ;;  %v8011_v54 = vld [vmem:[%s12820_s29 + $0x1e0] sm:$0xff]  ;;  %v8010_v62 = vld [vmem:[%s12820_s29 + $0x1d8] sm:$0xff] }
0x23d6   : > { %v7994_v63 = vld [vmem:[%s12820_s29 + $0x158] sm:$0xff] }
0x23d7   : > { %v7918_v27 = vadd.f32 1.0, %v7773_v15  ;;  %v15112_v51 = vadd.f32 %v7926_v28, %v7917_v25  ;;  %v8009_v15 = vld [vmem:[%s12820_s29 + $0x1d0] sm:$0xff]  ;;  %v8008_v25 = vld [vmem:[%s12820_s29 + $0x1c8] sm:$0xff] }
0x23d8   : > { %v7992_v28 = vld [vmem:[%s12820_s29 + $0x148] sm:$0xff] }
0x23d9   : > { %v7944_v7 = vadd.f32 %v7930_v16, %v7918_v27  ;;  %v7947_v29 = vmul.f32 %v15112_v51, %v15112_v51  ;;  %v7993_v16 = vld [vmem:[%s12820_s29 + $0x150] sm:$0xff]  ;;  %v8007_v27 = vld [vmem:[%s12820_s29 + $0x1c0] sm:$0xff] }
0x23db   : > { %8144 = vmatprep.mubr.f32.mxu0 %v7944_v7  ;;  %v7948_v22 = vmul.f32 %v7944_v7, %v7944_v7  ;;  %v7991_v7 = vld [vmem:[%s12820_s29 + $0x140] sm:$0xff] }
0x23dc   : > { %8145 = vmatmul.mubr.f32.vlgmr.msra.gmra.mxu0 %v15112_v51  ;;  %v8006_v51 = vld [vmem:[%s12820_s29 + $0x1b8] sm:$0xff] }
0x23dd   : > { %9904 = vmatpush3.msra.mxu0 %v7966_v21  ;;  %8284 = vmatprep.mubr.f32.mxu0 %v7948_v22  ;;  %v7990_v21 = vld [vmem:[%s12820_s29 + $0x138] sm:$0xff]  ;;  %v7989_v22 = vld [vmem:[%s12820_s29 + $0x130] sm:$0xff] }
0x23de   : > { %9905 = vmatprep.subr.mxu0 %v7981_v14  ;;  %v8005_v14 = vld [vmem:[%s12820_s29 + $0x1b0] sm:$0xff] }
0x23df   : > { %9906 = vmatpush3.msra.mxu0 %v7965_v13  ;;  %v8004_v13 = vld [vmem:[%s12820_s29 + $0x1a8] sm:$0xff] }
0x23e0   : > { %9907 = vmatprep.subr.mxu0 %v7980_v26  ;;  %v7988_v26 = vld [vmem:[%s12820_s29 + $0x128] sm:$0xff] }
0x23e1   : > { %9908 = vmatpush3.msra.mxu0 %v7964_v36  ;;  %v8003_v36 = vld [vmem:[%s12820_s29 + $0x1a0] sm:$0xff] }
0x23e2   : > { %9909 = vmatprep.subr.mxu0 %v7979_v6  ;;  %v7987_v6 = vld [vmem:[%s12820_s29 + $0x120] sm:$0xff] }
0x23e3   : > { %9910 = vmatpush3.msra.mxu0 %v7963_v8  ;;  %v8002_v8 = vld [vmem:[%s12820_s29 + $0x198] sm:$0xff] }
0x23e4   : > { %9911 = vmatprep.subr.mxu0 %v7978_v4  ;;  %v7986_v4 = vld [vmem:[%s12820_s29 + $0x118] sm:$0xff] }
0x23e5   : > { %9912 = vmatpush3.msra.mxu0 %v7962_v45  ;;  %v8001_v45 = vld [vmem:[%s12820_s29 + $0x190] sm:$0xff] }
0x23e6   : > { %9913 = vmatprep.subr.mxu0 %v7977_v0  ;;  %v7985_v0 = vld [vmem:[%s12820_s29 + $0x110] sm:$0xff] }
0x23e7   : > { %9914 = vmatpush3.msra.mxu0 %v7961_v60  ;;  %v8000_v60 = vld [vmem:[%s12820_s29 + $0x188] sm:$0xff] }
0x23e8   : > { %9915 = vmatprep.subr.mxu0 %v7976_v61  ;;  %v7984_v61 = vld [vmem:[%s12820_s29 + $0x108] sm:$0xff] }
0x23e9   : > { %9916 = vmatpush3.msra.mxu0 %v7960_v41  ;;  %v7999_v41 = vld [vmem:[%s12820_s29 + $0x180] sm:$0xff] }
0x23ea   : > { %9917 = vmatprep.subr.mxu0 %v7975_v44  ;;  %v7983_v44 = vld [vmem:[%s12820_s29 + $0x100] sm:$0xff] }
0x23eb   : > { %9918 = vmatpush3.msra.mxu0 %v7959_v38 }
0x23ec   : > { %9919 = vmatprep.subr.mxu0 %v7974_v20 }
0x23ed   : > { %9920 = vmatpush3.msra.mxu0 %v7958_v39 }
0x23ee   : > { %9921 = vmatprep.subr.mxu0 %v7973_v23 }
0x23ef   : > { %9922 = vmatpush3.msra.mxu0 %v7957_v35 }
0x23f0   : > { %9923 = vmatprep.subr.mxu0 %v7972_v49 }
0x23f1   : > { %9924 = vmatpush3.msra.mxu0 %v7956_v12 }
0x23f2   : > { %9925 = vmatprep.subr.mxu0 %v7971_v11 }
0x23f3   : > { %9926 = vmatpush3.msra.mxu0 %v7955_v52 }
0x23f4   : > { %9927 = vmatprep.subr.mxu0 %v7970_v59 }
0x23f5   : > { %9928 = vmatpush3.msra.mxu0 %v7954_v24 }
0x23f6   : > { %9929 = vmatprep.subr.mxu0 %v7969_v53 }
0x23f7   : > { %9930 = vmatpush3.msra.mxu0 %v7953_v42 }
0x23f8   : > { %9931 = vmatprep.subr.mxu0 %v7968_v43 }
0x23f9   : > { %9932 = vmatpush3.msra.mxu0 %v7952_v58 }
0x23fa   : > { %9933 = vmatprep.subr.mxu0 %v7967_v19 }
0x23fb   : > { %9934 = vmatpush3.msra.mxu0 %v7951_v50  ;;  %v8361_v50 = vld [vmem:[#allocation26] sm:$0x1] }
0x23fc   : > { %8285 = vmatmul.mubr.f32.vlgmr.msra.gmra.mxu0 %v7947_v29 }
0x2412   : > { %v7841_v33 = vpop.f32.mrf.mxu0  ;;  %v7912_v37 = vpop.f32.mrf.mxu1 }
0x2413   : > { %v7842_v3 = vadd.f32 %v7841_v33, %v15087_v32 }
0x2414   : > { %v7843_v1 = vpop.f32.mrf.mxu0  ;;  %v7914_v57 = vpop.f32.mrf.mxu1 }
0x2415   : > { %v7913_v2 = vadd.f32 %v7912_v37, %v7842_v3  ;;  %v7844_v56 = vadd.f32 %v7843_v1, %v15089_v34  ;;  %v7998_v34 = vld [vmem:[%s12820_s29 + $0x178] sm:$0xff] }
0x2417   : > { %v7915_v9 = vadd.f32 %v7914_v57, %v7844_v56  ;;  %v7919_v17 = vadd.f32 1.0, %v7913_v2 }
0x2419   : > { %v7920_v32 = vadd.f32 1.0, %v7915_v9  ;;  %v15156_v31 = vadd.f32 %v7934_v18, %v7919_v17 }
0x241b   : > { %v7946_v30 = vadd.f32 %v7938_v10, %v7920_v32  ;;  %v7949_v38 = vmul.f32 %v15156_v31, %v15156_v31 }
0x241d   : > { %8214 = vmatprep.mubr.f32.mxu1 %v7946_v30  ;;  %v7950_v47 = vmul.f32 %v7946_v30, %v7946_v30 }
0x241e   : > { %8215 = vmatmul.mubr.f32.vlgmr.msra.gmra.mxu1 %v15156_v31 }
0x241f   : > { %9939 = vmatpush3.msra.mxu1 %v7998_v34  ;;  %8354 = vmatprep.mubr.f32.mxu1 %v7950_v47 }
0x2420   : > { %9940 = vmatprep.subr.mxu1 %v8013_v46 }
0x2421   : > { %9941 = vmatpush3.msra.mxu1 %v7997_v5 }
0x2422   : > { %9942 = vmatprep.subr.mxu1 %v8012_v40 }
0x2423   : > { %9943 = vmatpush3.msra.mxu1 %v7996_v48 }
0x2424   : > { %9944 = vmatprep.subr.mxu1 %v8011_v54 }
0x2425   : > { %9945 = vmatpush3.msra.mxu1 %v7995_v55 }
0x2426   : > { %9946 = vmatprep.subr.mxu1 %v8010_v62 }
0x2427   : > { %9947 = vmatpush3.msra.mxu1 %v7994_v63 }
0x2428   : > { %9948 = vmatprep.subr.mxu1 %v8009_v15 }
0x2429   : > { %9949 = vmatpush3.msra.mxu1 %v7993_v16 }
0x242a   : > { %9950 = vmatprep.subr.mxu1 %v8008_v25 }
0x242b   : > { %9951 = vmatpush3.msra.mxu1 %v7992_v28 }
0x242c   : > { %9952 = vmatprep.subr.mxu1 %v8007_v27 }
0x242d   : > { %9953 = vmatpush3.msra.mxu1 %v7991_v7 }
0x242e   : > { %9954 = vmatprep.subr.mxu1 %v8006_v51 }
0x242f   : > { %9955 = vmatpush3.msra.mxu1 %v7990_v21 }
0x2430   : > { %9956 = vmatprep.subr.mxu1 %v8005_v14 }
0x2431   : > { %9957 = vmatpush3.msra.mxu1 %v7989_v22 }
0x2432   : > { %9958 = vmatprep.subr.mxu1 %v8004_v13 }
0x2433   : > { %9959 = vmatpush3.msra.mxu1 %v7988_v26 }
0x2434   : > { %9960 = vmatprep.subr.mxu1 %v8003_v36 }
0x2435   : > { %9961 = vmatpush3.msra.mxu1 %v7987_v6 }
0x2436   : > { %9962 = vmatprep.subr.mxu1 %v8002_v8 }
0x2437   : > { %9963 = vmatpush3.msra.mxu1 %v7986_v4 }
0x2438   : > { %9964 = vmatprep.subr.mxu1 %v8001_v45 }
0x2439   : > { %9965 = vmatpush3.msra.mxu1 %v7985_v0 }
0x243a   : > { %9966 = vmatprep.subr.mxu1 %v8000_v60 }
0x243b   : > { %9967 = vmatpush3.msra.mxu1 %v7984_v61 }
0x243c   : > { %9968 = vmatprep.subr.mxu1 %v7999_v41 }
0x243d   : > { %9969 = vmatpush3.msra.mxu1 %v7983_v44 }
0x243e   : > { %8355 = vmatmul.mubr.f32.vlgmr.msra.gmra.mxu1 %v7949_v38 }
0x249c   : > { %v9865_v20 = vpop.f32.mrf.mxu0 }
0x249e   : > { %v9866_v23 = vpop.f32.mrf.mxu0 }
0x249f   : > { %v9867_v11 = vadd.f32 %v9866_v23, %v9865_v20 }
0x24bc   : > { %v9935_v49 = vpop.f32.mrf.mxu0 }
0x24be   : > { %v9936_v52 = vpop.f32.mrf.mxu0 }
0x24bf   : > { %v9937_v53 = vadd.f32 %v9936_v52, %v9935_v49 }
0x24de   : > { %v9900_v39 = vpop.f32.mrf.mxu1 }
0x24e0   : > { %v9901_v35 = vpop.f32.mrf.mxu1 }
0x24e1   : > { %v9902_v12 = vadd.f32 %v9901_v35, %v9900_v39 }
0x24e3   : > { %v8217_v59 = vadd.f32 %v9902_v12, %v9867_v11 }
0x24e5   : > { %v8287_v43 = vadd.f32 %v9937_v53, %v8217_v59 }
0x24fe   : > { %v9970_v24 = vpop.f32.mrf.mxu1 }
0x2500   : > { %v9971_v42 = vpop.f32.mrf.mxu1 }
0x2501   : > { %v9972_v58 = vadd.f32 %v9971_v42, %v9970_v24 }
0x2503   : > { %v8357_v19 = vadd.f32 %v9972_v58, %v8287_v43 }
0x2505   : > { %v8360_v29 = vadd.f32 1.0, %v8357_v19 }
0x2507   : > { %v8362_v33 = vadd.f32 %v8361_v50, %v8360_v29 }
0x2509   : > { %8364 = vst.msk [vmem:[%s13317_s28] sm:$0x1] %vm8363_vm2, %v8362_v33 }
0x250a   : > { %11770 = shalt.err (!%p11767_p5)
}
0x250b   : > { %s11771_s0 = scalar_lea.hbm %s8376_s15, 16  ;;  %s11775_s18 = scalar_lea.hbm %s12830_s25, 32 }
0x250c   : > { %p11772_p13 = scmp.ne.s32.totalorder %s8376_s15, %s11771_s0  ;;  %p11776_p12 = scmp.lt.s32.totalorder %s8376_s15, %s12830_s25 }
0x250d   : > { %p11777_p7 = scmp.lt.s32.totalorder %s11775_s18, %s11771_s0 }
0x250e   : > { %p11773_p6 = pnand %p11772_p13, %p15463_p0 }
0x250f   : > { %p11778_p8 = por %p11777_p7, %p11776_p12 }
0x2510   : > { %p11774_p10 = pneg %p11773_p6 }
0x2512   : > { %p11779_p11 = pnand %p11778_p8, %p11774_p10 }
0x2514   : > { %11782 = shalt.err (!%p11779_p11)
}
0x2515   : > { %10545 = dma.vmem_to_hbm [thread:$0]  (%p15463_p0), %s8379_s22, 16, %s8376_s15, %s8366_s8  }
0x2516 PF: > { %s15464_s5 = sld [smem:[#allocation86_spill]] }
0x2517   : > { %s15465_s3 = sld [smem:[#allocation84_spill]] }
0x2518   : > { %s15466_s28 = sld [smem:[#allocation89_spill]] }
0x251c   : > { %p10632_p1 = scmp.ge.s32.totalorder %s15464_s5, 2 }
0x251d   : > { %s8390_s1 = sand.u32 1, %s15465_s3  }
0x251e   : > { %p15467_p2 = scmp.ne.s32.totalorder %s15466_s28, 0  ;;  %s8391_s4 = scalar_lea.sflag [#allocation4], %s8390_s1 }
0x2520   : > { %p10597_p3 = pnand %p10632_p1, %p15467_p2 }
0x2522   : > { %p10598_p9 = pneg %p10597_p3 }
0x2524   : > { %12128 = dma.done.wait (%p10598_p9), %s8391_s4, 16  }
0x2525   : > { %12130 = vsyncadd (%p10598_p9), %s8391_s4, 4294967280  ;;  %s15468_s22 = sld [smem:[#allocation87_spill]]  ;;  %s15471_s15 = smov %s12137_s16 }
0x2526   : > { %s15469_s2 = sld [smem:[#allocation85_spill]] }
0x2527   : > { %s15470_s18 = sld [smem:[#allocation88_spill]] }
0x252b   : > { %p136_p4 = scmp.ge.s32.totalorder %s15468_s22, 4  }
0x252c   : > { %s15472_s16 = smov %s15469_s2 }
0x252d   :  { %138 = sbr.rel (!%p136_p4) target bundleno = 119 (0x77), region = 752 }
0x2532   :  { %8395 = vsyncpa [#allocation3], 1 }
0x2533   :  { %8397 = vsyncpa [#allocation3 + $0x1], 1 }
0x2534   :  { %8398 = vsyncpa [#allocation6], 1 }
0x2535   :  { %8399 = vsyncpa [#allocation9], 1 }
0x2536   :  { %8400 = vsyncpa [#allocation12], 1 }
0x2537   :  { %8401 = vsyncpa [#allocation15], 1 }
0x2538   :  { %8402 = vsyncpa [#allocation18], 1 }
0x2539   :  { %8403 = vsyncpa [#allocation21], 1 }
0x253a   :  { %8404 = vsyncpa [#allocation24], 1 }
0x253b   :  { %8405 = vsyncpa [#allocation27], 1 }
0x253c   :  { %8406 = vsyncpa [#allocation4], 1 }
0x253d   :  { %8408 = vsyncpa [#allocation4 + $0x1], 1 }

</bundles_post_ra>
